<compile_context>
chip_gen: v7x
topology: tpu7x:2x2x1
jax: 0.10.0
libtpu: 0.0.40
codegen_flags: <defaults>
</compile_context>

<pallas_src>
import jax
import jax.numpy as jnp
from jax.experimental import pallas as pl
from jax.experimental.pallas import tpu as pltpu


def _round_up(x, m):
    return (x + m - 1) // m * m


# ---------------------------------------------------------------------------
# Fused Pallas kernel: one (batch-block, layer) grid step.
# ---------------------------------------------------------------------------
def _gat_fused_kernel(feat_ref, adj_ref, w_ref, b_ref, a1_ref, b1_ref,
                      a2_ref, b2_ref, out_ref, feat_scr):
    # feat_ref: (BB*NPAD, DP) bf16    adj_ref: (BB, NPAD, NPAD) bf16
    # w_ref:   (L, DP, MP) bf16       b_ref:   (L, 1, MP) f32
    # a1_ref:  (MP, 2*HP) bf16        b1_ref:  (1, 2*HP) f32
    # a2_ref:  (H,) f32 SMEM          b2_ref:  (1,) f32 SMEM
    # out_ref: (BB*NPAD, MP) f32      feat_scr:(BB*NPAD, DP) bf16 (layer carry)
    BB, NPAD, _ = adj_ref.shape
    MP = out_ref.shape[1]
    DP = feat_scr.shape[1]
    HP = a1_ref.shape[1] // 2
    H = a2_ref.shape[0]              # real (unpadded) hidden size
    f32 = jnp.float32

    layer = pl.program_id(1)
    last = pl.num_programs(1) - 1

    # Layer 0: load the (padded) input features into the carried scratch.
    @pl.when(layer == 0)
    def _():
        feat_scr[...] = feat_ref[...]

    # h = W_l(feature): bf16 operands on the MXU, f32 accumulation.
    w_l = w_ref[layer]                                                 # (DP, MP)
    h = jnp.dot(feat_scr[...], w_l,
                preferred_element_type=f32) + b_ref[layer]             # (R, MP) f32
    h_bf = h.astype(jnp.bfloat16)

    # Fused attention projections (single 2*HP-wide MXU pass):
    #   uv[:, :HP]     = u = h @ A1_left^T  + b1
    #   uv[:, HP:2HP]  = v = h @ A1_right^T            (vt = v^T per graph)
    uv = jnp.dot(h_bf, a1_ref[...], preferred_element_type=f32) + b1_ref[...]

    b2 = b2_ref[0]

    for g in range(BB):
        r0 = g * NPAD
        u_g = uv[r0:r0 + NPAD, :HP]                       # (NPAD, HP) f32
        vt_g = uv[r0:r0 + NPAD, HP:2 * HP].T              # (HP, NPAD), one XLU xpose

        # e[i,j] = leakyrelu( sum_h relu(u[i,h] + v[j,h]) * a2[h] + b2 )
        # accumulated into one lane-dense (NPAD, NPAD) f32 buffer.
        e = jnp.zeros((NPAD, NPAD), f32)
        for hh in range(H):
            pre = u_g[:, hh:hh + 1] + vt_g[hh:hh + 1, :]  # (NPAD, NPAD)
            e = e + jnp.maximum(pre, 0.0) * a2_ref[hh]
        e = e + b2
        e = jnp.where(e > 0, e, 0.01 * e)                 # LeakyReLU(0.01)

        # mask_logits + softmax over the *flattened* N*N logits (torch dim=1).
        # Zero-padded adj entries become -1e30 -> exp underflows to exactly 0,
        # so the flattened normalization is unchanged by padding.
        adj_g = adj_ref[g].astype(f32)
        masked = e * adj_g + (1.0 - adj_g) * (-1e30)
        m = jnp.max(jnp.max(masked, axis=1, keepdims=True),
                    axis=0, keepdims=True)                # (1, 1)
        ex = jnp.exp(masked - m)
        denom = jnp.sum(jnp.sum(ex, axis=1, keepdims=True),
                        axis=0, keepdims=True)            # (1, 1)
        attn = ex * (1.0 / denom)                         # exact scalar divide

        # feature = attention.bmm(h): f32 attn / f32 h for numerical parity.
        nf = jnp.dot(attn, h[r0:r0 + NPAD, :], preferred_element_type=f32)

        @pl.when(layer == last)
        def _():
            out_ref[r0:r0 + NPAD, :] = nf                 # single HBM-facing store

        @pl.when(layer < last)
        def _():
            feat_scr[r0:r0 + NPAD, :MP] = nf.astype(feat_scr.dtype)
            if DP > MP:   # keep trailing carry columns clean for the next layer
                feat_scr[r0:r0 + NPAD, MP:] = jnp.zeros((NPAD, DP - MP),
                                                        feat_scr.dtype)
    # TODO(synk): nn.Dropout(gat_dropout) between layers is training-only; the
    # inference forward is identity, so it is omitted here.


# ---------------------------------------------------------------------------
# Wrapper: pad / stack parameters, single fused pallas_call, slice output.
# ---------------------------------------------------------------------------
def gat_forward(feature, adj, params):
    B, N, in_dim = feature.shape
    Ws = params["W"]
    L = len(Ws)
    M = Ws[0][0].shape[0]                  # mem_dim
    H = params["A1"].shape[0]              # hidden_size

    LANE = 128
    NPAD = _round_up(N, LANE)              # node axis lane-dense (j axis of adj/attn)
    MP = _round_up(M, LANE)                # projection / output slab width
    HP = _round_up(H, LANE)                # each attention-projection half
    DP = _round_up(max(in_dim, M), LANE)   # carried feature width

    # Block several graphs per grid step (fills MXU rows, amortizes per-step cost).
    BB = 1
    for cand in (8, 4, 2, 1):
        if B % cand == 0:
            BB = cand
            break

    f32, bf16 = jnp.float32, jnp.bfloat16

    # Stack + pad per-layer linear weights (W_l^T) and biases (kept VMEM-resident).
    w_stack = jnp.zeros((L, DP, MP), f32)
    b_stack = jnp.zeros((L, 1, MP), f32)
    for l, (W, b) in enumerate(Ws):
        din = W.shape[1]
        w_stack = w_stack.at[l, :din, :M].set(W.T.astype(f32))
        b_stack = b_stack.at[l, 0, :M].set(b.astype(f32))
    w_stack = w_stack.astype(bf16)

    # Attention MLP afcs[0], split-and-fused into one (MP, 2*HP) operand.
    A1 = params["A1"].astype(f32)                                     # (H, 2M)
    a1cat = jnp.zeros((MP, 2 * HP), f32)
    a1cat = a1cat.at[:M, :H].set(A1[:, :M].T)                         # u half
    a1cat = a1cat.at[:M, HP:HP + H].set(A1[:, M:].T)                  # v half
    a1cat = a1cat.astype(bf16)
    b1cat = jnp.zeros((1, 2 * HP), f32).at[0, :H].set(params["b1"].astype(f32))
    a2 = params["a2"].astype(f32).reshape(H)                          # -> SMEM
    b2 = params["b2"].astype(f32).reshape(1)                          # -> SMEM

    # bf16 feature carry/input slab and bf16 0-1 adjacency mask (exact for 0/1).
    feat_p = (jnp.zeros((B, NPAD, DP), bf16)
              .at[:, :N, :in_dim].set(feature.astype(bf16))
              .reshape(B * NPAD, DP))
    adj_p = jnp.zeros((B, NPAD, NPAD), bf16).at[:, :N, :N].set(adj.astype(bf16))

    out = pl.pallas_call(
        _gat_fused_kernel,
        out_shape=jax.ShapeDtypeStruct((B * NPAD, MP), f32),
        grid_spec=pltpu.PrefetchScalarGridSpec(
            num_scalar_prefetch=0,
            grid=(B // BB, L),                       # batch blocks outer, layers inner
            in_specs=[
                pl.BlockSpec((BB * NPAD, DP), lambda b, l: (b, 0)),      # features
                pl.BlockSpec((BB, NPAD, NPAD), lambda b, l: (b, 0, 0)),  # adjacency
                pl.BlockSpec((L, DP, MP), lambda b, l: (0, 0, 0)),       # W stack (resident)
                pl.BlockSpec((L, 1, MP), lambda b, l: (0, 0, 0)),        # b stack (resident)
                pl.BlockSpec((MP, 2 * HP), lambda b, l: (0, 0)),         # fused A1 (resident)
                pl.BlockSpec((1, 2 * HP), lambda b, l: (0, 0)),          # b1 (resident)
                pl.BlockSpec(memory_space=pltpu.MemorySpace.SMEM),       # a2 scalars
                pl.BlockSpec(memory_space=pltpu.MemorySpace.SMEM),       # b2 scalar
            ],
            out_specs=pl.BlockSpec((BB * NPAD, MP), lambda b, l: (b, 0)),
            scratch_shapes=[pltpu.VMEM((BB * NPAD, DP), bf16)],   # layer-carried feats
        ),
        compiler_params=pltpu.CompilerParams(
            dimension_semantics=("parallel", "arbitrary"),
            vmem_limit_bytes=32 * 1024 * 1024,
        ),
    )(feat_p, adj_p, w_stack, b_stack, a1cat, b1cat, a2, b2)

    # TODO(synk): for very large N, additionally tile the j axis with an online
    # (flash-style) softmax over the flattened N*N normalization so the (N, N)
    # buffers fit v7x's 64 MiB VMEM; at these sizes one block suffices.
    return out.reshape(B, NPAD, MP)[:, :N, :M]


# ---------------------------------------------------------------------------
# Pure-JAX reference (mirrors the PyTorch forward exactly)
# ---------------------------------------------------------------------------
def gat_ref(feature, adj, params):
    B, N, _ = feature.shape
    dmask = adj.reshape(B, -1)
    for (W, b) in params["W"]:
        h = feature @ W.T + b                                   # (B, N, M)
        hi = jnp.repeat(h, N, axis=1)                           # h.repeat(1,1,N).view
        hj = jnp.tile(h, (1, N, 1))                             # h.repeat(1,N,1)
        a_input = jnp.concatenate([hi, hj], axis=2)             # (B, N*N, 2M)
        z = jnp.maximum(a_input @ params["A1"].T + params["b1"], 0.0)
        e = (z @ params["a2"].T + params["b2"])[..., 0]         # (B, N*N)
        e = jnp.where(e > 0, e, 0.01 * e)
        logits = e * dmask + (1.0 - dmask) * (-1e30)
        attn = jax.nn.softmax(logits, axis=1).reshape(B, N, N)
        feature = attn @ h
    return feature


# ---------------------------------------------------------------------------
# Deterministic parameter construction (synthetic, torch-like uniform init)
# ---------------------------------------------------------------------------
def make_params(key, in_dim, hidden_size, mem_dim, num_layers):
    def linear(k, out_f, in_f):
        k1, k2 = jax.random.split(k)
        s = 1.0 / jnp.sqrt(in_f)
        w = jax.random.uniform(k1, (out_f, in_f), jnp.float32, -s, s)
        b = jax.random.uniform(k2, (out_f,), jnp.float32, -s, s)
        return w, b

    keys = jax.random.split(key, num_layers + 2)
    Ws = []
    for l in range(num_layers):
        din = in_dim if l == 0 else mem_dim
        Ws.append(linear(keys[l], mem_dim, din))
    A1, b1 = linear(keys[num_layers], hidden_size, 2 * mem_dim)
    a2, b2 = linear(keys[num_layers + 1], 1, hidden_size)
    return {"W": Ws, "A1": A1, "b1": b1, "a2": a2, "b2": b2}


if __name__ == "__main__":
    B, N = 2, 8
    in_dim, hidden_size, mem_dim, num_layers = 16, 16, 32, 2

    key = jax.random.PRNGKey(0)
    k_feat, k_adj, k_par = jax.random.split(key, 3)

    feature = jax.random.normal(k_feat, (B, N, in_dim), jnp.float32)
    adj = jax.random.bernoulli(k_adj, 0.5, (B, N, N)).astype(jnp.float32)
    adj = jnp.maximum(adj, jnp.eye(N, dtype=jnp.float32)[None])  # keep self-loops

    params = make_params(k_par, in_dim, hidden_size, mem_dim, num_layers)

    out = jax.block_until_ready(gat_forward(feature, adj, params))
    ref = jax.block_until_ready(gat_ref(feature, adj, params))

    assert out.shape == (B, N, mem_dim)
    # bf16 MXU operands / bf16 feature carry (f32 accumulation, f32 attn@h)
    # -> slightly relaxed tolerance.
    err = jnp.max(jnp.abs(out - ref))
    assert jnp.allclose(out, ref, rtol=2e-2, atol=2e-2), f"max abs err {err}"

    print("KERNEL_OK")
</pallas_src>

<mosaic_0001>
module attributes {stable_mosaic.version = 11 : i64} {
  func.func @_gat_fused_kernel(%arg0: i32, %arg1: i32, %arg2: memref<256x128xbf16, #tpu.memory_space<vmem>>, %arg3: memref<2x128x128xbf16, #tpu.memory_space<vmem>>, %arg4: memref<2x128x128xbf16, #tpu.memory_space<vmem>>, %arg5: memref<2x1x128xf32, #tpu.memory_space<vmem>>, %arg6: memref<128x256xbf16, #tpu.memory_space<vmem>>, %arg7: memref<1x256xf32, #tpu.memory_space<vmem>>, %arg8: memref<16xf32, #tpu.memory_space<smem>>, %arg9: memref<1xf32, #tpu.memory_space<smem>>, %arg10: memref<256x128xf32, #tpu.memory_space<vmem>>, %arg11: memref<256x128xbf16, #tpu.memory_space<vmem>>) attributes {dimension_semantics = [#tpu.dimension_semantics<parallel>, #tpu.dimension_semantics<arbitrary>], iteration_bounds = array<i64: 1, 2>, scalar_prefetch = 0 : i64, scratch_operands = 1 : i64, tpu.core_type = #tpu.core_type<tc>, window_params = [{transform_indices = @transform_0, window_bounds = array<i64: 256, 128>}, {transform_indices = @transform_1, window_bounds = array<i64: 2, 128, 128>}, {pipeline_mode = #tpu.pipeline_mode<synchronous>, transform_indices = @transform_2, window_bounds = array<i64: 2, 128, 128>}, {pipeline_mode = #tpu.pipeline_mode<synchronous>, transform_indices = @transform_3, window_bounds = array<i64: 2, 1, 128>}, {pipeline_mode = #tpu.pipeline_mode<synchronous>, transform_indices = @transform_4, window_bounds = array<i64: 128, 256>}, {pipeline_mode = #tpu.pipeline_mode<synchronous>, transform_indices = @transform_5, window_bounds = array<i64: 1, 256>}, {transform_indices = @transform_6, window_bounds = array<i64: 16>}, {transform_indices = @transform_7, window_bounds = array<i64: 1>}, {transform_indices = @transform_8, window_bounds = array<i64: 256, 128>}]} {
    %c0_i32 = arith.constant 0 : i32
    %0 = arith.cmpi eq, %arg1, %c0_i32 : i32
    %1 = arith.extui %0 : i1 to i32
    %c0_i32_0 = arith.constant 0 : i32
    %2 = arith.cmpi ne, %1, %c0_i32_0 : i32
    scf.if %2 {
      %c0_96 = arith.constant 0 : index
      %c0_97 = arith.constant 0 : index
      %458 = vector.load %arg2[%c0_96, %c0_97] : memref<256x128xbf16, #tpu.memory_space<vmem>>, vector<256x128xbf16>
      %c0_98 = arith.constant 0 : index
      %c0_99 = arith.constant 0 : index
      %459 = vector.load %arg11[%c0_98, %c0_99] : memref<256x128xbf16, #tpu.memory_space<vmem>>, vector<256x128xbf16>
      tpu.vector_store %arg11[%c0_98, %c0_99], %458 {strides = array<i32>} : memref<256x128xbf16, #tpu.memory_space<vmem>>, vector<256x128xbf16>,
    } else {
    }
    %3 = arith.index_cast %arg1 : i32 to index
    %c0 = arith.constant 0 : index
    %c0_1 = arith.constant 0 : index
    %4 = vector.load %arg4[%3, %c0, %c0_1] : memref<2x128x128xbf16, #tpu.memory_space<vmem>>, vector<1x128x128xbf16>
    %5 = vector.shape_cast %4 : vector<1x128x128xbf16> to vector<128x128xbf16>
    %c0_2 = arith.constant 0 : index
    %c0_3 = arith.constant 0 : index
    %6 = vector.load %arg11[%c0_2, %c0_3] : memref<256x128xbf16, #tpu.memory_space<vmem>>, vector<256x128xbf16>
    %cst = arith.constant dense<0.000000e+00> : vector<256x128xf32>
    %7 = tpu.matmul %6, %5, %cst {dimension_numbers = #tpu.dot_dimension_numbers<[1], [0], [0], [1], [0, 0, 1, 1], [], []>} : vector<256x128xbf16>, vector<128x128xbf16>, vector<256x128xf32> -> vector<256x128xf32>
    %8 = arith.index_cast %arg1 : i32 to index
    %c0_4 = arith.constant 0 : index
    %c0_5 = arith.constant 0 : index
    %9 = vector.load %arg5[%8, %c0_4, %c0_5] : memref<2x1x128xf32, #tpu.memory_space<vmem>>, vector<1x1x128xf32>
    %10 = vector.shape_cast %9 : vector<1x1x128xf32> to vector<1x128xf32>
    %11 = vector.broadcast %10 : vector<1x128xf32> to vector<256x128xf32>
    %12 = arith.addf %7, %11 : vector<256x128xf32>
    %13 = arith.truncf %12 : vector<256x128xf32> to vector<256x128xbf16>
    %c0_6 = arith.constant 0 : index
    %c0_7 = arith.constant 0 : index
    %14 = vector.load %arg6[%c0_6, %c0_7] : memref<128x256xbf16, #tpu.memory_space<vmem>>, vector<128x256xbf16>
    %cst_8 = arith.constant dense<0.000000e+00> : vector<256x256xf32>
    %15 = tpu.matmul %13, %14, %cst_8 {dimension_numbers = #tpu.dot_dimension_numbers<[1], [0], [0], [1], [0, 0, 1, 1], [], []>} : vector<256x128xbf16>, vector<128x256xbf16>, vector<256x256xf32> -> vector<256x256xf32>
    %c0_9 = arith.constant 0 : index
    %c0_10 = arith.constant 0 : index
    %16 = vector.load %arg7[%c0_9, %c0_10] : memref<1x256xf32, #tpu.memory_space<vmem>>, vector<1x256xf32>
    %17 = vector.broadcast %16 : vector<1x256xf32> to vector<256x256xf32>
    %18 = arith.addf %15, %17 : vector<256x256xf32>
    %c0_11 = arith.constant 0 : index
    %19 = memref.load %arg9[%c0_11] : memref<1xf32, #tpu.memory_space<smem>>
    %20 = vector.extract_strided_slice %18 {offsets = [0, 0], sizes = [128, 128], strides = [1, 1]} : vector<256x256xf32> to vector<128x128xf32>
    %21 = vector.extract_strided_slice %18 {offsets = [0, 128], sizes = [128, 128], strides = [1, 1]} : vector<256x256xf32> to vector<128x128xf32>
    %22 = tpu.transpose %21, [1, 0] : vector<128x128xf32> -> vector<128x128xf32>
    %cst_12 = arith.constant 0.000000e+00 : f32
    %23 = vector.broadcast %cst_12 : f32 to vector<128x128xf32>
    %24 = vector.extract_strided_slice %20 {offsets = [0, 0], sizes = [128, 1], strides = [1, 1]} : vector<128x128xf32> to vector<128x1xf32>
    %25 = vector.extract_strided_slice %22 {offsets = [0, 0], sizes = [1, 128], strides = [1, 1]} : vector<128x128xf32> to vector<1x128xf32>
    %26 = vector.broadcast %24 : vector<128x1xf32> to vector<128x128xf32>
    %27 = vector.broadcast %25 : vector<1x128xf32> to vector<128x128xf32>
    %28 = arith.addf %26, %27 : vector<128x128xf32>
    %cst_13 = arith.constant 0.000000e+00 : f32
    %29 = vector.broadcast %cst_13 : f32 to vector<128x128xf32>
    %30 = arith.maximumf %28, %29 : vector<128x128xf32>
    %c0_14 = arith.constant 0 : index
    %31 = memref.load %arg8[%c0_14] : memref<16xf32, #tpu.memory_space<smem>>
    %32 = vector.broadcast %31 : f32 to vector<128x128xf32>
    %33 = arith.mulf %30, %32 : vector<128x128xf32>
    %34 = arith.addf %23, %33 : vector<128x128xf32>
    %35 = vector.extract_strided_slice %20 {offsets = [0, 1], sizes = [128, 1], strides = [1, 1]} : vector<128x128xf32> to vector<128x1xf32>
    %36 = vector.extract_strided_slice %22 {offsets = [1, 0], sizes = [1, 128], strides = [1, 1]} : vector<128x128xf32> to vector<1x128xf32>
    %37 = vector.broadcast %35 : vector<128x1xf32> to vector<128x128xf32>
    %38 = vector.broadcast %36 : vector<1x128xf32> to vector<128x128xf32>
    %39 = arith.addf %37, %38 : vector<128x128xf32>
    %cst_15 = arith.constant 0.000000e+00 : f32
    %40 = vector.broadcast %cst_15 : f32 to vector<128x128xf32>
    %41 = arith.maximumf %39, %40 : vector<128x128xf32>
    %c1 = arith.constant 1 : index
    %42 = memref.load %arg8[%c1] : memref<16xf32, #tpu.memory_space<smem>>
    %43 = vector.broadcast %42 : f32 to vector<128x128xf32>
    %44 = arith.mulf %41, %43 : vector<128x128xf32>
    %45 = arith.addf %34, %44 : vector<128x128xf32>
    %46 = vector.extract_strided_slice %20 {offsets = [0, 2], sizes = [128, 1], strides = [1, 1]} : vector<128x128xf32> to vector<128x1xf32>
    %47 = vector.extract_strided_slice %22 {offsets = [2, 0], sizes = [1, 128], strides = [1, 1]} : vector<128x128xf32> to vector<1x128xf32>
    %48 = vector.broadcast %46 : vector<128x1xf32> to vector<128x128xf32>
    %49 = vector.broadcast %47 : vector<1x128xf32> to vector<128x128xf32>
    %50 = arith.addf %48, %49 : vector<128x128xf32>
    %cst_16 = arith.constant 0.000000e+00 : f32
    %51 = vector.broadcast %cst_16 : f32 to vector<128x128xf32>
    %52 = arith.maximumf %50, %51 : vector<128x128xf32>
    %c2 = arith.constant 2 : index
    %53 = memref.load %arg8[%c2] : memref<16xf32, #tpu.memory_space<smem>>
    %54 = vector.broadcast %53 : f32 to vector<128x128xf32>
    %55 = arith.mulf %52, %54 : vector<128x128xf32>
    %56 = arith.addf %45, %55 : vector<128x128xf32>
    %57 = vector.extract_strided_slice %20 {offsets = [0, 3], sizes = [128, 1], strides = [1, 1]} : vector<128x128xf32> to vector<128x1xf32>
    %58 = vector.extract_strided_slice %22 {offsets = [3, 0], sizes = [1, 128], strides = [1, 1]} : vector<128x128xf32> to vector<1x128xf32>
    %59 = vector.broadcast %57 : vector<128x1xf32> to vector<128x128xf32>
    %60 = vector.broadcast %58 : vector<1x128xf32> to vector<128x128xf32>
    %61 = arith.addf %59, %60 : vector<128x128xf32>
    %cst_17 = arith.constant 0.000000e+00 : f32
    %62 = vector.broadcast %cst_17 : f32 to vector<128x128xf32>
    %63 = arith.maximumf %61, %62 : vector<128x128xf32>
    %c3 = arith.constant 3 : index
    %64 = memref.load %arg8[%c3] : memref<16xf32, #tpu.memory_space<smem>>
    %65 = vector.broadcast %64 : f32 to vector<128x128xf32>
    %66 = arith.mulf %63, %65 : vector<128x128xf32>
    %67 = arith.addf %56, %66 : vector<128x128xf32>
    %68 = vector.extract_strided_slice %20 {offsets = [0, 4], sizes = [128, 1], strides = [1, 1]} : vector<128x128xf32> to vector<128x1xf32>
    %69 = vector.extract_strided_slice %22 {offsets = [4, 0], sizes = [1, 128], strides = [1, 1]} : vector<128x128xf32> to vector<1x128xf32>
    %70 = vector.broadcast %68 : vector<128x1xf32> to vector<128x128xf32>
    %71 = vector.broadcast %69 : vector<1x128xf32> to vector<128x128xf32>
    %72 = arith.addf %70, %71 : vector<128x128xf32>
    %cst_18 = arith.constant 0.000000e+00 : f32
    %73 = vector.broadcast %cst_18 : f32 to vector<128x128xf32>
    %74 = arith.maximumf %72, %73 : vector<128x128xf32>
    %c4 = arith.constant 4 : index
    %75 = memref.load %arg8[%c4] : memref<16xf32, #tpu.memory_space<smem>>
    %76 = vector.broadcast %75 : f32 to vector<128x128xf32>
    %77 = arith.mulf %74, %76 : vector<128x128xf32>
    %78 = arith.addf %67, %77 : vector<128x128xf32>
    %79 = vector.extract_strided_slice %20 {offsets = [0, 5], sizes = [128, 1], strides = [1, 1]} : vector<128x128xf32> to vector<128x1xf32>
    %80 = vector.extract_strided_slice %22 {offsets = [5, 0], sizes = [1, 128], strides = [1, 1]} : vector<128x128xf32> to vector<1x128xf32>
    %81 = vector.broadcast %79 : vector<128x1xf32> to vector<128x128xf32>
    %82 = vector.broadcast %80 : vector<1x128xf32> to vector<128x128xf32>
    %83 = arith.addf %81, %82 : vector<128x128xf32>
    %cst_19 = arith.constant 0.000000e+00 : f32
    %84 = vector.broadcast %cst_19 : f32 to vector<128x128xf32>
    %85 = arith.maximumf %83, %84 : vector<128x128xf32>
    %c5 = arith.constant 5 : index
    %86 = memref.load %arg8[%c5] : memref<16xf32, #tpu.memory_space<smem>>
    %87 = vector.broadcast %86 : f32 to vector<128x128xf32>
    %88 = arith.mulf %85, %87 : vector<128x128xf32>
    %89 = arith.addf %78, %88 : vector<128x128xf32>
    %90 = vector.extract_strided_slice %20 {offsets = [0, 6], sizes = [128, 1], strides = [1, 1]} : vector<128x128xf32> to vector<128x1xf32>
    %91 = vector.extract_strided_slice %22 {offsets = [6, 0], sizes = [1, 128], strides = [1, 1]} : vector<128x128xf32> to vector<1x128xf32>
    %92 = vector.broadcast %90 : vector<128x1xf32> to vector<128x128xf32>
    %93 = vector.broadcast %91 : vector<1x128xf32> to vector<128x128xf32>
    %94 = arith.addf %92, %93 : vector<128x128xf32>
    %cst_20 = arith.constant 0.000000e+00 : f32
    %95 = vector.broadcast %cst_20 : f32 to vector<128x128xf32>
    %96 = arith.maximumf %94, %95 : vector<128x128xf32>
    %c6 = arith.constant 6 : index
    %97 = memref.load %arg8[%c6] : memref<16xf32, #tpu.memory_space<smem>>
    %98 = vector.broadcast %97 : f32 to vector<128x128xf32>
    %99 = arith.mulf %96, %98 : vector<128x128xf32>
    %100 = arith.addf %89, %99 : vector<128x128xf32>
    %101 = vector.extract_strided_slice %20 {offsets = [0, 7], sizes = [128, 1], strides = [1, 1]} : vector<128x128xf32> to vector<128x1xf32>
    %102 = vector.extract_strided_slice %22 {offsets = [7, 0], sizes = [1, 128], strides = [1, 1]} : vector<128x128xf32> to vector<1x128xf32>
    %103 = vector.broadcast %101 : vector<128x1xf32> to vector<128x128xf32>
    %104 = vector.broadcast %102 : vector<1x128xf32> to vector<128x128xf32>
    %105 = arith.addf %103, %104 : vector<128x128xf32>
    %cst_21 = arith.constant 0.000000e+00 : f32
    %106 = vector.broadcast %cst_21 : f32 to vector<128x128xf32>
    %107 = arith.maximumf %105, %106 : vector<128x128xf32>
    %c7 = arith.constant 7 : index
    %108 = memref.load %arg8[%c7] : memref<16xf32, #tpu.memory_space<smem>>
    %109 = vector.broadcast %108 : f32 to vector<128x128xf32>
    %110 = arith.mulf %107, %109 : vector<128x128xf32>
    %111 = arith.addf %100, %110 : vector<128x128xf32>
    %112 = vector.extract_strided_slice %20 {offsets = [0, 8], sizes = [128, 1], strides = [1, 1]} : vector<128x128xf32> to vector<128x1xf32>
    %113 = vector.extract_strided_slice %22 {offsets = [8, 0], sizes = [1, 128], strides = [1, 1]} : vector<128x128xf32> to vector<1x128xf32>
    %114 = vector.broadcast %112 : vector<128x1xf32> to vector<128x128xf32>
    %115 = vector.broadcast %113 : vector<1x128xf32> to vector<128x128xf32>
    %116 = arith.addf %114, %115 : vector<128x128xf32>
    %cst_22 = arith.constant 0.000000e+00 : f32
    %117 = vector.broadcast %cst_22 : f32 to vector<128x128xf32>
    %118 = arith.maximumf %116, %117 : vector<128x128xf32>
    %c8 = arith.constant 8 : index
    %119 = memref.load %arg8[%c8] : memref<16xf32, #tpu.memory_space<smem>>
    %120 = vector.broadcast %119 : f32 to vector<128x128xf32>
    %121 = arith.mulf %118, %120 : vector<128x128xf32>
    %122 = arith.addf %111, %121 : vector<128x128xf32>
    %123 = vector.extract_strided_slice %20 {offsets = [0, 9], sizes = [128, 1], strides = [1, 1]} : vector<128x128xf32> to vector<128x1xf32>
    %124 = vector.extract_strided_slice %22 {offsets = [9, 0], sizes = [1, 128], strides = [1, 1]} : vector<128x128xf32> to vector<1x128xf32>
    %125 = vector.broadcast %123 : vector<128x1xf32> to vector<128x128xf32>
    %126 = vector.broadcast %124 : vector<1x128xf32> to vector<128x128xf32>
    %127 = arith.addf %125, %126 : vector<128x128xf32>
    %cst_23 = arith.constant 0.000000e+00 : f32
    %128 = vector.broadcast %cst_23 : f32 to vector<128x128xf32>
    %129 = arith.maximumf %127, %128 : vector<128x128xf32>
    %c9 = arith.constant 9 : index
    %130 = memref.load %arg8[%c9] : memref<16xf32, #tpu.memory_space<smem>>
    %131 = vector.broadcast %130 : f32 to vector<128x128xf32>
    %132 = arith.mulf %129, %131 : vector<128x128xf32>
    %133 = arith.addf %122, %132 : vector<128x128xf32>
    %134 = vector.extract_strided_slice %20 {offsets = [0, 10], sizes = [128, 1], strides = [1, 1]} : vector<128x128xf32> to vector<128x1xf32>
    %135 = vector.extract_strided_slice %22 {offsets = [10, 0], sizes = [1, 128], strides = [1, 1]} : vector<128x128xf32> to vector<1x128xf32>
    %136 = vector.broadcast %134 : vector<128x1xf32> to vector<128x128xf32>
    %137 = vector.broadcast %135 : vector<1x128xf32> to vector<128x128xf32>
    %138 = arith.addf %136, %137 : vector<128x128xf32>
    %cst_24 = arith.constant 0.000000e+00 : f32
    %139 = vector.broadcast %cst_24 : f32 to vector<128x128xf32>
    %140 = arith.maximumf %138, %139 : vector<128x128xf32>
    %c10 = arith.constant 10 : index
    %141 = memref.load %arg8[%c10] : memref<16xf32, #tpu.memory_space<smem>>
    %142 = vector.broadcast %141 : f32 to vector<128x128xf32>
    %143 = arith.mulf %140, %142 : vector<128x128xf32>
    %144 = arith.addf %133, %143 : vector<128x128xf32>
    %145 = vector.extract_strided_slice %20 {offsets = [0, 11], sizes = [128, 1], strides = [1, 1]} : vector<128x128xf32> to vector<128x1xf32>
    %146 = vector.extract_strided_slice %22 {offsets = [11, 0], sizes = [1, 128], strides = [1, 1]} : vector<128x128xf32> to vector<1x128xf32>
    %147 = vector.broadcast %145 : vector<128x1xf32> to vector<128x128xf32>
    %148 = vector.broadcast %146 : vector<1x128xf32> to vector<128x128xf32>
    %149 = arith.addf %147, %148 : vector<128x128xf32>
    %cst_25 = arith.constant 0.000000e+00 : f32
    %150 = vector.broadcast %cst_25 : f32 to vector<128x128xf32>
    %151 = arith.maximumf %149, %150 : vector<128x128xf32>
    %c11 = arith.constant 11 : index
    %152 = memref.load %arg8[%c11] : memref<16xf32, #tpu.memory_space<smem>>
    %153 = vector.broadcast %152 : f32 to vector<128x128xf32>
    %154 = arith.mulf %151, %153 : vector<128x128xf32>
    %155 = arith.addf %144, %154 : vector<128x128xf32>
    %156 = vector.extract_strided_slice %20 {offsets = [0, 12], sizes = [128, 1], strides = [1, 1]} : vector<128x128xf32> to vector<128x1xf32>
    %157 = vector.extract_strided_slice %22 {offsets = [12, 0], sizes = [1, 128], strides = [1, 1]} : vector<128x128xf32> to vector<1x128xf32>
    %158 = vector.broadcast %156 : vector<128x1xf32> to vector<128x128xf32>
    %159 = vector.broadcast %157 : vector<1x128xf32> to vector<128x128xf32>
    %160 = arith.addf %158, %159 : vector<128x128xf32>
    %cst_26 = arith.constant 0.000000e+00 : f32
    %161 = vector.broadcast %cst_26 : f32 to vector<128x128xf32>
    %162 = arith.maximumf %160, %161 : vector<128x128xf32>
    %c12 = arith.constant 12 : index
    %163 = memref.load %arg8[%c12] : memref<16xf32, #tpu.memory_space<smem>>
    %164 = vector.broadcast %163 : f32 to vector<128x128xf32>
    %165 = arith.mulf %162, %164 : vector<128x128xf32>
    %166 = arith.addf %155, %165 : vector<128x128xf32>
    %167 = vector.extract_strided_slice %20 {offsets = [0, 13], sizes = [128, 1], strides = [1, 1]} : vector<128x128xf32> to vector<128x1xf32>
    %168 = vector.extract_strided_slice %22 {offsets = [13, 0], sizes = [1, 128], strides = [1, 1]} : vector<128x128xf32> to vector<1x128xf32>
    %169 = vector.broadcast %167 : vector<128x1xf32> to vector<128x128xf32>
    %170 = vector.broadcast %168 : vector<1x128xf32> to vector<128x128xf32>
    %171 = arith.addf %169, %170 : vector<128x128xf32>
    %cst_27 = arith.constant 0.000000e+00 : f32
    %172 = vector.broadcast %cst_27 : f32 to vector<128x128xf32>
    %173 = arith.maximumf %171, %172 : vector<128x128xf32>
    %c13 = arith.constant 13 : index
    %174 = memref.load %arg8[%c13] : memref<16xf32, #tpu.memory_space<smem>>
    %175 = vector.broadcast %174 : f32 to vector<128x128xf32>
    %176 = arith.mulf %173, %175 : vector<128x128xf32>
    %177 = arith.addf %166, %176 : vector<128x128xf32>
    %178 = vector.extract_strided_slice %20 {offsets = [0, 14], sizes = [128, 1], strides = [1, 1]} : vector<128x128xf32> to vector<128x1xf32>
    %179 = vector.extract_strided_slice %22 {offsets = [14, 0], sizes = [1, 128], strides = [1, 1]} : vector<128x128xf32> to vector<1x128xf32>
    %180 = vector.broadcast %178 : vector<128x1xf32> to vector<128x128xf32>
    %181 = vector.broadcast %179 : vector<1x128xf32> to vector<128x128xf32>
    %182 = arith.addf %180, %181 : vector<128x128xf32>
    %cst_28 = arith.constant 0.000000e+00 : f32
    %183 = vector.broadcast %cst_28 : f32 to vector<128x128xf32>
    %184 = arith.maximumf %182, %183 : vector<128x128xf32>
    %c14 = arith.constant 14 : index
    %185 = memref.load %arg8[%c14] : memref<16xf32, #tpu.memory_space<smem>>
    %186 = vector.broadcast %185 : f32 to vector<128x128xf32>
    %187 = arith.mulf %184, %186 : vector<128x128xf32>
    %188 = arith.addf %177, %187 : vector<128x128xf32>
    %189 = vector.extract_strided_slice %20 {offsets = [0, 15], sizes = [128, 1], strides = [1, 1]} : vector<128x128xf32> to vector<128x1xf32>
    %190 = vector.extract_strided_slice %22 {offsets = [15, 0], sizes = [1, 128], strides = [1, 1]} : vector<128x128xf32> to vector<1x128xf32>
    %191 = vector.broadcast %189 : vector<128x1xf32> to vector<128x128xf32>
    %192 = vector.broadcast %190 : vector<1x128xf32> to vector<128x128xf32>
    %193 = arith.addf %191, %192 : vector<128x128xf32>
    %cst_29 = arith.constant 0.000000e+00 : f32
    %194 = vector.broadcast %cst_29 : f32 to vector<128x128xf32>
    %195 = arith.maximumf %193, %194 : vector<128x128xf32>
    %c15 = arith.constant 15 : index
    %196 = memref.load %arg8[%c15] : memref<16xf32, #tpu.memory_space<smem>>
    %197 = vector.broadcast %196 : f32 to vector<128x128xf32>
    %198 = arith.mulf %195, %197 : vector<128x128xf32>
    %199 = arith.addf %188, %198 : vector<128x128xf32>
    %200 = vector.broadcast %19 : f32 to vector<128x128xf32>
    %201 = arith.addf %199, %200 : vector<128x128xf32>
    %cst_30 = arith.constant 0.000000e+00 : f32
    %202 = vector.broadcast %cst_30 : f32 to vector<128x128xf32>
    %203 = arith.cmpf ogt, %201, %202 : vector<128x128xf32>
    %cst_31 = arith.constant 0.00999999977 : f32
    %204 = vector.broadcast %cst_31 : f32 to vector<128x128xf32>
    %205 = arith.mulf %204, %201 : vector<128x128xf32>
    %206 = arith.select %203, %201, %205 : vector<128x128xi1>, vector<128x128xf32>
    %c0_32 = arith.constant 0 : index
    %c0_33 = arith.constant 0 : index
    %c0_34 = arith.constant 0 : index
    %207 = vector.load %arg3[%c0_32, %c0_33, %c0_34] : memref<2x128x128xbf16, #tpu.memory_space<vmem>>, vector<1x128x128xbf16>
    %208 = vector.shape_cast %207 : vector<1x128x128xbf16> to vector<128x128xbf16>
    %209 = arith.extf %208 : vector<128x128xbf16> to vector<128x128xf32>
    %210 = arith.mulf %206, %209 : vector<128x128xf32>
    %cst_35 = arith.constant 1.000000e+00 : f32
    %211 = vector.broadcast %cst_35 : f32 to vector<128x128xf32>
    %212 = arith.subf %211, %209 : vector<128x128xf32>
    %cst_36 = arith.constant -1.000000e+30 : f32
    %213 = vector.broadcast %cst_36 : f32 to vector<128x128xf32>
    %214 = arith.mulf %212, %213 : vector<128x128xf32>
    %215 = arith.addf %210, %214 : vector<128x128xf32>
    %cst_37 = arith.constant dense<0xFF800000> : vector<128xf32>
    %216 = vector.multi_reduction <maximumf>, %215, %cst_37 [1] : vector<128x128xf32> to vector<128xf32>
    %217 = vector.shape_cast %216 : vector<128xf32> to vector<128x1xf32>
    %cst_38 = arith.constant dense<0xFF800000> : vector<1xf32>
    %218 = vector.multi_reduction <maximumf>, %217, %cst_38 [0] : vector<128x1xf32> to vector<1xf32>
    %219 = vector.shape_cast %218 : vector<1xf32> to vector<1x1xf32>
    %220 = vector.broadcast %219 : vector<1x1xf32> to vector<128x128xf32>
    %221 = arith.subf %215, %220 : vector<128x128xf32>
    %222 = math.exp %221 : vector<128x128xf32>
    %cst_39 = arith.constant dense<0.000000e+00> : vector<128xf32>
    %223 = vector.multi_reduction <add>, %222, %cst_39 [1] : vector<128x128xf32> to vector<128xf32>
    %224 = vector.shape_cast %223 : vector<128xf32> to vector<128x1xf32>
    %cst_40 = arith.constant dense<0.000000e+00> : vector<1xf32>
    %225 = vector.multi_reduction <add>, %224, %cst_40 [0] : vector<128x1xf32> to vector<1xf32>
    %226 = vector.shape_cast %225 : vector<1xf32> to vector<1x1xf32>
    %cst_41 = arith.constant 1.000000e+00 : f32
    %227 = vector.broadcast %cst_41 : f32 to vector<1x1xf32>
    %228 = arith.divf %227, %226 : vector<1x1xf32>
    %229 = vector.broadcast %228 : vector<1x1xf32> to vector<128x128xf32>
    %230 = arith.mulf %222, %229 : vector<128x128xf32>
    %231 = vector.extract_strided_slice %12 {offsets = [0, 0], sizes = [128, 128], strides = [1, 1]} : vector<256x128xf32> to vector<128x128xf32>
    %cst_42 = arith.constant dense<0.000000e+00> : vector<128x128xf32>
    %232 = tpu.matmul %230, %231, %cst_42 {dimension_numbers = #tpu.dot_dimension_numbers<[1], [0], [0], [1], [0, 0, 1, 1], [], []>} : vector<128x128xf32>, vector<128x128xf32>, vector<128x128xf32> -> vector<128x128xf32>
    %c1_i32 = arith.constant 1 : i32
    %233 = arith.cmpi eq, %arg1, %c1_i32 : i32
    %234 = arith.extui %233 : i1 to i32
    %c0_i32_43 = arith.constant 0 : i32
    %235 = arith.cmpi ne, %234, %c0_i32_43 : i32
    scf.if %235 {
      %c0_96 = arith.constant 0 : index
      %c0_97 = arith.constant 0 : index
      %458 = vector.load %arg10[%c0_96, %c0_97] : memref<256x128xf32, #tpu.memory_space<vmem>>, vector<128x128xf32>
      tpu.vector_store %arg10[%c0_96, %c0_97], %232 {strides = array<i32>} : memref<256x128xf32, #tpu.memory_space<vmem>>, vector<128x128xf32>,
    } else {
    }
    %c1_i32_44 = arith.constant 1 : i32
    %236 = arith.cmpi slt, %arg1, %c1_i32_44 : i32
    %237 = arith.extui %236 : i1 to i32
    %c0_i32_45 = arith.constant 0 : i32
    %238 = arith.cmpi ne, %237, %c0_i32_45 : i32
    scf.if %238 {
      %458 = arith.truncf %232 : vector<128x128xf32> to vector<128x128xbf16>
      %c0_96 = arith.constant 0 : index
      %c0_97 = arith.constant 0 : index
      %459 = vector.load %arg11[%c0_96, %c0_97] : memref<256x128xbf16, #tpu.memory_space<vmem>>, vector<128x128xbf16>
      tpu.vector_store %arg11[%c0_96, %c0_97], %458 {strides = array<i32>} : memref<256x128xbf16, #tpu.memory_space<vmem>>, vector<128x128xbf16>,
    } else {
    }
    %239 = vector.extract_strided_slice %18 {offsets = [128, 0], sizes = [128, 128], strides = [1, 1]} : vector<256x256xf32> to vector<128x128xf32>
    %240 = vector.extract_strided_slice %18 {offsets = [128, 128], sizes = [128, 128], strides = [1, 1]} : vector<256x256xf32> to vector<128x128xf32>
    %241 = tpu.transpose %240, [1, 0] : vector<128x128xf32> -> vector<128x128xf32>
    %cst_46 = arith.constant 0.000000e+00 : f32
    %242 = vector.broadcast %cst_46 : f32 to vector<128x128xf32>
    %243 = vector.extract_strided_slice %239 {offsets = [0, 0], sizes = [128, 1], strides = [1, 1]} : vector<128x128xf32> to vector<128x1xf32>
    %244 = vector.extract_strided_slice %241 {offsets = [0, 0], sizes = [1, 128], strides = [1, 1]} : vector<128x128xf32> to vector<1x128xf32>
    %245 = vector.broadcast %243 : vector<128x1xf32> to vector<128x128xf32>
    %246 = vector.broadcast %244 : vector<1x128xf32> to vector<128x128xf32>
    %247 = arith.addf %245, %246 : vector<128x128xf32>
    %cst_47 = arith.constant 0.000000e+00 : f32
    %248 = vector.broadcast %cst_47 : f32 to vector<128x128xf32>
    %249 = arith.maximumf %247, %248 : vector<128x128xf32>
    %c0_48 = arith.constant 0 : index
    %250 = memref.load %arg8[%c0_48] : memref<16xf32, #tpu.memory_space<smem>>
    %251 = vector.broadcast %250 : f32 to vector<128x128xf32>
    %252 = arith.mulf %249, %251 : vector<128x128xf32>
    %253 = arith.addf %242, %252 : vector<128x128xf32>
    %254 = vector.extract_strided_slice %239 {offsets = [0, 1], sizes = [128, 1], strides = [1, 1]} : vector<128x128xf32> to vector<128x1xf32>
    %255 = vector.extract_strided_slice %241 {offsets = [1, 0], sizes = [1, 128], strides = [1, 1]} : vector<128x128xf32> to vector<1x128xf32>
    %256 = vector.broadcast %254 : vector<128x1xf32> to vector<128x128xf32>
    %257 = vector.broadcast %255 : vector<1x128xf32> to vector<128x128xf32>
    %258 = arith.addf %256, %257 : vector<128x128xf32>
    %cst_49 = arith.constant 0.000000e+00 : f32
    %259 = vector.broadcast %cst_49 : f32 to vector<128x128xf32>
    %260 = arith.maximumf %258, %259 : vector<128x128xf32>
    %c1_50 = arith.constant 1 : index
    %261 = memref.load %arg8[%c1_50] : memref<16xf32, #tpu.memory_space<smem>>
    %262 = vector.broadcast %261 : f32 to vector<128x128xf32>
    %263 = arith.mulf %260, %262 : vector<128x128xf32>
    %264 = arith.addf %253, %263 : vector<128x128xf32>
    %265 = vector.extract_strided_slice %239 {offsets = [0, 2], sizes = [128, 1], strides = [1, 1]} : vector<128x128xf32> to vector<128x1xf32>
    %266 = vector.extract_strided_slice %241 {offsets = [2, 0], sizes = [1, 128], strides = [1, 1]} : vector<128x128xf32> to vector<1x128xf32>
    %267 = vector.broadcast %265 : vector<128x1xf32> to vector<128x128xf32>
    %268 = vector.broadcast %266 : vector<1x128xf32> to vector<128x128xf32>
    %269 = arith.addf %267, %268 : vector<128x128xf32>
    %cst_51 = arith.constant 0.000000e+00 : f32
    %270 = vector.broadcast %cst_51 : f32 to vector<128x128xf32>
    %271 = arith.maximumf %269, %270 : vector<128x128xf32>
    %c2_52 = arith.constant 2 : index
    %272 = memref.load %arg8[%c2_52] : memref<16xf32, #tpu.memory_space<smem>>
    %273 = vector.broadcast %272 : f32 to vector<128x128xf32>
    %274 = arith.mulf %271, %273 : vector<128x128xf32>
    %275 = arith.addf %264, %274 : vector<128x128xf32>
    %276 = vector.extract_strided_slice %239 {offsets = [0, 3], sizes = [128, 1], strides = [1, 1]} : vector<128x128xf32> to vector<128x1xf32>
    %277 = vector.extract_strided_slice %241 {offsets = [3, 0], sizes = [1, 128], strides = [1, 1]} : vector<128x128xf32> to vector<1x128xf32>
    %278 = vector.broadcast %276 : vector<128x1xf32> to vector<128x128xf32>
    %279 = vector.broadcast %277 : vector<1x128xf32> to vector<128x128xf32>
    %280 = arith.addf %278, %279 : vector<128x128xf32>
    %cst_53 = arith.constant 0.000000e+00 : f32
    %281 = vector.broadcast %cst_53 : f32 to vector<128x128xf32>
    %282 = arith.maximumf %280, %281 : vector<128x128xf32>
    %c3_54 = arith.constant 3 : index
    %283 = memref.load %arg8[%c3_54] : memref<16xf32, #tpu.memory_space<smem>>
    %284 = vector.broadcast %283 : f32 to vector<128x128xf32>
    %285 = arith.mulf %282, %284 : vector<128x128xf32>
    %286 = arith.addf %275, %285 : vector<128x128xf32>
    %287 = vector.extract_strided_slice %239 {offsets = [0, 4], sizes = [128, 1], strides = [1, 1]} : vector<128x128xf32> to vector<128x1xf32>
    %288 = vector.extract_strided_slice %241 {offsets = [4, 0], sizes = [1, 128], strides = [1, 1]} : vector<128x128xf32> to vector<1x128xf32>
    %289 = vector.broadcast %287 : vector<128x1xf32> to vector<128x128xf32>
    %290 = vector.broadcast %288 : vector<1x128xf32> to vector<128x128xf32>
    %291 = arith.addf %289, %290 : vector<128x128xf32>
    %cst_55 = arith.constant 0.000000e+00 : f32
    %292 = vector.broadcast %cst_55 : f32 to vector<128x128xf32>
    %293 = arith.maximumf %291, %292 : vector<128x128xf32>
    %c4_56 = arith.constant 4 : index
    %294 = memref.load %arg8[%c4_56] : memref<16xf32, #tpu.memory_space<smem>>
    %295 = vector.broadcast %294 : f32 to vector<128x128xf32>
    %296 = arith.mulf %293, %295 : vector<128x128xf32>
    %297 = arith.addf %286, %296 : vector<128x128xf32>
    %298 = vector.extract_strided_slice %239 {offsets = [0, 5], sizes = [128, 1], strides = [1, 1]} : vector<128x128xf32> to vector<128x1xf32>
    %299 = vector.extract_strided_slice %241 {offsets = [5, 0], sizes = [1, 128], strides = [1, 1]} : vector<128x128xf32> to vector<1x128xf32>
    %300 = vector.broadcast %298 : vector<128x1xf32> to vector<128x128xf32>
    %301 = vector.broadcast %299 : vector<1x128xf32> to vector<128x128xf32>
    %302 = arith.addf %300, %301 : vector<128x128xf32>
    %cst_57 = arith.constant 0.000000e+00 : f32
    %303 = vector.broadcast %cst_57 : f32 to vector<128x128xf32>
    %304 = arith.maximumf %302, %303 : vector<128x128xf32>
    %c5_58 = arith.constant 5 : index
    %305 = memref.load %arg8[%c5_58] : memref<16xf32, #tpu.memory_space<smem>>
    %306 = vector.broadcast %305 : f32 to vector<128x128xf32>
    %307 = arith.mulf %304, %306 : vector<128x128xf32>
    %308 = arith.addf %297, %307 : vector<128x128xf32>
    %309 = vector.extract_strided_slice %239 {offsets = [0, 6], sizes = [128, 1], strides = [1, 1]} : vector<128x128xf32> to vector<128x1xf32>
    %310 = vector.extract_strided_slice %241 {offsets = [6, 0], sizes = [1, 128], strides = [1, 1]} : vector<128x128xf32> to vector<1x128xf32>
    %311 = vector.broadcast %309 : vector<128x1xf32> to vector<128x128xf32>
    %312 = vector.broadcast %310 : vector<1x128xf32> to vector<128x128xf32>
    %313 = arith.addf %311, %312 : vector<128x128xf32>
    %cst_59 = arith.constant 0.000000e+00 : f32
    %314 = vector.broadcast %cst_59 : f32 to vector<128x128xf32>
    %315 = arith.maximumf %313, %314 : vector<128x128xf32>
    %c6_60 = arith.constant 6 : index
    %316 = memref.load %arg8[%c6_60] : memref<16xf32, #tpu.memory_space<smem>>
    %317 = vector.broadcast %316 : f32 to vector<128x128xf32>
    %318 = arith.mulf %315, %317 : vector<128x128xf32>
    %319 = arith.addf %308, %318 : vector<128x128xf32>
    %320 = vector.extract_strided_slice %239 {offsets = [0, 7], sizes = [128, 1], strides = [1, 1]} : vector<128x128xf32> to vector<128x1xf32>
    %321 = vector.extract_strided_slice %241 {offsets = [7, 0], sizes = [1, 128], strides = [1, 1]} : vector<128x128xf32> to vector<1x128xf32>
    %322 = vector.broadcast %320 : vector<128x1xf32> to vector<128x128xf32>
    %323 = vector.broadcast %321 : vector<1x128xf32> to vector<128x128xf32>
    %324 = arith.addf %322, %323 : vector<128x128xf32>
    %cst_61 = arith.constant 0.000000e+00 : f32
    %325 = vector.broadcast %cst_61 : f32 to vector<128x128xf32>
    %326 = arith.maximumf %324, %325 : vector<128x128xf32>
    %c7_62 = arith.constant 7 : index
    %327 = memref.load %arg8[%c7_62] : memref<16xf32, #tpu.memory_space<smem>>
    %328 = vector.broadcast %327 : f32 to vector<128x128xf32>
    %329 = arith.mulf %326, %328 : vector<128x128xf32>
    %330 = arith.addf %319, %329 : vector<128x128xf32>
    %331 = vector.extract_strided_slice %239 {offsets = [0, 8], sizes = [128, 1], strides = [1, 1]} : vector<128x128xf32> to vector<128x1xf32>
    %332 = vector.extract_strided_slice %241 {offsets = [8, 0], sizes = [1, 128], strides = [1, 1]} : vector<128x128xf32> to vector<1x128xf32>
    %333 = vector.broadcast %331 : vector<128x1xf32> to vector<128x128xf32>
    %334 = vector.broadcast %332 : vector<1x128xf32> to vector<128x128xf32>
    %335 = arith.addf %333, %334 : vector<128x128xf32>
    %cst_63 = arith.constant 0.000000e+00 : f32
    %336 = vector.broadcast %cst_63 : f32 to vector<128x128xf32>
    %337 = arith.maximumf %335, %336 : vector<128x128xf32>
    %c8_64 = arith.constant 8 : index
    %338 = memref.load %arg8[%c8_64] : memref<16xf32, #tpu.memory_space<smem>>
    %339 = vector.broadcast %338 : f32 to vector<128x128xf32>
    %340 = arith.mulf %337, %339 : vector<128x128xf32>
    %341 = arith.addf %330, %340 : vector<128x128xf32>
    %342 = vector.extract_strided_slice %239 {offsets = [0, 9], sizes = [128, 1], strides = [1, 1]} : vector<128x128xf32> to vector<128x1xf32>
    %343 = vector.extract_strided_slice %241 {offsets = [9, 0], sizes = [1, 128], strides = [1, 1]} : vector<128x128xf32> to vector<1x128xf32>
    %344 = vector.broadcast %342 : vector<128x1xf32> to vector<128x128xf32>
    %345 = vector.broadcast %343 : vector<1x128xf32> to vector<128x128xf32>
    %346 = arith.addf %344, %345 : vector<128x128xf32>
    %cst_65 = arith.constant 0.000000e+00 : f32
    %347 = vector.broadcast %cst_65 : f32 to vector<128x128xf32>
    %348 = arith.maximumf %346, %347 : vector<128x128xf32>
    %c9_66 = arith.constant 9 : index
    %349 = memref.load %arg8[%c9_66] : memref<16xf32, #tpu.memory_space<smem>>
    %350 = vector.broadcast %349 : f32 to vector<128x128xf32>
    %351 = arith.mulf %348, %350 : vector<128x128xf32>
    %352 = arith.addf %341, %351 : vector<128x128xf32>
    %353 = vector.extract_strided_slice %239 {offsets = [0, 10], sizes = [128, 1], strides = [1, 1]} : vector<128x128xf32> to vector<128x1xf32>
    %354 = vector.extract_strided_slice %241 {offsets = [10, 0], sizes = [1, 128], strides = [1, 1]} : vector<128x128xf32> to vector<1x128xf32>
    %355 = vector.broadcast %353 : vector<128x1xf32> to vector<128x128xf32>
    %356 = vector.broadcast %354 : vector<1x128xf32> to vector<128x128xf32>
    %357 = arith.addf %355, %356 : vector<128x128xf32>
    %cst_67 = arith.constant 0.000000e+00 : f32
    %358 = vector.broadcast %cst_67 : f32 to vector<128x128xf32>
    %359 = arith.maximumf %357, %358 : vector<128x128xf32>
    %c10_68 = arith.constant 10 : index
    %360 = memref.load %arg8[%c10_68] : memref<16xf32, #tpu.memory_space<smem>>
    %361 = vector.broadcast %360 : f32 to vector<128x128xf32>
    %362 = arith.mulf %359, %361 : vector<128x128xf32>
    %363 = arith.addf %352, %362 : vector<128x128xf32>
    %364 = vector.extract_strided_slice %239 {offsets = [0, 11], sizes = [128, 1], strides = [1, 1]} : vector<128x128xf32> to vector<128x1xf32>
    %365 = vector.extract_strided_slice %241 {offsets = [11, 0], sizes = [1, 128], strides = [1, 1]} : vector<128x128xf32> to vector<1x128xf32>
    %366 = vector.broadcast %364 : vector<128x1xf32> to vector<128x128xf32>
    %367 = vector.broadcast %365 : vector<1x128xf32> to vector<128x128xf32>
    %368 = arith.addf %366, %367 : vector<128x128xf32>
    %cst_69 = arith.constant 0.000000e+00 : f32
    %369 = vector.broadcast %cst_69 : f32 to vector<128x128xf32>
    %370 = arith.maximumf %368, %369 : vector<128x128xf32>
    %c11_70 = arith.constant 11 : index
    %371 = memref.load %arg8[%c11_70] : memref<16xf32, #tpu.memory_space<smem>>
    %372 = vector.broadcast %371 : f32 to vector<128x128xf32>
    %373 = arith.mulf %370, %372 : vector<128x128xf32>
    %374 = arith.addf %363, %373 : vector<128x128xf32>
    %375 = vector.extract_strided_slice %239 {offsets = [0, 12], sizes = [128, 1], strides = [1, 1]} : vector<128x128xf32> to vector<128x1xf32>
    %376 = vector.extract_strided_slice %241 {offsets = [12, 0], sizes = [1, 128], strides = [1, 1]} : vector<128x128xf32> to vector<1x128xf32>
    %377 = vector.broadcast %375 : vector<128x1xf32> to vector<128x128xf32>
    %378 = vector.broadcast %376 : vector<1x128xf32> to vector<128x128xf32>
    %379 = arith.addf %377, %378 : vector<128x128xf32>
    %cst_71 = arith.constant 0.000000e+00 : f32
    %380 = vector.broadcast %cst_71 : f32 to vector<128x128xf32>
    %381 = arith.maximumf %379, %380 : vector<128x128xf32>
    %c12_72 = arith.constant 12 : index
    %382 = memref.load %arg8[%c12_72] : memref<16xf32, #tpu.memory_space<smem>>
    %383 = vector.broadcast %382 : f32 to vector<128x128xf32>
    %384 = arith.mulf %381, %383 : vector<128x128xf32>
    %385 = arith.addf %374, %384 : vector<128x128xf32>
    %386 = vector.extract_strided_slice %239 {offsets = [0, 13], sizes = [128, 1], strides = [1, 1]} : vector<128x128xf32> to vector<128x1xf32>
    %387 = vector.extract_strided_slice %241 {offsets = [13, 0], sizes = [1, 128], strides = [1, 1]} : vector<128x128xf32> to vector<1x128xf32>
    %388 = vector.broadcast %386 : vector<128x1xf32> to vector<128x128xf32>
    %389 = vector.broadcast %387 : vector<1x128xf32> to vector<128x128xf32>
    %390 = arith.addf %388, %389 : vector<128x128xf32>
    %cst_73 = arith.constant 0.000000e+00 : f32
    %391 = vector.broadcast %cst_73 : f32 to vector<128x128xf32>
    %392 = arith.maximumf %390, %391 : vector<128x128xf32>
    %c13_74 = arith.constant 13 : index
    %393 = memref.load %arg8[%c13_74] : memref<16xf32, #tpu.memory_space<smem>>
    %394 = vector.broadcast %393 : f32 to vector<128x128xf32>
    %395 = arith.mulf %392, %394 : vector<128x128xf32>
    %396 = arith.addf %385, %395 : vector<128x128xf32>
    %397 = vector.extract_strided_slice %239 {offsets = [0, 14], sizes = [128, 1], strides = [1, 1]} : vector<128x128xf32> to vector<128x1xf32>
    %398 = vector.extract_strided_slice %241 {offsets = [14, 0], sizes = [1, 128], strides = [1, 1]} : vector<128x128xf32> to vector<1x128xf32>
    %399 = vector.broadcast %397 : vector<128x1xf32> to vector<128x128xf32>
    %400 = vector.broadcast %398 : vector<1x128xf32> to vector<128x128xf32>
    %401 = arith.addf %399, %400 : vector<128x128xf32>
    %cst_75 = arith.constant 0.000000e+00 : f32
    %402 = vector.broadcast %cst_75 : f32 to vector<128x128xf32>
    %403 = arith.maximumf %401, %402 : vector<128x128xf32>
    %c14_76 = arith.constant 14 : index
    %404 = memref.load %arg8[%c14_76] : memref<16xf32, #tpu.memory_space<smem>>
    %405 = vector.broadcast %404 : f32 to vector<128x128xf32>
    %406 = arith.mulf %403, %405 : vector<128x128xf32>
    %407 = arith.addf %396, %406 : vector<128x128xf32>
    %408 = vector.extract_strided_slice %239 {offsets = [0, 15], sizes = [128, 1], strides = [1, 1]} : vector<128x128xf32> to vector<128x1xf32>
    %409 = vector.extract_strided_slice %241 {offsets = [15, 0], sizes = [1, 128], strides = [1, 1]} : vector<128x128xf32> to vector<1x128xf32>
    %410 = vector.broadcast %408 : vector<128x1xf32> to vector<128x128xf32>
    %411 = vector.broadcast %409 : vector<1x128xf32> to vector<128x128xf32>
    %412 = arith.addf %410, %411 : vector<128x128xf32>
    %cst_77 = arith.constant 0.000000e+00 : f32
    %413 = vector.broadcast %cst_77 : f32 to vector<128x128xf32>
    %414 = arith.maximumf %412, %413 : vector<128x128xf32>
    %c15_78 = arith.constant 15 : index
    %415 = memref.load %arg8[%c15_78] : memref<16xf32, #tpu.memory_space<smem>>
    %416 = vector.broadcast %415 : f32 to vector<128x128xf32>
    %417 = arith.mulf %414, %416 : vector<128x128xf32>
    %418 = arith.addf %407, %417 : vector<128x128xf32>
    %419 = vector.broadcast %19 : f32 to vector<128x128xf32>
    %420 = arith.addf %418, %419 : vector<128x128xf32>
    %cst_79 = arith.constant 0.000000e+00 : f32
    %421 = vector.broadcast %cst_79 : f32 to vector<128x128xf32>
    %422 = arith.cmpf ogt, %420, %421 : vector<128x128xf32>
    %cst_80 = arith.constant 0.00999999977 : f32
    %423 = vector.broadcast %cst_80 : f32 to vector<128x128xf32>
    %424 = arith.mulf %423, %420 : vector<128x128xf32>
    %425 = arith.select %422, %420, %424 : vector<128x128xi1>, vector<128x128xf32>
    %c1_81 = arith.constant 1 : index
    %c0_82 = arith.constant 0 : index
    %c0_83 = arith.constant 0 : index
    %426 = vector.load %arg3[%c1_81, %c0_82, %c0_83] : memref<2x128x128xbf16, #tpu.memory_space<vmem>>, vector<1x128x128xbf16>
    %427 = vector.shape_cast %426 : vector<1x128x128xbf16> to vector<128x128xbf16>
    %428 = arith.extf %427 : vector<128x128xbf16> to vector<128x128xf32>
    %429 = arith.mulf %425, %428 : vector<128x128xf32>
    %cst_84 = arith.constant 1.000000e+00 : f32
    %430 = vector.broadcast %cst_84 : f32 to vector<128x128xf32>
    %431 = arith.subf %430, %428 : vector<128x128xf32>
    %cst_85 = arith.constant -1.000000e+30 : f32
    %432 = vector.broadcast %cst_85 : f32 to vector<128x128xf32>
    %433 = arith.mulf %431, %432 : vector<128x128xf32>
    %434 = arith.addf %429, %433 : vector<128x128xf32>
    %cst_86 = arith.constant dense<0xFF800000> : vector<128xf32>
    %435 = vector.multi_reduction <maximumf>, %434, %cst_86 [1] : vector<128x128xf32> to vector<128xf32>
    %436 = vector.shape_cast %435 : vector<128xf32> to vector<128x1xf32>
    %cst_87 = arith.constant dense<0xFF800000> : vector<1xf32>
    %437 = vector.multi_reduction <maximumf>, %436, %cst_87 [0] : vector<128x1xf32> to vector<1xf32>
    %438 = vector.shape_cast %437 : vector<1xf32> to vector<1x1xf32>
    %439 = vector.broadcast %438 : vector<1x1xf32> to vector<128x128xf32>
    %440 = arith.subf %434, %439 : vector<128x128xf32>
    %441 = math.exp %440 : vector<128x128xf32>
    %cst_88 = arith.constant dense<0.000000e+00> : vector<128xf32>
    %442 = vector.multi_reduction <add>, %441, %cst_88 [1] : vector<128x128xf32> to vector<128xf32>
    %443 = vector.shape_cast %442 : vector<128xf32> to vector<128x1xf32>
    %cst_89 = arith.constant dense<0.000000e+00> : vector<1xf32>
    %444 = vector.multi_reduction <add>, %443, %cst_89 [0] : vector<128x1xf32> to vector<1xf32>
    %445 = vector.shape_cast %444 : vector<1xf32> to vector<1x1xf32>
    %cst_90 = arith.constant 1.000000e+00 : f32
    %446 = vector.broadcast %cst_90 : f32 to vector<1x1xf32>
    %447 = arith.divf %446, %445 : vector<1x1xf32>
    %448 = vector.broadcast %447 : vector<1x1xf32> to vector<128x128xf32>
    %449 = arith.mulf %441, %448 : vector<128x128xf32>
    %450 = vector.extract_strided_slice %12 {offsets = [128, 0], sizes = [128, 128], strides = [1, 1]} : vector<256x128xf32> to vector<128x128xf32>
    %cst_91 = arith.constant dense<0.000000e+00> : vector<128x128xf32>
    %451 = tpu.matmul %449, %450, %cst_91 {dimension_numbers = #tpu.dot_dimension_numbers<[1], [0], [0], [1], [0, 0, 1, 1], [], []>} : vector<128x128xf32>, vector<128x128xf32>, vector<128x128xf32> -> vector<128x128xf32>
    %c1_i32_92 = arith.constant 1 : i32
    %452 = arith.cmpi eq, %arg1, %c1_i32_92 : i32
    %453 = arith.extui %452 : i1 to i32
    %c0_i32_93 = arith.constant 0 : i32
    %454 = arith.cmpi ne, %453, %c0_i32_93 : i32
    scf.if %454 {
      %c128 = arith.constant 128 : index
      %c0_96 = arith.constant 0 : index
      %458 = vector.load %arg10[%c128, %c0_96] : memref<256x128xf32, #tpu.memory_space<vmem>>, vector<128x128xf32>
      tpu.vector_store %arg10[%c128, %c0_96], %451 {strides = array<i32>} : memref<256x128xf32, #tpu.memory_space<vmem>>, vector<128x128xf32>,
    } else {
    }
    %c1_i32_94 = arith.constant 1 : i32
    %455 = arith.cmpi slt, %arg1, %c1_i32_94 : i32
    %456 = arith.extui %455 : i1 to i32
    %c0_i32_95 = arith.constant 0 : i32
    %457 = arith.cmpi ne, %456, %c0_i32_95 : i32
    scf.if %457 {
      %458 = arith.truncf %451 : vector<128x128xf32> to vector<128x128xbf16>
      %c128 = arith.constant 128 : index
      %c0_96 = arith.constant 0 : index
      %459 = vector.load %arg11[%c128, %c0_96] : memref<256x128xbf16, #tpu.memory_space<vmem>>, vector<128x128xbf16>
      tpu.vector_store %arg11[%c128, %c0_96], %458 {strides = array<i32>} : memref<256x128xbf16, #tpu.memory_space<vmem>>, vector<128x128xbf16>,
    } else {
    }
    return
  }
  func.func @transform_0(%arg0: i32, %arg1: i32) -> (i32, i32) {
    %c0_i32 = arith.constant 0 : i32
    %c0_i32_0 = arith.constant 0 : i32
    return %arg0, %c0_i32 : i32, i32
  }
  func.func @transform_1(%arg0: i32, %arg1: i32) -> (i32, i32, i32) {
    %c0_i32 = arith.constant 0 : i32
    %c0_i32_0 = arith.constant 0 : i32
    %c0_i32_1 = arith.constant 0 : i32
    return %arg0, %c0_i32, %c0_i32_0 : i32, i32, i32
  }
  func.func @transform_2(%arg0: i32, %arg1: i32) -> (i32, i32, i32) {
    %c0_i32 = arith.constant 0 : i32
    %c0_i32_0 = arith.constant 0 : i32
    %c0_i32_1 = arith.constant 0 : i32
    %c0_i32_2 = arith.constant 0 : i32
    return %c0_i32, %c0_i32_0, %c0_i32_1 : i32, i32, i32
  }
  func.func @transform_3(%arg0: i32, %arg1: i32) -> (i32, i32, i32) {
    %c0_i32 = arith.constant 0 : i32
    %c0_i32_0 = arith.constant 0 : i32
    %c0_i32_1 = arith.constant 0 : i32
    %c0_i32_2 = arith.constant 0 : i32
    return %c0_i32, %c0_i32_0, %c0_i32_1 : i32, i32, i32
  }
  func.func @transform_4(%arg0: i32, %arg1: i32) -> (i32, i32) {
    %c0_i32 = arith.constant 0 : i32
    %c0_i32_0 = arith.constant 0 : i32
    %c0_i32_1 = arith.constant 0 : i32
    return %c0_i32, %c0_i32_0 : i32, i32
  }
  func.func @transform_5(%arg0: i32, %arg1: i32) -> (i32, i32) {
    %c0_i32 = arith.constant 0 : i32
    %c0_i32_0 = arith.constant 0 : i32
    %c0_i32_1 = arith.constant 0 : i32
    return %c0_i32, %c0_i32_0 : i32, i32
  }
  func.func @transform_6(%arg0: i32, %arg1: i32) -> i32 {
    %c0_i32 = arith.constant 0 : i32
    %c0_i32_0 = arith.constant 0 : i32
    return %c0_i32 : i32
  }
  func.func @transform_7(%arg0: i32, %arg1: i32) -> i32 {
    %c0_i32 = arith.constant 0 : i32
    %c0_i32_0 = arith.constant 0 : i32
    return %c0_i32 : i32
  }
  func.func @transform_8(%arg0: i32, %arg1: i32) -> (i32, i32) {
    %c0_i32 = arith.constant 0 : i32
    %c0_i32_0 = arith.constant 0 : i32
    return %arg0, %c0_i32 : i32, i32
  }
}

</mosaic_0001>

<bundles_post_ra>
// kernel: tpu_custom_call.1
= control target key start
LH: loop header
LB: loop body
LE: loop exit
PB: predicated region body
PF: predicated region fallthrough
CT: control target
= control target key end

     0   :  { %s12503_s0 = inlined_call_operand.hbm [shape: bf16[256,128], index: 0, kind: input, shape index: {}]   ;;  %s12504_s1 = inlined_call_operand.hbm [shape: bf16[2,128,128], index: 1, kind: input, shape index: {}]   ;;  %s12505_s2 = inlined_call_operand.hbm [shape: bf16[2,128,128], index: 2, kind: input, shape index: {}]   ;;  %s12506_s3 = inlined_call_operand.vmem [shape: f32[2,1,128], index: 3, kind: input, shape index: {}]   ;;  %s12507_s4 = inlined_call_operand.hbm [shape: bf16[128,256], index: 4, kind: input, shape index: {}]   ;;  %s12508_s5 = inlined_call_operand.vmem [shape: f32[1,256], index: 5, kind: input, shape index: {}]   ;;  %s12509_s6 = inlined_call_operand.vmem [shape: f32[16], index: 6, kind: input, shape index: {}]   ;;  %s12510_s7 = inlined_call_operand.<no memory space> [shape: f32[1], index: 7, kind: input, shape index: {}]   ;;  %s12511_s8 = inlined_call_operand.hbm [shape: f32[256,128], index: 8, kind: output, shape index: {}]  }
   0x1   :  { %13 = sst [smem:[#allocation3]] %s12510_s7 }
   0x2   :  { %14 = vsyncpa [#allocation5], 0 }
   0x3   :  { %15 = vsyncpa [#allocation9], 0 }
   0x4   :  { %16 = vsyncpa [#allocation12], 0 }
   0x5   :  { %17 = vsyncpa [#allocation7], 0 }
   0x6   :  { %18 = vsyncpa [#allocation6], 0  ;;  %s7885_s29 = smov 0   ;;  %s7887_s30 = smov 0  }
   0x7   :  { %s7889_s9 = smov 0  }
   0x8 LB: > { %s12515_s7 = sadd.s32 4294967295, %s7807_s9   ;;  %p6631_p0 = scmp.ge.s32.totalorder %s7807_s9, 1  ;;  %s7807_s9 = sphi %s7889_s9, %s24_s9   ;;  %s7803_s30 = sphi %s7887_s30, %s13597_s30   ;;  %s7799_s29 = sphi %s7885_s29, %s13596_s29  }
   0x9   : > { %p245_p1 = scmp.lt.s32.totalorder %s7807_s9, 3  ;;  %p7905_p2 = scmp.eq.s32.totalorder %s12515_s7, 0 }
   0xa   : > { %s7809_s12 = smov [#allocation8]   ;;  %s33_s15 = sadd.s32 1, %s7803_s30 }
   0xb   : > { %s12715_s10 = scalar_select %p7905_p2, 1, 0 }
   0xc   : > { %p7909_p3 = pnand %p6631_p0, %p245_p1  ;;  %s277_s13 = sshll.u32 %s7809_s12, 4  ;;  %s7913_s13 = int_to_ptr.vmem [resolvable:$true] %s277_s13 }
   0xd   : > { %p7924_p6 = scmp.ge.s32.totalorder %s33_s15, 2  ;;  %s7810_s17 = smov [#allocation4]  }
   0xe   : > { %s12716_s11 = scalar_select %p7909_p3, 1, 0 }
   0xf   : > { %p7140_p4 = pneg %p7909_p3  ;;  %s260_s18 = sshll.u32 %s7810_s17, 4  ;;  %s261_s18 = int_to_ptr.vmem [resolvable:$true] %s260_s18 }
  0x10   : > { %s7612_s21 = scalar_lea.hbm %s12504_s1, 2048 }
  0x11   : > { %p7919_p5 = pnand %p7905_p2, %p7140_p4  ;;  %p7613_p7 = scmp.ne.s32.totalorder %s12504_s1, %s7612_s21 }
  0x12   : > { %p7619_p11 = scmp.lt.u32.totalorder %s7612_s21, %s12504_s1 }
  0x13   : > { %p7936_p8 = pneg %p7919_p5 }
  0x15   : > { %p7615_p9 = pnand %p7936_p8, %p7613_p7 }
  0x17   : > { %p7616_p10 = pneg %p7615_p9 }
  0x19   : > { %p7621_p12 = pnand %p7619_p11, %p7616_p10 }
  0x1b   : > { %7624 = shalt.err (!%p7621_p12)
}
  0x1c   : > { %s7625_s27 = scalar_lea.vmem %s7913_s13, 2048  ;;  %p7633_p4 = scmp.lt.s32.totalorder %s7913_s13, %s7913_s13 }
  0x1d   : > { %p7626_p13 = scmp.ne.s32.totalorder %s7913_s13, %s7625_s27  ;;  %p7634_p2 = scmp.lt.s32.totalorder %s7625_s27, %s7625_s27 }
  0x1f   : > { %p7628_p0 = pnand %p7626_p13, %p7936_p8  ;;  %p7635_p7 = por %p7634_p2, %p7633_p4 }
  0x21   : > { %p7629_p1 = pneg %p7628_p0 }
  0x23   : > { %p7636_p9 = pnand %p7635_p7, %p7629_p1 }
  0x25   : > { %7639 = shalt.err (!%p7636_p9)
}
  0x26   : > { %s7811_s28 = smov 64   ;;  %s7812_s12 = smov 4  }
  0x27   : > { %7146 = dma.hbm_to_vmem [thread:$0]  (!%p7919_p5), %s12504_s1, 2048, %s7913_s13, [#allocation9], %s7811_s28, %s7811_s28, %s7812_s12  }
  0x28   : > { %s13599_s15 = smov (%p7924_p6, %s33_s15), 0  ;;  %s7640_s22 = scalar_lea.hbm %s12503_s0, 2048 }
  0x29   : > { %p7641_p2 = scmp.ne.s32.totalorder %s12503_s0, %s7640_s22  ;;  %p7647_p12 = scmp.lt.u32.totalorder %s7640_s22, %s12503_s0 }
  0x2b   : > { %p7643_p10 = pnand %p7641_p2, %p7936_p8 }
  0x2d   : > { %p7644_p11 = pneg %p7643_p10 }
  0x2f   : > { %p7649_p13 = pnand %p7647_p12, %p7644_p11 }
  0x31   : > { %7652 = shalt.err (!%p7649_p13)
}
  0x32   : > { %s7653_s13 = scalar_lea.vmem %s261_s18, 2048  ;;  %p7661_p4 = scmp.lt.s32.totalorder %s261_s18, %s261_s18 }
  0x33   : > { %p7654_p6 = scmp.ne.s32.totalorder %s261_s18, %s7653_s13  ;;  %p7662_p7 = scmp.lt.s32.totalorder %s7653_s13, %s7653_s13 }
  0x35   : > { %p7656_p0 = pnand %p7654_p6, %p7936_p8  ;;  %p7663_p9 = por %p7662_p7, %p7661_p4 }
  0x37   : > { %p7657_p1 = pneg %p7656_p0 }
  0x39   : > { %p7664_p3 = pnand %p7663_p9, %p7657_p1 }
  0x3b   : > { %7667 = shalt.err (!%p7664_p3)
}
  0x3c   : > { %7143 = dma.hbm_to_vmem [thread:$0]  (!%p7919_p5), %s12503_s0, 2048, %s261_s18, [#allocation5], %s7811_s28, %s7811_s28, %s7812_s12  }
  0x3d   : > { %s7813_s19 = smov [#allocation10]   ;;  %s7814_s21 = smov [#allocation11]  }
  0x3e   : > { %s290_s20 = sshll.u32 %s7813_s19, 4  ;;  %s306_s22 = sshll.u32 %s7814_s21, 4  ;;  %s291_s20 = int_to_ptr.vmem [resolvable:$true] %s290_s20  ;;  %s307_s22 = int_to_ptr.vmem [resolvable:$true] %s306_s22 }
  0x3f   : > { %s7668_s26 = scalar_lea.hbm %s12505_s2, 2048 }
  0x40   : > { %p7669_p3 = scmp.ne.s32.totalorder %s12505_s2, %s7668_s26  ;;  %p7675_p11 = scmp.lt.u32.totalorder %s7668_s26, %s12505_s2 }
  0x42   : > { %p7671_p2 = pnand %p7669_p3, %p7936_p8 }
  0x44   : > { %p7672_p10 = pneg %p7671_p2 }
  0x46   : > { %p7677_p12 = pnand %p7675_p11, %p7672_p10 }
  0x48   : > { %7680 = shalt.err (!%p7677_p12)
}
  0x49   : > { %s7681_s18 = scalar_lea.vmem %s291_s20, 2048  ;;  %p7689_p1 = scmp.lt.s32.totalorder %s291_s20, %s291_s20 }
  0x4a   : > { %p7682_p13 = scmp.ne.s32.totalorder %s291_s20, %s7681_s18  ;;  %p7690_p4 = scmp.lt.s32.totalorder %s7681_s18, %s7681_s18 }
  0x4c   : > { %p7684_p6 = pnand %p7682_p13, %p7936_p8  ;;  %p7691_p7 = por %p7690_p4, %p7689_p1 }
  0x4e   : > { %p7685_p0 = pneg %p7684_p6 }
  0x50   : > { %p7692_p9 = pnand %p7691_p7, %p7685_p0 }
  0x52   : > { %7695 = shalt.err (!%p7692_p9)
}
  0x53   : > { %7149 = dma.hbm_to_vmem [thread:$0]  (!%p7919_p5), %s12505_s2, 2048, %s291_s20, [#allocation9], %s7811_s28, %s7811_s28, %s7812_s12  }
  0x54   : > { %s323_s23 = sshll.u32 %s12509_s6, 4  ;;  %s7696_s27 = scalar_lea.hbm %s12507_s4, 2048  ;;  %s324_s23 = int_to_ptr.vmem [resolvable:$true] %s323_s23 }
  0x55   : > { %p7697_p3 = scmp.ne.s32.totalorder %s12507_s4, %s7696_s27  ;;  %p7703_p11 = scmp.lt.u32.totalorder %s7696_s27, %s12507_s4 }
  0x57   : > { %p7699_p2 = pnand %p7697_p3, %p7936_p8 }
  0x59   : > { %p7700_p10 = pneg %p7699_p2 }
  0x5b   : > { %p7705_p12 = pnand %p7703_p11, %p7700_p10 }
  0x5d   : > { %7708 = shalt.err (!%p7705_p12)
}
  0x5e   : > { %s7709_s28 = scalar_lea.vmem %s307_s22, 2048  ;;  %p7717_p1 = scmp.lt.s32.totalorder %s307_s22, %s307_s22 }
  0x5f   : > { %p7710_p13 = scmp.ne.s32.totalorder %s307_s22, %s7709_s28  ;;  %p7718_p4 = scmp.lt.s32.totalorder %s7709_s28, %s7709_s28 }
  0x61   : > { %p7712_p6 = pnand %p7710_p13, %p7936_p8  ;;  %p7719_p7 = por %p7718_p4, %p7717_p1 }
  0x63   : > { %p7713_p0 = pneg %p7712_p6 }
  0x65   : > { %p7720_p9 = pnand %p7719_p7, %p7713_p0 }
  0x67   : > { %7723 = shalt.err (!%p7720_p9)
}
  0x68   : > { %s7815_s12 = smov 128   ;;  %s7816_s20 = smov 8  }
  0x69   : > { %7152 = dma.hbm_to_vmem [thread:$0]  (!%p7919_p5), %s12507_s4, 2048, %s307_s22, [#allocation12], %s7815_s12, %s7815_s12, %s7816_s20  }
  0x6a   : > { %s7724_s21 = scalar_lea.vmem %s324_s23, 16  ;;  %p7732_p11 = scmp.lt.s32.totalorder %s324_s23, %s324_s23 }
  0x6b   : > { %p7725_p3 = scmp.ne.s32.totalorder %s324_s23, %s7724_s21  ;;  %p7733_p12 = scmp.lt.s32.totalorder %s7724_s21, %s7724_s21 }
  0x6d   : > { %p7727_p2 = pnand %p7725_p3, %p7936_p8  ;;  %p7734_p13 = por %p7733_p12, %p7732_p11 }
  0x6f   : > { %p7728_p10 = pneg %p7727_p2 }
  0x71   : > { %p7735_p6 = pnand %p7734_p13, %p7728_p10 }
  0x73   : > { %7738 = shalt.err (!%p7735_p6)
}
  0x74   : > { %s7817_s25 = smov [#allocation13]   ;;  %p12720_p0 = scmp.ne.s32.totalorder %s12716_s11, 0 }
  0x75   : > { %7155 = dma.vmem_to_smem (!%p7919_p5), %s324_s23, 16, %s7817_s25, [#allocation7]  }
  0x76   : > { %339 = sbr.rel (%p12720_p0) target bundleno = 3584 (0xe00), region = 52 }
  0x7d   : > { %p12721_p1 = scmp.ne.s32.totalorder %s12715_s10, 0 }
  0x7f   : > { %7778 = dma.done.wait (%p12721_p1), [#allocation5], 2048  }
  0x80   : > { %7780 = vsyncadd (%p12721_p1), [#allocation5], 4294965248 }
  0x81   : > { %7782 = dma.done.wait (%p12721_p1), [#allocation9], 4096  }
  0x82   : > { %7784 = vsyncadd (%p12721_p1), [#allocation9], 4294963200 }
  0x83   : > { %7786 = dma.done.wait (%p12721_p1), [#allocation12], 2048  }
  0x84   : > { %7788 = vsyncadd (%p12721_p1), [#allocation12], 4294965248 }
  0x85   : > { %7790 = dma.done.wait (%p12721_p1), [#allocation7], 16  }
  0x86   : > { %7792 = vsyncadd (%p12721_p1), [#allocation7], 4294967280 }
  0x87   : > { %361 = sfence }
  0x88   : > { %p6643_p5 = scmp.ne.s32.totalorder %s7799_s29, 0 }
  0x89   : > { %v7220_v0 = vld [vmem:[#allocation4] sm:$0xff] (!%p6643_p5)   ;;  %v7221_v1 = vld [vmem:[#allocation4 + $0x8] sm:$0xff] (!%p6643_p5)   ;;  %v7222_v2 = vld [vmem:[#allocation4 + $0x10] sm:$0xff] (!%p6643_p5)  }
  0x8a   : > { %387 = sbr.rel (%p6643_p5) target bundleno = 146 (0x92), region = 76  ;;  %516 = vst [vmem:[#allocation2] sm:$0xff] (!%p6643_p5), %v7220_v0  ;;  %517 = vst [vmem:[#allocation2 + $0x8] sm:$0xff] (!%p6643_p5), %v7221_v1  ;;  %v7223_v3 = vld [vmem:[#allocation4 + $0x18] sm:$0xff] (!%p6643_p5)   ;;  %v7224_v4 = vld [vmem:[#allocation4 + $0x20] sm:$0xff] (!%p6643_p5)  }
  0x8b   : > { %518 = vst [vmem:[#allocation2 + $0x10] sm:$0xff] (!%p6643_p5), %v7222_v2  ;;  %519 = vst [vmem:[#allocation2 + $0x18] sm:$0xff] (!%p6643_p5), %v7223_v3  ;;  %v7225_v5 = vld [vmem:[#allocation4 + $0x28] sm:$0xff] (!%p6643_p5)   ;;  %v7226_v6 = vld [vmem:[#allocation4 + $0x30] sm:$0xff] (!%p6643_p5)  }
  0x8c   : > { %520 = vst [vmem:[#allocation2 + $0x20] sm:$0xff] (!%p6643_p5), %v7224_v4  ;;  %521 = vst [vmem:[#allocation2 + $0x28] sm:$0xff] (!%p6643_p5), %v7225_v5  ;;  %v7227_v7 = vld [vmem:[#allocation4 + $0x38] sm:$0xff] (!%p6643_p5)   ;;  %v7228_v8 = vld [vmem:[#allocation4 + $0x40] sm:$0xff] (!%p6643_p5)  }
  0x8d   : > { %522 = vst [vmem:[#allocation2 + $0x30] sm:$0xff] (!%p6643_p5), %v7226_v6  ;;  %523 = vst [vmem:[#allocation2 + $0x38] sm:$0xff] (!%p6643_p5), %v7227_v7  ;;  %v7229_v9 = vld [vmem:[#allocation4 + $0x48] sm:$0xff] (!%p6643_p5)   ;;  %v7230_v10 = vld [vmem:[#allocation4 + $0x50] sm:$0xff] (!%p6643_p5)  }
  0x8e   : > { %524 = vst [vmem:[#allocation2 + $0x40] sm:$0xff] (!%p6643_p5), %v7228_v8  ;;  %525 = vst [vmem:[#allocation2 + $0x48] sm:$0xff] (!%p6643_p5), %v7229_v9  ;;  %v7231_v11 = vld [vmem:[#allocation4 + $0x58] sm:$0xff] (!%p6643_p5)   ;;  %v7232_v12 = vld [vmem:[#allocation4 + $0x60] sm:$0xff] (!%p6643_p5)  }
  0x8f   : > { %526 = vst [vmem:[#allocation2 + $0x50] sm:$0xff] (!%p6643_p5), %v7230_v10  ;;  %527 = vst [vmem:[#allocation2 + $0x58] sm:$0xff] (!%p6643_p5), %v7231_v11  ;;  %v7233_v13 = vld [vmem:[#allocation4 + $0x68] sm:$0xff] (!%p6643_p5)   ;;  %v7234_v14 = vld [vmem:[#allocation4 + $0x70] sm:$0xff] (!%p6643_p5)  }
  0x90   : > { %528 = vst [vmem:[#allocation2 + $0x60] sm:$0xff] (!%p6643_p5), %v7232_v12  ;;  %529 = vst [vmem:[#allocation2 + $0x68] sm:$0xff] (!%p6643_p5), %v7233_v13  ;;  %v7235_v15 = vld [vmem:[#allocation4 + $0x78] sm:$0xff] (!%p6643_p5)  }
  0x91   : > { %530 = vst [vmem:[#allocation2 + $0x70] sm:$0xff] %v7234_v14  ;;  %531 = vst [vmem:[#allocation2 + $0x78] sm:$0xff] %v7235_v15 }
  0x92 PF: > { %s6725_s10 = sshll.u32 %s7799_s29, 6  ;;  %v551_v16 = vld [vmem:[#allocation2] sm:$0xff]  ;;  %v7476_v23 = vld [vmem:[#allocation11 + $0x14] ss:$8 sps:$4 sm:$0xff]   ;;  %v7478_v24 = vld [vmem:[#allocation11 + $0x10] ss:$8 sps:$4 sm:$0xff]   ;;  %s8067_s22 = scalar_lea.vmem %s12506_s3, %s7799_s29 }
  0x93   : > { %6908 = vmatprep.mubr.bf16.mxu0 %v551_v16  ;;  %s8051_s11 = scalar_lea.vmem [#allocation10], %s6725_s10  ;;  %v7473_v21 = vld [vmem:[#allocation11 + $0x4] ss:$8 sps:$4 sm:$0xff]   ;;  %v7475_v22 = vld [vmem:[#allocation11] ss:$8 sps:$4 sm:$0xff]   ;;  %v553_v38 = vld [vmem:[#allocation2 + $0x10] sm:$0xff] }
  0x94   : > { %v7465_v17 = vld [vmem:[%s8051_s11] sm:$0xff]   ;;  %v7466_v18 = vld [vmem:[%s8051_s11 + $0x8] sm:$0xff]   ;;  %v7467_v19 = vld [vmem:[%s8051_s11 + $0x10] sm:$0xff]   ;;  %908 = vmatprep.subr.bf16.mxu1 %v7473_v21  ;;  %v12528_v46 = vmov 0   ;;  %v12536_v16 = vmov 1   ;;  %s1250_s16 = sld [smem:[#allocation13]] }
  0x95   : > { %6892 = vmatprep.subr.bf16.mxu0 %v7465_v17  ;;  %v7468_v20 = vld [vmem:[%s8051_s11 + $0x18] sm:$0xff]   ;;  %909 = vmatpush1.bf16.msra.mxu1 %v7475_v22  ;;  %v7469_v25 = vld [vmem:[%s8051_s11 + $0x20] sm:$0xff]   ;;  %v7470_v27 = vld [vmem:[%s8051_s11 + $0x28] sm:$0xff]   ;;  %s6687_s18 = sld [smem:[#allocation13 + $0x1]]  ;;  %s6688_s7 = sld [smem:[#allocation13 + $0x2]] }
  0x96   : > { %6893 = vmatpush3.bf16.msra.mxu0 %v7465_v17  ;;  %910 = vmatprep.subr.bf16.mxu1 %v7476_v23  ;;  %v7479_v26 = vld [vmem:[#allocation11 + $0x24] ss:$8 sps:$4 sm:$0xff]   ;;  %v7481_v28 = vld [vmem:[#allocation11 + $0x20] ss:$8 sps:$4 sm:$0xff]   ;;  %v7482_v29 = vld [vmem:[#allocation11 + $0x34] ss:$8 sps:$4 sm:$0xff]  }
  0x97   : > { %6894 = vmatprep.subr.bf16.mxu0 %v7466_v18  ;;  %v7484_v30 = vld [vmem:[#allocation11 + $0x30] ss:$8 sps:$4 sm:$0xff]   ;;  %v7485_v32 = vld [vmem:[#allocation11 + $0x44] ss:$8 sps:$4 sm:$0xff]   ;;  %v7487_v33 = vld [vmem:[#allocation11 + $0x40] ss:$8 sps:$4 sm:$0xff]   ;;  %940 = vmatprep.mubr.bf16.mxu1 %v12528_v46 }
  0x98   : > { %v7471_v31 = vld [vmem:[%s8051_s11 + $0x30] sm:$0xff]   ;;  %v7472_v34 = vld [vmem:[%s8051_s11 + $0x38] sm:$0xff]   ;;  %v552_v37 = vld [vmem:[#allocation2 + $0x8] sm:$0xff]  ;;  %7236 = vset.pattern.permute.xlu1 %v12528_v46  ;;  %7237 = vset.pattern.permute.xlu0 %v12536_v16  ;;  %s6689_s28 = sld [smem:[#allocation13 + $0x3]]  ;;  %s9087_s12 = sld [smem:[#allocation13 + $0x4]] }
  0x99   : > { %911 = vmatpush1.bf16.msra.mxu1 %v7478_v24  ;;  %v7488_v35 = vld [vmem:[#allocation11 + $0x54] ss:$8 sps:$4 sm:$0xff]   ;;  %v7490_v36 = vld [vmem:[#allocation11 + $0x50] ss:$8 sps:$4 sm:$0xff]   ;;  %v7491_v40 = vld [vmem:[#allocation11 + $0x64] ss:$8 sps:$4 sm:$0xff]  }
  0x9a   : > { %6895 = vmatpush3.bf16.msra.mxu0 %v7466_v18  ;;  %912 = vmatprep.subr.bf16.mxu1 %v7479_v26  ;;  %v554_v39 = vld [vmem:[#allocation2 + $0x18] sm:$0xff]  ;;  %v7493_v41 = vld [vmem:[#allocation11 + $0x60] ss:$8 sps:$4 sm:$0xff]   ;;  %v557_v47 = vld [vmem:[#allocation2 + $0x30] sm:$0xff]  ;;  %s9098_s20 = sld [smem:[#allocation13 + $0x5]]  ;;  %s9100_s17 = sld [smem:[#allocation13 + $0x6]] }
  0x9b   : > { %6896 = vmatprep.subr.bf16.mxu0 %v7467_v19  ;;  %v555_v42 = vld [vmem:[#allocation2 + $0x20] sm:$0xff]  ;;  %v7494_v43 = vld [vmem:[#allocation11 + $0x74] ss:$8 sps:$4 sm:$0xff]   ;;  %v556_v44 = vld [vmem:[#allocation2 + $0x28] sm:$0xff]  ;;  %s9108_s19 = sld [smem:[#allocation13 + $0x7]]  ;;  %s9110_s21 = sld [smem:[#allocation13 + $0x8]] }
  0x9c   : > { %v7496_v45 = vld [vmem:[#allocation11 + $0x70] ss:$8 sps:$4 sm:$0xff]   ;;  %v8070_v50 = vld [vmem:[%s8067_s22] ss:$0 sm:$0xff]  ;;  %s9115_s25 = sld [smem:[#allocation13 + $0x9]]  ;;  %s9117_s10 = sld [smem:[#allocation13 + $0xa]] }
  0x9d   : > { %913 = vmatpush1.bf16.msra.mxu1 %v7481_v28  ;;  %v558_v48 = vld [vmem:[#allocation2 + $0x38] sm:$0xff]  ;;  %s9120_s11 = sld [smem:[#allocation13 + $0xb]]  ;;  %s9126_s14 = sld [smem:[#allocation13 + $0xc]] }
  0x9e   : > { %6897 = vmatpush3.bf16.msra.mxu0 %v7467_v19  ;;  %914 = vmatprep.subr.bf16.mxu1 %v7482_v29  ;;  %s9128_s24 = sld [smem:[#allocation13 + $0xd]]  ;;  %s9142_s23 = sld [smem:[#allocation13 + $0xe]] }
  0x9f   : > { %6898 = vmatprep.subr.bf16.mxu0 %v7468_v20  ;;  %s9788_s26 = sld [smem:[#allocation13 + $0xf]]  ;;  %s9941_s27 = sld [smem:[#allocation3]] }
  0xa0   : > { %p6702_p8 = scmp.ne.s32.totalorder %s7799_s29, 1 }
  0xa1   : > { %915 = vmatpush1.bf16.msra.mxu1 %v7484_v30  ;;  %v816_v30 = vld [vmem:[%s12508_s5] sm:$0x3] }
  0xa2   : > { %6899 = vmatpush3.bf16.msra.mxu0 %v7468_v20  ;;  %916 = vmatprep.subr.bf16.mxu1 %v7485_v32 }
  0xa3   : > { %6900 = vmatprep.subr.bf16.mxu0 %v7469_v25 }
  0xa5   : > { %917 = vmatpush1.bf16.msra.mxu1 %v7487_v33 }
  0xa6   : > { %6901 = vmatpush3.bf16.msra.mxu0 %v7469_v25  ;;  %918 = vmatprep.subr.bf16.mxu1 %v7488_v35 }
  0xa7   : > { %6902 = vmatprep.subr.bf16.mxu0 %v7470_v27 }
  0xa9   : > { %919 = vmatpush1.bf16.msra.mxu1 %v7490_v36 }
  0xaa   : > { %6903 = vmatpush3.bf16.msra.mxu0 %v7470_v27  ;;  %920 = vmatprep.subr.bf16.mxu1 %v7491_v40  ;;  %v818_v27 = vlaneseq }
  0xab   : > { %6904 = vmatprep.subr.bf16.mxu0 %v7471_v31 }
  0xac   : > { %v8096_v28 = vshrl.u32 %v818_v27, 7 }
  0xad   : > { %921 = vmatpush1.bf16.msra.mxu1 %v7493_v41 }
  0xae   : > { %6905 = vmatpush3.bf16.msra.mxu0 %v7471_v31  ;;  %922 = vmatprep.subr.bf16.mxu1 %v7494_v43  ;;  %v8100_v29 = vsub.s32 0, %v8096_v28  ;;  %v12551_v43 = vmov 4  }
  0xaf   : > { %6906 = vmatprep.subr.bf16.mxu0 %v7472_v34 }
  0xb0   : > { %12722 = vst [vmem:[#allocation20_spill] sm:$0xff] %v8100_v29  ;;  %v8106_v31 = vrot.slane %v816_v30, %v8100_v29 }
  0xb1   : > { %923 = vmatpush1.bf16.msra.mxu1 %v7496_v45 }
  0xb2   : > { %6907 = vmatpush3.bf16.msra.mxu0 %v7472_v34  ;;  %12723 = vst [vmem:[#allocation21_spill] sm:$0xff] %v8106_v31 }
  0xb5   : > { %6909 = vmatmul.mubr.bf16.vlgmr.msra.gmra.mrb[0].mxu0 %v552_v37  ;;  %v12545_v37 = vmov 2  }
  0xb6   : > { %6912 = vmatprep.mubr.bf16.mxu0 %v553_v38  ;;  %v12533_v38 = vmov 3  }
  0xbd   : > { %6913 = vmatmul.mubr.bf16.gmra.mrb[4].mxu0 %v554_v39 }
  0xbe   : > { %6916 = vmatprep.mubr.bf16.mxu0 %v555_v42 }
  0xc5   : > { %6917 = vmatmul.mubr.bf16.gmra.mrb[8].mxu0 %v556_v44  ;;  %v12530_v44 = vmov 5  }
  0xc6   : > { %6920 = vmatprep.mubr.bf16.mxu0 %v557_v47  ;;  %v12542_v47 = vmov 6  }
  0xcd   : > { %6921 = vmatmul.mubr.bf16.gmra.mrb[12].mxu0 %v558_v48  ;;  %v12525_v48 = vmov 7  }
 0x188   : > { %v6910_v49 = vpop.f32.mrb[0].mxu0 }
 0x189   : > { %v657_v51 = vpop.f32.mrb[1].mxu0  ;;  %v666_v53 = vadd.f32 %v6910_v49, %v8070_v50 }
 0x18a   : > { %v6911_v52 = vpop.f32.mrb[2].mxu0  ;;  %v658_v56 = vadd.f32 %v8070_v50, %v657_v51  ;;  %v12548_v51 = vmov 8  }
 0x18b   : > { %v669_v54 = vadd.f32 %v6911_v52, %v8070_v50  ;;  %v660_v55 = vpop.f32.mrb[3].mxu0  ;;  %v12522_v52 = vmov 9  }
 0x18c   : > { %v661_v57 = vadd.f32 %v8070_v50, %v660_v55  ;;  %v12554_v55 = vmov 10  }
 0x18d   : > { %v785_v58 = vpack.c.bf16 %v669_v54, %v666_v53 }
 0x18e   : > { %v784_v59 = vpack.c.bf16 %v661_v57, %v658_v56  ;;  %v12516_v56 = vmov 11   ;;  %v12539_v57 = vmov 12  }
 0x190   : > { %941 = vmatmul.mubr.bf16.vlgmr.msra.gmra.mrb[0].mxu1 %v784_v59  ;;  %7053 = vmatprep.subr.bf16.mxu0 %v784_v59  ;;  %v6914_v60 = vpop.f32.mrb[4].mxu0 }
 0x191   : > { %7055 = vmatpush3.bf16.msra.mxu0 %v784_v59  ;;  %950 = vmatprep.mubr.bf16.mxu1 %v12528_v46  ;;  %v682_v61 = vadd.f32 %v6914_v60, %v8070_v50  ;;  %v673_v62 = vpop.f32.mrb[5].mxu0 }
 0x192   : > { %7057 = vmatprep.subr.bf16.mxu0 %v785_v58  ;;  %v674_v63 = vadd.f32 %v8070_v50, %v673_v62  ;;  %v6915_v0 = vpop.f32.mrb[6].mxu0 }
 0x193   : > { %v685_v1 = vadd.f32 %v6915_v0, %v8070_v50  ;;  %v676_v2 = vpop.f32.mrb[7].mxu0 }
 0x194   : > { %v677_v3 = vadd.f32 %v8070_v50, %v676_v2 }
 0x195   : > { %7059 = vmatpush3.bf16.msra.mxu0 %v785_v58  ;;  %v787_v4 = vpack.c.bf16 %v685_v1, %v682_v61 }
 0x196   : > { %v786_v5 = vpack.c.bf16 %v677_v3, %v674_v63 }
 0x198   : > { %951 = vmatmul.mubr.bf16.gmra.mrb[4].mxu1 %v785_v58  ;;  %7061 = vmatprep.subr.bf16.mxu0 %v786_v5  ;;  %v6918_v6 = vpop.f32.mrb[8].mxu0  ;;  %v12519_v58 = vmov 13  }
 0x199   : > { %960 = vmatprep.mubr.bf16.mxu1 %v12528_v46  ;;  %7063 = vmatpush3.bf16.msra.mxu0 %v786_v5  ;;  %v698_v7 = vadd.f32 %v6918_v6, %v8070_v50  ;;  %v689_v8 = vpop.f32.mrb[9].mxu0 }
 0x19a   : > { %7065 = vmatprep.subr.bf16.mxu0 %v787_v4  ;;  %v690_v9 = vadd.f32 %v8070_v50, %v689_v8  ;;  %v6919_v10 = vpop.f32.mrb[10].mxu0 }
 0x19b   : > { %v701_v11 = vadd.f32 %v6919_v10, %v8070_v50  ;;  %v692_v12 = vpop.f32.mrb[11].mxu0 }
 0x19c   : > { %v693_v13 = vadd.f32 %v8070_v50, %v692_v12 }
 0x19d   : > { %7067 = vmatpush3.bf16.msra.mxu0 %v787_v4  ;;  %v789_v14 = vpack.c.bf16 %v701_v11, %v698_v7 }
 0x19e   : > { %v788_v15 = vpack.c.bf16 %v693_v13, %v690_v9 }
 0x1a0   : > { %961 = vmatmul.mubr.bf16.gmra.mrb[8].mxu1 %v786_v5  ;;  %7069 = vmatprep.subr.bf16.mxu0 %v788_v15  ;;  %v6922_v17 = vpop.f32.mrb[12].mxu0 }
 0x1a1   : > { %970 = vmatprep.mubr.bf16.mxu1 %v12528_v46  ;;  %7071 = vmatpush3.bf16.msra.mxu0 %v788_v15  ;;  %v705_v18 = vpop.f32.mrb[13].mxu0  ;;  %v714_v19 = vadd.f32 %v6922_v17, %v8070_v50 }
 0x1a2   : > { %7073 = vmatprep.subr.bf16.mxu0 %v789_v14  ;;  %v706_v20 = vadd.f32 %v8070_v50, %v705_v18  ;;  %v6923_v21 = vpop.f32.mrb[14].mxu0 }
 0x1a3   : > { %v717_v22 = vadd.f32 %v6923_v21, %v8070_v50  ;;  %v708_v23 = vpop.f32.mrb[15].mxu0 }
 0x1a4   : > { %v709_v24 = vadd.f32 %v8070_v50, %v708_v23 }
 0x1a5   : > { %7075 = vmatpush3.bf16.msra.mxu0 %v789_v14  ;;  %v791_v25 = vpack.c.bf16 %v717_v22, %v714_v19 }
 0x1a6   : > { %v790_v26 = vpack.c.bf16 %v709_v24, %v706_v20 }
 0x1a8   : > { %971 = vmatmul.mubr.bf16.gmra.mrb[12].mxu1 %v787_v4  ;;  %7077 = vmatprep.subr.bf16.mxu0 %v790_v26 }
 0x1a9   : > { %980 = vmatprep.mubr.bf16.mxu1 %v12528_v46  ;;  %7079 = vmatpush3.bf16.msra.mxu0 %v790_v26 }
 0x1aa   : > { %7081 = vmatprep.subr.bf16.mxu0 %v791_v25 }
 0x1ad   : > { %7083 = vmatpush3.bf16.msra.mxu0 %v791_v25 }
 0x1b0   : > { %981 = vmatmul.mubr.bf16.gmra.mrb[16].mxu1 %v788_v15 }
 0x1b1   : > { %990 = vmatprep.mubr.bf16.mxu1 %v12528_v46 }
 0x1b8   : > { %991 = vmatmul.mubr.bf16.gmra.mrb[20].mxu1 %v789_v14 }
 0x1b9   : > { %1000 = vmatprep.mubr.bf16.mxu1 %v12528_v46 }
 0x1c0   : > { %1001 = vmatmul.mubr.bf16.gmra.mrb[24].mxu1 %v790_v26 }
 0x1c1   : > { %1010 = vmatprep.mubr.bf16.mxu1 %v12528_v46 }
 0x1c8   : > { %1011 = vmatmul.mubr.bf16.gmra.mrb[28].mxu1 %v791_v25 }
 0x1c9   : > { %1020 = vmatprep.mubr.bf16.mxu1 %v12528_v46 }
 0x263   : > { %v942_v32 = vpop.f32.mrb[0].mxu1 }
 0x264   : > { %v8109_v33 = vadd.f32 %v942_v32, %v8106_v31  ;;  %v8111_v34 = vpop.f32.mrb[1].mxu1 }
 0x265   : > { %v946_v35 = vpop.f32.mrb[2].mxu1 }
 0x266   : > { %12724 = vst [vmem:[#allocation22_spill] sm:$0xff] %v8109_v33  ;;  %v8113_v36 = vpop.f32.mrb[3].mxu1  ;;  %1285 = vperm.xlu0 %7237, %v8109_v33   ;;  %1136 = vperm.xlu1 %7236, %v8109_v33   ;;  %v8160_v59 = vadd.f32 %v946_v35, %v8106_v31 }
 0x268   : > { %12725 = vst [vmem:[#allocation23_spill] sm:$0xff] %v8160_v59 }
 0x26a   : > { %7238 = vset.pattern.permute.xlu0 %v12545_v37  ;;  %7239 = vset.pattern.permute.xlu1 %v12533_v38 }
 0x26b   : > { %v8119_v39 = vpop.f32.mrb[4].mxu1  ;;  %1419 = vperm.xlu0 %7238, %v8109_v33   ;;  %1553 = vperm.xlu1 %7239, %v8109_v33  }
 0x26c   : > { %v8123_v40 = vpop.f32.mrb[5].mxu1  ;;  %v8206_v0 = vadd.f32 %v8119_v39, %v8106_v31 }
 0x26d   : > { %v8125_v41 = vpop.f32.mrb[6].mxu1 }
 0x26e   : > { %v8127_v42 = vpop.f32.mrb[7].mxu1  ;;  %v8194_v63 = vadd.f32 %v8125_v41, %v8106_v31  ;;  %12727 = vst [vmem:[#allocation25_spill] sm:$0xff] %v8206_v0 }
 0x26f   : > { %7240 = vset.pattern.permute.xlu0 %v12551_v43  ;;  %7241 = vset.pattern.permute.xlu1 %v12530_v44 }
 0x270   : > { %1687 = vperm.xlu0 %7240, %v8109_v33   ;;  %1821 = vperm.xlu1 %7241, %v8109_v33   ;;  %12726 = vst [vmem:[#allocation24_spill] sm:$0xff] %v8194_v63 }
 0x273   : > { %v8133_v45 = vpop.f32.mrb[8].mxu1 }
 0x274   : > { %7242 = vset.pattern.permute.xlu0 %v12542_v47  ;;  %7243 = vset.pattern.permute.xlu1 %v12525_v48  ;;  %v8137_v49 = vpop.f32.mrb[9].mxu1  ;;  %v8228_v2 = vadd.f32 %v8133_v45, %v8106_v31 }
 0x275   : > { %1955 = vperm.xlu0 %7242, %v8109_v33   ;;  %2089 = vperm.xlu1 %7243, %v8109_v33   ;;  %v8141_v50 = vpop.f32.mrb[10].mxu1 }
 0x276   : > { %v8147_v53 = vpop.f32.mrb[11].mxu1  ;;  %12728 = vst [vmem:[#allocation26_spill] sm:$0xff] %v8228_v2  ;;  %v8260_v5 = vadd.f32 %v8141_v50, %v8106_v31 }
 0x278   : > { %12729 = vst [vmem:[#allocation27_spill] sm:$0xff] %v8260_v5 }
 0x279   : > { %7244 = vset.pattern.permute.xlu0 %v12548_v51  ;;  %7245 = vset.pattern.permute.xlu1 %v12522_v52 }
 0x27a   : > { %2223 = vperm.xlu0 %7244, %v8109_v33   ;;  %2357 = vperm.xlu1 %7245, %v8109_v33  }
 0x27b   : > { %v8149_v54 = vpop.f32.mrb[12].mxu1 }
 0x27c   : > { %v8174_v60 = vpop.f32.mrb[13].mxu1  ;;  %v8312_v19 = vadd.f32 %v8149_v54, %v8106_v31 }
 0x27d   : > { %v8178_v61 = vpop.f32.mrb[14].mxu1 }
 0x27e   : > { %7246 = vset.pattern.permute.xlu0 %v12554_v55  ;;  %7247 = vset.pattern.permute.xlu1 %v12516_v56  ;;  %v8182_v62 = vpop.f32.mrb[15].mxu1  ;;  %12739 = vst [vmem:[#allocation37_spill] sm:$0xff] %v8312_v19 }
 0x27f   : > { %2491 = vperm.xlu0 %7246, %v8109_v33   ;;  %2625 = vperm.xlu1 %7247, %v8109_v33  }
 0x283   : > { %7248 = vset.pattern.permute.xlu0 %v12539_v57  ;;  %7249 = vset.pattern.permute.xlu1 %v12519_v58  ;;  %v8218_v1 = vpop.f32.mrb[16].mxu1 }
 0x284   : > { %2759 = vperm.xlu0 %7248, %v8109_v33   ;;  %2893 = vperm.xlu1 %7249, %v8109_v33   ;;  %v8242_v3 = vpop.f32.mrb[17].mxu1 }
 0x285   : > { %v8244_v4 = vpop.f32.mrb[18].mxu1 }
 0x286   : > { %v8294_v14 = vpop.f32.mrb[19].mxu1 }
 0x288   : > { %7253 = vset.pattern.permute.xlu0 %v12533_v38  ;;  %7250 = vset.pattern.permute.xlu1 %v12528_v46 }
 0x289   : > { %1557 = vperm.xlu0 %7253, %v8160_v59   ;;  %1141 = vperm.xlu1 %7250, %v8160_v59  }
 0x28b   : > { %v8298_v15 = vpop.f32.mrb[20].mxu1 }
 0x28c   : > { %v8326_v24 = vpop.f32.mrb[21].mxu1 }
 0x28d   : > { %7255 = vset.pattern.permute.xlu0 %v12530_v44  ;;  %7251 = vset.pattern.permute.xlu1 %v12536_v16  ;;  %v8330_v25 = vpop.f32.mrb[22].mxu1 }
 0x28e   : > { %1825 = vperm.xlu0 %7255, %v8160_v59   ;;  %1289 = vperm.xlu1 %7251, %v8160_v59  }
 0x292   : > { %7257 = vset.pattern.permute.xlu0 %v12525_v48  ;;  %7252 = vset.pattern.permute.xlu1 %v12545_v37 }
 0x293   : > { %2093 = vperm.xlu0 %7257, %v8160_v59   ;;  %1423 = vperm.xlu1 %7252, %v8160_v59  }
 0x297   : > { %7259 = vset.pattern.permute.xlu0 %v12522_v52  ;;  %7254 = vset.pattern.permute.xlu1 %v12551_v43 }
 0x298   : > { %2361 = vperm.xlu0 %7259, %v8160_v59   ;;  %1691 = vperm.xlu1 %7254, %v8160_v59  }
 0x29c   : > { %7261 = vset.pattern.permute.xlu0 %v12516_v56  ;;  %7256 = vset.pattern.permute.xlu1 %v12542_v47 }
 0x29d   : > { %2629 = vperm.xlu0 %7261, %v8160_v59   ;;  %1959 = vperm.xlu1 %7256, %v8160_v59  }
 0x2a1   : > { %7263 = vset.pattern.permute.xlu0 %v12519_v58  ;;  %7258 = vset.pattern.permute.xlu1 %v12548_v51 }
 0x2a2   : > { %2897 = vperm.xlu0 %7263, %v8160_v59   ;;  %2227 = vperm.xlu1 %7258, %v8160_v59  }
 0x2a6   : > { %7280 = vset.pattern.permute.xlu0 %v12545_v37  ;;  %7260 = vset.pattern.permute.xlu1 %v12554_v55 }
 0x2a7   : > { %1431 = vperm.xlu0 %7280, %v8194_v63   ;;  %2495 = vperm.xlu1 %7260, %v8160_v59  }
 0x2ab   : > { %7282 = vset.pattern.permute.xlu0 %v12551_v43  ;;  %7262 = vset.pattern.permute.xlu1 %v12539_v57 }
 0x2ac   : > { %1699 = vperm.xlu0 %7282, %v8194_v63   ;;  %2763 = vperm.xlu1 %7262, %v8160_v59  }
 0x2b0   : > { %7284 = vset.pattern.permute.xlu0 %v12542_v47  ;;  %7264 = vset.pattern.permute.xlu1 %v12528_v46 }
 0x2b1   : > { %1967 = vperm.xlu0 %7284, %v8194_v63   ;;  %1146 = vperm.xlu1 %7264, %v8206_v0  }
 0x2b5   : > { %7286 = vset.pattern.permute.xlu0 %v12548_v51  ;;  %7265 = vset.pattern.permute.xlu1 %v12536_v16 }
 0x2b6   : > { %2235 = vperm.xlu0 %7286, %v8194_v63   ;;  %1293 = vperm.xlu1 %7265, %v8206_v0  }
 0x2ba   : > { %7288 = vset.pattern.permute.xlu0 %v12554_v55  ;;  %7266 = vset.pattern.permute.xlu1 %v12545_v37 }
 0x2bb   : > { %2503 = vperm.xlu0 %7288, %v8194_v63   ;;  %1427 = vperm.xlu1 %7266, %v8206_v0  }
 0x2bf   : > { %7290 = vset.pattern.permute.xlu0 %v12539_v57  ;;  %7267 = vset.pattern.permute.xlu1 %v12533_v38 }
 0x2c0   : > { %2771 = vperm.xlu0 %7290, %v8194_v63   ;;  %1561 = vperm.xlu1 %7267, %v8206_v0  }
 0x2c4   : > { %7295 = vset.pattern.permute.xlu0 %v12533_v38  ;;  %7268 = vset.pattern.permute.xlu1 %v12551_v43 }
 0x2c5   : > { %1569 = vperm.xlu0 %7295, %v8228_v2   ;;  %1695 = vperm.xlu1 %7268, %v8206_v0  }
 0x2c9   : > { %7297 = vset.pattern.permute.xlu0 %v12530_v44  ;;  %7269 = vset.pattern.permute.xlu1 %v12530_v44 }
 0x2ca   : > { %1837 = vperm.xlu0 %7297, %v8228_v2   ;;  %1829 = vperm.xlu1 %7269, %v8206_v0  }
 0x2ce   : > { %7299 = vset.pattern.permute.xlu0 %v12525_v48  ;;  %7270 = vset.pattern.permute.xlu1 %v12542_v47 }
 0x2cf   : > { %2105 = vperm.xlu0 %7299, %v8228_v2   ;;  %1963 = vperm.xlu1 %7270, %v8206_v0  }
 0x2d3   : > { %7301 = vset.pattern.permute.xlu0 %v12522_v52  ;;  %7271 = vset.pattern.permute.xlu1 %v12525_v48 }
 0x2d4   : > { %2373 = vperm.xlu0 %7301, %v8228_v2   ;;  %2097 = vperm.xlu1 %7271, %v8206_v0  }
 0x2d8   : > { %7303 = vset.pattern.permute.xlu0 %v12516_v56  ;;  %7272 = vset.pattern.permute.xlu1 %v12548_v51 }
 0x2d9   : > { %2641 = vperm.xlu0 %7303, %v8228_v2   ;;  %2231 = vperm.xlu1 %7272, %v8206_v0  }
 0x2dd   : > { %7305 = vset.pattern.permute.xlu0 %v12519_v58  ;;  %7273 = vset.pattern.permute.xlu1 %v12522_v52 }
 0x2de   : > { %2909 = vperm.xlu0 %7305, %v8228_v2   ;;  %2365 = vperm.xlu1 %7273, %v8206_v0  }
 0x2e2   : > { %7308 = vset.pattern.permute.xlu0 %v12545_v37  ;;  %7274 = vset.pattern.permute.xlu1 %v12554_v55 }
 0x2e3   : > { %1439 = vperm.xlu0 %7308, %v8260_v5   ;;  %2499 = vperm.xlu1 %7274, %v8206_v0  }
 0x2e5   : > { %v8266_v6 = vpop.permute.xlu0 %1285  ;;  %v8268_v7 = vpop.permute.xlu1 %1136 }
 0x2e6   : > { %12730 = vst [vmem:[#allocation28_spill] sm:$0xff] %v8268_v7 }
 0x2e7   : > { %7310 = vset.pattern.permute.xlu0 %v12551_v43  ;;  %7275 = vset.pattern.permute.xlu1 %v12516_v56 }
 0x2e8   : > { %1707 = vperm.xlu0 %7310, %v8260_v5   ;;  %2633 = vperm.xlu1 %7275, %v8206_v0  }
 0x2ea   : > { %v8274_v8 = vpop.permute.xlu0 %1419  ;;  %v8276_v9 = vpop.permute.xlu1 %1553 }
 0x2eb   : > { %12731 = vst [vmem:[#allocation29_spill] sm:$0xff] %v8274_v8  ;;  %12732 = vst [vmem:[#allocation30_spill] sm:$0xff] %v8276_v9 }
 0x2ec   : > { %7312 = vset.pattern.permute.xlu0 %v12542_v47  ;;  %7276 = vset.pattern.permute.xlu1 %v12539_v57 }
 0x2ed   : > { %1975 = vperm.xlu0 %7312, %v8260_v5   ;;  %2767 = vperm.xlu1 %7276, %v8206_v0  }
 0x2ef   : > { %v8282_v10 = vpop.permute.xlu0 %1687  ;;  %v8284_v11 = vpop.permute.xlu1 %1821 }
 0x2f0   : > { %12733 = vst [vmem:[#allocation31_spill] sm:$0xff] %v8282_v10  ;;  %12734 = vst [vmem:[#allocation32_spill] sm:$0xff] %v8284_v11 }
 0x2f1   : > { %7314 = vset.pattern.permute.xlu0 %v12548_v51  ;;  %7277 = vset.pattern.permute.xlu1 %v12519_v58 }
 0x2f2   : > { %2243 = vperm.xlu0 %7314, %v8260_v5   ;;  %2901 = vperm.xlu1 %7277, %v8206_v0   ;;  %v12788_v0 = vmov 2  }
 0x2f4   : > { %v8290_v12 = vpop.permute.xlu0 %1955  ;;  %v8292_v13 = vpop.permute.xlu1 %2089 }
 0x2f5   : > { %12735 = vst [vmem:[#allocation33_spill] sm:$0xff] %v8290_v12  ;;  %12736 = vst [vmem:[#allocation34_spill] sm:$0xff] %v8292_v13 }
 0x2f6   : > { %7316 = vset.pattern.permute.xlu0 %v12554_v55  ;;  %7278 = vset.pattern.permute.xlu1 %v12528_v46 }
 0x2f7   : > { %2511 = vperm.xlu0 %7316, %v8260_v5   ;;  %1151 = vperm.xlu1 %7278, %v8194_v63  }
 0x2f9   : > { %v8302_v17 = vpop.permute.xlu0 %2223  ;;  %v8304_v18 = vpop.permute.xlu1 %2357 }
 0x2fa   : > { %12737 = vst [vmem:[#allocation35_spill] sm:$0xff] %v8302_v17  ;;  %12738 = vst [vmem:[#allocation36_spill] sm:$0xff] %v8304_v18 }
 0x2fb   : > { %7318 = vset.pattern.permute.xlu0 %v12539_v57  ;;  %7279 = vset.pattern.permute.xlu1 %v12536_v16 }
 0x2fc   : > { %2779 = vperm.xlu0 %7318, %v8260_v5   ;;  %1297 = vperm.xlu1 %7279, %v8194_v63  }
 0x2fe   : > { %v8314_v20 = vpop.permute.xlu0 %2491  ;;  %v8316_v21 = vpop.permute.xlu1 %2625 }
 0x2ff   : > { %12740 = vst [vmem:[#allocation38_spill] sm:$0xff] %v8314_v20  ;;  %12741 = vst [vmem:[#allocation39_spill] sm:$0xff] %v8316_v21 }
 0x300   : > { %7323 = vset.pattern.permute.xlu0 %v12533_v38  ;;  %7281 = vset.pattern.permute.xlu1 %v12533_v38 }
 0x301   : > { %1577 = vperm.xlu0 %7323, %v8312_v19   ;;  %1565 = vperm.xlu1 %7281, %v8194_v63  }
 0x303   : > { %v8322_v22 = vpop.permute.xlu0 %2759  ;;  %v8324_v23 = vpop.permute.xlu1 %2893 }
 0x304   : > { %12742 = vst [vmem:[#allocation40_spill] sm:$0xff] %v8322_v22  ;;  %12743 = vst [vmem:[#allocation41_spill] sm:$0xff] %v8324_v23 }
 0x305   : > { %7325 = vset.pattern.permute.xlu0 %v12530_v44  ;;  %7283 = vset.pattern.permute.xlu1 %v12530_v44 }
 0x306   : > { %1845 = vperm.xlu0 %7325, %v8312_v19   ;;  %1833 = vperm.xlu1 %7283, %v8194_v63  }
 0x308   : > { %v8334_v26 = vpop.permute.xlu0 %1557  ;;  %v8336_v27 = vpop.permute.xlu1 %1141 }
 0x309   : > { %12744 = vst [vmem:[#allocation42_spill] sm:$0xff] %v8334_v26  ;;  %12745 = vst [vmem:[#allocation43_spill] sm:$0xff] %v8336_v27 }
 0x30a   : > { %7327 = vset.pattern.permute.xlu0 %v12525_v48  ;;  %7285 = vset.pattern.permute.xlu1 %v12525_v48  ;;  %v8382_v48 = vpop.f32.mrb[23].mxu1 }
 0x30b   : > { %2113 = vperm.xlu0 %7327, %v8312_v19   ;;  %2101 = vperm.xlu1 %7285, %v8194_v63  }
 0x30d   : > { %v8342_v30 = vpop.permute.xlu0 %1825  ;;  %v8344_v32 = vpop.permute.xlu1 %1289 }
 0x30e   : > { %12746 = vst [vmem:[#allocation44_spill] sm:$0xff] %v8342_v30  ;;  %12747 = vst [vmem:[#allocation45_spill] sm:$0xff] %v8344_v32  ;;  %v12778_v30 = vmov 7  }
 0x30f   : > { %7329 = vset.pattern.permute.xlu0 %v12522_v52  ;;  %7287 = vset.pattern.permute.xlu1 %v12522_v52 }
 0x310   : > { %2381 = vperm.xlu0 %7329, %v8312_v19   ;;  %2369 = vperm.xlu1 %7287, %v8194_v63  }
 0x312   : > { %v8350_v35 = vpop.permute.xlu0 %2093  ;;  %v8352_v39 = vpop.permute.xlu1 %1423 }
 0x313   : > { %12748 = vst [vmem:[#allocation46_spill] sm:$0xff] %v8350_v35  ;;  %12749 = vst [vmem:[#allocation47_spill] sm:$0xff] %v8352_v39  ;;  %v12775_v35 = vmov 5  }
 0x314   : > { %7331 = vset.pattern.permute.xlu0 %v12516_v56  ;;  %7289 = vset.pattern.permute.xlu1 %v12516_v56  ;;  %v8372_v56 = vadd.f32 %v8178_v61, %v8106_v31  ;;  %v8386_v61 = vpop.f32.mrb[24].mxu1 }
 0x315   : > { %2649 = vperm.xlu0 %7331, %v8312_v19   ;;  %2637 = vperm.xlu1 %7289, %v8194_v63  }
 0x316   : > { %12754 = vst [vmem:[#allocation52_spill] sm:$0xff] %v8372_v56 }
 0x317   : > { %v8358_v41 = vpop.permute.xlu0 %2361  ;;  %v8360_v45 = vpop.permute.xlu1 %1691 }
 0x318   : > { %12750 = vst [vmem:[#allocation48_spill] sm:$0xff] %v8358_v41  ;;  %12751 = vst [vmem:[#allocation49_spill] sm:$0xff] %v8360_v45  ;;  %v12772_v41 = vmov 10   ;;  %v12779_v45 = vmov 0  }
 0x319   : > { %7333 = vset.pattern.permute.xlu0 %v12519_v58  ;;  %7291 = vset.pattern.permute.xlu1 %v12519_v58 }
 0x31a   : > { %2917 = vperm.xlu0 %7333, %v8312_v19   ;;  %2905 = vperm.xlu1 %7291, %v8194_v63  }
 0x31c   : > { %v8366_v50 = vpop.permute.xlu0 %2629  ;;  %v8368_v54 = vpop.permute.xlu1 %1959 }
 0x31d   : > { %12752 = vst [vmem:[#allocation50_spill] sm:$0xff] %v8366_v50  ;;  %12753 = vst [vmem:[#allocation51_spill] sm:$0xff] %v8368_v54  ;;  %v8446_v54 = vpop.f32.mrb[25].mxu1 }
 0x31e   : > { %7336 = vset.pattern.permute.xlu0 %v12545_v37  ;;  %7292 = vset.pattern.permute.xlu1 %v12528_v46 }
 0x31f   : > { %1447 = vperm.xlu0 %7336, %v8372_v56   ;;  %1156 = vperm.xlu1 %7292, %v8228_v2  }
 0x321   : > { %v8378_v58 = vpop.permute.xlu0 %2897  ;;  %v8380_v52 = vpop.permute.xlu1 %2227 }
 0x322   : > { %12755 = vst [vmem:[#allocation53_spill] sm:$0xff] %v8378_v58  ;;  %12756 = vst [vmem:[#allocation54_spill] sm:$0xff] %v8380_v52 }
 0x323   : > { %7338 = vset.pattern.permute.xlu0 %v12551_v43  ;;  %7293 = vset.pattern.permute.xlu1 %v12536_v16 }
 0x324   : > { %1715 = vperm.xlu0 %7338, %v8372_v56   ;;  %1301 = vperm.xlu1 %7293, %v8228_v2  }
 0x326   : > { %v8390_v46 = vpop.permute.xlu0 %1431  ;;  %v8392_v44 = vpop.permute.xlu1 %2495 }
 0x327   : > { %12757 = vst [vmem:[#allocation55_spill] sm:$0xff] %v8390_v46  ;;  %12758 = vst [vmem:[#allocation56_spill] sm:$0xff] %v8392_v44  ;;  %v12771_v44 = vmov 3  }
 0x328   : > { %7340 = vset.pattern.permute.xlu0 %v12542_v47  ;;  %7294 = vset.pattern.permute.xlu1 %v12545_v37  ;;  %v12763_v37 = vmov 6  }
 0x329   : > { %1983 = vperm.xlu0 %7340, %v8372_v56   ;;  %1435 = vperm.xlu1 %7294, %v8228_v2  }
 0x32b   : > { %v8398_v38 = vpop.permute.xlu0 %1699  ;;  %v8400_v16 = vpop.permute.xlu1 %2763 }
 0x32c   : > { %12759 = vst [vmem:[#allocation57_spill] sm:$0xff] %v8398_v38  ;;  %12760 = vst [vmem:[#allocation58_spill] sm:$0xff] %v8400_v16  ;;  %v12767_v16 = vmov 8   ;;  %v12800_v38 = vmov 13  }
 0x32d   : > { %7342 = vset.pattern.permute.xlu0 %v12548_v51  ;;  %7296 = vset.pattern.permute.xlu1 %v12551_v43  ;;  %v12766_v43 = vmov 12  }
 0x32e   : > { %2251 = vperm.xlu0 %7342, %v8372_v56   ;;  %1703 = vperm.xlu1 %7296, %v8228_v2  }
 0x330   : > { %v8406_v57 = vpop.permute.xlu0 %1967  ;;  %v8408_v47 = vpop.permute.xlu1 %1146 }
 0x331   : > { %12761 = vst [vmem:[#allocation59_spill] sm:$0xff] %v8406_v57  ;;  %12762 = vst [vmem:[#allocation60_spill] sm:$0xff] %v8408_v47 }
 0x332   : > { %7344 = vset.pattern.permute.xlu0 %v12554_v55  ;;  %7298 = vset.pattern.permute.xlu1 %v12763_v37  ;;  %v8424_v55 = vadd.f32 %v8218_v1, %v8106_v31 }
 0x333   : > { %2519 = vperm.xlu0 %7344, %v8372_v56   ;;  %1971 = vperm.xlu1 %7298, %v8228_v2  }
 0x334   : > { %12768 = vst [vmem:[#allocation63_spill] sm:$0xff] %v8424_v55 }
 0x335   : > { %v8414_v58 = vpop.permute.xlu0 %2235  ;;  %v8416_v51 = vpop.permute.xlu1 %1293 }
 0x336   : > { %12764 = vst [vmem:[#allocation61_spill] sm:$0xff] %v8414_v58  ;;  %12765 = vst [vmem:[#allocation62_spill] sm:$0xff] %v8416_v51 }
 0x337   : > { %7346 = vset.pattern.permute.xlu0 %v12766_v43  ;;  %7300 = vset.pattern.permute.xlu1 %v12767_v16 }
 0x338   : > { %2787 = vperm.xlu0 %7346, %v8372_v56   ;;  %2239 = vperm.xlu1 %7300, %v8228_v2  }
 0x33a   : > { %v8426_v50 = vpop.permute.xlu0 %2503  ;;  %v8428_v47 = vpop.permute.xlu1 %1427 }
 0x33b   : > { %12769 = vst [vmem:[#allocation64_spill] sm:$0xff] %v8426_v50  ;;  %12770 = vst [vmem:[#allocation65_spill] sm:$0xff] %v8428_v47  ;;  %v12794_v50 = vmov 9  }
 0x33c   : > { %7351 = vset.pattern.permute.xlu0 %v12771_v44  ;;  %7302 = vset.pattern.permute.xlu1 %v12772_v41 }
 0x33d   : > { %1585 = vperm.xlu0 %7351, %v8424_v55   ;;  %2507 = vperm.xlu1 %7302, %v8228_v2  }
 0x33f   : > { %v8434_v51 = vpop.permute.xlu1 %1561  ;;  %v8436_v52 = vpop.permute.xlu0 %2771 }
 0x340   : > { %12773 = vst [vmem:[#allocation66_spill] sm:$0xff] %v8434_v51  ;;  %12774 = vst [vmem:[#allocation67_spill] sm:$0xff] %v8436_v52  ;;  %v8450_v51 = vpop.f32.mrb[26].mxu1  ;;  %v12791_v52 = vmov 4  }
 0x341   : > { %7353 = vset.pattern.permute.xlu0 %v12775_v35  ;;  %7304 = vset.pattern.permute.xlu1 %v12766_v43 }
 0x342   : > { %1853 = vperm.xlu0 %7353, %v8424_v55   ;;  %2775 = vperm.xlu1 %7304, %v8228_v2  }
 0x344   : > { %v8442_v1 = vpop.permute.xlu1 %1695  ;;  %v8444_v47 = vpop.permute.xlu0 %1569 }
 0x345   : > { %12776 = vst [vmem:[#allocation68_spill] sm:$0xff] %v8442_v1  ;;  %12777 = vst [vmem:[#allocation69_spill] sm:$0xff] %v8444_v47  ;;  %v12782_v1 = vmov 1  }
 0x346   : > { %7355 = vset.pattern.permute.xlu0 %v12778_v30  ;;  %7306 = vset.pattern.permute.xlu1 %v12779_v45 }
 0x347   : > { %2121 = vperm.xlu0 %7355, %v8424_v55   ;;  %1161 = vperm.xlu1 %7306, %v8260_v5  }
 0x349   : > { %v8454_v26 = vpop.permute.xlu1 %1829  ;;  %v8456_v39 = vpop.permute.xlu0 %1837 }
 0x34a   : > { %12780 = vst [vmem:[#allocation70_spill] sm:$0xff] %v8454_v26  ;;  %12781 = vst [vmem:[#allocation71_spill] sm:$0xff] %v8456_v39  ;;  %v8472_v39 = vadd.f32 %v8244_v4, %v8106_v31 }
 0x34b   : > { %7358 = vset.pattern.permute.xlu0 %v12772_v41  ;;  %7307 = vset.pattern.permute.xlu1 %v12782_v1 }
 0x34c   : > { %2523 = vperm.xlu0 %7358, %v8424_v55   ;;  %1305 = vperm.xlu1 %7307, %v8260_v5   ;;  %12785 = vst [vmem:[#allocation74_spill] sm:$0xff] %v8472_v39 }
 0x34e   : > { %v8462_v47 = vpop.permute.xlu1 %1963  ;;  %v8464_v32 = vpop.permute.xlu0 %2105 }
 0x34f   : > { %12783 = vst [vmem:[#allocation72_spill] sm:$0xff] %v8462_v47  ;;  %12784 = vst [vmem:[#allocation73_spill] sm:$0xff] %v8464_v32 }
 0x350   : > { %7360 = vset.pattern.permute.xlu0 %v12766_v43  ;;  %7309 = vset.pattern.permute.xlu1 %v12771_v44 }
 0x351   : > { %2791 = vperm.xlu0 %7360, %v8424_v55   ;;  %1573 = vperm.xlu1 %7309, %v8260_v5  }
 0x353   : > { %v8474_v26 = vpop.permute.xlu1 %2097  ;;  %v8476_v27 = vpop.permute.xlu0 %2373 }
 0x354   : > { %12786 = vst [vmem:[#allocation75_spill] sm:$0xff] %v8474_v26  ;;  %12787 = vst [vmem:[#allocation76_spill] sm:$0xff] %v8476_v27  ;;  %v8494_v26 = vpop.f32.mrb[27].mxu1 }
 0x355   : > { %7364 = vset.pattern.permute.xlu0 %v12788_v0  ;;  %7311 = vset.pattern.permute.xlu1 %v12775_v35 }
 0x356   : > { %1455 = vperm.xlu0 %7364, %v8472_v39   ;;  %1841 = vperm.xlu1 %7311, %v8260_v5  }
 0x358   : > { %v8482_v32 = vpop.permute.xlu1 %2231  ;;  %v8484_v47 = vpop.permute.xlu0 %2641 }
 0x359   : > { %12789 = vst [vmem:[#allocation77_spill] sm:$0xff] %v8482_v32  ;;  %12790 = vst [vmem:[#allocation78_spill] sm:$0xff] %v8484_v47  ;;  %v8498_v32 = vpop.f32.mrb[28].mxu1 }
 0x35a   : > { %7366 = vset.pattern.permute.xlu0 %v12791_v52  ;;  %7313 = vset.pattern.permute.xlu1 %v12778_v30  ;;  %v8530_v23 = vpop.f32.mrb[29].mxu1 }
 0x35b   : > { %1723 = vperm.xlu0 %7366, %v8472_v39   ;;  %2109 = vperm.xlu1 %7313, %v8260_v5  }
 0x35d   : > { %v8490_v4 = vpop.permute.xlu1 %2365  ;;  %v8492_v27 = vpop.permute.xlu0 %2909 }
 0x35e   : > { %12792 = vst [vmem:[#allocation79_spill] sm:$0xff] %v8490_v4  ;;  %12793 = vst [vmem:[#allocation80_spill] sm:$0xff] %v8492_v27  ;;  %v12797_v4 = vmov 11  }
 0x35f   : > { %7368 = vset.pattern.permute.xlu0 %v12763_v37  ;;  %7315 = vset.pattern.permute.xlu1 %v12794_v50 }
 0x360   : > { %1991 = vperm.xlu0 %7368, %v8472_v39   ;;  %2377 = vperm.xlu1 %7315, %v8260_v5  }
 0x362   : > { %v8502_v47 = vpop.permute.xlu1 %2499  ;;  %v8504_v58 = vpop.permute.xlu0 %1439 }
 0x363   : > { %12795 = vst [vmem:[#allocation81_spill] sm:$0xff] %v8502_v47  ;;  %12796 = vst [vmem:[#allocation82_spill] sm:$0xff] %v8504_v58 }
 0x364   : > { %7370 = vset.pattern.permute.xlu0 %v12767_v16  ;;  %7317 = vset.pattern.permute.xlu1 %v12797_v4 }
 0x365   : > { %2259 = vperm.xlu0 %7370, %v8472_v39   ;;  %2645 = vperm.xlu1 %7317, %v8260_v5  }
 0x367   : > { %v8510_v27 = vpop.permute.xlu1 %2633  ;;  %v8512_v57 = vpop.permute.xlu0 %1707 }
 0x368   : > { %12798 = vst [vmem:[#allocation83_spill] sm:$0xff] %v8510_v27  ;;  %12799 = vst [vmem:[#allocation84_spill] sm:$0xff] %v8512_v57 }
 0x369   : > { %7371 = vset.pattern.permute.xlu0 %v12794_v50  ;;  %7319 = vset.pattern.permute.xlu1 %v12800_v38 }
 0x36a   : > { %2393 = vperm.xlu0 %7371, %v8472_v39   ;;  %2913 = vperm.xlu1 %7319, %v8260_v5  }
 0x36c   : > { %v8518_v47 = vpop.permute.xlu1 %2767  ;;  %v8520_v58 = vpop.permute.xlu0 %1975 }
 0x36d   : > { %12801 = vst [vmem:[#allocation85_spill] sm:$0xff] %v8518_v47  ;;  %12802 = vst [vmem:[#allocation86_spill] sm:$0xff] %v8520_v58  ;;  %v8534_v47 = vpop.f32.mrb[30].mxu1  ;;  %v8540_v58 = vadd.f32 %v8298_v15, %v8106_v31 }
 0x36e   : > { %7373 = vset.pattern.permute.xlu0 %v12797_v4  ;;  %7320 = vset.pattern.permute.xlu1 %v12779_v45 }
 0x36f   : > { %2661 = vperm.xlu0 %7373, %v8472_v39   ;;  %1166 = vperm.xlu1 %7320, %v8312_v19   ;;  %12805 = vst [vmem:[#allocation89_spill] sm:$0xff] %v8540_v58 }
 0x371   : > { %v8526_v27 = vpop.permute.xlu1 %2901  ;;  %v8528_v57 = vpop.permute.xlu0 %2243 }
 0x372   : > { %12803 = vst [vmem:[#allocation87_spill] sm:$0xff] %v8526_v27  ;;  %12804 = vst [vmem:[#allocation88_spill] sm:$0xff] %v8528_v57 }
 0x373   : > { %7375 = vset.pattern.permute.xlu0 %v12800_v38  ;;  %7321 = vset.pattern.permute.xlu1 %v12782_v1 }
 0x374   : > { %2929 = vperm.xlu0 %7375, %v8472_v39   ;;  %1309 = vperm.xlu1 %7321, %v8312_v19  }
 0x376   : > { %v8542_v21 = vpop.permute.xlu1 %1151  ;;  %v8544_v27 = vpop.permute.xlu0 %2511 }
 0x377   : > { %12806 = vst [vmem:[#allocation90_spill] sm:$0xff] %v8542_v21  ;;  %12807 = vst [vmem:[#allocation91_spill] sm:$0xff] %v8544_v27 }
 0x378   : > { %7379 = vset.pattern.permute.xlu0 %v12771_v44  ;;  %7322 = vset.pattern.permute.xlu1 %v12788_v0 }
 0x379   : > { %1593 = vperm.xlu0 %7379, %v8540_v58   ;;  %1443 = vperm.xlu1 %7322, %v8312_v19  }
 0x37b   : > { %v8550_v57 = vpop.permute.xlu1 %1297  ;;  %v8552_v18 = vpop.permute.xlu0 %2779 }
 0x37c   : > { %12808 = vst [vmem:[#allocation92_spill] sm:$0xff] %v8550_v57  ;;  %12809 = vst [vmem:[#allocation93_spill] sm:$0xff] %v8552_v18  ;;  %v8568_v18 = vadd.f32 %v8330_v25, %v8106_v31 }
 0x37d   : > { %7381 = vset.pattern.permute.xlu0 %v12775_v35  ;;  %7324 = vset.pattern.permute.xlu1 %v12791_v52 }
 0x37e   : > { %1861 = vperm.xlu0 %7381, %v8540_v58   ;;  %1711 = vperm.xlu1 %7324, %v8312_v19   ;;  %12812 = vst [vmem:[#allocation96_spill] sm:$0xff] %v8568_v18 }
 0x380   : > { %v8558_v15 = vpop.permute.xlu1 %1565  ;;  %v8560_v27 = vpop.permute.xlu0 %1577 }
 0x381   : > { %12810 = vst [vmem:[#allocation94_spill] sm:$0xff] %v8558_v15  ;;  %12811 = vst [vmem:[#allocation95_spill] sm:$0xff] %v8560_v27 }
 0x382   : > { %7383 = vset.pattern.permute.xlu0 %v12778_v30  ;;  %7326 = vset.pattern.permute.xlu1 %v12763_v37 }
 0x383   : > { %2129 = vperm.xlu0 %7383, %v8540_v58   ;;  %1979 = vperm.xlu1 %7326, %v8312_v19  }
 0x385   : > { %v8570_v46 = vpop.permute.xlu1 %1833  ;;  %v8572_v13 = vpop.permute.xlu0 %1845 }
 0x386   : > { %12813 = vst [vmem:[#allocation97_spill] sm:$0xff] %v8570_v46  ;;  %12814 = vst [vmem:[#allocation98_spill] sm:$0xff] %v8572_v13 }
 0x387   : > { %7392 = vset.pattern.permute.xlu0 %v12788_v0  ;;  %7328 = vset.pattern.permute.xlu1 %v12767_v16 }
 0x388   : > { %1463 = vperm.xlu0 %7392, %v8568_v18   ;;  %2247 = vperm.xlu1 %7328, %v8312_v19  }
 0x38a   : > { %v8578_v27 = vpop.permute.xlu1 %2101  ;;  %v8580_v15 = vpop.permute.xlu0 %2113 }
 0x38b   : > { %12815 = vst [vmem:[#allocation99_spill] sm:$0xff] %v8578_v27  ;;  %12816 = vst [vmem:[#allocation100_spill] sm:$0xff] %v8580_v15 }
 0x38c   : > { %7394 = vset.pattern.permute.xlu0 %v12791_v52  ;;  %7330 = vset.pattern.permute.xlu1 %v12772_v41 }
 0x38d   : > { %1731 = vperm.xlu0 %7394, %v8568_v18   ;;  %2515 = vperm.xlu1 %7330, %v8312_v19  }
 0x38f   : > { %v8586_v25 = vpop.permute.xlu1 %2369  ;;  %v8588_v13 = vpop.permute.xlu0 %2381 }
 0x390   : > { %12817 = vst [vmem:[#allocation101_spill] sm:$0xff] %v8586_v25  ;;  %12818 = vst [vmem:[#allocation102_spill] sm:$0xff] %v8588_v13 }
 0x391   : > { %7396 = vset.pattern.permute.xlu0 %v12763_v37  ;;  %7332 = vset.pattern.permute.xlu1 %v12766_v43 }
 0x392   : > { %1999 = vperm.xlu0 %7396, %v8568_v18   ;;  %2783 = vperm.xlu1 %7332, %v8312_v19  }
 0x394   : > { %v8594_v15 = vpop.permute.xlu1 %2637  ;;  %v8596_v27 = vpop.permute.xlu0 %2649 }
 0x395   : > { %12819 = vst [vmem:[#allocation103_spill] sm:$0xff] %v8594_v15  ;;  %12820 = vst [vmem:[#allocation104_spill] sm:$0xff] %v8596_v27 }
 0x396   : > { %7398 = vset.pattern.permute.xlu0 %v12767_v16  ;;  %7334 = vset.pattern.permute.xlu1 %v12779_v45 }
 0x397   : > { %2267 = vperm.xlu0 %7398, %v8568_v18   ;;  %1171 = vperm.xlu1 %7334, %v8372_v56  }
 0x399   : > { %v8602_v13 = vpop.permute.xlu1 %2905  ;;  %v8604_v25 = vpop.permute.xlu0 %2917 }
 0x39a   : > { %12821 = vst [vmem:[#allocation105_spill] sm:$0xff] %v8602_v13  ;;  %12822 = vst [vmem:[#allocation106_spill] sm:$0xff] %v8604_v25  ;;  %v8620_v25 = vadd.f32 %v8386_v61, %v8106_v31 }
 0x39b   : > { %7400 = vset.pattern.permute.xlu0 %v12772_v41  ;;  %7335 = vset.pattern.permute.xlu1 %v12782_v1 }
 0x39c   : > { %2535 = vperm.xlu0 %7400, %v8568_v18   ;;  %1313 = vperm.xlu1 %7335, %v8372_v56   ;;  %12825 = vst [vmem:[#allocation109_spill] sm:$0xff] %v8620_v25 }
 0x39e   : > { %v8610_v27 = vpop.permute.xlu0 %1447  ;;  %v8612_v15 = vpop.permute.xlu1 %1156 }
 0x39f   : > { %12823 = vst [vmem:[#allocation107_spill] sm:$0xff] %v8610_v27  ;;  %12824 = vst [vmem:[#allocation108_spill] sm:$0xff] %v8612_v15  ;;  %v8630_v15 = vpop.f32.mrb[31].mxu1 }
 0x3a0   : > { %7402 = vset.pattern.permute.xlu0 %v12766_v43  ;;  %7337 = vset.pattern.permute.xlu1 %v12771_v44 }
 0x3a1   : > { %2803 = vperm.xlu0 %7402, %v8568_v18   ;;  %1581 = vperm.xlu1 %7337, %v8372_v56  }
 0x3a3   : > { %v8622_v13 = vpop.permute.xlu0 %1715  ;;  %v8624_v46 = vpop.permute.xlu1 %1301 }
 0x3a4   : > { %12826 = vst [vmem:[#allocation110_spill] sm:$0xff] %v8622_v13  ;;  %12827 = vst [vmem:[#allocation111_spill] sm:$0xff] %v8624_v46 }
 0x3a5   : > { %7404 = vset.pattern.permute.xlu0 %v12782_v1  ;;  %7339 = vset.pattern.permute.xlu1 %v12775_v35 }
 0x3a6   : > { %1333 = vperm.xlu0 %7404, %v8620_v25   ;;  %1849 = vperm.xlu1 %7339, %v8372_v56  }
 0x3a8   : > { %v8632_v27 = vpop.permute.xlu0 %1983  ;;  %v8634_v22 = vpop.permute.xlu1 %1435 }
 0x3a9   : > { %12828 = vst [vmem:[#allocation112_spill] sm:$0xff] %v8632_v27  ;;  %12829 = vst [vmem:[#allocation113_spill] sm:$0xff] %v8634_v22 }
 0x3aa   : > { %7406 = vset.pattern.permute.xlu0 %v12771_v44  ;;  %7341 = vset.pattern.permute.xlu1 %v12778_v30 }
 0x3ab   : > { %1601 = vperm.xlu0 %7406, %v8620_v25   ;;  %2117 = vperm.xlu1 %7341, %v8372_v56  }
 0x3ad   : > { %v8640_v61 = vpop.permute.xlu0 %2251  ;;  %v8642_v46 = vpop.permute.xlu1 %1703 }
 0x3ae   : > { %12830 = vst [vmem:[#allocation114_spill] sm:$0xff] %v8640_v61  ;;  %12831 = vst [vmem:[#allocation115_spill] sm:$0xff] %v8642_v46 }
 0x3af   : > { %7408 = vset.pattern.permute.xlu0 %v12775_v35  ;;  %7343 = vset.pattern.permute.xlu1 %v12794_v50 }
 0x3b0   : > { %1869 = vperm.xlu0 %7408, %v8620_v25   ;;  %2385 = vperm.xlu1 %7343, %v8372_v56  }
 0x3b2   : > { %v8648_v22 = vpop.permute.xlu0 %2519  ;;  %v8650_v27 = vpop.permute.xlu1 %1971 }
 0x3b3   : > { %12832 = vst [vmem:[#allocation116_spill] sm:$0xff] %v8648_v22  ;;  %12833 = vst [vmem:[#allocation117_spill] sm:$0xff] %v8650_v27 }
 0x3b4   : > { %7410 = vset.pattern.permute.xlu0 %v12778_v30  ;;  %7345 = vset.pattern.permute.xlu1 %v12797_v4 }
 0x3b5   : > { %2137 = vperm.xlu0 %7410, %v8620_v25   ;;  %2653 = vperm.xlu1 %7345, %v8372_v56  }
 0x3b7   : > { %v8656_v46 = vpop.permute.xlu1 %2239  ;;  %v8658_v61 = vpop.permute.xlu0 %2787 }
 0x3b8   : > { %12834 = vst [vmem:[#allocation118_spill] sm:$0xff] %v8656_v46  ;;  %12835 = vst [vmem:[#allocation119_spill] sm:$0xff] %v8658_v61 }
 0x3b9   : > { %7411 = vset.pattern.permute.xlu0 %v12767_v16  ;;  %7347 = vset.pattern.permute.xlu1 %v12800_v38 }
 0x3ba   : > { %2271 = vperm.xlu0 %7411, %v8620_v25   ;;  %2921 = vperm.xlu1 %7347, %v8372_v56  }
 0x3bc   : > { %v8664_v27 = vpop.permute.xlu1 %2507  ;;  %v8666_v22 = vpop.permute.xlu0 %1585 }
 0x3bd   : > { %12836 = vst [vmem:[#allocation120_spill] sm:$0xff] %v8664_v27  ;;  %12837 = vst [vmem:[#allocation121_spill] sm:$0xff] %v8666_v22  ;;  %v8682_v27 = vadd.f32 %v8450_v51, %v8106_v31 }
 0x3be   : > { %7413 = vset.pattern.permute.xlu0 %v12772_v41  ;;  %7348 = vset.pattern.permute.xlu1 %v12779_v45 }
 0x3bf   : > { %2539 = vperm.xlu0 %7413, %v8620_v25   ;;  %1176 = vperm.xlu1 %7348, %v8424_v55   ;;  %12840 = vst [vmem:[#allocation124_spill] sm:$0xff] %v8682_v27 }
 0x3c1   : > { %v8672_v46 = vpop.permute.xlu1 %2775  ;;  %v8674_v61 = vpop.permute.xlu0 %1853 }
 0x3c2   : > { %12838 = vst [vmem:[#allocation122_spill] sm:$0xff] %v8672_v46  ;;  %12839 = vst [vmem:[#allocation123_spill] sm:$0xff] %v8674_v61 }
 0x3c3   : > { %7415 = vset.pattern.permute.xlu0 %v12766_v43  ;;  %7349 = vset.pattern.permute.xlu1 %v12782_v1 }
 0x3c4   : > { %2807 = vperm.xlu0 %7415, %v8620_v25   ;;  %1317 = vperm.xlu1 %7349, %v8424_v55  }
 0x3c6   : > { %v8684_v22 = vpop.permute.xlu1 %1161  ;;  %v8686_v13 = vpop.permute.xlu0 %2121 }
 0x3c7   : > { %12841 = vst [vmem:[#allocation125_spill] sm:$0xff] %v8684_v22  ;;  %12842 = vst [vmem:[#allocation126_spill] sm:$0xff] %v8686_v13 }
 0x3c8   : > { %7418 = vset.pattern.permute.xlu0 %v12788_v0  ;;  %7350 = vset.pattern.permute.xlu1 %v12788_v0 }
 0x3c9   : > { %1471 = vperm.xlu0 %7418, %v8682_v27   ;;  %1451 = vperm.xlu1 %7350, %v8424_v55  }
 0x3cb   : > { %v8692_v46 = vpop.permute.xlu1 %1305  ;;  %v8694_v61 = vpop.permute.xlu0 %2523 }
 0x3cc   : > { %12843 = vst [vmem:[#allocation127_spill] sm:$0xff] %v8692_v46  ;;  %12844 = vst [vmem:[#allocation128_spill] sm:$0xff] %v8694_v61 }
 0x3cd   : > { %7420 = vset.pattern.permute.xlu0 %v12791_v52  ;;  %7352 = vset.pattern.permute.xlu1 %v12791_v52 }
 0x3ce   : > { %1739 = vperm.xlu0 %7420, %v8682_v27   ;;  %1719 = vperm.xlu1 %7352, %v8424_v55  }
 0x3d0   : > { %v8700_v51 = vpop.permute.xlu1 %1573  ;;  %v8702_v13 = vpop.permute.xlu0 %2791 }
 0x3d1   : > { %12845 = vst [vmem:[#allocation129_spill] sm:$0xff] %v8700_v51  ;;  %12846 = vst [vmem:[#allocation130_spill] sm:$0xff] %v8702_v13 }
 0x3d2   : > { %7422 = vset.pattern.permute.xlu0 %v12763_v37  ;;  %7354 = vset.pattern.permute.xlu1 %v12763_v37 }
 0x3d3   : > { %2007 = vperm.xlu0 %7422, %v8682_v27   ;;  %1987 = vperm.xlu1 %7354, %v8424_v55  }
 0x3d5   : > { %v8708_v61 = vpop.permute.xlu1 %1841  ;;  %v8710_v46 = vpop.permute.xlu0 %1455 }
 0x3d6   : > { %12847 = vst [vmem:[#allocation131_spill] sm:$0xff] %v8708_v61  ;;  %12848 = vst [vmem:[#allocation132_spill] sm:$0xff] %v8710_v46  ;;  %v8726_v46 = vadd.f32 %v8498_v32, %v8106_v31 }
 0x3d7   : > { %7425 = vset.pattern.permute.xlu0 %v12794_v50  ;;  %7356 = vset.pattern.permute.xlu1 %v12767_v16 }
 0x3d8   : > { %2409 = vperm.xlu0 %7425, %v8682_v27   ;;  %2255 = vperm.xlu1 %7356, %v8424_v55   ;;  %12851 = vst [vmem:[#allocation135_spill] sm:$0xff] %v8726_v46 }
 0x3da   : > { %v8716_v13 = vpop.permute.xlu1 %2109  ;;  %v8718_v51 = vpop.permute.xlu0 %1723 }
 0x3db   : > { %12849 = vst [vmem:[#allocation133_spill] sm:$0xff] %v8716_v13  ;;  %12850 = vst [vmem:[#allocation134_spill] sm:$0xff] %v8718_v51 }
 0x3dc   : > { %7427 = vset.pattern.permute.xlu0 %v12797_v4  ;;  %7357 = vset.pattern.permute.xlu1 %v12794_v50 }
 0x3dd   : > { %2677 = vperm.xlu0 %7427, %v8682_v27   ;;  %2389 = vperm.xlu1 %7357, %v8424_v55  }
 0x3df   : > { %v8728_v61 = vpop.permute.xlu1 %2377  ;;  %v8730_v22 = vpop.permute.xlu0 %1991 }
 0x3e0   : > { %12852 = vst [vmem:[#allocation136_spill] sm:$0xff] %v8728_v61  ;;  %12853 = vst [vmem:[#allocation137_spill] sm:$0xff] %v8730_v22 }
 0x3e1   : > { %7430 = vset.pattern.permute.xlu0 %v12782_v1  ;;  %7359 = vset.pattern.permute.xlu1 %v12797_v4 }
 0x3e2   : > { %1341 = vperm.xlu0 %7430, %v8726_v46   ;;  %2657 = vperm.xlu1 %7359, %v8424_v55  }
 0x3e4   : > { %v8736_v51 = vpop.permute.xlu1 %2645  ;;  %v8738_v13 = vpop.permute.xlu0 %2259 }
 0x3e5   : > { %12854 = vst [vmem:[#allocation138_spill] sm:$0xff] %v8736_v51  ;;  %12855 = vst [vmem:[#allocation139_spill] sm:$0xff] %v8738_v13 }
 0x3e6   : > { %7432 = vset.pattern.permute.xlu0 %v12771_v44  ;;  %7361 = vset.pattern.permute.xlu1 %v12800_v38 }
 0x3e7   : > { %1609 = vperm.xlu0 %7432, %v8726_v46   ;;  %2925 = vperm.xlu1 %7361, %v8424_v55  }
 0x3e9   : > { %v8744_v32 = vpop.permute.xlu1 %2913  ;;  %v8746_v22 = vpop.permute.xlu0 %2393 }
 0x3ea   : > { %12856 = vst [vmem:[#allocation140_spill] sm:$0xff] %v8744_v32  ;;  %12857 = vst [vmem:[#allocation141_spill] sm:$0xff] %v8746_v22  ;;  %v8762_v22 = vadd.f32 %v8534_v47, %v8106_v31 }
 0x3eb   : > { %7434 = vset.pattern.permute.xlu0 %v12775_v35  ;;  %7362 = vset.pattern.permute.xlu1 %v12779_v45 }
 0x3ec   : > { %1877 = vperm.xlu0 %7434, %v8726_v46   ;;  %1181 = vperm.xlu1 %7362, %v8472_v39   ;;  %12860 = vst [vmem:[#allocation144_spill] sm:$0xff] %v8762_v22 }
 0x3ee   : > { %v8752_v13 = vpop.permute.xlu1 %1166  ;;  %v8754_v51 = vpop.permute.xlu0 %2661 }
 0x3ef   : > { %12858 = vst [vmem:[#allocation142_spill] sm:$0xff] %v8752_v13  ;;  %12859 = vst [vmem:[#allocation143_spill] sm:$0xff] %v8754_v51 }
 0x3f0   : > { %7436 = vset.pattern.permute.xlu0 %v12778_v30  ;;  %7363 = vset.pattern.permute.xlu1 %v12782_v1 }
 0x3f1   : > { %2145 = vperm.xlu0 %7436, %v8726_v46   ;;  %1321 = vperm.xlu1 %7363, %v8472_v39  }
 0x3f3   : > { %v8764_v32 = vpop.permute.xlu1 %1309  ;;  %v8766_v61 = vpop.permute.xlu0 %2929 }
 0x3f4   : > { %12861 = vst [vmem:[#allocation145_spill] sm:$0xff] %v8764_v32  ;;  %12862 = vst [vmem:[#allocation146_spill] sm:$0xff] %v8766_v61 }
 0x3f5   : > { %7444 = vset.pattern.permute.xlu0 %v12788_v0  ;;  %7365 = vset.pattern.permute.xlu1 %v12771_v44 }
 0x3f6   : > { %1479 = vperm.xlu0 %7444, %v8762_v22   ;;  %1589 = vperm.xlu1 %7365, %v8472_v39  }
 0x3f8   : > { %v8772_v51 = vpop.permute.xlu1 %1443  ;;  %v8774_v13 = vpop.permute.xlu0 %1593 }
 0x3f9   : > { %12863 = vst [vmem:[#allocation147_spill] sm:$0xff] %v8772_v51 }
 0x3fa   : > { %7446 = vset.pattern.permute.xlu0 %v12791_v52  ;;  %7367 = vset.pattern.permute.xlu1 %v12775_v35 }
 0x3fb   : > { %1747 = vperm.xlu0 %7446, %v8762_v22   ;;  %1857 = vperm.xlu1 %7367, %v8472_v39  }
 0x3fd   : > { %v8780_v47 = vpop.permute.xlu1 %1711  ;;  %v8782_v31 = vpop.permute.xlu0 %1861 }
 0x3fe   : > { %12864 = vst [vmem:[#allocation148_spill] sm:$0xff] %v8780_v47 }
 0x3ff   : > { %7448 = vset.pattern.permute.xlu0 %v12763_v37  ;;  %7369 = vset.pattern.permute.xlu1 %v12778_v30 }
 0x400   : > { %2015 = vperm.xlu0 %7448, %v8762_v22   ;;  %2125 = vperm.xlu1 %7369, %v8472_v39  }
 0x402   : > { %v8788_v61 = vpop.permute.xlu1 %1979  ;;  %v8790_v51 = vpop.permute.xlu0 %2129 }
 0x403   : > { %12865 = vst [vmem:[#allocation149_spill] sm:$0xff] %v8788_v61 }
 0x404   : > { %7450 = vset.pattern.permute.xlu0 %v12767_v16  ;;  %7372 = vset.pattern.permute.xlu1 %v12772_v41 }
 0x405   : > { %2283 = vperm.xlu0 %7450, %v8762_v22   ;;  %2527 = vperm.xlu1 %7372, %v8472_v39  }
 0x407   : > { %v8796_v47 = vpop.permute.xlu1 %2247  ;;  %v8798_v32 = vpop.permute.xlu0 %1463 }
 0x408   : > { %12866 = vst [vmem:[#allocation150_spill] sm:$0xff] %v8796_v47 }
 0x409   : > { %7452 = vset.pattern.permute.xlu0 %v12772_v41  ;;  %7374 = vset.pattern.permute.xlu1 %v12766_v43 }
 0x40a   : > { %2551 = vperm.xlu0 %7452, %v8762_v22   ;;  %2795 = vperm.xlu1 %7374, %v8472_v39  }
 0x40c   : > { %v8804_v61 = vpop.permute.xlu1 %2515  ;;  %v8806_v20 = vpop.permute.xlu0 %1731 }
 0x40d   : > { %12867 = vst [vmem:[#allocation151_spill] sm:$0xff] %v8804_v61 }
 0x40e   : > { %7457 = vset.pattern.permute.xlu0 %v12766_v43  ;;  %7376 = vset.pattern.permute.xlu1 %v12779_v45 }
 0x40f   : > { %2819 = vperm.xlu0 %7457, %v8762_v22   ;;  %1186 = vperm.xlu1 %7376, %v8540_v58  }
 0x411   : > { %v8812_v47 = vpop.permute.xlu1 %2783  ;;  %v8815_v17 = vpop.permute.xlu0 %1999 }
 0x412   : > { %12868 = vst [vmem:[#allocation152_spill] sm:$0xff] %v8812_v47 }
 0x413   : > { %7377 = vset.pattern.permute.xlu1 %v12782_v1 }
 0x414   : > { %1325 = vperm.xlu1 %7377, %v8540_v58  }
 0x416   : > { %v8818_v11 = vpop.permute.xlu1 %1171  ;;  %v8822_v61 = vpop.permute.xlu0 %2267 }
 0x417   : > { %12869 = vst [vmem:[#allocation153_spill] sm:$0xff] %v8818_v11  ;;  %v8834_v11 = vsub.s32 1, %v8096_v28 }
 0x418   : > { %7378 = vset.pattern.permute.xlu1 %v12788_v0 }
 0x419   : > { %1459 = vperm.xlu1 %7378, %v8540_v58   ;;  %12872 = vst [vmem:[#allocation156_spill] sm:$0xff] %v8834_v11 }
 0x41b   : > { %v8824_v12 = vpop.permute.xlu1 %1313  ;;  %v8828_v47 = vpop.permute.xlu0 %2535 }
 0x41c   : > { %12870 = vst [vmem:[#allocation154_spill] sm:$0xff] %v8824_v12  ;;  %v7531_v12 = vld [vmem:[%s12508_s5] sm:$0x3] }
 0x41d   : > { %7380 = vset.pattern.permute.xlu1 %v12791_v52  ;;  %v8845_v9 = vrot.slane %v7531_v12, %v8834_v11 }
 0x41e   : > { %1727 = vperm.xlu1 %7380, %v8540_v58  }
 0x41f   : > { %12875 = vst [vmem:[#allocation159_spill] sm:$0xff] %v8845_v9  ;;  %v949_v12 = vadd.f32 %v8113_v36, %v8845_v9  ;;  %v959_v36 = vadd.f32 %v8127_v42, %v8845_v9  ;;  %v969_v42 = vadd.f32 %v8147_v53, %v8845_v9  ;;  %v979_v53 = vadd.f32 %v8182_v62, %v8845_v9 }
 0x420   : > { %v8830_v57 = vpop.permute.xlu1 %1581  ;;  %v8839_v10 = vpop.permute.xlu0 %2803  ;;  %v989_v62 = vadd.f32 %v8294_v14, %v8845_v9  ;;  %v999_v14 = vadd.f32 %v8382_v48, %v8845_v9  ;;  %v1009_v48 = vadd.f32 %v8494_v26, %v8845_v9  ;;  %v1019_v26 = vadd.f32 %v8630_v15, %v8845_v9 }
 0x421   : > { %12871 = vst [vmem:[#allocation155_spill] sm:$0xff] %v8830_v57  ;;  %12874 = vst [vmem:[#allocation158_spill] sm:$0xff] %v8839_v10 }
 0x422   : > { %7382 = vset.pattern.permute.xlu1 %v12763_v37 }
 0x423   : > { %1995 = vperm.xlu1 %7382, %v8540_v58  }
 0x425   : > { %v8837_v21 = vpop.permute.xlu1 %1849  ;;  %v8849_v57 = vpop.permute.xlu0 %1333 }
 0x426   : > { %12873 = vst [vmem:[#allocation157_spill] sm:$0xff] %v8837_v21  ;;  %v945_v21 = vadd.f32 %v8111_v34, %v8845_v9  ;;  %v955_v34 = vadd.f32 %v8123_v40, %v8845_v9 }
 0x427   : > { %7384 = vset.pattern.permute.xlu1 %v12767_v16 }
 0x428   : > { %2263 = vperm.xlu1 %7384, %v8540_v58  }
 0x42a   : > { %v8851_v8 = vpop.permute.xlu1 %2117  ;;  %v8861_v7 = vpop.permute.xlu0 %1601 }
 0x42b   : > { %12876 = vst [vmem:[#allocation160_spill] sm:$0xff] %v8851_v8 }
 0x42c   : > { %7385 = vset.pattern.permute.xlu1 %v12794_v50 }
 0x42d   : > { %1102 = vxpose.xlu0.b32.start [1/16] (narrow) %v945_v21, 16  ;;  %2397 = vperm.xlu1 %7385, %v8540_v58  }
 0x42f   : > { %v8859_v10 = vpop.permute.xlu1 %2385  ;;  %v8869_v21 = vpop.permute.xlu0 %1869 }
 0x430   : > { %12877 = vst [vmem:[#allocation161_spill] sm:$0xff] %v8859_v10  ;;  %v965_v10 = vadd.f32 %v8137_v49, %v8845_v9  ;;  %v975_v49 = vadd.f32 %v8174_v60, %v8845_v9  ;;  %v985_v60 = vadd.f32 %v8242_v3, %v8845_v9  ;;  %v995_v3 = vadd.f32 %v8326_v24, %v8845_v9 }
 0x431   : > { %1103 = vxpose.xlu0.b32.cont [2/16] (narrow) %v949_v12, 16  ;;  %7386 = vset.pattern.permute.xlu1 %v12772_v41  ;;  %v1005_v24 = vadd.f32 %v8446_v54, %v8845_v9 }
 0x432   : > { %2531 = vperm.xlu1 %7386, %v8540_v58  }
 0x434   : > { %v8867_v8 = vpop.permute.xlu1 %2653  ;;  %v8880_v40 = vpop.permute.xlu0 %2137 }
 0x435   : > { %12878 = vst [vmem:[#allocation162_spill] sm:$0xff] %v8867_v8  ;;  %1104 = vxpose.xlu0.b32.cont [3/16] (narrow) %v955_v34, 16 }
 0x436   : > { %7387 = vset.pattern.permute.xlu1 %v12797_v4 }
 0x437   : > { %2665 = vperm.xlu1 %7387, %v8540_v58  }
 0x439   : > { %1105 = vxpose.xlu0.b32.cont [4/16] (narrow) %v959_v36, 16  ;;  %v8875_v12 = vpop.permute.xlu1 %2921  ;;  %v8889_v36 = vpop.permute.xlu0 %2271 }
 0x43a   : > { %12879 = vst [vmem:[#allocation163_spill] sm:$0xff] %v8875_v12 }
 0x43b   : > { %7388 = vset.pattern.permute.xlu1 %v12766_v43 }
 0x43c   : > { %2799 = vperm.xlu1 %7388, %v8540_v58  }
 0x43d   : > { %1106 = vxpose.xlu0.b32.cont [5/16] (narrow) %v965_v10, 16 }
 0x43e   : > { %v8883_v34 = vpop.permute.xlu1 %1176  ;;  %v8899_v10 = vpop.permute.xlu0 %2539 }
 0x43f   : > { %12880 = vst [vmem:[#allocation164_spill] sm:$0xff] %v8883_v34  ;;  %12882 = vst [vmem:[#allocation166_spill] sm:$0xff] %v8899_v10  ;;  %v9059_v34 = vstv %s6687_s18  ;;  %v9197_v10 = vstv %s9128_s24 }
 0x440   : > { %7389 = vset.pattern.permute.xlu1 %v12800_v38  ;;  %12932 = vst [vmem:[#allocation216_spill] sm:$0xff] %v9197_v10 }
 0x441   : > { %1107 = vxpose.xlu0.b32.cont [6/16] (narrow) %v969_v42, 16  ;;  %2933 = vperm.xlu1 %7389, %v8540_v58  }
 0x443   : > { %v8893_v12 = vpop.permute.xlu1 %1317  ;;  %v8909_v58 = vpop.permute.xlu0 %2807 }
 0x444   : > { %12881 = vst [vmem:[#allocation165_spill] sm:$0xff] %v8893_v12  ;;  %12885 = vst [vmem:[#allocation169_spill] sm:$0xff] %v8909_v58 }
 0x445   : > { %1108 = vxpose.xlu0.b32.cont [7/16] (narrow) %v975_v49, 16  ;;  %7390 = vset.pattern.permute.xlu1 %v12779_v45 }
 0x446   : > { %1191 = vperm.xlu1 %7390, %v8568_v18  }
 0x448   : > { %v8901_v42 = vpop.permute.xlu1 %1451 }
 0x449   : > { %12883 = vst [vmem:[#allocation167_spill] sm:$0xff] %v8901_v42  ;;  %1109 = vxpose.xlu0.b32.cont [8/16] (narrow) %v979_v53, 16  ;;  %v8919_v42 = vpop.permute.xlu0 %1471 }
 0x44a   : > { %7391 = vset.pattern.permute.xlu1 %v12782_v1  ;;  %12887 = vst [vmem:[#allocation171_spill] sm:$0xff] %v8919_v42 }
 0x44b   : > { %1329 = vperm.xlu1 %7391, %v8568_v18  }
 0x44d   : > { %1110 = vxpose.xlu0.b32.cont [9/16] (narrow) %v985_v60, 16  ;;  %v8907_v49 = vpop.permute.xlu1 %1719 }
 0x44e   : > { %12884 = vst [vmem:[#allocation168_spill] sm:$0xff] %v8907_v49 }
 0x44f   : > { %7393 = vset.pattern.permute.xlu1 %v12771_v44 }
 0x450   : > { %1597 = vperm.xlu1 %7393, %v8568_v18  }
 0x451   : > { %1111 = vxpose.xlu0.b32.cont [10/16] (narrow) %v989_v62, 16  ;;  %v8928_v62 = vpop.permute.xlu0 %1739 }
 0x452   : > { %v8915_v53 = vpop.permute.xlu1 %1987  ;;  %12889 = vst [vmem:[#allocation173_spill] sm:$0xff] %v8928_v62 }
 0x453   : > { %12886 = vst [vmem:[#allocation170_spill] sm:$0xff] %v8915_v53 }
 0x454   : > { %7395 = vset.pattern.permute.xlu1 %v12775_v35 }
 0x455   : > { %1112 = vxpose.xlu0.b32.cont [11/16] (narrow) %v995_v3, 16  ;;  %1865 = vperm.xlu1 %7395, %v8568_v18   ;;  %v8939_v3 = vpop.permute.xlu0 %2007 }
 0x456   : > { %12891 = vst [vmem:[#allocation175_spill] sm:$0xff] %v8939_v3 }
 0x457   : > { %v8925_v60 = vpop.permute.xlu1 %2255 }
 0x458   : > { %12888 = vst [vmem:[#allocation172_spill] sm:$0xff] %v8925_v60  ;;  %v1015_v60 = vadd.f32 %v8530_v23, %v8845_v9 }
 0x459   : > { %1113 = vxpose.xlu0.b32.cont [12/16] (narrow) %v999_v14, 16  ;;  %7397 = vset.pattern.permute.xlu1 %v12778_v30  ;;  %v8947_v54 = vpop.permute.xlu0 %2409 }
 0x45a   : > { %2133 = vperm.xlu1 %7397, %v8568_v18   ;;  %12893 = vst [vmem:[#allocation177_spill] sm:$0xff] %v8947_v54  ;;  %v9057_v54 = vstv %s1250_s16 }
 0x45c   : > { %v8933_v58 = vpop.permute.xlu1 %2389 }
 0x45d   : > { %12890 = vst [vmem:[#allocation174_spill] sm:$0xff] %v8933_v58  ;;  %1114 = vxpose.xlu0.b32.cont [13/16] (narrow) %v1005_v24, 16  ;;  %v8957_v23 = vpop.permute.xlu0 %2677 }
 0x45e   : > { %7399 = vset.pattern.permute.xlu1 %v12794_v50  ;;  %12896 = vst [vmem:[#allocation180_spill] sm:$0xff] %v8957_v23 }
 0x45f   : > { %2401 = vperm.xlu1 %7399, %v8568_v18  }
 0x461   : > { %1115 = vxpose.xlu0.b32.cont [14/16] (narrow) %v1009_v48, 16  ;;  %v8941_v14 = vpop.permute.xlu1 %2657 }
 0x462   : > { %12892 = vst [vmem:[#allocation176_spill] sm:$0xff] %v8941_v14  ;;  %v8963_v14 = vpop.permute.xlu0 %1341 }
 0x463   : > { %7401 = vset.pattern.permute.xlu1 %v12797_v4  ;;  %12898 = vst [vmem:[#allocation182_spill] sm:$0xff] %v8963_v14  ;;  %v9049_v14 = vsub.s32 3, %v8096_v28 }
 0x464   : > { %2669 = vperm.xlu1 %7401, %v8568_v18  }
 0x465   : > { %1116 = vxpose.xlu0.b32.cont [15/16] (narrow) %v1015_v60, 16  ;;  %12914 = vst [vmem:[#allocation198_spill] sm:$0xff] %v9049_v14 }
 0x466   : > { %v8949_v24 = vpop.permute.xlu1 %2925 }
 0x467   : > { %12894 = vst [vmem:[#allocation178_spill] sm:$0xff] %v8949_v24 }
 0x468   : > { %7403 = vset.pattern.permute.xlu1 %v12779_v45 }
 0x469   : > { %1117 = vxpose.xlu0.b32.end [16/16] (narrow) %v1019_v26, 16  ;;  %1196 = vperm.xlu1 %7403, %v8620_v25   ;;  %v8970_v26 = vpop.permute.xlu0 %1609 }
 0x46a   : > { %12900 = vst [vmem:[#allocation184_spill] sm:$0xff] %v8970_v26 }
 0x46b   : > { %v8955_v48 = vpop.permute.xlu1 %1181 }
 0x46c   : > { %12895 = vst [vmem:[#allocation179_spill] sm:$0xff] %v8955_v48 }
 0x46d   : > { %7405 = vset.pattern.permute.xlu1 %v12788_v0 }
 0x46e   : > { %1467 = vperm.xlu1 %7405, %v8620_v25  }
 0x470   : > { %v8961_v60 = vpop.permute.xlu1 %1321 }
 0x471   : > { %12897 = vst [vmem:[#allocation181_spill] sm:$0xff] %v8961_v60  ;;  %v8977_v60 = vpop.permute.xlu0 %1877 }
 0x472   : > { %7407 = vset.pattern.permute.xlu1 %v12791_v52  ;;  %12902 = vst [vmem:[#allocation186_spill] sm:$0xff] %v8977_v60 }
 0x473   : > { %1735 = vperm.xlu1 %7407, %v8620_v25  }
 0x475   : > { %v8967_v15 = vpop.permute.xlu1 %1589 }
 0x476   : > { %12899 = vst [vmem:[#allocation183_spill] sm:$0xff] %v8967_v15  ;;  %v8983_v15 = vpop.permute.xlu0 %2145 }
 0x477   : > { %7409 = vset.pattern.permute.xlu1 %v12763_v37  ;;  %12904 = vst [vmem:[#allocation188_spill] sm:$0xff] %v8983_v15 }
 0x478   : > { %2003 = vperm.xlu1 %7409, %v8620_v25  }
 0x47a   : > { %v8973_v9 = vpop.permute.xlu1 %1857  ;;  %v8991_v24 = vpop.permute.xlu0 %1479 }
 0x47b   : > { %12901 = vst [vmem:[#allocation185_spill] sm:$0xff] %v8973_v9  ;;  %12907 = vst [vmem:[#allocation191_spill] sm:$0xff] %v8991_v24  ;;  %v12565_v24 = vmov 14  }
 0x47c   : > { %7412 = vset.pattern.permute.xlu1 %v12794_v50 }
 0x47d   : > { %2405 = vperm.xlu1 %7412, %v8620_v25  }
 0x47e   : > { %v8995_v60 = vpop.permute.xlu0 %1747 }
 0x47f   : > { %v8979_v48 = vpop.permute.xlu1 %2125  ;;  %12908 = vst [vmem:[#allocation192_spill] sm:$0xff] %v8995_v60 }
 0x480   : > { %12903 = vst [vmem:[#allocation187_spill] sm:$0xff] %v8979_v48 }
 0x481   : > { %7414 = vset.pattern.permute.xlu1 %v12797_v4 }
 0x482   : > { %2673 = vperm.xlu1 %7414, %v8620_v25  }
 0x484   : > { %v8985_v23 = vpop.permute.xlu1 %2527 }
 0x485   : > { %12905 = vst [vmem:[#allocation189_spill] sm:$0xff] %v8985_v23 }
 0x486   : > { %7416 = vset.pattern.permute.xlu1 %v12779_v45 }
 0x487   : > { %1201 = vperm.xlu1 %7416, %v8682_v27  }
 0x489   : > { %v8989_v9 = vpop.permute.xlu1 %2795 }
 0x48a   : > { %12906 = vst [vmem:[#allocation190_spill] sm:$0xff] %v8989_v9  ;;  %v9002_v9 = vpop.permute.xlu0 %2015 }
 0x48b   : > { %7417 = vset.pattern.permute.xlu1 %v12782_v1  ;;  %12909 = vst [vmem:[#allocation193_spill] sm:$0xff] %v9002_v9 }
 0x48c   : > { %1337 = vperm.xlu1 %7417, %v8682_v27  }
 0x48e   : > { %v1187_v48 = vpop.permute.xlu1 %1186  ;;  %v9009_v15 = vpop.permute.xlu0 %2283 }
 0x48f   : > { %12910 = vst [vmem:[#allocation194_spill] sm:$0xff] %v9009_v15 }
 0x490   : > { %7419 = vset.pattern.permute.xlu1 %v12771_v44  ;;  %v9140_v44 = vstv %s9087_s12 }
 0x491   : > { %1605 = vperm.xlu1 %7419, %v8682_v27   ;;  %12923 = vst [vmem:[#allocation207_spill] sm:$0xff] %v9140_v44 }
 0x492   : > { %7458 = vset.pattern.permute.xlu0 %v12800_v38  ;;  %v9076_v38 = vsub.s32 5, %v8096_v28 }
 0x493   : > { %2945 = vperm.xlu0 %7458, %v8682_v27   ;;  %v1326_v23 = vpop.permute.xlu1 %1325 }
 0x494   : > { %12918 = vst [vmem:[#allocation202_spill] sm:$0xff] %v9076_v38 }
 0x495   : > { %7421 = vset.pattern.permute.xlu1 %v12775_v35  ;;  %v9093_v35 = vsub.s32 6, %v8096_v28 }
 0x496   : > { %1873 = vperm.xlu1 %7421, %v8682_v27  }
 0x497   : > { %7459 = vset.pattern.permute.xlu0 %v12565_v24  ;;  %v9017_v24 = vpop.permute.xlu0 %2551  ;;  %12920 = vst [vmem:[#allocation204_spill] sm:$0xff] %v9093_v35 }
 0x498   : > { %3027 = vperm.xlu0 %7459, %v8109_v33   ;;  %v1460_v60 = vpop.permute.xlu1 %1459  ;;  %12911 = vst [vmem:[#allocation195_spill] sm:$0xff] %v9017_v24 }
 0x49a   : > { %7423 = vset.pattern.permute.xlu1 %v12778_v30 }
 0x49b   : > { %2141 = vperm.xlu1 %7423, %v8682_v27  }
 0x49c   : > { %3039 = vperm.xlu0 %7459, %v8194_v63   ;;  %v9026_v63 = vpop.permute.xlu0 %2819 }
 0x49d   : > { %v9012_v58 = vpop.permute.xlu1 %1727  ;;  %12912 = vst [vmem:[#allocation196_spill] sm:$0xff] %v9026_v63 }
 0x49f   : > { %7424 = vset.pattern.permute.xlu1 %v12767_v16 }
 0x4a0   : > { %3047 = vperm.xlu0 %7459, %v8260_v5   ;;  %2275 = vperm.xlu1 %7424, %v8682_v27  }
 0x4a2   : > { %v9019_v9 = vpop.permute.xlu1 %1995 }
 0x4a4   : > { %3055 = vperm.xlu0 %7459, %v8372_v56   ;;  %7426 = vset.pattern.permute.xlu1 %v12772_v41  ;;  %v9035_v56 = vsub.s32 2, %v8096_v28 }
 0x4a5   : > { %2543 = vperm.xlu1 %7426, %v8682_v27  }
 0x4a6   : > { %12913 = vst [vmem:[#allocation197_spill] sm:$0xff] %v9035_v56 }
 0x4a7   : > { %v9024_v15 = vpop.permute.xlu1 %2263 }
 0x4a8   : > { %3059 = vperm.xlu0 %7459, %v8424_v55  }
 0x4a9   : > { %7428 = vset.pattern.permute.xlu1 %v12766_v43 }
 0x4aa   : > { %2811 = vperm.xlu1 %7428, %v8682_v27  }
 0x4ac   : > { %3071 = vperm.xlu0 %7459, %v8568_v18   ;;  %v9032_v24 = vpop.permute.xlu1 %2397  ;;  %v12579_v18 = vmov 15  }
 0x4ad   : > { %v1118_v5 = vpop.trf.xlu0 }
 0x4ae   : > { %v9038_v26 = vrot.slane %v1118_v5, %v8100_v29  ;;  %v9041_v63 = vrot.slane %v1118_v5, %v8834_v11  ;;  %7429 = vset.pattern.permute.xlu1 %v12779_v45  ;;  %v9052_v53 = vrot.slane %v1118_v5, %v9035_v56  ;;  %v9176_v45 = vstv %s9115_s25 }
 0x4af   : > { %1206 = vperm.xlu1 %7429, %v8726_v46  }
 0x4b0   : > { %3075 = vperm.xlu0 %7459, %v8620_v25   ;;  %v1228_v55 = vadd.f32 %v9038_v26, %v1187_v48  ;;  %v1362_v27 = vadd.f32 %v9041_v63, %v1326_v23  ;;  %12915 = vst [vmem:[#allocation199_spill] sm:$0xff] %v9052_v53  ;;  %v9064_v48 = vsub.s32 4, %v8096_v28  ;;  %v9067_v23 = vrot.slane %v1118_v5, %v9049_v14 }
 0x4b1   : > { %v9054_v33 = vpop.permute.xlu1 %2531  ;;  %v1496_v8 = vadd.f32 %v9052_v53, %v1460_v60 }
 0x4b2   : > { %v1244_v49 = vmax.f32 %v1228_v55, 0.0  ;;  %v1378_v12 = vmax.f32 %v1362_v27, 0.0  ;;  %12916 = vst [vmem:[#allocation200_spill] sm:$0xff] %v9064_v48  ;;  %12917 = vst [vmem:[#allocation201_spill] sm:$0xff] %v9067_v23  ;;  %v9079_v30 = vrot.slane %v1118_v5, %v9064_v48  ;;  %v1630_v60 = vadd.f32 %v9067_v23, %v8774_v13 }
 0x4b3   : > { %7431 = vset.pattern.permute.xlu1 %v12788_v0  ;;  %v1512_v3 = vmax.f32 %v1496_v8, 0.0  ;;  %v9096_v8 = vsub.s32 7, %v8096_v28  ;;  %v9113_v28 = vstv %s6689_s28 }
 0x4b4   : > { %3087 = vperm.xlu0 %7459, %v8762_v22   ;;  %1475 = vperm.xlu1 %7431, %v8726_v46   ;;  %v1262_v55 = vmul.f32 %v9057_v54, %v1244_v49  ;;  %v1396_v27 = vmul.f32 %v9059_v34, %v1378_v12  ;;  %12919 = vst [vmem:[#allocation203_spill] sm:$0xff] %v9079_v30  ;;  %v9085_v49 = vstv %s6688_s7  ;;  %12922 = vst [vmem:[#allocation206_spill] sm:$0xff] %v9113_v28 }
 0x4b5   : > { %12921 = vst [vmem:[#allocation205_spill] sm:$0xff] %v9096_v8  ;;  %v1530_v13 = vmul.f32 %v9085_v49, %v1512_v3  ;;  %v9173_v22 = vstv %s9110_s21 }
 0x4b6   : > { %v9070_v0 = vpop.permute.xlu1 %2665  ;;  %v1412_v12 = vadd.f32 %v1396_v27, %v1262_v55  ;;  %v1764_v55 = vadd.f32 %v9079_v30, %v9012_v58  ;;  %v9124_v58 = vrot.slane %v1118_v5, %v9093_v35  ;;  %v1119_v27 = vpop.trf.xlu0  ;;  %12928 = vst [vmem:[#allocation212_spill] sm:$0xff] %v9173_v22 }
 0x4b7   : > { %v9145_v1 = vrot.slane %v1119_v27, %v8100_v29 }
 0x4b8   : > { %7463 = vset.pattern.permute.xlu0 %v12579_v18  ;;  %7433 = vset.pattern.permute.xlu1 %v12791_v52  ;;  %v9103_v52 = vrot.slane %v1118_v5, %v9076_v38  ;;  %v1546_v3 = vadd.f32 %v1530_v13, %v1412_v12  ;;  %v1780_v12 = vmax.f32 %v1764_v55, 0.0  ;;  %v9155_v55 = vstv %s9098_s20 }
 0x4b9   : > { %3165 = vperm.xlu0 %7463, %v8160_v59   ;;  %1743 = vperm.xlu1 %7433, %v8726_v46   ;;  %v1646_v59 = vmax.f32 %v1630_v60, 0.0  ;;  %12926 = vst [vmem:[#allocation210_spill] sm:$0xff] %v9155_v55 }
 0x4ba   : > { %v1898_v13 = vadd.f32 %v9103_v52, %v8782_v31  ;;  %v9152_v31 = vrot.slane %v1119_v27, %v9035_v56  ;;  %v1798_v29 = vmul.f32 %v9140_v44, %v1780_v12  ;;  %v9179_v12 = vstv %s9117_s10 }
 0x4bb   : > { %v9090_v18 = vpop.permute.xlu1 %2799 }
 0x4bc   : > { %12925 = vst [vmem:[#allocation209_spill] sm:$0xff] %v9152_v31  ;;  %v2568_v42 = vadd.f32 %v9152_v31, %v9054_v33 }
 0x4bd   : > { %3177 = vperm.xlu0 %7463, %v8228_v2   ;;  %7435 = vset.pattern.permute.xlu1 %v12763_v37  ;;  %v9133_v2 = vrot.slane %v1118_v5, %v9096_v8  ;;  %v1664_v37 = vmul.f32 %v9113_v28, %v1646_v59  ;;  %v9149_v59 = vrot.slane %v1119_v27, %v8834_v11  ;;  %v9170_v11 = vstv %s9108_s19 }
 0x4be   : > { %2011 = vperm.xlu1 %7435, %v8726_v46   ;;  %v9194_v28 = vstv %s9126_s14 }
 0x4bf   : > { %v1680_v5 = vadd.f32 %v1664_v37, %v1546_v3  ;;  %12924 = vst [vmem:[#allocation208_spill] sm:$0xff] %v9149_v59  ;;  %v1914_v3 = vmax.f32 %v1898_v13, 0.0  ;;  %v2166_v37 = vadd.f32 %v9133_v2, %v8790_v51  ;;  %v9182_v13 = vrot.slane %v1119_v27, %v9049_v14  ;;  %12931 = vst [vmem:[#allocation215_spill] sm:$0xff] %v9194_v28 }
 0x4c0   : > { %v9130_v60 = vpop.permute.xlu1 %2933  ;;  %v9187_v51 = vstv %s9120_s11 }
 0x4c1   : > { %3185 = vperm.xlu0 %7463, %v8312_v19   ;;  %v9158_v19 = vstv %s9100_s17  ;;  %12929 = vst [vmem:[#allocation213_spill] sm:$0xff] %v9182_v13  ;;  %v1814_v62 = vadd.f32 %v1798_v29, %v1680_v5  ;;  %12930 = vst [vmem:[#allocation214_spill] sm:$0xff] %v9187_v51  ;;  %v1932_v29 = vmul.f32 %v9155_v55, %v1914_v3  ;;  %v2182_v14 = vmax.f32 %v2166_v37, 0.0 }
 0x4c2   : > { %7437 = vset.pattern.permute.xlu1 %v12767_v16  ;;  %12927 = vst [vmem:[#allocation211_spill] sm:$0xff] %v9158_v19  ;;  %v2032_v16 = vadd.f32 %v9124_v58, %v9019_v9  ;;  %v2300_v9 = vadd.f32 %v9145_v1, %v9024_v15  ;;  %v2702_v15 = vadd.f32 %v9182_v13, %v9070_v0  ;;  %v9213_v3 = vstv %s9142_s23 }
 0x4c3   : > { %2279 = vperm.xlu1 %7437, %v8726_v46   ;;  %12934 = vst [vmem:[#allocation218_spill] sm:$0xff] %v9213_v3  ;;  %v9219_v0 = vrot.slane %v1119_v27, %v9093_v35  ;;  %v1948_v37 = vadd.f32 %v1932_v29, %v1814_v62  ;;  %v2584_v55 = vmax.f32 %v2568_v42, 0.0  ;;  %v2200_v3 = vmul.f32 %v9170_v11, %v2182_v14  ;;  %v12947_v35 = vld [vmem:[#allocation173_spill] sm:$0xff] }
 0x4c4   : > { %v2048_v5 = vmax.f32 %v2032_v16, 0.0  ;;  %v9216_v16 = vrot.slane %v1119_v27, %v9076_v38  ;;  %v2718_v10 = vmax.f32 %v2702_v15, 0.0  ;;  %v2301_v42 = vadd.f32 %v9145_v1, %v8822_v61 }
 0x4c5   : > { %3197 = vperm.xlu0 %7463, %v8472_v39   ;;  %v9167_v56 = vpop.permute.xlu1 %1191  ;;  %v2434_v39 = vadd.f32 %v9149_v59, %v9032_v24  ;;  %v9206_v24 = vrot.slane %v1119_v27, %v9064_v48  ;;  %v1497_v59 = vadd.f32 %v9052_v53, %v8798_v32  ;;  %12936 = vst [vmem:[#allocation220_spill] sm:$0xff] %v9219_v0 }
 0x4c6   : > { %12935 = vst [vmem:[#allocation219_spill] sm:$0xff] %v9216_v16  ;;  %v9222_v48 = vrot.slane %v1119_v27, %v9096_v8  ;;  %v2033_v32 = vadd.f32 %v9124_v58, %v8815_v17  ;;  %v2569_v17 = vadd.f32 %v9152_v31, %v8828_v47  ;;  %v1364_v61 = vadd.f32 %v9041_v63, %v8849_v57 }
 0x4c7   : > { %7438 = vset.pattern.permute.xlu1 %v12794_v50  ;;  %12933 = vst [vmem:[#allocation217_spill] sm:$0xff] %v9206_v24  ;;  %v1765_v50 = vadd.f32 %v9079_v30, %v8806_v20  ;;  %v2450_v13 = vmax.f32 %v2434_v39, 0.0  ;;  %v2066_v20 = vmul.f32 %v9158_v19, %v2048_v5  ;;  %v2836_v38 = vadd.f32 %v9206_v24, %v9090_v18 }
 0x4c8   : > { %2413 = vperm.xlu1 %7438, %v8726_v46   ;;  %12937 = vst [vmem:[#allocation221_spill] sm:$0xff] %v9222_v48  ;;  %v1513_v62 = vmax.f32 %v1497_v59, 0.0  ;;  %v1352_v18 = vadd.f32 %v9041_v63, %v8266_v6  ;;  %v2049_v59 = vmax.f32 %v2033_v32, 0.0  ;;  %v9249_v47 = vmul.f32 %v9187_v51, %v2718_v10 }
 0x4c9   : > { %3209 = vperm.xlu0 %7463, %v8620_v25   ;;  %v2316_v25 = vmax.f32 %v2300_v9, 0.0  ;;  %v1781_v39 = vmax.f32 %v1765_v50, 0.0  ;;  %v2082_v27 = vadd.f32 %v2066_v20, %v1948_v37  ;;  %v2468_v5 = vmul.f32 %v9176_v45, %v2450_v13 }
 0x4ca   : > { %v1330_v33 = vpop.permute.xlu1 %1329  ;;  %v9244_v50 = vmul.f32 %v9179_v12, %v2584_v55  ;;  %v1632_v6 = vadd.f32 %v9067_v23, %v8861_v7  ;;  %v9255_v37 = vmul.f32 %v9085_v49, %v1513_v62  ;;  %v2317_v13 = vmax.f32 %v2301_v42, 0.0 }
 0x4cb   : > { %v2334_v14 = vmul.f32 %v9173_v22, %v2316_v25  ;;  %v2852_v25 = vmax.f32 %v2836_v38, 0.0  ;;  %v1363_v15 = vadd.f32 %v9041_v63, %v1330_v33  ;;  %v9259_v55 = vmul.f32 %v9140_v44, %v1781_v39 }
 0x4cc   : > { %7439 = vset.pattern.permute.xlu1 %v12772_v41  ;;  %v12938_v41 = vld [vmem:[#allocation28_spill] sm:$0xff]  ;;  %v2585_v32 = vmax.f32 %v2569_v17, 0.0  ;;  %v2216_v57 = vadd.f32 %v2200_v3, %v2082_v27  ;;  %v1229_v10 = vadd.f32 %v9038_v26, %v9167_v56  ;;  %v1368_v38 = vmax.f32 %v1352_v18, 0.0  ;;  %v12939_v17 = vld [vmem:[#allocation29_spill] sm:$0xff] }
 0x4cd   : > { %3217 = vperm.xlu0 %7463, %v8726_v46   ;;  %2547 = vperm.xlu1 %7439, %v8726_v46   ;;  %v1218_v29 = vadd.f32 %v9038_v26, %v12938_v41  ;;  %v2970_v7 = vadd.f32 %v9216_v16, %v9130_v60  ;;  %v9267_v62 = vmul.f32 %v9158_v19, %v2049_v59  ;;  %v1380_v41 = vmax.f32 %v1364_v61, 0.0 }
 0x4ce   : > { %v1900_v39 = vadd.f32 %v9103_v52, %v8869_v21  ;;  %v9272_v3 = vmul.f32 %v9194_v28, %v2852_v25  ;;  %v1379_v42 = vmax.f32 %v1363_v15, 0.0  ;;  %v1648_v56 = vmax.f32 %v1632_v6, 0.0 }
 0x4cf   : > { %v1598_v9 = vpop.permute.xlu1 %1597  ;;  %v1234_v33 = vmax.f32 %v1218_v29, 0.0  ;;  %v1486_v27 = vadd.f32 %v9052_v53, %v12939_v17  ;;  %v9277_v18 = vmul.f32 %v9173_v22, %v2317_v13  ;;  %v9280_v60 = vmul.f32 %v9179_v12, %v2585_v32  ;;  %v12942_v17 = vld [vmem:[#allocation166_spill] sm:$0xff] }
 0x4d0   : > { %v2168_v29 = vadd.f32 %v9133_v2, %v8880_v40  ;;  %v2302_v21 = vadd.f32 %v9145_v1, %v8889_v36  ;;  %v2350_v59 = vadd.f32 %v2334_v14, %v2216_v57  ;;  %v1245_v61 = vmax.f32 %v1229_v10, 0.0  ;;  %v12943_v10 = vld [vmem:[#allocation30_spill] sm:$0xff] }
 0x4d1   : > { %7440 = vset.pattern.permute.xlu1 %v12797_v4  ;;  %12940 = vst [vmem:[#allocation28_spill] sm:$0xff] %v9280_v60  ;;  %v1386_v25 = vmul.f32 %v9059_v34, %v1368_v38  ;;  %v1252_v15 = vmul.f32 %v9057_v54, %v1234_v33  ;;  %v2986_v6 = vmax.f32 %v2970_v7, 0.0  ;;  %v9291_v13 = vmul.f32 %v9059_v34, %v1380_v41  ;;  %v12944_v33 = vld [vmem:[#allocation206_spill] sm:$0xff]  ;;  %v12946_v41 = vld [vmem:[#allocation171_spill] sm:$0xff] }
 0x4d2   : > { %2681 = vperm.xlu1 %7440, %v8726_v46   ;;  %v1916_v32 = vmax.f32 %v1900_v39, 0.0  ;;  %v2570_v40 = vadd.f32 %v9152_v31, %v12942_v17  ;;  %v1397_v36 = vmul.f32 %v9059_v34, %v1379_v42  ;;  %v1631_v14 = vadd.f32 %v9067_v23, %v1598_v9 }
 0x4d3   : > { %12941 = vst [vmem:[#allocation29_spill] sm:$0xff] %v9291_v13  ;;  %v1620_v38 = vadd.f32 %v9067_v23, %v12943_v10  ;;  %v9302_v7 = vmul.f32 %v12944_v33, %v1648_v56  ;;  %v2184_v8 = vmax.f32 %v2168_v29, 0.0  ;;  %v1499_v39 = vadd.f32 %v9052_v53, %v12946_v41  ;;  %v12951_v10 = vld [vmem:[#allocation210_spill] sm:$0xff] }
 0x4d4   : > { %v1866_v20 = vpop.permute.xlu1 %1865  ;;  %v1767_v17 = vadd.f32 %v9079_v30, %v12947_v35  ;;  %v2484_v48 = vadd.f32 %v2468_v5, %v2350_v59  ;;  %v1263_v42 = vmul.f32 %v9057_v54, %v1245_v61  ;;  %v2318_v9 = vmax.f32 %v2302_v21, 0.0  ;;  %v12954_v35 = vld [vmem:[#allocation144_spill] sm:$0xff] }
 0x4d5   : > { %12945 = vst [vmem:[#allocation166_spill] sm:$0xff] %v9302_v7  ;;  %v1402_v0 = vadd.f32 %v1386_v25, %v1252_v15  ;;  %v12950_v60 = vmov 0   ;;  %v9314_v56 = vmul.f32 %v12951_v10, %v1916_v32  ;;  %v2586_v29 = vmax.f32 %v2570_v40, 0.0  ;;  %v12953_v7 = vld [vmem:[#allocation31_spill] sm:$0xff] }
 0x4d6   : > { %7441 = vset.pattern.permute.xlu1 %v12766_v43  ;;  %v1502_v43 = vmax.f32 %v1486_v27, 0.0  ;;  %v1754_v41 = vadd.f32 %v9079_v30, %v12953_v7  ;;  %v1413_v13 = vadd.f32 %v1397_v36, %v1263_v42  ;;  %v1647_v4 = vmax.f32 %v1631_v14, 0.0  ;;  %v12958_v7 = vld [vmem:[#allocation92_spill] sm:$0xff] }
 0x4d7   : > { %2815 = vperm.xlu1 %7441, %v8726_v46   ;;  %v12948_v46 = vld [vmem:[#allocation216_spill] sm:$0xff]  ;;  %12952 = vst [vmem:[#allocation206_spill] sm:$0xff] %v9314_v56  ;;  %v1636_v21 = vmax.f32 %v1620_v38, 0.0  ;;  %v9323_v61 = vmul.f32 %v9170_v11, %v2184_v8  ;;  %v1515_v25 = vmax.f32 %v1499_v39, 0.0  ;;  %v1783_v15 = vmax.f32 %v1767_v17, 0.0  ;;  %v12960_v8 = vld [vmem:[#allocation33_spill] sm:$0xff] }
 0x4d8   : > { %v9310_v27 = vmul.f32 %v12948_v46, %v2986_v6  ;;  %v1520_v5 = vmul.f32 %v9085_v49, %v1502_v43  ;;  %v12956_v6 = vld [vmem:[#allocation90_spill] sm:$0xff]  ;;  %v2618_v40 = vadd.f32 %v9244_v50, %v2484_v48  ;;  %v9329_v36 = vmul.f32 %v9173_v22, %v2318_v9  ;;  %v12961_v17 = vld [vmem:[#allocation32_spill] sm:$0xff] }
 0x4d9   : > { %v9297_v57 = vpop.permute.xlu1 %2133  ;;  %12955 = vst [vmem:[#allocation171_spill] sm:$0xff] %v9323_v61  ;;  %v1221_v32 = vadd.f32 %v9038_v26, %v12956_v6  ;;  %v1355_v43 = vadd.f32 %v9041_v63, %v12958_v7  ;;  %v9334_v38 = vmul.f32 %v9179_v12, %v2586_v29  ;;  %v1770_v42 = vmax.f32 %v1754_v41, 0.0 }
 0x4da   : > { %12949 = vst [vmem:[#allocation30_spill] sm:$0xff] %v9310_v27  ;;  %12957 = vst [vmem:[#allocation173_spill] sm:$0xff] %v9329_v36  ;;  %v1536_v14 = vadd.f32 %v1520_v5, %v1402_v0  ;;  %v2022_v39 = vadd.f32 %v9124_v58, %v12960_v8  ;;  %v1547_v6 = vadd.f32 %v9255_v37, %v1413_v13  ;;  %v12962_v0 = vmov 1   ;;  %v12967_v8 = vld [vmem:[#allocation38_spill] sm:$0xff]  ;;  %v12968_v27 = vld [vmem:[#allocation40_spill] sm:$0xff] }
 0x4db   : > { %7442 = vset.pattern.permute.xlu1 %v12950_v60  ;;  %12959 = vst [vmem:[#allocation210_spill] sm:$0xff] %v9334_v38  ;;  %v1888_v60 = vadd.f32 %v9103_v52, %v12961_v17  ;;  %v1665_v48 = vmul.f32 %v12944_v33, %v1647_v4  ;;  %v1899_v50 = vadd.f32 %v9103_v52, %v1866_v20  ;;  %v1237_v5 = vmax.f32 %v1221_v32, 0.0  ;;  %v12966_v4 = vld [vmem:[#allocation35_spill] sm:$0xff]  ;;  %v12972_v36 = vld [vmem:[#allocation36_spill] sm:$0xff] }
 0x4dc   : > { %1211 = vperm.xlu1 %7442, %v12954_v35   ;;  %v1654_v9 = vmul.f32 %v12944_v33, %v1636_v21  ;;  %v9347_v29 = vmul.f32 %v9085_v49, %v1515_v25  ;;  %v9350_v41 = vmul.f32 %v9140_v44, %v1783_v15  ;;  %v1371_v7 = vmax.f32 %v1355_v43, 0.0  ;;  %v12970_v32 = vld [vmem:[#allocation55_spill] sm:$0xff] }
 0x4dd   : > { %v2752_v37 = vadd.f32 %v9249_v47, %v2618_v40  ;;  %v2290_v20 = vadd.f32 %v9145_v1, %v12966_v4  ;;  %v2558_v21 = vadd.f32 %v9152_v31, %v12967_v8  ;;  %v2826_v25 = vadd.f32 %v9206_v24, %v12968_v27  ;;  %v12973_v8 = vld [vmem:[#allocation208_spill] sm:$0xff] }
 0x4de   : > { %v9320_v59 = vpop.permute.xlu1 %2401  ;;  %12963 = vst [vmem:[#allocation31_spill] sm:$0xff] %v9347_v29  ;;  %12964 = vst [vmem:[#allocation90_spill] sm:$0xff] %v9350_v41  ;;  %v1670_v17 = vadd.f32 %v1654_v9, %v1536_v14  ;;  %v12969_v29 = vld [vmem:[#allocation34_spill] sm:$0xff]  ;;  %v1489_v43 = vadd.f32 %v9052_v53, %v12970_v32  ;;  %v1681_v47 = vadd.f32 %v1665_v48, %v1547_v6  ;;  %v1915_v40 = vmax.f32 %v1899_v50, 0.0  ;;  %v12975_v9 = vld [vmem:[#allocation213_spill] sm:$0xff] }
 0x4df   : > { %v2156_v15 = vadd.f32 %v9133_v2, %v12969_v29  ;;  %v1788_v41 = vmul.f32 %v9140_v44, %v1770_v42  ;;  %v1904_v38 = vmax.f32 %v1888_v60, 0.0  ;;  %v12971_v4 = vmov 3  }
 0x4e0   : > { %7443 = vset.pattern.permute.xlu1 %v12962_v0  ;;  %v2038_v0 = vmax.f32 %v2022_v39, 0.0  ;;  %v2424_v14 = vadd.f32 %v12973_v8, %v12972_v36  ;;  %v12974_v39 = vld [vmem:[#allocation39_spill] sm:$0xff]  ;;  %v1255_v27 = vmul.f32 %v9057_v54, %v1237_v5  ;;  %v1389_v29 = vmul.f32 %v9059_v34, %v1371_v7  ;;  %v12977_v36 = vld [vmem:[#allocation94_spill] sm:$0xff] }
 0x4e1   : > { %1345 = vperm.xlu1 %7443, %v12954_v35   ;;  %v2692_v61 = vadd.f32 %v12975_v9, %v12974_v39  ;;  %v9374_v56 = vadd.f32 %v9272_v3, %v2752_v37  ;;  %v2306_v6 = vmax.f32 %v2290_v20, 0.0  ;;  %v2574_v42 = vmax.f32 %v2558_v21, 0.0 }
 0x4e2   : > { %v1804_v60 = vadd.f32 %v1788_v41, %v1670_v17  ;;  %v2842_v50 = vmax.f32 %v2826_v25, 0.0  ;;  %v2172_v32 = vmax.f32 %v2156_v15, 0.0  ;;  %v1815_v39 = vadd.f32 %v9259_v55, %v1681_v47  ;;  %v12979_v15 = vld [vmem:[#allocation41_spill] sm:$0xff] }
 0x4e3   : > { %v9353_v13 = vpop.permute.xlu1 %2669  ;;  %12976 = vst [vmem:[#allocation33_spill] sm:$0xff] %v9374_v56  ;;  %v1933_v5 = vmul.f32 %v12951_v10, %v1915_v40  ;;  %v2167_v3 = vadd.f32 %v9133_v2, %v9297_v57  ;;  %v1922_v7 = vmul.f32 %v12951_v10, %v1904_v38  ;;  %v2056_v37 = vmul.f32 %v9158_v19, %v2038_v0  ;;  %v12981_v47 = vld [vmem:[#allocation57_spill] sm:$0xff] }
 0x4e4   : > { %12965 = vst [vmem:[#allocation92_spill] sm:$0xff] %v9353_v13  ;;  %v1623_v13 = vadd.f32 %v9067_v23, %v12977_v36  ;;  %v2440_v20 = vmax.f32 %v2424_v14, 0.0  ;;  %v2708_v41 = vmax.f32 %v2692_v61, 0.0  ;;  %v1405_v21 = vadd.f32 %v1389_v29, %v1255_v27  ;;  %v12980_v36 = vld [vmem:[#allocation175_spill] sm:$0xff]  ;;  %v12986_v56 = vld [vmem:[#allocation125_spill] sm:$0xff] }
 0x4e5   : > { %7445 = vset.pattern.permute.xlu1 %v12971_v4  ;;  %v1505_v4 = vmax.f32 %v1489_v43, 0.0  ;;  %v12978_v17 = vmov 5   ;;  %v1938_v25 = vadd.f32 %v1922_v7, %v1804_v60  ;;  %v2960_v43 = vadd.f32 %v9216_v16, %v12979_v15 }
 0x4e6   : > { %1613 = vperm.xlu1 %7445, %v12954_v35   ;;  %v2035_v55 = vadd.f32 %v9124_v58, %v12980_v36  ;;  %v1757_v40 = vadd.f32 %v9079_v30, %v12981_v47  ;;  %v2324_v57 = vmul.f32 %v9173_v22, %v2306_v6  ;;  %v9395_v38 = vmul.f32 %v9179_v12, %v2574_v42  ;;  %v12983_v6 = vld [vmem:[#allocation59_spill] sm:$0xff]  ;;  %v12985_v47 = vld [vmem:[#allocation97_spill] sm:$0xff] }
 0x4e7   : > { %v1523_v61 = vmul.f32 %v9085_v49, %v1505_v4  ;;  %v1639_v0 = vmax.f32 %v1623_v13, 0.0  ;;  %v1949_v14 = vadd.f32 %v1933_v5, %v1815_v39  ;;  %v2183_v27 = vmax.f32 %v2167_v3, 0.0 }
 0x4e8   : > { %v1197_v48 = vpop.permute.xlu1 %1196  ;;  %v9399_v60 = vmul.f32 %v9194_v28, %v2842_v50  ;;  %v2190_v7 = vmul.f32 %v9170_v11, %v2172_v32  ;;  %v9406_v15 = vmul.f32 %v9187_v51, %v2708_v41  ;;  %v2025_v42 = vadd.f32 %v9124_v58, %v12983_v6 }
 0x4e9   : > { %v1539_v36 = vadd.f32 %v1523_v61, %v1405_v21  ;;  %v2072_v4 = vadd.f32 %v2056_v37, %v1938_v25  ;;  %v2976_v13 = vmax.f32 %v2960_v43, 0.0  ;;  %v2051_v39 = vmax.f32 %v2035_v55, 0.0 }
 0x4ea   : > { %7447 = vset.pattern.permute.xlu1 %v12978_v17  ;;  %12982 = vst [vmem:[#allocation32_spill] sm:$0xff] %v9399_v60  ;;  %v9403_v17 = vmul.f32 %v9176_v45, %v2440_v20  ;;  %v1773_v5 = vmax.f32 %v1757_v40, 0.0  ;;  %v1230_v3 = vadd.f32 %v9038_v26, %v1197_v48  ;;  %v12984_v50 = vmov 7   ;;  %v12987_v48 = vld [vmem:[#allocation127_spill] sm:$0xff] }
 0x4eb   : > { %1881 = vperm.xlu1 %7447, %v12954_v35   ;;  %v1657_v32 = vmul.f32 %v12944_v33, %v1639_v0  ;;  %v1891_v20 = vadd.f32 %v9103_v52, %v12985_v47  ;;  %v1223_v41 = vadd.f32 %v9038_v26, %v12986_v56  ;;  %v2083_v60 = vadd.f32 %v9267_v62, %v1949_v14 }
 0x4ec   : > { %v2201_v21 = vmul.f32 %v9170_v11, %v2183_v27  ;;  %v2435_v37 = vadd.f32 %v12973_v8, %v9320_v59  ;;  %v1357_v25 = vadd.f32 %v9041_v63, %v12987_v48  ;;  %v2041_v40 = vmax.f32 %v2025_v42, 0.0  ;;  %v12989_v59 = vld [vmem:[#allocation82_spill] sm:$0xff] }
 0x4ed   : > { %v1468_v29 = vpop.permute.xlu1 %1467  ;;  %v1673_v61 = vadd.f32 %v1657_v32, %v1539_v36  ;;  %v1239_v0 = vmax.f32 %v1223_v41, 0.0  ;;  %v9426_v56 = vmul.f32 %v12948_v46, %v2976_v13  ;;  %v9429_v62 = vmul.f32 %v9158_v19, %v2051_v39  ;;  %v12991_v36 = vld [vmem:[#allocation61_spill] sm:$0xff] }
 0x4ee   : > { %v1498_v43 = vadd.f32 %v9052_v53, %v1468_v29  ;;  %v1791_v14 = vmul.f32 %v9140_v44, %v1773_v5  ;;  %v1491_v27 = vadd.f32 %v9052_v53, %v12989_v59  ;;  %v1246_v6 = vmax.f32 %v1230_v3, 0.0 }
 0x4ef   : > { %7449 = vset.pattern.permute.xlu1 %v12984_v50  ;;  %12988 = vst [vmem:[#allocation35_spill] sm:$0xff] %v9429_v62  ;;  %v2206_v50 = vadd.f32 %v2190_v7, %v2072_v4  ;;  %v1907_v47 = vmax.f32 %v1891_v20, 0.0  ;;  %v1373_v48 = vmax.f32 %v1357_v25, 0.0  ;;  %v2217_v29 = vadd.f32 %v2201_v21, %v2083_v60  ;;  %v12992_v4 = vld [vmem:[#allocation64_spill] sm:$0xff]  ;;  %v12993_v20 = vld [vmem:[#allocation67_spill] sm:$0xff]  ;;  %v12994_v25 = vld [vmem:[#allocation129_spill] sm:$0xff] }
 0x4f0   : > { %2149 = vperm.xlu1 %7449, %v12954_v35   ;;  %v2451_v16 = vmax.f32 %v2435_v37, 0.0  ;;  %v12990_v42 = vmov 9   ;;  %v2293_v13 = vadd.f32 %v9145_v1, %v12991_v36  ;;  %v1257_v32 = vmul.f32 %v9057_v54, %v1239_v0  ;;  %v12996_v36 = vld [vmem:[#allocation92_spill] sm:$0xff] }
 0x4f1   : > { %v1514_v39 = vmax.f32 %v1498_v43, 0.0  ;;  %v2059_v5 = vmul.f32 %v9158_v19, %v2041_v40  ;;  %v1807_v41 = vadd.f32 %v1791_v14, %v1673_v61  ;;  %v1391_v3 = vmul.f32 %v9059_v34, %v1373_v48  ;;  %v12995_v40 = vld [vmem:[#allocation99_spill] sm:$0xff] }
 0x4f2   : > { %v1736_v55 = vpop.permute.xlu1 %1735  ;;  %v2561_v60 = vadd.f32 %v9152_v31, %v12992_v4  ;;  %v2829_v21 = vadd.f32 %v9206_v24, %v12993_v20  ;;  %v1507_v37 = vmax.f32 %v1491_v27, 0.0  ;;  %v1625_v59 = vadd.f32 %v9067_v23, %v12994_v25  ;;  %v13001_v24 = vld [vmem:[#allocation131_spill] sm:$0xff] }
 0x4f3   : > { %v1264_v43 = vmul.f32 %v9057_v54, %v1246_v6  ;;  %v2340_v0 = vadd.f32 %v2324_v57, %v2206_v50  ;;  %v2159_v61 = vadd.f32 %v9133_v2, %v12995_v40  ;;  %v2351_v14 = vadd.f32 %v9277_v18, %v2217_v29  ;;  %v12998_v18 = vld [vmem:[#allocation84_spill] sm:$0xff]  ;;  %v12999_v40 = vld [vmem:[#allocation29_spill] sm:$0xff] }
 0x4f4   : > { %7451 = vset.pattern.permute.xlu1 %v12990_v42  ;;  %v1925_v42 = vmul.f32 %v12951_v10, %v1907_v47  ;;  %v2469_v48 = vmul.f32 %v9176_v45, %v2451_v16  ;;  %v2703_v4 = vadd.f32 %v12975_v9, %v12996_v36  ;;  %v1407_v20 = vadd.f32 %v1391_v3, %v1257_v32  ;;  %v13000_v3 = vld [vmem:[#allocation101_spill] sm:$0xff] }
 0x4f5   : > { %2417 = vperm.xlu1 %7451, %v12954_v35   ;;  %v1532_v27 = vmul.f32 %v9085_v49, %v1514_v39  ;;  %v1766_v25 = vadd.f32 %v9079_v30, %v1736_v55  ;;  %v12997_v62 = vmov 11   ;;  %v2309_v57 = vmax.f32 %v2293_v13, 0.0 }
 0x4f6   : > { %v1941_v6 = vadd.f32 %v1925_v42, %v1807_v41  ;;  %v2577_v50 = vmax.f32 %v2561_v60, 0.0  ;;  %v1525_v47 = vmul.f32 %v9085_v49, %v1507_v37  ;;  %v1759_v16 = vadd.f32 %v9079_v30, %v12998_v18 }
 0x4f7   : > { %v2004_v7 = vpop.permute.xlu1 %2003  ;;  %v1641_v29 = vmax.f32 %v1625_v59, 0.0  ;;  %v1414_v36 = vadd.f32 %v12999_v40, %v1264_v43  ;;  %v2474_v39 = vadd.f32 %v9403_v17, %v2340_v0  ;;  %v2175_v55 = vmax.f32 %v2159_v61, 0.0 }
 0x4f8   : > { %v2485_v13 = vadd.f32 %v2469_v48, %v2351_v14  ;;  %v2719_v41 = vmax.f32 %v2703_v4, 0.0  ;;  %v2845_v42 = vmax.f32 %v2829_v21, 0.0  ;;  %v1541_v60 = vadd.f32 %v1525_v47, %v1407_v20  ;;  %v13003_v14 = vld [vmem:[#allocation96_spill] sm:$0xff]  ;;  %v13004_v4 = vld [vmem:[#allocation86_spill] sm:$0xff] }
 0x4f9   : > { %7453 = vset.pattern.permute.xlu1 %v12997_v62  ;;  %v2427_v62 = vadd.f32 %v12973_v8, %v13000_v3  ;;  %v1782_v37 = vmax.f32 %v1766_v25, 0.0  ;;  %v2075_v46 = vadd.f32 %v2059_v5, %v1941_v6  ;;  %v1893_v59 = vadd.f32 %v9103_v52, %v13001_v24  ;;  %v13005_v20 = vld [vmem:[#allocation28_spill] sm:$0xff]  ;;  %v13006_v47 = vld [vmem:[#allocation166_spill] sm:$0xff] }
 0x4fa   : > { %2685 = vperm.xlu1 %7453, %v12954_v35   ;;  %v1548_v35 = vadd.f32 %v1532_v27, %v1414_v36  ;;  %v13002_v18 = vmov 13   ;;  %v2327_v43 = vmul.f32 %v9173_v22, %v2309_v57  ;;  %v9473_v17 = vmul.f32 %v9179_v12, %v2577_v50 }
 0x4fb   : > { %v1775_v0 = vmax.f32 %v1759_v16, 0.0  ;;  %v1659_v61 = vmul.f32 %v12944_v33, %v1641_v29  ;;  %v2608_v21 = vadd.f32 %v9395_v38, %v2474_v39  ;;  %v2193_v48 = vmul.f32 %v9170_v11, %v2175_v55  ;;  %v13007_v55 = vld [vmem:[#allocation107_spill] sm:$0xff] }
 0x4fc   : > { %v9463_v32 = vpop.permute.xlu1 %2405  ;;  %v2443_v5 = vmax.f32 %v2427_v62, 0.0  ;;  %v2027_v24 = vadd.f32 %v9124_v58, %v13004_v4  ;;  %v2619_v27 = vadd.f32 %v13005_v20, %v2485_v13  ;;  %v2737_v25 = vmul.f32 %v9187_v51, %v2719_v41  ;;  %v13008_v62 = vld [vmem:[#allocation153_spill] sm:$0xff]  ;;  %v13013_v4 = vld [vmem:[#allocation155_spill] sm:$0xff] }
 0x4fd   : > { %v9486_v6 = vmul.f32 %v9194_v28, %v2845_v42  ;;  %v1675_v50 = vadd.f32 %v1659_v61, %v1541_v60  ;;  %v1682_v16 = vadd.f32 %v13006_v47, %v1548_v35  ;;  %v1800_v38 = vmul.f32 %v9140_v44, %v1782_v37  ;;  %v13010_v60 = vld [vmem:[#allocation103_spill] sm:$0xff]  ;;  %v13012_v61 = vld [vmem:[#allocation154_spill] sm:$0xff] }
 0x4fe   : > { %7454 = vset.pattern.permute.xlu1 %v13002_v18  ;;  %v2209_v29 = vadd.f32 %v2193_v48, %v2075_v46  ;;  %v1909_v40 = vmax.f32 %v1893_v59, 0.0  ;;  %v2034_v36 = vadd.f32 %v9124_v58, %v2004_v7  ;;  %v1793_v39 = vmul.f32 %v9140_v44, %v1775_v0  ;;  %v13011_v59 = vld [vmem:[#allocation23_spill] sm:$0xff] }
 0x4ff   : > { %2937 = vperm.xlu1 %7454, %v13003_v14   ;;  %v1493_v3 = vadd.f32 %v9052_v53, %v13007_v55  ;;  %v1225_v13 = vadd.f32 %v9038_v26, %v13008_v62  ;;  %v13009_v41 = vmov 14   ;;  %v2742_v42 = vadd.f32 %v9406_v15, %v2608_v21  ;;  %v13014_v21 = vld [vmem:[#allocation133_spill] sm:$0xff]  ;;  %v13017_v14 = vld [vmem:[#allocation219_spill] sm:$0xff] }
 0x500   : > { %v2461_v35 = vmul.f32 %v9176_v45, %v2443_v5  ;;  %v2695_v46 = vadd.f32 %v12975_v9, %v13010_v60  ;;  %v2043_v37 = vmax.f32 %v2027_v24, 0.0  ;;  %v1809_v7 = vadd.f32 %v1793_v39, %v1675_v50 }
 0x501   : > { %v9483_v57 = vpop.permute.xlu1 %2673  ;;  %v1241_v0 = vmax.f32 %v1225_v13, 0.0  ;;  %v1359_v48 = vadd.f32 %v9041_v63, %v13012_v61  ;;  %v1627_v20 = vadd.f32 %v9067_v23, %v13013_v4  ;;  %v1816_v47 = vadd.f32 %v1800_v38, %v1682_v16  ;;  %v13016_v61 = vld [vmem:[#allocation105_spill] sm:$0xff]  ;;  %v13018_v4 = vld [vmem:[#allocation110_spill] sm:$0xff]  ;;  %v13020_v38 = vld [vmem:[#allocation32_spill] sm:$0xff] }
 0x502   : > { %v2343_v62 = vadd.f32 %v2327_v43, %v2209_v29  ;;  %v1927_v15 = vmul.f32 %v12951_v10, %v1909_v40  ;;  %v2161_v5 = vadd.f32 %v9133_v2, %v13014_v21  ;;  %v2050_v60 = vmax.f32 %v2034_v36, 0.0  ;;  %v13019_v43 = vld [vmem:[#allocation25_spill] sm:$0xff] }
 0x503   : > { %7455 = vset.pattern.permute.xlu1 %v13009_v41  ;;  %v1509_v24 = vmax.f32 %v1493_v3, 0.0  ;;  %v1375_v50 = vmax.f32 %v1359_v48, 0.0  ;;  %v9510_v39 = vadd.f32 %v2737_v25, %v2619_v27  ;;  %v2711_v13 = vmax.f32 %v2695_v46, 0.0  ;;  %v13021_v27 = vld [vmem:[#allocation88_spill] sm:$0xff]  ;;  %v13022_v48 = vld [vmem:[#allocation206_spill] sm:$0xff] }
 0x504   : > { %3031 = vperm.xlu1 %7455, %v13011_v59   ;;  %v1259_v59 = vmul.f32 %v9057_v54, %v1241_v0  ;;  %v2963_v53 = vadd.f32 %v13017_v14, %v13016_v61  ;;  %v1761_v16 = vadd.f32 %v9079_v30, %v13018_v4  ;;  %v2876_v29 = vadd.f32 %v13020_v38, %v2742_v42 }
 0x505   : > { %13015 = vst [vmem:[#allocation38_spill] sm:$0xff] %v9510_v39  ;;  %v1943_v40 = vadd.f32 %v1927_v15, %v1809_v7  ;;  %v1393_v36 = vmul.f32 %v9059_v34, %v1375_v50  ;;  %v1643_v3 = vmax.f32 %v1627_v20, 0.0  ;;  %v2477_v21 = vadd.f32 %v2461_v35, %v2343_v62  ;;  %v13023_v7 = vld [vmem:[#allocation91_spill] sm:$0xff]  ;;  %v13024_v35 = vld [vmem:[#allocation157_spill] sm:$0xff]  ;;  %v13025_v62 = vld [vmem:[#allocation26_spill] sm:$0xff] }
 0x506   : > { %v1202_v55 = vpop.permute.xlu1 %1201  ;;  %v2061_v0 = vmul.f32 %v9158_v19, %v2043_v37  ;;  %v2295_v25 = vadd.f32 %v9145_v1, %v13021_v27  ;;  %v2177_v46 = vmax.f32 %v2161_v5, 0.0  ;;  %v1950_v61 = vadd.f32 %v13022_v48, %v1816_v47  ;;  %v13026_v5 = vld [vmem:[#allocation136_spill] sm:$0xff] }
 0x507   : > { %v2068_v39 = vmul.f32 %v9158_v19, %v2050_v60  ;;  %v1409_v30 = vadd.f32 %v1393_v36, %v1259_v59  ;;  %v2979_v42 = vmax.f32 %v2963_v53, 0.0  ;;  %v2563_v15 = vadd.f32 %v9152_v31, %v13023_v7 }
 0x508   : > { %3035 = vperm.xlu1 %7455, %v13019_v43   ;;  %v1527_v43 = vmul.f32 %v9085_v49, %v1509_v24  ;;  %v1777_v20 = vmax.f32 %v1761_v16, 0.0  ;;  %v1895_v37 = vadd.f32 %v9103_v52, %v13024_v35  ;;  %v2077_v50 = vadd.f32 %v2061_v0, %v1943_v40  ;;  %v13031_v35 = vld [vmem:[#allocation216_spill] sm:$0xff] }
 0x509   : > { %v2429_v47 = vadd.f32 %v12973_v8, %v13026_v5  ;;  %v1661_v60 = vmul.f32 %v12944_v33, %v1643_v3  ;;  %v9534_v24 = vadd.f32 %v9426_v56, %v2876_v29  ;;  %v2611_v53 = vadd.f32 %v9473_v17, %v2477_v21  ;;  %v13027_v3 = vld [vmem:[#allocation112_spill] sm:$0xff]  ;;  %v13028_v17 = vld [vmem:[#allocation37_spill] sm:$0xff]  ;;  %v13032_v5 = vld [vmem:[#allocation171_spill] sm:$0xff] }
 0x50a   : > { %v1543_v38 = vadd.f32 %v1527_v43, %v1409_v30  ;;  %v2729_v59 = vmul.f32 %v9187_v51, %v2711_v13  ;;  %v2311_v16 = vmax.f32 %v2295_v25, 0.0  ;;  %v2084_v36 = vadd.f32 %v2068_v39, %v1950_v61  ;;  %v13029_v21 = vld [vmem:[#allocation93_spill] sm:$0xff] }
 0x50b   : > { %v1338_v4 = vpop.permute.xlu1 %1337  ;;  %v2436_v27 = vadd.f32 %v12973_v8, %v9463_v32  ;;  %v2195_v40 = vmul.f32 %v9170_v11, %v2177_v46  ;;  %v1795_v43 = vmul.f32 %v9140_v44, %v1777_v20  ;;  %v2029_v56 = vadd.f32 %v9124_v58, %v13027_v3  ;;  %v13030_v39 = vld [vmem:[#allocation217_spill] sm:$0xff]  ;;  %v13033_v3 = vld [vmem:[#allocation138_spill] sm:$0xff] }
 0x50c   : > { %3043 = vperm.xlu1 %7455, %v13025_v62   ;;  %v1677_v0 = vadd.f32 %v1661_v60, %v1543_v38  ;;  %v1365_v48 = vadd.f32 %v9041_v63, %v1338_v4  ;;  %v1911_v29 = vmax.f32 %v1895_v37, 0.0  ;;  %v2579_v13 = vmax.f32 %v2563_v15, 0.0 }
 0x50d   : > { %v2831_v25 = vadd.f32 %v13030_v39, %v13029_v21  ;;  %v2211_v61 = vadd.f32 %v2195_v40, %v2077_v50  ;;  %v2445_v32 = vmax.f32 %v2429_v47, 0.0  ;;  %v1231_v46 = vadd.f32 %v9038_v26, %v1202_v55  ;;  %v13034_v47 = vld [vmem:[#allocation160_spill] sm:$0xff]  ;;  %v13035_v40 = vld [vmem:[#allocation109_spill] sm:$0xff] }
 0x50e   : > { %v2745_v4 = vadd.f32 %v2729_v59, %v2611_v53  ;;  %v2997_v62 = vmul.f32 %v13031_v35, %v2979_v42  ;;  %v1811_v20 = vadd.f32 %v1795_v43, %v1677_v0  ;;  %v2218_v38 = vadd.f32 %v13032_v5, %v2084_v36 }
 0x50f   : > { %v2452_v60 = vmax.f32 %v2436_v27, 0.0  ;;  %v2329_v37 = vmul.f32 %v9173_v22, %v2311_v16  ;;  %v2697_v15 = vadd.f32 %v12975_v9, %v13033_v3  ;;  %v2045_v21 = vmax.f32 %v2029_v56, 0.0  ;;  %v13038_v3 = vld [vmem:[#allocation140_spill] sm:$0xff] }
 0x510   : > { %v1606_v30 = vpop.permute.xlu1 %1605  ;;  %3051 = vperm.xlu1 %7455, %v13028_v17   ;;  %v1381_v17 = vmax.f32 %v1365_v48, 0.0  ;;  %v1929_v50 = vmul.f32 %v12951_v10, %v1911_v29  ;;  %v2163_v55 = vadd.f32 %v9133_v2, %v13034_v47  ;;  %v2597_v42 = vmul.f32 %v9179_v12, %v2579_v13  ;;  %v13036_v48 = vld [vmem:[#allocation114_spill] sm:$0xff]  ;;  %v13037_v29 = vld [vmem:[#allocation173_spill] sm:$0xff]  ;;  %v13040_v47 = vld [vmem:[#allocation135_spill] sm:$0xff] }
 0x511   : > { %v2847_v59 = vmax.f32 %v2831_v25, 0.0  ;;  %v2345_v36 = vadd.f32 %v2329_v37, %v2211_v61  ;;  %v2463_v27 = vmul.f32 %v9176_v45, %v2445_v32  ;;  %v1247_v16 = vmax.f32 %v1231_v46, 0.0 }
 0x512   : > { %v9549_v7 = vpop.permute.xlu0 %2945  ;;  %v2879_v0 = vadd.f32 %v9486_v6, %v2745_v4  ;;  %v2297_v43 = vadd.f32 %v9145_v1, %v13036_v48  ;;  %v1945_v56 = vadd.f32 %v1929_v50, %v1811_v20  ;;  %v2352_v5 = vadd.f32 %v13037_v29, %v2218_v38 }
 0x513   : > { %v2704_v13 = vadd.f32 %v12975_v9, %v9483_v57  ;;  %v2713_v61 = vmax.f32 %v2697_v15, 0.0  ;;  %v1399_v32 = vmul.f32 %v9059_v34, %v1381_v17  ;;  %v1633_v46 = vadd.f32 %v9067_v23, %v1606_v30  ;;  %v13041_v30 = vld [vmem:[#allocation119_spill] sm:$0xff] }
 0x514   : > { %7456 = vset.pattern.permute.xlu1 %v13002_v18  ;;  %v2470_v18 = vmul.f32 %v9176_v45, %v2452_v60  ;;  %v2063_v6 = vmul.f32 %v9158_v19, %v2045_v21  ;;  %v2179_v4 = vmax.f32 %v2163_v55, 0.0  ;;  %v2865_v37 = vmul.f32 %v9194_v28, %v2847_v59  ;;  %v13039_v60 = vld [vmem:[#allocation116_spill] sm:$0xff] }
 0x515   : > { %v1874_v53 = vpop.permute.xlu1 %1873  ;;  %2941 = vperm.xlu1 %7456, %v13035_v40   ;;  %v2479_v20 = vadd.f32 %v2463_v27, %v2345_v36  ;;  %v2965_v38 = vadd.f32 %v13017_v14, %v13038_v3  ;;  %v2565_v50 = vadd.f32 %v9152_v31, %v13039_v60  ;;  %v1265_v57 = vmul.f32 %v9057_v54, %v1247_v16  ;;  %v13042_v60 = vld [vmem:[#allocation161_spill] sm:$0xff] }
 0x516   : > { %v2313_v17 = vmax.f32 %v2297_v43, 0.0  ;;  %v2833_v21 = vadd.f32 %v13030_v39, %v13041_v30  ;;  %v2079_v55 = vadd.f32 %v2063_v6, %v1945_v56  ;;  %v2486_v40 = vadd.f32 %v2470_v18, %v2352_v5  ;;  %v13043_v30 = vld [vmem:[#allocation162_spill] sm:$0xff]  ;;  %v13044_v5 = vld [vmem:[#allocation144_spill] sm:$0xff] }
 0x517   : > { %v9570_v25 = vpop.permute.xlu0 %3027  ;;  %v2720_v59 = vmax.f32 %v2704_v13, 0.0  ;;  %v9588_v27 = vadd.f32 %v2997_v62, %v2879_v0  ;;  %v2731_v48 = vmul.f32 %v9187_v51, %v2713_v61  ;;  %v1415_v29 = vadd.f32 %v1399_v32, %v1265_v57  ;;  %v13045_v13 = vld [vmem:[#allocation163_spill] sm:$0xff]  ;;  %v13046_v32 = vld [vmem:[#allocation210_spill] sm:$0xff] }
 0x518   : > { %v1649_v3 = vmax.f32 %v1633_v46, 0.0  ;;  %v2197_v16 = vmul.f32 %v9170_v11, %v2179_v4  ;;  %v2613_v43 = vadd.f32 %v2597_v42, %v2479_v20  ;;  %v2981_v19 = vmax.f32 %v2965_v38, 0.0  ;;  %v13047_v42 = vld [vmem:[#allocation164_spill] sm:$0xff]  ;;  %v13048_v38 = vld [vmem:[#allocation165_spill] sm:$0xff]  ;;  %v13049_v57 = vld [vmem:[#allocation31_spill] sm:$0xff] }
 0x519   : > { %2949 = vperm.xlu1 %7456, %v13040_v47   ;;  %v2431_v47 = vadd.f32 %v12973_v8, %v13042_v60  ;;  %v2581_v44 = vmax.f32 %v2565_v50, 0.0  ;;  %v2699_v56 = vadd.f32 %v12975_v9, %v13043_v30  ;;  %v2331_v62 = vmul.f32 %v9173_v22, %v2313_v17  ;;  %v13057_v22 = vld [vmem:[#allocation199_spill] sm:$0xff] }
 0x51a   : > { %v9582_v15 = vpop.permute.xlu1 %2141  ;;  %v2849_v0 = vmax.f32 %v2833_v21, 0.0  ;;  %v2213_v18 = vadd.f32 %v2197_v16, %v2079_v55  ;;  %v2967_v61 = vadd.f32 %v13017_v14, %v13045_v13  ;;  %v2620_v46 = vadd.f32 %v13046_v32, %v2486_v40 }
 0x51b   : > { %v9586_v36 = vpop.permute.xlu0 %3039  ;;  %v2738_v6 = vmul.f32 %v9187_v51, %v2720_v59  ;;  %v1226_v20 = vadd.f32 %v9038_v26, %v13047_v42  ;;  %v1360_v50 = vadd.f32 %v9041_v63, %v13048_v38  ;;  %v1549_v60 = vadd.f32 %v13049_v57, %v1415_v29  ;;  %v13050_v38 = vld [vmem:[#allocation177_spill] sm:$0xff] }
 0x51c   : > { %v1667_v17 = vmul.f32 %v12944_v33, %v1649_v3  ;;  %v1901_v21 = vadd.f32 %v9103_v52, %v1874_v53  ;;  %v2447_v55 = vmax.f32 %v2431_v47, 0.0  ;;  %v2747_v40 = vadd.f32 %v2731_v48, %v2613_v43  ;;  %v13051_v53 = vld [vmem:[#allocation74_spill] sm:$0xff]  ;;  %v13052_v47 = vld [vmem:[#allocation121_spill] sm:$0xff]  ;;  %v13053_v43 = vld [vmem:[#allocation123_spill] sm:$0xff] }
 0x51d   : > { %2953 = vperm.xlu1 %7456, %v13044_v5   ;;  %v2999_v59 = vmul.f32 %v13031_v35, %v2981_v19  ;;  %v2599_v30 = vmul.f32 %v9179_v12, %v2581_v44  ;;  %v2715_v13 = vmax.f32 %v2699_v56, 0.0  ;;  %v9617_v32 = vmul.f32 %v9194_v28, %v2849_v0 }
 0x51e   : > { %v2347_v42 = vadd.f32 %v2331_v62, %v2213_v18  ;;  %v2983_v29 = vmax.f32 %v2967_v61, 0.0  ;;  %v2437_v3 = vadd.f32 %v12973_v8, %v13050_v38  ;;  %v1628_v48 = vadd.f32 %v9067_v23, %v13052_v47  ;;  %v13056_v47 = vld [vmem:[#allocation167_spill] sm:$0xff] }
 0x51f   : > { %v9602_v4 = vpop.permute.xlu1 %2275  ;;  %v9611_v16 = vpop.permute.xlu0 %3047  ;;  %v1896_v19 = vadd.f32 %v9103_v52, %v13053_v43  ;;  %v1242_v44 = vmax.f32 %v1226_v20, 0.0  ;;  %v1376_v56 = vmax.f32 %v1360_v50, 0.0  ;;  %v9626_v57 = vadd.f32 %v2738_v6, %v2620_v46  ;;  %v13058_v20 = vld [vmem:[#allocation220_spill] sm:$0xff]  ;;  %v13060_v43 = vld [vmem:[#allocation90_spill] sm:$0xff] }
 0x520   : > { %v1683_v5 = vadd.f32 %v1667_v17, %v1549_v60  ;;  %v1917_v0 = vmax.f32 %v1901_v21, 0.0  ;;  %v2465_v62 = vmul.f32 %v9176_v45, %v2447_v55  ;;  %v2881_v61 = vadd.f32 %v2865_v37, %v2747_v40  ;;  %v13059_v21 = vld [vmem:[#allocation89_spill] sm:$0xff] }
 0x521   : > { %7460 = vset.pattern.permute.xlu1 %v13009_v41  ;;  %13054 = vst [vmem:[#allocation40_spill] sm:$0xff] %v9626_v57  ;;  %v2733_v38 = vmul.f32 %v9187_v51, %v2715_v13  ;;  %v1494_v9 = vadd.f32 %v13057_v22, %v13056_v47  ;;  %v3094_v50 = vadd.f32 %v13058_v20, %v9570_v25  ;;  %v2453_v60 = vmax.f32 %v2437_v3, 0.0  ;;  %v13071_v51 = vld [vmem:[#allocation35_spill] sm:$0xff] }
 0x522   : > { %3063 = vperm.xlu1 %7460, %v13051_v53   ;;  %v13055_v53 = vld [vmem:[#allocation126_spill] sm:$0xff]  ;;  %v2481_v46 = vadd.f32 %v2465_v62, %v2347_v42  ;;  %v9639_v6 = vmul.f32 %v13031_v35, %v2983_v29  ;;  %v1644_v37 = vmax.f32 %v1628_v48, 0.0  ;;  %v1912_v55 = vmax.f32 %v1896_v19, 0.0  ;;  %v13061_v42 = vld [vmem:[#allocation128_spill] sm:$0xff] }
 0x523   : > { %v2164_v41 = vadd.f32 %v9133_v2, %v13055_v53  ;;  %v9641_v17 = vpop.permute.xlu0 %3055  ;;  %v1260_v40 = vmul.f32 %v9057_v54, %v1242_v44  ;;  %v1394_v13 = vmul.f32 %v9059_v34, %v1376_v56  ;;  %v1817_v53 = vadd.f32 %v13060_v43, %v1683_v5 }
 0x524   : > { %v9629_v18 = vpop.permute.xlu1 %2543  ;;  %v1935_v47 = vmul.f32 %v12951_v10, %v1917_v0  ;;  %v2169_v25 = vadd.f32 %v9133_v2, %v9582_v15  ;;  %v2566_v29 = vadd.f32 %v9152_v31, %v13061_v42  ;;  %v3097_v3 = vadd.f32 %v13058_v20, %v9586_v36  ;;  %v13062_v0 = vld [vmem:[#allocation130_spill] sm:$0xff] }
 0x525   : > { %v9654_v62 = vadd.f32 %v2999_v59, %v2881_v61  ;;  %v2180_v48 = vmax.f32 %v2164_v41, 0.0  ;;  %v1510_v19 = vmax.f32 %v1494_v9, 0.0  ;;  %v3110_v56 = vmax.f32 %v3094_v50, 0.0  ;;  %v13064_v61 = vld [vmem:[#allocation168_spill] sm:$0xff]  ;;  %v13065_v41 = vld [vmem:[#allocation203_spill] sm:$0xff] }
 0x526   : > { %3067 = vperm.xlu1 %7460, %v13059_v21   ;;  %v2615_v57 = vadd.f32 %v2599_v30, %v2481_v46  ;;  %v9659_v5 = vmul.f32 %v9176_v45, %v2453_v60  ;;  %v2834_v15 = vadd.f32 %v13030_v39, %v13062_v0  ;;  %v9665_v43 = vadd.f32 %v13017_v14, %v9549_v7  ;;  %v13067_v21 = vld [vmem:[#allocation22_spill] sm:$0xff] }
 0x527   : > { %v1662_v36 = vmul.f32 %v12944_v33, %v1644_v37  ;;  %v1410_v59 = vadd.f32 %v1394_v13, %v1260_v40  ;;  %v1762_v9 = vadd.f32 %v13065_v41, %v13064_v61  ;;  %v13066_v42 = vmov 15   ;;  %v13068_v40 = vld [vmem:[#allocation170_spill] sm:$0xff] }
 0x528   : > { %13063 = vst [vmem:[#allocation34_spill] sm:$0xff] %v9665_v43  ;;  %v1951_v50 = vadd.f32 %v1935_v47, %v1817_v53  ;;  %v2185_v30 = vmax.f32 %v2169_v25, 0.0  ;;  %v9672_v46 = vmul.f32 %v12951_v10, %v1912_v55  ;;  %v2582_v60 = vmax.f32 %v2566_v29, 0.0  ;;  %v9678_v43 = vpop.permute.xlu0 %3059  ;;  %v13069_v61 = vld [vmem:[#allocation218_spill] sm:$0xff] }
 0x529   : > { %v9656_v44 = vpop.permute.xlu1 %2811  ;;  %v3113_v0 = vmax.f32 %v3097_v3, 0.0  ;;  %v9676_v7 = vmul.f32 %v9170_v11, %v2180_v48  ;;  %v1528_v37 = vmul.f32 %v9085_v49, %v1510_v19  ;;  %v2030_v13 = vadd.f32 %v9124_v58, %v13068_v40  ;;  %v13070_v55 = vld [vmem:[#allocation182_spill] sm:$0xff] }
 0x52a   : > { %7461 = vset.pattern.permute.xlu1 %v13066_v42  ;;  %v3128_v53 = vmul.f32 %v13069_v61, %v3110_v56  ;;  %v2749_v47 = vadd.f32 %v2733_v38, %v2615_v57  ;;  %v2850_v25 = vmax.f32 %v2834_v15, 0.0  ;;  %v1366_v29 = vadd.f32 %v9041_v63, %v13070_v55  ;;  %v13073_v38 = vld [vmem:[#allocation25_spill] sm:$0xff] }
 0x52b   : > { %3161 = vperm.xlu1 %7461, %v13067_v21   ;;  %v3099_v21 = vadd.f32 %v13058_v20, %v9611_v16  ;;  %v1544_v3 = vadd.f32 %v1528_v37, %v1410_v59  ;;  %v1778_v48 = vmax.f32 %v1762_v9, 0.0  ;;  %v2085_v19 = vadd.f32 %v13071_v51, %v1951_v50  ;;  %v13074_v16 = vld [vmem:[#allocation172_spill] sm:$0xff] }
 0x52c   : > { %v2203_v39 = vmul.f32 %v9170_v11, %v2185_v30  ;;  %v2303_v56 = vadd.f32 %v9145_v1, %v9602_v4  ;;  %v9694_v57 = vmul.f32 %v9179_v12, %v2582_v60  ;;  %v3131_v15 = vmul.f32 %v13069_v61, %v3113_v0  ;;  %v13076_v30 = vld [vmem:[#allocation184_spill] sm:$0xff]  ;;  %v13078_v0 = vld [vmem:[#allocation207_spill] sm:$0xff] }
 0x52d   : > { %v2046_v40 = vmax.f32 %v2030_v13, 0.0  ;;  %v2298_v59 = vadd.f32 %v9145_v1, %v13074_v16  ;;  %v9702_v51 = vmul.f32 %v9194_v28, %v2850_v25  ;;  %v1382_v50 = vmax.f32 %v1366_v29, 0.0  ;;  %v13090_v28 = vld [vmem:[#allocation52_spill] sm:$0xff] }
 0x52e   : > { %v1207_v35 = vpop.permute.xlu1 %1206  ;;  %13072 = vst [vmem:[#allocation55_spill] sm:$0xff] %v9694_v57  ;;  %v1634_v4 = vadd.f32 %v9067_v23, %v13076_v30  ;;  %v9707_v60 = vadd.f32 %v3128_v53, %v9534_v24  ;;  %v3115_v37 = vmax.f32 %v3099_v21, 0.0  ;;  %v1678_v55 = vadd.f32 %v1662_v36, %v1544_v3  ;;  %v13081_v24 = vld [vmem:[#allocation211_spill] sm:$0xff]  ;;  %v13082_v36 = vld [vmem:[#allocation174_spill] sm:$0xff] }
 0x52f   : > { %v1232_v42 = vadd.f32 %v9038_v26, %v1207_v35  ;;  %3169 = vperm.xlu1 %7461, %v13073_v38   ;;  %v2883_v35 = vadd.f32 %v9617_v32, %v2749_v47  ;;  %13075 = vst [vmem:[#allocation36_spill] sm:$0xff] %v9702_v51  ;;  %v1796_v13 = vmul.f32 %v13078_v0, %v1778_v48  ;;  %v9710_v38 = vpop.permute.xlu0 %3071  ;;  %v2319_v57 = vmax.f32 %v2303_v56, 0.0  ;;  %v13079_v47 = vld [vmem:[#allocation24_spill] sm:$0xff] }
 0x530   : > { %13077 = vst [vmem:[#allocation208_spill] sm:$0xff] %v9707_v60  ;;  %v9716_v29 = vadd.f32 %v3131_v15, %v9588_v27  ;;  %v2064_v53 = vmul.f32 %v13081_v24, %v2046_v40  ;;  %v2314_v21 = vmax.f32 %v2298_v59, 0.0  ;;  %v2432_v3 = vadd.f32 %v12973_v8, %v13082_v36  ;;  %v13085_v15 = vld [vmem:[#allocation186_spill] sm:$0xff]  ;;  %v13086_v59 = vld [vmem:[#allocation212_spill] sm:$0xff] }
 0x531   : > { %v1248_v9 = vmax.f32 %v1232_v42, 0.0  ;;  %v2219_v42 = vadd.f32 %v2203_v39, %v2085_v19  ;;  %v9722_v48 = vadd.f32 %v9639_v6, %v2883_v35  ;;  %v1400_v39 = vmul.f32 %v9059_v34, %v1382_v50 }
 0x532   : > { %13080 = vst [vmem:[#allocation39_spill] sm:$0xff] %v9716_v29  ;;  %v1650_v56 = vmax.f32 %v1634_v4, 0.0  ;;  %v1812_v30 = vadd.f32 %v1796_v13, %v1678_v55  ;;  %v1902_v40 = vadd.f32 %v9103_v52, %v13085_v15  ;;  %v2337_v51 = vmul.f32 %v13086_v59, %v2319_v57  ;;  %v13088_v57 = vld [vmem:[#allocation43_spill] sm:$0xff] }
 0x533   : > { %v1476_v16 = vpop.permute.xlu1 %1475  ;;  %v1266_v32 = vmul.f32 %v9057_v54, %v1248_v9  ;;  %3173 = vperm.xlu1 %7461, %v13079_v47   ;;  %v3133_v9 = vmul.f32 %v13069_v61, %v3115_v37  ;;  %v13084_v47 = vld [vmem:[#allocation213_spill] sm:$0xff]  ;;  %v3101_v6 = vadd.f32 %v13058_v20, %v9641_v17  ;;  %v9739_v4 = vadd.f32 %v9152_v31, %v9629_v18  ;;  %v9744_v13 = vpop.permute.xlu0 %3075 }
 0x534   : > { %v1500_v25 = vadd.f32 %v13057_v22, %v1476_v16  ;;  %v13083_v16 = vld [vmem:[#allocation176_spill] sm:$0xff]  ;;  %v9742_v37 = vmul.f32 %v13086_v59, %v2314_v21  ;;  %v2448_v55 = vmax.f32 %v2432_v3, 0.0  ;;  %v1946_v18 = vadd.f32 %v9672_v46, %v1812_v30 }
 0x535   : > { %v9728_v27 = vadd.f32 %v13084_v47, %v13083_v16  ;;  %v1416_v35 = vadd.f32 %v1400_v39, %v1266_v32  ;;  %v1219_v16 = vadd.f32 %v9038_v26, %v13088_v57  ;;  %v1668_v32 = vmul.f32 %v12944_v33, %v1650_v56  ;;  %v13091_v57 = vld [vmem:[#allocation47_spill] sm:$0xff] }
 0x536   : > { %v1516_v19 = vmax.f32 %v1500_v25, 0.0  ;;  %v13087_v25 = vld [vmem:[#allocation27_spill] sm:$0xff]  ;;  %v9758_v56 = vadd.f32 %v3133_v9, %v9654_v62 }
 0x537   : > { %3181 = vperm.xlu1 %7461, %v13087_v25   ;;  %v2716_v21 = vmax.f32 %v9728_v27, 0.0  ;;  %v1918_v25 = vmax.f32 %v1902_v40, 0.0  ;;  %v1235_v3 = vmax.f32 %v1219_v16, 0.0 }
 0x538   : > { %v1534_v50 = vmul.f32 %v9085_v49, %v1516_v19  ;;  %v1744_v36 = vpop.permute.xlu1 %1743  ;;  %v13089_v19 = vld [vmem:[#allocation45_spill] sm:$0xff]  ;;  %13092 = vst [vmem:[#allocation94_spill] sm:$0xff] %v9758_v56  ;;  %v13097_v56 = vld [vmem:[#allocation124_spill] sm:$0xff] }
 0x539   : > { %v1768_v39 = vadd.f32 %v13065_v41, %v1744_v36  ;;  %v1353_v15 = vadd.f32 %v9041_v63, %v13089_v19  ;;  %v13093_v36 = vld [vmem:[#allocation188_spill] sm:$0xff]  ;;  %v1253_v46 = vmul.f32 %v9057_v54, %v1235_v3  ;;  %v1936_v62 = vmul.f32 %v12951_v10, %v1918_v25  ;;  %v13098_v25 = vld [vmem:[#allocation178_spill] sm:$0xff] }
 0x53a   : > { %v1550_v17 = vadd.f32 %v1534_v50, %v1416_v35  ;;  %v1487_v35 = vadd.f32 %v13057_v22, %v13091_v57  ;;  %v3117_v50 = vmax.f32 %v3101_v6, 0.0  ;;  %v2170_v19 = vadd.f32 %v9133_v2, %v13093_v36  ;;  %v13095_v6 = vld [vmem:[#allocation49_spill] sm:$0xff] }
 0x53b   : > { %v1784_v60 = vmax.f32 %v1768_v39, 0.0  ;;  %3189 = vperm.xlu1 %7461, %v13090_v28   ;;  %v1369_v31 = vmax.f32 %v1353_v15, 0.0  ;;  %v13094_v28 = vld [vmem:[#allocation42_spill] sm:$0xff]  ;;  %v9767_v39 = vpop.permute.xlu0 %3087  ;;  %v1755_v15 = vadd.f32 %v13065_v41, %v13095_v6  ;;  %v13096_v57 = vmov 14  }
 0x53c   : > { %v1684_v29 = vadd.f32 %v1668_v32, %v1550_v17  ;;  %v1503_v16 = vmax.f32 %v1487_v35, 0.0  ;;  %v1621_v17 = vadd.f32 %v9067_v23, %v13094_v28  ;;  %v2080_v32 = vadd.f32 %v2064_v53, %v1946_v18 }
 0x53d   : > { %v1802_v30 = vmul.f32 %v13078_v0, %v1784_v60  ;;  %v2012_v27 = vpop.permute.xlu1 %2011  ;;  %v1387_v40 = vmul.f32 %v9059_v34, %v1369_v31  ;;  %v2353_v36 = vadd.f32 %v2337_v51, %v2219_v42  ;;  %v2587_v28 = vmax.f32 %v9739_v4, 0.0  ;;  %v13099_v51 = vld [vmem:[#allocation44_spill] sm:$0xff] }
 0x53e   : > { %v2036_v9 = vadd.f32 %v9124_v58, %v2012_v27  ;;  %v1521_v31 = vmul.f32 %v9085_v49, %v1503_v16  ;;  %v1637_v35 = vmax.f32 %v1621_v17, 0.0  ;;  %v2466_v53 = vmul.f32 %v9176_v45, %v2448_v55  ;;  %v13100_v17 = vld [vmem:[#allocation180_spill] sm:$0xff] }
 0x53f   : > { %v1818_v3 = vadd.f32 %v1802_v30, %v1684_v29  ;;  %7462 = vset.pattern.permute.xlu1 %v13096_v57  ;;  %v1403_v60 = vadd.f32 %v1387_v40, %v1253_v46  ;;  %v2968_v27 = vadd.f32 %v13017_v14, %v13098_v25  ;;  %v2186_v6 = vmax.f32 %v2170_v19, 0.0 }
 0x540   : > { %v2052_v18 = vmax.f32 %v2036_v9, 0.0  ;;  %3079 = vperm.xlu1 %7462, %v13097_v56   ;;  %v1655_v40 = vmul.f32 %v12944_v33, %v1637_v35  ;;  %v1771_v16 = vmax.f32 %v1755_v15, 0.0  ;;  %v1889_v42 = vadd.f32 %v9103_v52, %v13099_v51  ;;  %v9796_v15 = vpop.permute.xlu0 %3165 }
 0x541   : > { %v1952_v23 = vadd.f32 %v1936_v62, %v1818_v3  ;;  %v1537_v29 = vadd.f32 %v1521_v31, %v1403_v60  ;;  %v3135_v4 = vmul.f32 %v13069_v61, %v3117_v50  ;;  %v2214_v55 = vadd.f32 %v9676_v7, %v2080_v32  ;;  %v13102_v60 = vld [vmem:[#allocation135_spill] sm:$0xff]  ;;  %v13103_v31 = vld [vmem:[#allocation217_spill] sm:$0xff] }
 0x542   : > { %v2070_v30 = vmul.f32 %v13081_v24, %v2052_v18  ;;  %v2280_v46 = vpop.permute.xlu1 %2279  ;;  %v2705_v9 = vadd.f32 %v13084_v47, %v13100_v17  ;;  %v2487_v62 = vadd.f32 %v9659_v5, %v2353_v36  ;;  %v9794_v3 = vadd.f32 %v13058_v20, %v9678_v43  ;;  %v13104_v43 = vld [vmem:[#allocation51_spill] sm:$0xff] }
 0x543   : > { %v2304_v19 = vadd.f32 %v9145_v1, %v2280_v46  ;;  %v1671_v50 = vadd.f32 %v1655_v40, %v1537_v29  ;;  %v2605_v7 = vmul.f32 %v9179_v12, %v2587_v28  ;;  %v2984_v32 = vmax.f32 %v2968_v27, 0.0 }
 0x544   : > { %13101 = vst [vmem:[#allocation41_spill] sm:$0xff] %v9794_v3  ;;  %v2086_v57 = vadd.f32 %v2070_v30, %v1952_v23  ;;  %3083 = vperm.xlu1 %7462, %v13102_v60   ;;  %v2839_v35 = vadd.f32 %v13103_v31, %v9656_v44  ;;  %v2204_v25 = vmul.f32 %v9170_v11, %v2186_v6  ;;  %v1905_v36 = vmax.f32 %v1889_v42, 0.0  ;;  %v13106_v30 = vld [vmem:[#allocation214_spill] sm:$0xff] }
 0x545   : > { %v2320_v18 = vmax.f32 %v2304_v19, 0.0  ;;  %v1789_v5 = vmul.f32 %v13078_v0, %v1771_v16  ;;  %v2023_v46 = vadd.f32 %v9124_v58, %v13104_v43  ;;  %v9807_v23 = vadd.f32 %v3135_v4, %v9722_v48  ;;  %v13108_v19 = vld [vmem:[#allocation216_spill] sm:$0xff]  ;;  %v13110_v4 = vld [vmem:[#allocation63_spill] sm:$0xff] }
 0x546   : > { %v2348_v29 = vadd.f32 %v9742_v37, %v2214_v55  ;;  %v2734_v28 = vmul.f32 %v13106_v30, %v2716_v21  ;;  %v2721_v27 = vmax.f32 %v2705_v9, 0.0  ;;  %v2220_v51 = vadd.f32 %v2204_v25, %v2086_v57  ;;  %v9819_v21 = vpop.permute.xlu0 %3177 }
 0x547   : > { %13105 = vst [vmem:[#allocation175_spill] sm:$0xff] %v9807_v23  ;;  %v2414_v40 = vpop.permute.xlu1 %2413  ;;  %v2338_v44 = vmul.f32 %v13086_v59, %v2320_v18  ;;  %v13107_v17 = vmov 15   ;;  %v1805_v16 = vadd.f32 %v1789_v5, %v1671_v50  ;;  %v2621_v42 = vadd.f32 %v2605_v7, %v2487_v62  ;;  %v13111_v18 = vld [vmem:[#allocation46_spill] sm:$0xff] }
 0x548   : > { %v2438_v6 = vadd.f32 %v12973_v8, %v2414_v40  ;;  %7464 = vset.pattern.permute.xlu1 %v13107_v17  ;;  %v9815_v60 = vmul.f32 %v13108_v19, %v2984_v32  ;;  %v2855_v37 = vmax.f32 %v2839_v35, 0.0  ;;  %v1923_v9 = vmul.f32 %v12951_v10, %v1905_v36  ;;  %v13114_v17 = vld [vmem:[#allocation89_spill] sm:$0xff] }
 0x549   : > { %3193 = vperm.xlu1 %7464, %v13110_v4   ;;  %v2039_v57 = vmax.f32 %v2023_v46, 0.0  ;;  %v2157_v25 = vadd.f32 %v9133_v2, %v13111_v18  ;;  %v2482_v43 = vadd.f32 %v2466_v53, %v2348_v29  ;;  %v2739_v62 = vmul.f32 %v13106_v30, %v2721_v27  ;;  %v13113_v46 = vld [vmem:[#allocation209_spill] sm:$0xff]  ;;  %v13115_v53 = vld [vmem:[#allocation191_spill] sm:$0xff]  ;;  %v13116_v27 = vld [vmem:[#allocation192_spill] sm:$0xff] }
 0x54a   : > { %13109 = vst [vmem:[#allocation57_spill] sm:$0xff] %v9815_v60  ;;  %v2454_v55 = vmax.f32 %v2438_v6, 0.0  ;;  %v3105_v50 = vadd.f32 %v13058_v20, %v9710_v38  ;;  %v9828_v7 = vstv %s9788_s26  ;;  %v3106_v32 = vadd.f32 %v13058_v20, %v9744_v13  ;;  %v13117_v4 = vld [vmem:[#allocation193_spill] sm:$0xff] }
 0x54b   : > { %13112 = vst [vmem:[#allocation59_spill] sm:$0xff] %v9828_v7  ;;  %v2354_v35 = vadd.f32 %v2338_v44, %v2220_v51  ;;  %v1939_v36 = vadd.f32 %v1923_v9, %v1805_v16  ;;  %v1501_v29 = vadd.f32 %v13057_v22, %v13115_v53  ;;  %v1769_v38 = vadd.f32 %v13065_v41, %v13116_v27  ;;  %v13118_v44 = vld [vmem:[#allocation54_spill] sm:$0xff] }
 0x54c   : > { %v2472_v5 = vmul.f32 %v9176_v45, %v2454_v55  ;;  %v2548_v40 = vpop.permute.xlu1 %2547  ;;  %v2037_v18 = vadd.f32 %v9124_v58, %v13117_v4  ;;  %v2057_v13 = vmul.f32 %v13081_v24, %v2039_v57  ;;  %v2173_v51 = vmax.f32 %v2157_v25, 0.0  ;;  %v13119_v55 = vld [vmem:[#allocation55_spill] sm:$0xff]  ;;  %v13123_v25 = vld [vmem:[#allocation96_spill] sm:$0xff] }
 0x54d   : > { %v2572_v6 = vadd.f32 %v13113_v46, %v2548_v40  ;;  %3201 = vperm.xlu1 %7464, %v13114_v17   ;;  %v2291_v16 = vadd.f32 %v9145_v1, %v13118_v44  ;;  %v2616_v9 = vadd.f32 %v13119_v55, %v2482_v43  ;;  %v13120_v40 = vld [vmem:[#allocation215_spill] sm:$0xff]  ;;  %v3121_v60 = vmax.f32 %v3105_v50, 0.0 }
 0x54e   : > { %v2488_v48 = vadd.f32 %v2472_v5, %v2354_v35  ;;  %v9846_v17 = vmul.f32 %v13120_v40, %v2855_v37  ;;  %v9848_v3 = vadd.f32 %v2739_v62, %v2621_v42  ;;  %v3122_v27 = vmax.f32 %v3106_v32, 0.0  ;;  %v3186_v35 = vpop.permute.xlu0 %3185  ;;  %v13124_v62 = vld [vmem:[#allocation48_spill] sm:$0xff] }
 0x54f   : > { %v2588_v53 = vmax.f32 %v2572_v6, 0.0  ;;  %v3109_v4 = vadd.f32 %v13058_v20, %v9767_v39  ;;  %v2073_v5 = vadd.f32 %v2057_v13, %v1939_v36  ;;  %v1517_v23 = vmax.f32 %v1501_v29, 0.0  ;;  %v13127_v13 = vld [vmem:[#allocation194_spill] sm:$0xff] }
 0x550   : > { %13121 = vst [vmem:[#allocation97_spill] sm:$0xff] %v9846_v17  ;;  %13122 = vst [vmem:[#allocation125_spill] sm:$0xff] %v9848_v3  ;;  %v1785_v43 = vmax.f32 %v1769_v38, 0.0  ;;  %v2053_v55 = vmax.f32 %v2037_v18, 0.0  ;;  %v2191_v50 = vmul.f32 %v9170_v11, %v2173_v51  ;;  %v2307_v42 = vmax.f32 %v2291_v16, 0.0  ;;  %v13133_v17 = vld [vmem:[#allocation60_spill] sm:$0xff] }
 0x551   : > { %v2606_v57 = vmul.f32 %v9179_v12, %v2588_v53  ;;  %3205 = vperm.xlu1 %7464, %v13123_v25   ;;  %v2682_v44 = vpop.permute.xlu1 %2681  ;;  %v2425_v32 = vadd.f32 %v12973_v8, %v13124_v62  ;;  %v9858_v6 = vadd.f32 %v2734_v28, %v2616_v9  ;;  %v9861_v39 = vmul.f32 %v13069_v61, %v3121_v60  ;;  %v13134_v3 = vld [vmem:[#allocation62_spill] sm:$0xff] }
 0x552   : > { %v2706_v37 = vadd.f32 %v13084_v47, %v2682_v44  ;;  %v2305_v53 = vadd.f32 %v9145_v1, %v13127_v13  ;;  %v9866_v29 = vmul.f32 %v13069_v61, %v3122_v27  ;;  %v3125_v38 = vmax.f32 %v3109_v4, 0.0  ;;  %v3198_v9 = vpop.permute.xlu0 %3197  ;;  %v13131_v44 = vld [vmem:[#allocation221_spill] sm:$0xff] }
 0x553   : > { %13125 = vst [vmem:[#allocation127_spill] sm:$0xff] %v9858_v6  ;;  %13126 = vst [vmem:[#allocation82_spill] sm:$0xff] %v9861_v39  ;;  %v2622_v36 = vadd.f32 %v2606_v57, %v2488_v48  ;;  %v2207_v25 = vadd.f32 %v2191_v50, %v2073_v5  ;;  %v9870_v51 = vmul.f32 %v9085_v49, %v1517_v23  ;;  %v13129_v48 = vld [vmem:[#allocation195_spill] sm:$0xff]  ;;  %v2441_v57 = vmax.f32 %v2425_v32, 0.0  ;;  %v13132_v50 = vld [vmem:[#allocation158_spill] sm:$0xff] }
 0x554   : > { %13128 = vst [vmem:[#allocation61_spill] sm:$0xff] %v9866_v29  ;;  %v2722_v18 = vmax.f32 %v2706_v37, 0.0  ;;  %v9873_v28 = vmul.f32 %v13078_v0, %v1785_v43  ;;  %v9876_v60 = vmul.f32 %v13081_v24, %v2053_v55  ;;  %v2573_v16 = vadd.f32 %v13113_v46, %v13129_v48 }
 0x555   : > { %3213 = vperm.xlu1 %7464, %v13097_v56   ;;  %v2325_v5 = vmul.f32 %v13086_v59, %v2307_v42  ;;  %v13130_v56 = vld [vmem:[#allocation56_spill] sm:$0xff]  ;;  %v3229_v43 = vadd.f32 %v13131_v44, %v9796_v15  ;;  %v2321_v55 = vmax.f32 %v2305_v53, 0.0  ;;  %v2837_v62 = vadd.f32 %v13103_v31, %v13132_v50 }
 0x556   : > { %v2740_v27 = vmul.f32 %v13106_v30, %v2722_v18  ;;  %v2816_v4 = vpop.permute.xlu1 %2815  ;;  %v2559_v23 = vadd.f32 %v13113_v46, %v13130_v56  ;;  %v1220_v18 = vadd.f32 %v9038_v26, %v13133_v17  ;;  %v1354_v42 = vadd.f32 %v9041_v63, %v13134_v3 }
 0x557   : > { %v2840_v37 = vadd.f32 %v13103_v31, %v2816_v4  ;;  %v2341_v48 = vadd.f32 %v2325_v5, %v2207_v25  ;;  %v9894_v32 = vmul.f32 %v13069_v61, %v3125_v38  ;;  %v3232_v15 = vadd.f32 %v13131_v44, %v9819_v21  ;;  %v13136_v4 = vld [vmem:[#allocation144_spill] sm:$0xff]  ;;  %v13138_v21 = vld [vmem:[#allocation58_spill] sm:$0xff]  ;;  %v13140_v61 = vld [vmem:[#allocation65_spill] sm:$0xff] }
 0x558   : > { %v2756_v13 = vadd.f32 %v2740_v27, %v2622_v36  ;;  %v2589_v53 = vmax.f32 %v2573_v16, 0.0  ;;  %v3234_v50 = vadd.f32 %v13131_v44, %v3186_v35  ;;  %v2459_v36 = vmul.f32 %v9176_v45, %v2441_v57  ;;  %v13137_v27 = vld [vmem:[#allocation50_spill] sm:$0xff]  ;;  %v3210_v16 = vpop.permute.xlu0 %3209 }
 0x559   : > { %13135 = vst [vmem:[#allocation64_spill] sm:$0xff] %v9894_v32  ;;  %v2856_v56 = vmax.f32 %v2840_v37, 0.0  ;;  %3221 = vperm.xlu1 %7464, %v13136_v4   ;;  %v2575_v25 = vmax.f32 %v2559_v23, 0.0  ;;  %v2693_v17 = vadd.f32 %v13084_v47, %v13137_v27  ;;  %v9905_v38 = vmul.f32 %v13086_v59, %v2321_v55 }
 0x55a   : > { %v2853_v6 = vmax.f32 %v2837_v62, 0.0  ;;  %v2827_v37 = vadd.f32 %v13103_v31, %v13138_v21  ;;  %v3245_v4 = vmax.f32 %v3229_v43, 0.0  ;;  %v2475_v29 = vadd.f32 %v2459_v36, %v2341_v48 }
 0x55b   : > { %v2874_v3 = vmul.f32 %v13120_v40, %v2856_v56  ;;  %v1212_v5 = vpop.permute.xlu1 %1211  ;;  %v1236_v35 = vmax.f32 %v1220_v18, 0.0  ;;  %v1370_v32 = vmax.f32 %v1354_v42, 0.0  ;;  %v3248_v57 = vmax.f32 %v3232_v15, 0.0 }
 0x55c   : > { %v1233_v27 = vadd.f32 %v9038_v26, %v1212_v5  ;;  %v9913_v56 = vmul.f32 %v9179_v12, %v2589_v53  ;;  %v3250_v39 = vmax.f32 %v3234_v50, 0.0  ;;  %v2593_v55 = vmul.f32 %v9179_v12, %v2575_v25  ;;  %v13141_v50 = vld [vmem:[#allocation66_spill] sm:$0xff] }
 0x55d   : > { %v9909_v23 = vadd.f32 %v2874_v3, %v2756_v13  ;;  %v2709_v62 = vmax.f32 %v2693_v17, 0.0  ;;  %v1488_v21 = vadd.f32 %v13057_v22, %v13140_v61  ;;  %v3237_v43 = vadd.f32 %v13131_v44, %v3198_v9  ;;  %v13142_v3 = vld [vmem:[#allocation201_spill] sm:$0xff]  ;;  %v13143_v5 = vld [vmem:[#allocation38_spill] sm:$0xff] }
 0x55e   : > { %v3240_v48 = vadd.f32 %v13131_v44, %v3210_v16  ;;  %v2871_v18 = vmul.f32 %v13120_v40, %v2853_v6  ;;  %v2843_v13 = vmax.f32 %v2827_v37, 0.0  ;;  %v2609_v15 = vadd.f32 %v2593_v55, %v2475_v29 }
 0x55f   : > { %13139 = vst [vmem:[#allocation67_spill] sm:$0xff] %v9909_v23  ;;  %v1254_v36 = vmul.f32 %v9057_v54, %v1236_v35  ;;  %v1388_v53 = vmul.f32 %v9059_v34, %v1370_v32  ;;  %v1622_v25 = vadd.f32 %v13142_v3, %v13141_v50  ;;  %v9926_v17 = vmul.f32 %v9828_v7, %v3245_v4  ;;  %v13147_v4 = vld [vmem:[#allocation53_spill] sm:$0xff] }
 0x560   : > { %v1346_v42 = vpop.permute.xlu1 %1345  ;;  %v1249_v61 = vmax.f32 %v1233_v27, 0.0  ;;  %v9930_v16 = vadd.f32 %v2871_v18, %v13143_v5  ;;  %v9933_v6 = vmul.f32 %v9828_v7, %v3248_v57  ;;  %v9936_v29 = vmul.f32 %v9828_v7, %v3250_v39 }
 0x561   : > { %v1367_v9 = vadd.f32 %v9041_v63, %v1346_v42  ;;  %v2727_v32 = vmul.f32 %v13106_v30, %v2709_v62  ;;  %v1504_v37 = vmax.f32 %v1488_v21, 0.0  ;;  %v3253_v35 = vmax.f32 %v3237_v43, 0.0  ;;  %v13148_v62 = vld [vmem:[#allocation68_spill] sm:$0xff]  ;;  %v13149_v43 = vld [vmem:[#allocation70_spill] sm:$0xff] }
 0x562   : > { %13144 = vst [vmem:[#allocation129_spill] sm:$0xff] %v9930_v16  ;;  %13145 = vst [vmem:[#allocation99_spill] sm:$0xff] %v9933_v6  ;;  %v3256_v55 = vmax.f32 %v3240_v48, 0.0  ;;  %v2961_v27 = vadd.f32 %v13017_v14, %v13147_v4  ;;  %v2861_v18 = vmul.f32 %v13120_v40, %v2843_v13  ;;  %v1404_v5 = vadd.f32 %v1388_v53, %v1254_v36  ;;  %v13151_v36 = vld [vmem:[#allocation111_spill] sm:$0xff] }
 0x563   : > { %13146 = vst [vmem:[#allocation92_spill] sm:$0xff] %v9936_v29  ;;  %v1383_v50 = vmax.f32 %v1367_v9, 0.0  ;;  %v2743_v42 = vadd.f32 %v2727_v32, %v2609_v15  ;;  %v1638_v57 = vmax.f32 %v1622_v25, 0.0  ;;  %v1267_v23 = vmul.f32 %v9057_v54, %v1249_v61  ;;  %v13150_v15 = vld [vmem:[#allocation108_spill] sm:$0xff] }
 0x564   : > { %v1756_v21 = vadd.f32 %v13065_v41, %v13148_v62  ;;  %v1890_v48 = vadd.f32 %v9103_v52, %v13149_v43  ;;  %v1522_v4 = vmul.f32 %v9085_v49, %v1504_v37  ;;  %v1222_v13 = vadd.f32 %v9038_v26, %v13150_v15 }
 0x565   : > { %v1401_v39 = vmul.f32 %v9059_v34, %v1383_v50  ;;  %v1614_v29 = vpop.permute.xlu1 %1613  ;;  %v1356_v53 = vadd.f32 %v9041_v63, %v13151_v36  ;;  %v9957_v25 = vmul.f32 %v9828_v7, %v3253_v35  ;;  %v2977_v32 = vmax.f32 %v2961_v27, 0.0  ;;  %v13153_v50 = vld [vmem:[#allocation72_spill] sm:$0xff] }
 0x566   : > { %v1635_v9 = vadd.f32 %v13142_v3, %v1614_v29  ;;  %v2024_v62 = vadd.f32 %v9124_v58, %v13153_v50  ;;  %v9962_v43 = vmul.f32 %v9828_v7, %v3256_v55  ;;  %v3218_v29 = vpop.permute.xlu0 %3217  ;;  %v2877_v37 = vadd.f32 %v2861_v18, %v2743_v42 }
 0x567   : > { %13152 = vst [vmem:[#allocation84_spill] sm:$0xff] %v9957_v25  ;;  %v1417_v61 = vadd.f32 %v1401_v39, %v1267_v23  ;;  %v1538_v16 = vadd.f32 %v1522_v4, %v1404_v5  ;;  %v1656_v36 = vmul.f32 %v12944_v33, %v1638_v57  ;;  %v1772_v40 = vmax.f32 %v1756_v21, 0.0  ;;  %v13155_v39 = vld [vmem:[#allocation75_spill] sm:$0xff] }
 0x568   : > { %13154 = vst [vmem:[#allocation29_spill] sm:$0xff] %v9962_v43  ;;  %v1651_v6 = vmax.f32 %v1635_v9, 0.0  ;;  %v1906_v35 = vmax.f32 %v1890_v48, 0.0  ;;  %v2158_v50 = vadd.f32 %v9133_v2, %v13155_v39  ;;  %v1238_v25 = vmax.f32 %v1222_v13, 0.0  ;;  %v13158_v48 = vld [vmem:[#allocation113_spill] sm:$0xff]  ;;  %v13161_v39 = vld [vmem:[#allocation79_spill] sm:$0xff] }
 0x569   : > { %v1551_v15 = vadd.f32 %v9870_v51, %v1417_v61  ;;  %v1372_v55 = vmax.f32 %v1356_v53, 0.0  ;;  %v9970_v43 = vadd.f32 %v13131_v44, %v3218_v29  ;;  %v2995_v18 = vmul.f32 %v13108_v19, %v2977_v32  ;;  %v13166_v44 = vld [vmem:[#allocation147_spill] sm:$0xff] }
 0x56a   : > { %v1669_v23 = vmul.f32 %v12944_v33, %v1651_v6  ;;  %v1882_v27 = vpop.permute.xlu1 %1881  ;;  %v2040_v51 = vmax.f32 %v2024_v62, 0.0  ;;  %v9975_v57 = vstv %s9941_s27  ;;  %v1672_v21 = vadd.f32 %v1656_v36, %v1538_v16 }
 0x56b   : > { %13156 = vst [vmem:[#allocation101_spill] sm:$0xff] %v9970_v43  ;;  %v1903_v42 = vadd.f32 %v9103_v52, %v1882_v27  ;;  %13157 = vst [vmem:[#allocation131_spill] sm:$0xff] %v9975_v57  ;;  %v1490_v6 = vadd.f32 %v13057_v22, %v13158_v48  ;;  %v9979_v4 = vadd.f32 %v2995_v18, %v2877_v37  ;;  %v2174_v29 = vmax.f32 %v2158_v50, 0.0  ;;  %v13160_v27 = vld [vmem:[#allocation69_spill] sm:$0xff] }
 0x56c   : > { %v1685_v5 = vadd.f32 %v1669_v23, %v1551_v15  ;;  %v1790_v13 = vmul.f32 %v13078_v0, %v1772_v40  ;;  %v1924_v53 = vmul.f32 %v12951_v10, %v1906_v35  ;;  %v1256_v32 = vmul.f32 %v9057_v54, %v1238_v25  ;;  %v13159_v23 = vld [vmem:[#allocation77_spill] sm:$0xff] }
 0x56d   : > { %v1919_v9 = vmax.f32 %v1903_v42, 0.0  ;;  %v1390_v62 = vmul.f32 %v9059_v34, %v1372_v55  ;;  %v2058_v36 = vmul.f32 %v13081_v24, %v2040_v51  ;;  %v9990_v37 = vadd.f32 %v9145_v1, %v13159_v23  ;;  %v13162_v42 = vld [vmem:[#allocation81_spill] sm:$0xff]  ;;  %v13163_v51 = vld [vmem:[#allocation142_spill] sm:$0xff] }
 0x56e   : > { %v1819_v61 = vadd.f32 %v9873_v28, %v1685_v5  ;;  %v1624_v40 = vadd.f32 %v13142_v3, %v13160_v27  ;;  %v1806_v28 = vadd.f32 %v1790_v13, %v1672_v21  ;;  %v9997_v25 = vadd.f32 %v12973_v8, %v13161_v39  ;;  %v13164_v48 = vld [vmem:[#allocation145_spill] sm:$0xff]  ;;  %v13165_v13 = vld [vmem:[#allocation115_spill] sm:$0xff] }
 0x56f   : > { %v1937_v15 = vmul.f32 %v12951_v10, %v1919_v9  ;;  %v2150_v16 = vpop.permute.xlu1 %2149  ;;  %v1506_v50 = vmax.f32 %v1490_v6, 0.0  ;;  %v10001_v18 = vadd.f32 %v13113_v46, %v13162_v42  ;;  %v1224_v5 = vadd.f32 %v9038_v26, %v13163_v51 }
 0x570   : > { %v2171_v35 = vadd.f32 %v9133_v2, %v2150_v16  ;;  %v1358_v9 = vadd.f32 %v9041_v63, %v13164_v48  ;;  %v2192_v16 = vmul.f32 %v9170_v11, %v2174_v29  ;;  %v1406_v21 = vadd.f32 %v1390_v62, %v1256_v32  ;;  %v13167_v48 = vld [vmem:[#allocation95_spill] sm:$0xff] }
 0x571   : > { %v1953_v55 = vadd.f32 %v1937_v15, %v1819_v61  ;;  %v1758_v27 = vadd.f32 %v13065_v41, %v13165_v13  ;;  %v1640_v61 = vmax.f32 %v1624_v40, 0.0  ;;  %v1240_v15 = vmax.f32 %v1224_v5, 0.0 }
 0x572   : > { %v2187_v23 = vmax.f32 %v2171_v35, 0.0  ;;  %v1374_v39 = vmax.f32 %v1358_v9, 0.0  ;;  %v1940_v7 = vadd.f32 %v1924_v53, %v1806_v28  ;;  %v1524_v51 = vmul.f32 %v9085_v49, %v1506_v50  ;;  %v13168_v28 = vld [vmem:[#allocation71_spill] sm:$0xff] }
 0x573   : > { %v2087_v6 = vadd.f32 %v9876_v60, %v1953_v55  ;;  %v1492_v35 = vadd.f32 %v13057_v22, %v13166_v44  ;;  %v1258_v32 = vmul.f32 %v9057_v54, %v1240_v15  ;;  %v1626_v60 = vadd.f32 %v13142_v3, %v13167_v48 }
 0x574   : > { %v2205_v42 = vmul.f32 %v9170_v11, %v2187_v23  ;;  %v2418_v43 = vpop.permute.xlu1 %2417  ;;  %v1392_v62 = vmul.f32 %v9059_v34, %v1374_v39  ;;  %v1540_v55 = vadd.f32 %v1524_v51, %v1406_v21  ;;  %v1774_v5 = vmax.f32 %v1758_v27, 0.0  ;;  %v13169_v39 = vld [vmem:[#allocation148_spill] sm:$0xff]  ;;  %v13170_v51 = vld [vmem:[#allocation83_spill] sm:$0xff] }
 0x575   : > { %v2439_v29 = vadd.f32 %v12973_v8, %v2418_v43  ;;  %v1508_v9 = vmax.f32 %v1492_v35, 0.0  ;;  %v1658_v53 = vmul.f32 %v12944_v33, %v1640_v61  ;;  %v1892_v50 = vadd.f32 %v9103_v52, %v13168_v28 }
 0x576   : > { %v2221_v40 = vadd.f32 %v2205_v42, %v2087_v6  ;;  %v1408_v44 = vadd.f32 %v1392_v62, %v1258_v32  ;;  %v1642_v15 = vmax.f32 %v1626_v60, 0.0  ;;  %v1760_v19 = vadd.f32 %v13065_v41, %v13169_v39 }
 0x577   : > { %v2455_v23 = vmax.f32 %v2439_v29, 0.0  ;;  %v1526_v13 = vmul.f32 %v9085_v49, %v1508_v9  ;;  %v2074_v27 = vadd.f32 %v2058_v36, %v1940_v7  ;;  %v2308_v42 = vmax.f32 %v9990_v37, 0.0  ;;  %v13172_v37 = vld [vmem:[#allocation98_spill] sm:$0xff] }
 0x578   : > { %v2355_v43 = vadd.f32 %v9905_v38, %v2221_v40  ;;  %v2694_v61 = vadd.f32 %v13084_v47, %v13170_v51  ;;  %v2442_v29 = vmax.f32 %v9997_v25, 0.0  ;;  %v1674_v38 = vadd.f32 %v1658_v53, %v1540_v55  ;;  %v13171_v40 = vld [vmem:[#allocation117_spill] sm:$0xff] }
 0x579   : > { %v2473_v6 = vmul.f32 %v9176_v45, %v2455_v23  ;;  %v2686_v21 = vpop.permute.xlu1 %2685  ;;  %v1542_v32 = vadd.f32 %v1526_v13, %v1408_v44  ;;  %v1792_v48 = vmul.f32 %v13078_v0, %v1774_v5  ;;  %v1908_v60 = vmax.f32 %v1892_v50, 0.0  ;;  %v13173_v55 = vld [vmem:[#allocation73_spill] sm:$0xff] }
 0x57a   : > { %v2707_v35 = vadd.f32 %v13084_v47, %v2686_v21  ;;  %v2026_v9 = vadd.f32 %v9124_v58, %v13171_v40  ;;  %v1660_v7 = vmul.f32 %v12944_v33, %v1642_v15  ;;  %v1776_v36 = vmax.f32 %v1760_v19, 0.0 }
 0x57b   : > { %v2489_v62 = vadd.f32 %v2473_v6, %v2355_v43  ;;  %v1894_v28 = vadd.f32 %v9103_v52, %v13172_v37  ;;  %v2208_v21 = vadd.f32 %v2192_v16, %v2074_v27  ;;  %v2576_v25 = vmax.f32 %v10001_v18, 0.0  ;;  %v13174_v43 = vld [vmem:[#allocation118_spill] sm:$0xff] }
 0x57c   : > { %v2723_v23 = vmax.f32 %v2707_v35, 0.0  ;;  %v2160_v53 = vadd.f32 %v9133_v2, %v13173_v55  ;;  %v1808_v44 = vadd.f32 %v1792_v48, %v1674_v38  ;;  %v2294_v13 = vadd.f32 %v9145_v1, %v13174_v43  ;;  %v13175_v35 = vld [vmem:[#allocation149_spill] sm:$0xff] }
 0x57d   : > { %v2623_v39 = vadd.f32 %v9913_v56, %v2489_v62  ;;  %v1676_v19 = vadd.f32 %v1660_v7, %v1542_v32  ;;  %v2326_v15 = vmul.f32 %v13086_v59, %v2308_v42  ;;  %v2710_v6 = vmax.f32 %v2694_v61, 0.0  ;;  %v13176_v48 = vld [vmem:[#allocation85_spill] sm:$0xff] }
 0x57e   : > { %v2741_v5 = vmul.f32 %v13106_v30, %v2723_v23  ;;  %v10044_v50 = vpop.permute.xlu1 %2937  ;;  %v1926_v56 = vmul.f32 %v12951_v10, %v1908_v60  ;;  %v2042_v16 = vmax.f32 %v2026_v9, 0.0  ;;  %v1794_v18 = vmul.f32 %v13078_v0, %v1776_v36 }
 0x57f   : > { %v1910_v51 = vmax.f32 %v1894_v28, 0.0  ;;  %v2028_v62 = vadd.f32 %v9124_v58, %v13175_v35  ;;  %v2342_v40 = vadd.f32 %v2326_v15, %v2208_v21  ;;  %v2460_v38 = vmul.f32 %v9176_v45, %v2442_v29  ;;  %v13177_v28 = vld [vmem:[#allocation76_spill] sm:$0xff] }
 0x580   : > { %v10050_v27 = vadd.f32 %v2741_v5, %v2623_v39  ;;  %v10058_v32 = vadd.f32 %v13103_v31, %v13176_v48  ;;  %v2176_v42 = vmax.f32 %v2160_v53, 0.0  ;;  %v10061_v61 = vmul.f32 %v9179_v12, %v2576_v25  ;;  %v13178_v39 = vld [vmem:[#allocation120_spill] sm:$0xff] }
 0x581   : > { %v1942_v60 = vadd.f32 %v1926_v56, %v1808_v44  ;;  %v2310_v9 = vmax.f32 %v2294_v13, 0.0  ;;  %v1810_v23 = vadd.f32 %v1794_v18, %v1676_v19  ;;  %v10064_v36 = vmul.f32 %v13106_v30, %v2710_v6  ;;  %v13179_v5 = vld [vmem:[#allocation100_spill] sm:$0xff]  ;;  %v13180_v19 = vld [vmem:[#allocation87_spill] sm:$0xff] }
 0x582   : > { %v2060_v37 = vmul.f32 %v13081_v24, %v2042_v16  ;;  %v2428_v29 = vadd.f32 %v12973_v8, %v13177_v28  ;;  %v2562_v21 = vadd.f32 %v13113_v46, %v13178_v39  ;;  %v1928_v25 = vmul.f32 %v12951_v10, %v1910_v51  ;;  %v13182_v28 = vld [vmem:[#allocation181_spill] sm:$0xff] }
 0x583   : > { %v3032_v7 = vpop.permute.xlu1 %3031  ;;  %v2044_v53 = vmax.f32 %v2028_v62, 0.0  ;;  %v2162_v44 = vadd.f32 %v9133_v2, %v13179_v5  ;;  %v10075_v43 = vadd.f32 %v2460_v38, %v2342_v40  ;;  %v10080_v15 = vadd.f32 %v13017_v14, %v13180_v19  ;;  %v13181_v40 = vld [vmem:[#allocation179_spill] sm:$0xff]  ;;  %v13183_v5 = vld [vmem:[#allocation218_spill] sm:$0xff] }
 0x584   : > { %v3095_v55 = vadd.f32 %v13058_v20, %v3032_v7  ;;  %v2194_v6 = vmul.f32 %v9170_v11, %v2176_v42  ;;  %v2076_v16 = vadd.f32 %v2060_v37, %v1942_v60  ;;  %v2328_v18 = vmul.f32 %v13086_v59, %v2310_v9  ;;  %v10086_v7 = vld [vmem:[#allocation8] sm:$0xff]   ;;  %v13184_v37 = vld [vmem:[#allocation150_spill] sm:$0xff] }
 0x585   : > { %v1944_v35 = vadd.f32 %v1928_v25, %v1810_v23  ;;  %v2444_v62 = vmax.f32 %v2428_v29, 0.0  ;;  %v2578_v48 = vmax.f32 %v2562_v21, 0.0  ;;  %v1227_v38 = vadd.f32 %v9038_v26, %v13181_v40  ;;  %v13185_v23 = vld [vmem:[#allocation78_spill] sm:$0xff]  ;;  %v13186_v25 = vld [vmem:[#allocation132_spill] sm:$0xff] }
 0x586   : > { %v3111_v56 = vmax.f32 %v3095_v55, 0.0  ;;  %v1361_v39 = vadd.f32 %v9041_v63, %v13182_v28  ;;  %v2062_v42 = vmul.f32 %v13081_v24, %v2044_v53  ;;  %v2178_v60 = vmax.f32 %v2162_v44, 0.0 }
 0x587   : > { %v10084_v51 = vpop.permute.xlu1 %3035  ;;  %v2296_v9 = vadd.f32 %v9145_v1, %v13184_v37  ;;  %v10098_v29 = vadd.f32 %v13084_v47, %v13185_v23  ;;  %v1243_v21 = vmax.f32 %v1227_v38, 0.0  ;;  %v1495_v26 = vadd.f32 %v13057_v22, %v13186_v25  ;;  %v13187_v23 = vld [vmem:[#allocation183_spill] sm:$0xff] }
 0x588   : > { %v3129_v19 = vmul.f32 %v13183_v5, %v3111_v56  ;;  %v1377_v55 = vmax.f32 %v1361_v39, 0.0  ;;  %v2210_v63 = vadd.f32 %v2194_v6, %v2076_v16  ;;  %v2078_v28 = vadd.f32 %v2062_v42, %v1944_v35 }
 0x589   : > { %v6729_v56 = vunpack.c.h.bf16 %v10086_v7  ;;  %v1261_v44 = vmul.f32 %v9057_v54, %v1243_v21  ;;  %v1511_v13 = vmax.f32 %v1495_v26, 0.0  ;;  %v1629_v38 = vadd.f32 %v13142_v3, %v13187_v23 }
 0x58a   : > { %v3145_v40 = vadd.f32 %v3129_v19, %v9979_v4  ;;  %v1395_v37 = vmul.f32 %v9059_v34, %v1377_v55  ;;  %v2196_v22 = vmul.f32 %v9170_v11, %v2178_v60  ;;  %v2312_v25 = vmax.f32 %v2296_v9, 0.0  ;;  %v13188_v4 = vld [vmem:[#allocation102_spill] sm:$0xff] }
 0x58b   : > { %v10104_v53 = vpop.permute.xlu1 %3043  ;;  %v2430_v6 = vadd.f32 %v12973_v8, %v13188_v4  ;;  %v2462_v16 = vmul.f32 %v9176_v45, %v2444_v62  ;;  %v1529_v19 = vmul.f32 %v9085_v49, %v1511_v13  ;;  %v1645_v54 = vmax.f32 %v1629_v38, 0.0  ;;  %v13189_v9 = vld [vmem:[#allocation134_spill] sm:$0xff]  ;;  %v13191_v13 = vld [vmem:[#allocation151_spill] sm:$0xff] }
 0x58c   : > { %v3279_v39 = vadd.f32 %v9926_v17, %v3145_v40  ;;  %v1411_v35 = vadd.f32 %v1395_v37, %v1261_v44  ;;  %v2344_v42 = vadd.f32 %v2328_v18, %v2210_v63  ;;  %v2212_v21 = vadd.f32 %v2196_v22, %v2078_v28  ;;  %v13190_v40 = vld [vmem:[#allocation185_spill] sm:$0xff]  ;;  %v13193_v22 = vld [vmem:[#allocation187_spill] sm:$0xff]  ;;  %v13194_v4 = vld [vmem:[#allocation122_spill] sm:$0xff] }
 0x58d   : > { %v3408_v55 = vsub.f32 1.0, %v6729_v56  ;;  %v1663_v60 = vmul.f32 %v12944_v33, %v1645_v54  ;;  %v1763_v26 = vadd.f32 %v13065_v41, %v13189_v9  ;;  %v1897_v62 = vadd.f32 %v9103_v52, %v13190_v40 }
 0x58e   : > { %v3296_v34 = vadd.f32 %v9975_v57, %v3279_v39  ;;  %v1545_v17 = vadd.f32 %v1529_v19, %v1411_v35  ;;  %v2330_v44 = vmul.f32 %v13086_v59, %v2312_v25  ;;  %v2446_v49 = vmax.f32 %v2430_v6, 0.0  ;;  %v13192_v39 = vld [vmem:[#allocation137_spill] sm:$0xff] }
 0x58f   : > { %v10117_v3 = vpop.permute.xlu1 %3051  ;;  %v2564_v37 = vadd.f32 %v13113_v46, %v13191_v13  ;;  %v1779_v28 = vmax.f32 %v1763_v26, 0.0  ;;  %v1913_v23 = vmax.f32 %v1897_v62, 0.0  ;;  %v2596_v38 = vmul.f32 %v9179_v12, %v2578_v48 }
 0x590   : > { %vm3312_vm0 = vcmp.gt.f32.partialorder %v3296_v34, 0.0  ;;  %v3328_v18 = vmul.f32 0.01, %v3296_v34  ;;  %v1679_v63 = vadd.f32 %v1663_v60, %v1545_v17  ;;  %v3424_v33 = vmul.f32 -1e+30, %v3408_v55  ;;  %v13195_v17 = vld [vmem:[#allocation104_spill] sm:$0xff] }
 0x591   : > { %v2031_v41 = vadd.f32 %v9124_v58, %v13192_v39  ;;  %v2165_v52 = vadd.f32 %v9133_v2, %v13193_v22  ;;  %v2830_v25 = vadd.f32 %v13103_v31, %v13194_v4  ;;  %v2346_v6 = vadd.f32 %v2330_v44, %v2212_v21  ;;  %v13196_v21 = vld [vmem:[#allocation139_spill] sm:$0xff]  ;;  %v13200_v39 = vld [vmem:[#allocation152_spill] sm:$0xff]  ;;  %v13201_v22 = vld [vmem:[#allocation141_spill] sm:$0xff] }
 0x592   : > { %v3344_v35 = vsel %vm3312_vm0, %v3296_v34, %v3328_v18  ;;  %v1797_v19 = vmul.f32 %v13078_v0, %v1779_v28  ;;  %v2478_v54 = vadd.f32 %v2462_v16, %v2344_v42  ;;  %v2698_v60 = vadd.f32 %v13084_v47, %v13195_v17  ;;  %v13197_v16 = vld [vmem:[#allocation80_spill] sm:$0xff]  ;;  %v13203_v17 = vld [vmem:[#allocation106_spill] sm:$0xff] }
 0x593   : > { %v3392_v48 = vmul.f32 %v6729_v56, %v3344_v35  ;;  %v2047_v55 = vmax.f32 %v2031_v41, 0.0  ;;  %v2464_v26 = vmul.f32 %v9176_v45, %v2446_v49  ;;  %v2580_v58 = vmax.f32 %v2564_v37, 0.0 }
 0x594   : > { %v2942_v9 = vpop.permute.xlu1 %2941  ;;  %v1813_v40 = vadd.f32 %v1797_v19, %v1679_v63  ;;  %v1931_v2 = vmul.f32 %v12951_v10, %v1913_v23  ;;  %v2712_v62 = vmax.f32 %v10098_v29, 0.0  ;;  %v2181_v34 = vmax.f32 %v2165_v52, 0.0  ;;  %v13199_v29 = vld [vmem:[#allocation215_spill] sm:$0xff] }
 0x595   : > { %v10140_v13 = vadd.f32 %v3424_v33, %v3392_v48  ;;  %v2299_v0 = vadd.f32 %v9145_v1, %v13196_v21  ;;  %v2964_v42 = vadd.f32 %v13017_v14, %v13197_v16  ;;  %v2480_v44 = vadd.f32 %v2464_v26, %v2346_v6  ;;  %v13202_v6 = vld [vmem:[#allocation196_spill] sm:$0xff] }
 0x596   : > { %v1947_v56 = vadd.f32 %v1931_v2, %v1813_v40  ;;  %v2065_v18 = vmul.f32 %v13081_v24, %v2047_v55  ;;  %v10149_v49 = vadd.f32 %v10061_v61, %v10075_v43  ;;  %v13198_v10 = vmax.f32 %v10058_v32, 0.0 }
 0x597   : > { %v2612_v63 = vadd.f32 %v2596_v38, %v2478_v54  ;;  %v2846_v28 = vmax.f32 %v2830_v25, 0.0  ;;  %3457 = vmax.xlane.f32.xlu1 %v10140_v13  ;;  %v2598_v23 = vmul.f32 %v9179_v12, %v2580_v58  ;;  %v2714_v33 = vmax.f32 %v2698_v60, 0.0 }
 0x598   : > { %v10154_v37 = vmul.f32 %v13199_v29, %v13198_v10  ;;  %v10157_v1 = vpop.permute.xlu1 %2949  ;;  %v2832_v24 = vadd.f32 %v13103_v31, %v13200_v39  ;;  %v2081_v41 = vadd.f32 %v2065_v18, %v1947_v56  ;;  %v2730_v61 = vmul.f32 %v13106_v30, %v2712_v62  ;;  %v13204_v62 = vld [vmem:[#allocation189_spill] sm:$0xff] }
 0x599   : > { %v2199_v32 = vmul.f32 %v9170_v11, %v2181_v34  ;;  %v2315_v43 = vmax.f32 %v2299_v0, 0.0  ;;  %v2433_v38 = vadd.f32 %v12973_v8, %v13201_v22  ;;  %v2971_v52 = vadd.f32 %v13017_v14, %v10044_v50  ;;  %v13205_v0 = vld [vmem:[#allocation169_spill] sm:$0xff] }
 0x59a   : > { %v2980_v4 = vmax.f32 %v2964_v42, 0.0  ;;  %v2614_v25 = vadd.f32 %v2598_v23, %v2480_v44  ;;  %v2841_v35 = vadd.f32 %v13103_v31, %v13202_v6  ;;  %v2746_v19 = vadd.f32 %v2730_v61, %v2612_v63 }
 0x59b   : > { %v3098_v54 = vadd.f32 %v13058_v20, %v10104_v53  ;;  %v2966_v60 = vadd.f32 %v13017_v14, %v13203_v17  ;;  %v2215_v48 = vadd.f32 %v2199_v32, %v2081_v41  ;;  %v2732_v55 = vmul.f32 %v13106_v30, %v2714_v33  ;;  %v13206_v33 = vld [vmem:[#allocation216_spill] sm:$0xff]  ;;  %v13207_v41 = vld [vmem:[#allocation143_spill] sm:$0xff] }
 0x59c   : > { %v2954_v11 = vpop.permute.xlu1 %2953  ;;  %v2848_v8 = vmax.f32 %v2832_v24, 0.0  ;;  %v3100_v50 = vadd.f32 %v13058_v20, %v10117_v3  ;;  %v2864_v58 = vmul.f32 %v13199_v29, %v2846_v28  ;;  %v2333_v40 = vmul.f32 %v13086_v59, %v2315_v43 }
 0x59d   : > { %v2975_v26 = vadd.f32 %v13017_v14, %v2954_v11  ;;  %v2449_v2 = vmax.f32 %v2433_v38, 0.0  ;;  %v2567_v53 = vadd.f32 %v13113_v46, %v13204_v62  ;;  %v2987_v34 = vmax.f32 %v2971_v52, 0.0  ;;  %v13208_v11 = vld [vmem:[#allocation190_spill] sm:$0xff] }
 0x59e   : > { %v2748_v21 = vadd.f32 %v2732_v55, %v2614_v25  ;;  %v2838_v16 = vadd.f32 %v13103_v31, %v13205_v0  ;;  %v2857_v42 = vmax.f32 %v2841_v35, 0.0  ;;  %v3114_v44 = vmax.f32 %v3098_v54, 0.0  ;;  %v13209_v55 = vld [vmem:[#allocation129_spill] sm:$0xff] }
 0x59f   : > { %v2972_v56 = vadd.f32 %v13017_v14, %v2942_v9  ;;  %v2991_v3 = vmax.f32 %v2975_v26, 0.0  ;;  %v2349_v18 = vadd.f32 %v2333_v40, %v2215_v48  ;;  %v2880_v10 = vadd.f32 %v2864_v58, %v2746_v19 }
 0x5a0   : > { %v2866_v63 = vmul.f32 %v13199_v29, %v2848_v8  ;;  %v2982_v28 = vmax.f32 %v2966_v60, 0.0  ;;  %v3116_v59 = vmax.f32 %v3100_v50, 0.0  ;;  %v2998_v39 = vmul.f32 %v13206_v33, %v2980_v4 }
 0x5a1   : > { %v3064_v23 = vpop.permute.xlu1 %3063  ;;  %v2467_v46 = vmul.f32 %v9176_v45, %v2449_v2  ;;  %v2583_v24 = vmax.f32 %v2567_v53, 0.0  ;;  %v2701_v61 = vadd.f32 %v13084_v47, %v13207_v41  ;;  %v3005_v32 = vmul.f32 %v13206_v33, %v2987_v34  ;;  %v13210_v34 = vld [vmem:[#allocation40_spill] sm:$0xff] }
 0x5a2   : > { %v2882_v43 = vadd.f32 %v2866_v63, %v2748_v21  ;;  %v2854_v9 = vmax.f32 %v2838_v16, 0.0  ;;  %v2875_v22 = vmul.f32 %v13199_v29, %v2857_v42  ;;  %v3132_v38 = vmul.f32 %v13183_v5, %v3114_v44  ;;  %v13211_v16 = vld [vmem:[#allocation146_spill] sm:$0xff]  ;;  %v13214_v63 = vld [vmem:[#allocation99_spill] sm:$0xff] }
 0x5a3   : > { %v2988_v52 = vmax.f32 %v2972_v56, 0.0  ;;  %v3009_v25 = vmul.f32 %v13206_v33, %v2991_v3  ;;  %v2483_v6 = vadd.f32 %v2467_v46, %v2349_v18  ;;  %v3096_v4 = vadd.f32 %v13058_v20, %v10084_v51  ;;  %v13212_v3 = vld [vmem:[#allocation221_spill] sm:$0xff]  ;;  %v13213_v18 = vld [vmem:[#allocation82_spill] sm:$0xff] }
 0x5a4   : > { %v3014_v45 = vadd.f32 %v2998_v39, %v2880_v10  ;;  %v3000_v35 = vmul.f32 %v13206_v33, %v2982_v28  ;;  %v3134_v47 = vmul.f32 %v13183_v5, %v3116_v59  ;;  %v2891_v54 = vadd.f32 %v2875_v22, %v10050_v27  ;;  %v13215_v39 = vld [vmem:[#allocation64_spill] sm:$0xff] }
 0x5a5   : > { %v10198_v19 = vpop.permute.xlu1 %3067  ;;  %v2601_v17 = vmul.f32 %v9179_v12, %v2583_v24  ;;  %v2717_v60 = vmax.f32 %v2701_v61, 0.0  ;;  %v2835_v48 = vadd.f32 %v13103_v31, %v13208_v11  ;;  %v3021_v8 = vadd.f32 %v3005_v32, %v13209_v55  ;;  %v13219_v11 = vld [vmem:[#allocation208_spill] sm:$0xff] }
 0x5a6   : > { %v2744_v51 = vadd.f32 %v10064_v36, %v10149_v49  ;;  %v3016_v50 = vadd.f32 %v3000_v35, %v2882_v43  ;;  %v2872_v26 = vmul.f32 %v13199_v29, %v2854_v9  ;;  %v3148_v58 = vadd.f32 %v3132_v38, %v3014_v45  ;;  %v13218_v35 = vld [vmem:[#allocation61_spill] sm:$0xff] }
 0x5a7   : > { %v3006_v40 = vmul.f32 %v13206_v33, %v2988_v52  ;;  %v3025_v2 = vadd.f32 %v3009_v25, %v2891_v54  ;;  %v2617_v62 = vadd.f32 %v2601_v17, %v2483_v6  ;;  %v2978_v27 = vmax.f32 %v10080_v15, 0.0  ;;  %v13217_v25 = vld [vmem:[#allocation59_spill] sm:$0xff] }
 0x5a8   : > { %v3112_v12 = vmax.f32 %v3096_v4, 0.0  ;;  %v3150_v53 = vadd.f32 %v3134_v47, %v3016_v50  ;;  %v2888_v21 = vadd.f32 %v2872_v26, %v13210_v34  ;;  %v2735_v31 = vmul.f32 %v13106_v30, %v2717_v60 }
 0x5a9   : > { %v2851_v0 = vmax.f32 %v2835_v48, 0.0  ;;  %v2969_v36 = vadd.f32 %v13017_v14, %v13211_v16  ;;  %v3103_v49 = vadd.f32 %v13058_v20, %v3064_v23  ;;  %v2878_v44 = vadd.f32 %v10154_v37, %v2744_v51  ;;  %v13216_v37 = vld [vmem:[#allocation92_spill] sm:$0xff]  ;;  %v10254_v16 = vld [vmem:[#allocation8 + $0x10] sm:$0xff]  }
 0x5aa   : > { %v3162_v42 = vpop.permute.xlu1 %3161  ;;  %v2974_v56 = vadd.f32 %v13017_v14, %v10157_v1  ;;  %v10220_v10 = vadd.f32 %v13213_v18, %v3021_v8  ;;  %v3282_v28 = vadd.f32 %v13214_v63, %v3148_v58  ;;  %v3022_v30 = vadd.f32 %v3006_v40, %v2888_v21  ;;  %v10229_v14 = vld [vmem:[#allocation8 + $0x8] sm:$0xff]  }
 0x5ab   : > { %v3228_v15 = vadd.f32 %v13212_v3, %v3162_v42  ;;  %v2751_v59 = vadd.f32 %v2735_v31, %v2617_v62  ;;  %v10224_v46 = vadd.f32 %v13215_v39, %v3025_v2  ;;  %v2996_v23 = vmul.f32 %v13206_v33, %v2978_v27  ;;  %v13220_v27 = vld [vmem:[#allocation29_spill] sm:$0xff] }
 0x5ac   : > { %v3130_v24 = vmul.f32 %v13183_v5, %v3112_v12  ;;  %v3284_v41 = vadd.f32 %v13216_v37, %v3150_v53  ;;  %v2869_v1 = vmul.f32 %v13199_v29, %v2851_v0  ;;  %v2985_v32 = vmax.f32 %v2969_v36, 0.0 }
 0x5ad   : > { %v3244_v61 = vmax.f32 %v3228_v15, 0.0  ;;  %v3119_v43 = vmax.f32 %v3103_v49, 0.0  ;;  %v6728_v22 = vunpack.c.l.bf16 %v10086_v7  ;;  %v3012_v38 = vadd.f32 %v2996_v23, %v2878_v44 }
 0x5ae   : > { %v3170_v9 = vpop.permute.xlu1 %3169  ;;  %v2990_v52 = vmax.f32 %v2974_v56, 0.0  ;;  %v3299_v45 = vadd.f32 %v9975_v57, %v3282_v28  ;;  %v3156_v47 = vadd.f32 %v13218_v35, %v3022_v30  ;;  %v2885_v54 = vadd.f32 %v2869_v1, %v2751_v59  ;;  %v6792_v35 = vld [vmem:[#allocation8 + $0x18] sm:$0xff]  }
 0x5af   : > { %v3262_v6 = vmul.f32 %v13217_v25, %v3244_v61  ;;  %v3230_v4 = vadd.f32 %v13212_v3, %v3170_v9  ;;  %v6732_v17 = vunpack.c.l.bf16 %v10229_v14  ;;  %v3146_v60 = vadd.f32 %v3130_v24, %v3012_v38  ;;  %v13221_v24 = vld [vmem:[#allocation39_spill] sm:$0xff] }
 0x5b0   : > { %v10239_v29 = vadd.f32 %v9975_v57, %v3284_v41  ;;  %v3003_v55 = vmul.f32 %v13206_v33, %v2985_v32  ;;  %v3137_v8 = vmul.f32 %v13183_v5, %v3119_v43  ;;  %v3407_v50 = vsub.f32 1.0, %v6728_v22 }
 0x5b1   : > { %v3278_v48 = vadd.f32 %v3262_v6, %v13219_v11  ;;  %v3246_v7 = vmax.f32 %v3230_v4, 0.0  ;;  %v6733_v26 = vunpack.c.h.bf16 %v10229_v14  ;;  %v10246_v58 = vmul.f32 %v13206_v33, %v2990_v52  ;;  %v13222_v14 = vld [vmem:[#allocation84_spill] sm:$0xff]  ;;  %v13223_v11 = vld [vmem:[#allocation94_spill] sm:$0xff] }
 0x5b2   : > { %v3174_v51 = vpop.permute.xlu1 %3173  ;;  %v10252_v12 = vadd.f32 %v13220_v27, %v3156_v47  ;;  %v3019_v53 = vadd.f32 %v3003_v55, %v2885_v54  ;;  %v3409_v34 = vsub.f32 1.0, %v6732_v17  ;;  %vm3315_vm1 = vcmp.gt.f32.partialorder %v3299_v45, 0.0 }
 0x5b3   : > { %v3295_v40 = vadd.f32 %v9975_v57, %v3278_v48  ;;  %v3264_v2 = vmul.f32 %v13217_v25, %v3246_v7  ;;  %v3231_v62 = vadd.f32 %v13212_v3, %v3174_v51  ;;  %v3423_v42 = vmul.f32 -1e+30, %v3407_v50 }
 0x5b4   : > { %v3153_v36 = vadd.f32 %v3137_v8, %v3019_v53  ;;  %v3410_v44 = vsub.f32 1.0, %v6733_v26  ;;  %v3331_v56 = vmul.f32 0.01, %v3299_v45  ;;  %v3425_v59 = vmul.f32 -1e+30, %v3409_v34 }
 0x5b5   : > { %v3280_v21 = vadd.f32 %v3264_v2, %v3146_v60  ;;  %v3247_v31 = vmax.f32 %v3231_v62, 0.0  ;;  %vm3311_vm2 = vcmp.gt.f32.partialorder %v3295_v40, 0.0  ;;  %v3327_v0 = vmul.f32 0.01, %v3295_v40 }
 0x5b6   : > { %v3182_v49 = vpop.permute.xlu1 %3181  ;;  %v6736_v39 = vunpack.c.l.bf16 %v10254_v16  ;;  %v6737_v23 = vunpack.c.h.bf16 %v10254_v16  ;;  %v3287_v1 = vadd.f32 %v13222_v14, %v3153_v36  ;;  %v3426_v9 = vmul.f32 -1e+30, %v3410_v44  ;;  %v13224_v16 = vld [vmem:[#allocation175_spill] sm:$0xff] }
 0x5b7   : > { %v3297_v15 = vadd.f32 %v9975_v57, %v3280_v21  ;;  %v3265_v18 = vmul.f32 %v13217_v25, %v3247_v31  ;;  %v3233_v63 = vadd.f32 %v13212_v3, %v3182_v49  ;;  %v3343_v28 = vsel %vm3311_vm2, %v3295_v40, %v3327_v0  ;;  %v10275_v40 = vld [vmem:[#allocation8 + $0x20] sm:$0xff]  }
 0x5b8   : > { %v3391_v30 = vmul.f32 %v6728_v22, %v3343_v28  ;;  %v3347_v38 = vsel %vm3315_vm1, %v3299_v45, %v3331_v56  ;;  %v3411_v54 = vsub.f32 1.0, %v6736_v39  ;;  %v3412_v60 = vsub.f32 1.0, %v6737_v23 }
 0x5b9   : > { %v3281_v37 = vadd.f32 %v3265_v18, %v13221_v24  ;;  %v3249_v41 = vmax.f32 %v3233_v63, 0.0  ;;  %vm3313_vm3 = vcmp.gt.f32.partialorder %v3297_v15, 0.0  ;;  %v3329_v61 = vmul.f32 0.01, %v3297_v15 }
 0x5ba   : > { %v3190_v32 = vpop.permute.xlu1 %3189  ;;  %v10263_v43 = vadd.f32 %v3423_v42, %v3391_v30  ;;  %vm3317_vm4 = vcmp.gt.f32.partialorder %v10239_v29, 0.0  ;;  %v3333_v8 = vmul.f32 0.01, %v10239_v29  ;;  %v6740_v51 = vunpack.c.l.bf16 %v6792_v35 }
 0x5bb   : > { %v3298_v22 = vadd.f32 %v9975_v57, %v3281_v37  ;;  %v3267_v52 = vmul.f32 %v13217_v25, %v3249_v41  ;;  %v3235_v6 = vadd.f32 %v13212_v3, %v3190_v32  ;;  %v3345_v4 = vsel %vm3313_vm3, %v3297_v15, %v3329_v61 }
 0x5bc   : > { %3455 = vmax.xlane.f32.xlu0 %v10263_v43  ;;  %v3393_v47 = vmul.f32 %v6732_v17, %v3345_v4  ;;  %v6741_v50 = vunpack.c.h.bf16 %v6792_v35  ;;  %v3304_v2 = vadd.f32 %v9975_v57, %v3287_v1  ;;  %v3395_v21 = vmul.f32 %v6736_v39, %v3347_v38  ;;  %v13226_v38 = vld [vmem:[#allocation36_spill] sm:$0xff]  ;;  %v13227_v35 = vld [vmem:[#allocation34_spill] sm:$0xff] }
 0x5bd   : > { %v3283_v48 = vadd.f32 %v3267_v52, %v13223_v11  ;;  %v3251_v7 = vmax.f32 %v3235_v6, 0.0  ;;  %vm3314_vm5 = vcmp.gt.f32.partialorder %v3298_v22, 0.0  ;;  %v3330_v45 = vmul.f32 0.01, %v3298_v22 }
 0x5be   : > { %v10272_v55 = vadd.f32 %v3425_v59, %v3393_v47  ;;  %v3427_v31 = vmul.f32 -1e+30, %v3411_v54  ;;  %v3428_v0 = vmul.f32 -1e+30, %v3412_v60  ;;  %v6745_v42 = vunpack.c.h.bf16 %v10275_v40  ;;  %v13228_v47 = vld [vmem:[#allocation41_spill] sm:$0xff] }
 0x5bf   : > { %v3300_v17 = vadd.f32 %v9975_v57, %v3283_v48  ;;  %v3269_v62 = vmul.f32 %v13217_v25, %v3251_v7  ;;  %v3080_v27 = vpop.permute.xlu1 %3079  ;;  %v3346_v53 = vsel %vm3314_vm5, %v3298_v22, %v3330_v45  ;;  %v3349_v56 = vsel %vm3317_vm4, %v10239_v29, %v3333_v8  ;;  %v13230_v45 = vld [vmem:[#allocation101_spill] sm:$0xff] }
 0x5c0   : > { %3459 = vmax.xlane.f32.xlu0 %v10272_v55  ;;  %v3394_v34 = vmul.f32 %v6733_v26, %v3346_v53  ;;  %v3413_v15 = vsub.f32 1.0, %v6740_v51  ;;  %v3414_v18 = vsub.f32 1.0, %v6741_v50  ;;  %v3104_v26 = vadd.f32 %v13058_v20, %v10198_v19 }
 0x5c1   : > { %v3285_v36 = vadd.f32 %v3269_v62, %v13224_v16  ;;  %vm3316_vm6 = vcmp.gt.f32.partialorder %v3300_v17, 0.0  ;;  %v3332_v49 = vmul.f32 0.01, %v3300_v17  ;;  %v3336_v59 = vmul.f32 0.01, %v3304_v2  ;;  %v13233_v16 = vld [vmem:[#allocation125_spill] sm:$0xff] }
 0x5c2   : > { %v10283_v44 = vadd.f32 %v3426_v9, %v3394_v34  ;;  %v10293_v24 = vadd.f32 %v3427_v31, %v3395_v21  ;;  %vm3320_vm7 = vcmp.gt.f32.partialorder %v3304_v2, 0.0  ;;  %v3397_v41 = vmul.f32 %v6740_v51, %v3349_v56  ;;  %v13225_v9 = vld [vmem:[#allocation127_spill] sm:$0xff]  ;;  %v13232_v31 = vld [vmem:[#allocation57_spill] sm:$0xff] }
 0x5c3   : > { %v3302_v63 = vadd.f32 %v9975_v57, %v3285_v36  ;;  %v3084_v28 = vpop.permute.xlu1 %3083  ;;  %v3348_v30 = vsel %vm3316_vm6, %v3300_v17, %v3332_v49  ;;  %v3416_v61 = vsub.f32 1.0, %v6745_v42  ;;  %v3429_v19 = vmul.f32 -1e+30, %v3413_v15  ;;  %v13231_v51 = vld [vmem:[#allocation67_spill] sm:$0xff]  ;;  %v13234_v36 = vld [vmem:[#allocation97_spill] sm:$0xff] }
 0x5c4   : > { %v3108_v39 = vadd.f32 %v13058_v20, %v3084_v28  ;;  %3461 = vmax.xlane.f32.xlu0 %v10283_v44  ;;  %v3396_v37 = vmul.f32 %v6737_v23, %v3348_v30  ;;  %v3430_v32 = vmul.f32 -1e+30, %v3414_v18  ;;  %v2884_v22 = vadd.f32 %v13226_v38, %v13225_v9  ;;  %v10319_v56 = vld [vmem:[#allocation8 + $0x28] sm:$0xff]   ;;  %v10321_v18 = vld [vmem:[#allocation8 + $0x30] sm:$0xff]  }
 0x5c5   : > { %vm3318_vm8 = vcmp.gt.f32.partialorder %v3302_v63, 0.0  ;;  %v3334_v29 = vmul.f32 0.01, %v3302_v63  ;;  %v3307_v52 = vadd.f32 %v9975_v57, %v10252_v12  ;;  %v3352_v4 = vsel %vm3320_vm7, %v3304_v2, %v3336_v59 }
 0x5c6   : > { %v3124_v14 = vmax.f32 %v3108_v39, 0.0  ;;  %v10295_v1 = vadd.f32 %v3428_v0, %v3396_v37  ;;  %v2989_v23 = vmax.f32 %v13227_v35, 0.0  ;;  %v13229_v54 = vmax.f32 %v13228_v47, 0.0 }
 0x5c7   : > { %v3350_v6 = vsel %vm3318_vm8, %v3302_v63, %v3334_v29  ;;  %v3258_v8 = vmax.f32 %v13230_v45, 0.0  ;;  %v3024_v12 = vadd.f32 %v10246_v58, %v13231_v51  ;;  %v3120_v2 = vmax.f32 %v3104_v26, 0.0  ;;  %v13235_v29 = vld [vmem:[#allocation33_spill] sm:$0xff] }
 0x5c8   : > { %v3136_v60 = vmul.f32 %v13183_v5, %v13229_v54  ;;  %v3142_v11 = vmul.f32 %v13183_v5, %v3124_v14  ;;  %3463 = vmax.xlane.f32.xlu0 %v10293_v24  ;;  %3465 = vmax.xlane.f32.xlu1 %v10295_v1  ;;  %v3194_v48 = vpop.permute.xlu1 %3193  ;;  %v3398_v7 = vmul.f32 %v6741_v50, %v3350_v6  ;;  %v3432_v21 = vmul.f32 -1e+30, %v3416_v61  ;;  %v13236_v61 = vld [vmem:[#allocation30_spill] sm:$0xff] }
 0x5c9   : > { %v3236_v17 = vadd.f32 %v13212_v3, %v3194_v48  ;;  %v10312_v62 = vadd.f32 %v3429_v19, %v3397_v41  ;;  %v3400_v34 = vmul.f32 %v6745_v42, %v3352_v4  ;;  %v3018_v0 = vadd.f32 %v13232_v31, %v2884_v22 }
 0x5ca   : > { %v10314_v53 = vadd.f32 %v3430_v32, %v3398_v7  ;;  %v2889_v49 = vadd.f32 %v13234_v36, %v13233_v16  ;;  %v3339_v15 = vmul.f32 0.01, %v3307_v52  ;;  %v3107_v58 = vadd.f32 %v13058_v20, %v3080_v27 }
 0x5cb   : > { %v3252_v50 = vmax.f32 %v3236_v17, 0.0  ;;  %v3158_v26 = vadd.f32 %v3142_v11, %v3024_v12  ;;  %v6744_v63 = vunpack.c.l.bf16 %v10275_v40  ;;  %vm3323_vm9 = vcmp.gt.f32.partialorder %v3307_v52, 0.0 }
 0x5cc   : > { %3467 = vmax.xlane.f32.xlu0 %v10312_v62  ;;  %3469 = vmax.xlane.f32.xlu1 %v10314_v53  ;;  %v3202_v42 = vpop.permute.xlu1 %3201  ;;  %v3152_v28 = vadd.f32 %v3136_v60, %v3018_v0  ;;  %v3138_v30 = vmul.f32 %v13183_v5, %v3120_v2  ;;  %v3276_v37 = vmul.f32 %v13217_v25, %v3258_v8  ;;  %v6748_v20 = vunpack.c.l.bf16 %v10319_v56 }
 0x5cd   : > { %v3270_v59 = vmul.f32 %v13217_v25, %v3252_v50  ;;  %v3238_v39 = vadd.f32 %v13212_v3, %v3202_v42  ;;  %v10331_v41 = vadd.f32 %v3432_v21, %v3400_v34  ;;  %v6752_v27 = vunpack.c.l.bf16 %v10321_v18 }
 0x5ce   : > { %v3020_v14 = vadd.f32 %v13236_v61, %v13235_v29  ;;  %v3355_v32 = vsel %vm3323_vm9, %v3307_v52, %v3339_v15  ;;  %v3007_v9 = vmul.f32 %v13206_v33, %v2989_v23  ;;  %v3123_v38 = vmax.f32 %v3107_v58, 0.0  ;;  %v10342_v23 = vld [vmem:[#allocation8 + $0x38] sm:$0xff]   ;;  %v560_v58 = vld [vmem:[#allocation2 + $0x48] sm:$0xff] }
 0x5cf   : > { %v3286_v40 = vadd.f32 %v3270_v59, %v3152_v28  ;;  %v3254_v19 = vmax.f32 %v3238_v39, 0.0  ;;  %v3292_v22 = vadd.f32 %v3276_v37, %v3158_v26  ;;  %v3415_v4 = vsub.f32 1.0, %v6744_v63 }
 0x5d0   : > { %3473 = vmax.xlane.f32.xlu1 %v10331_v41  ;;  %v3206_v6 = vpop.permute.xlu1 %3205  ;;  %v3154_v35 = vadd.f32 %v3138_v30, %v3020_v14  ;;  %v3023_v11 = vadd.f32 %v3007_v9, %v2889_v49  ;;  %v3417_v48 = vsub.f32 1.0, %v6748_v20  ;;  %v3403_v7 = vmul.f32 %v6752_v27, %v3355_v32 }
 0x5d1   : > { %v3303_v47 = vadd.f32 %v9975_v57, %v3286_v40  ;;  %v3272_v54 = vmul.f32 %v13217_v25, %v3254_v19  ;;  %v3239_v60 = vadd.f32 %v13212_v3, %v3206_v6  ;;  %v3419_v45 = vsub.f32 1.0, %v6752_v27 }
 0x5d2   : > { %v3141_v51 = vmul.f32 %v13183_v5, %v3123_v38  ;;  %v3309_v12 = vadd.f32 %v9975_v57, %v3292_v22  ;;  %v3431_v17 = vmul.f32 -1e+30, %v3415_v4  ;;  %v6749_v34 = vunpack.c.h.bf16 %v10319_v56  ;;  %v559_v5 = vld [vmem:[#allocation2 + $0x40] sm:$0xff] }
 0x5d3   : > { %v3288_v52 = vadd.f32 %v3272_v54, %v3154_v35  ;;  %v3255_v8 = vmax.f32 %v3239_v60, 0.0  ;;  %vm3319_vm10 = vcmp.gt.f32.partialorder %v3303_v47, 0.0  ;;  %v3335_v33 = vmul.f32 0.01, %v3303_v47  ;;  %6924 = vmatprep.mubr.bf16.mxu0 %v559_v5 }
 0x5d4   : > { %v3214_v2 = vpop.permute.xlu1 %3213  ;;  %v3433_v49 = vmul.f32 -1e+30, %v3417_v48  ;;  %v6756_v50 = vunpack.c.l.bf16 %v10342_v23  ;;  %v6753_v15 = vunpack.c.h.bf16 %v10321_v18  ;;  %v3157_v28 = vadd.f32 %v3141_v51, %v3023_v11  ;;  %6925 = vmatmul.mubr.bf16.gmra.mrb[16].mxu0 %v560_v58 }
 0x5d5   : > { %v3305_v21 = vadd.f32 %v9975_v57, %v3288_v52  ;;  %v3273_v31 = vmul.f32 %v13217_v25, %v3255_v8  ;;  %v3241_v0 = vadd.f32 %v13212_v3, %v3214_v2  ;;  %v3351_v16 = vsel %vm3319_vm10, %v3303_v47, %v3335_v33 }
 0x5d6   : > { %v3399_v36 = vmul.f32 %v6744_v63, %v3351_v16  ;;  %v3418_v39 = vsub.f32 1.0, %v6749_v34  ;;  %v3341_v37 = vmul.f32 0.01, %v3309_v12  ;;  %v3435_v61 = vmul.f32 -1e+30, %v3419_v45  ;;  %v563_v16 = vld [vmem:[#allocation2 + $0x60] sm:$0xff] }
 0x5d7   : > { %v3289_v26 = vadd.f32 %v3273_v31, %v10220_v10  ;;  %v3257_v42 = vmax.f32 %v3241_v0, 0.0  ;;  %vm3321_vm11 = vcmp.gt.f32.partialorder %v3305_v21, 0.0  ;;  %v3337_v56 = vmul.f32 0.01, %v3305_v21  ;;  %v561_v31 = vld [vmem:[#allocation2 + $0x50] sm:$0xff]  ;;  %v562_v0 = vld [vmem:[#allocation2 + $0x58] sm:$0xff] }
 0x5d8   : > { %v3222_v30 = vpop.permute.xlu1 %3221  ;;  %v10353_v59 = vadd.f32 %v3431_v17, %v3399_v36  ;;  %vm3325_vm12 = vcmp.gt.f32.partialorder %v3309_v12, 0.0  ;;  %v3421_v14 = vsub.f32 1.0, %v6756_v50  ;;  %v3434_v38 = vmul.f32 -1e+30, %v3418_v39  ;;  %6928 = vmatprep.mubr.bf16.mxu0 %v561_v31  ;;  %v564_v36 = vld [vmem:[#allocation2 + $0x68] sm:$0xff] }
 0x5d9   : > { %v3306_v63 = vadd.f32 %v9975_v57, %v3289_v26  ;;  %v3275_v27 = vmul.f32 %v13217_v25, %v3257_v42  ;;  %v3243_v18 = vadd.f32 %v13212_v3, %v3222_v30  ;;  %v3353_v29 = vsel %vm3321_vm11, %v3305_v21, %v3337_v56 }
 0x5da   : > { %3471 = vmax.xlane.f32.xlu0 %v10353_v59  ;;  %v3401_v10 = vmul.f32 %v6748_v20, %v3353_v29  ;;  %v3420_v22 = vsub.f32 1.0, %v6753_v15  ;;  %v6757_v6 = vunpack.c.h.bf16 %v10342_v23  ;;  %v3357_v47 = vsel %vm3325_vm12, %v3309_v12, %v3341_v37 }
 0x5db   : > { %v3291_v40 = vadd.f32 %v3275_v27, %v3157_v28  ;;  %v3259_v19 = vmax.f32 %v3243_v18, 0.0  ;;  %vm3322_vm13 = vcmp.gt.f32.partialorder %v3306_v63, 0.0  ;;  %v3338_v32 = vmul.f32 0.01, %v3306_v63 }
 0x5dc   : > { %v10359_v9 = vadd.f32 %v3433_v49, %v3401_v10  ;;  %v10365_v20 = vadd.f32 %v3435_v61, %v3403_v7  ;;  %v3437_v11 = vmul.f32 -1e+30, %v3421_v14  ;;  %v3405_v52 = vmul.f32 %v6756_v50, %v3357_v47  ;;  %6929 = vmatmul.mubr.bf16.gmra.mrb[20].mxu0 %v562_v0  ;;  %v565_v49 = vld [vmem:[#allocation2 + $0x70] sm:$0xff]  ;;  %v566_v50 = vld [vmem:[#allocation2 + $0x78] sm:$0xff] }
 0x5dd   : > { %v3308_v4 = vadd.f32 %v9975_v57, %v3291_v40  ;;  %v3277_v3 = vmul.f32 %v13217_v25, %v3259_v19  ;;  %v3354_v35 = vsel %vm3322_vm13, %v3306_v63, %v3338_v32  ;;  %v3436_v8 = vmul.f32 -1e+30, %v3420_v22  ;;  %6932 = vmatprep.mubr.bf16.mxu0 %v563_v16 }
 0x5de   : > { %3475 = vmax.xlane.f32.xlu0 %v10359_v9  ;;  %v3402_v54 = vmul.f32 %v6749_v34, %v3354_v35  ;;  %v3422_v33 = vsub.f32 1.0, %v6757_v6  ;;  %v10373_v12 = vadd.f32 %v3437_v11, %v3405_v52 }
 0x5df   : > { %v3293_v60 = vadd.f32 %v3277_v3, %v10224_v46  ;;  %vm3324_vm14 = vcmp.gt.f32.partialorder %v3308_v4, 0.0  ;;  %v3340_v48 = vmul.f32 0.01, %v3308_v4 }
 0x5e0   : > { %v10368_v45 = vadd.f32 %v3434_v38, %v3402_v54  ;;  %v3438_v2 = vmul.f32 -1e+30, %v3422_v33 }
 0x5e1   : > { %v3310_v23 = vadd.f32 %v9975_v57, %v3293_v60  ;;  %v3356_v25 = vsel %vm3324_vm14, %v3308_v4, %v3340_v48 }
 0x5e2   : > { %3479 = vmax.xlane.f32.xlu0 %v10365_v20  ;;  %3477 = vmax.xlane.f32.xlu1 %v10368_v45  ;;  %v3404_v7 = vmul.f32 %v6753_v15, %v3356_v25 }
 0x5e3   : > { %vm3326_vm15 = vcmp.gt.f32.partialorder %v3310_v23, 0.0  ;;  %v3342_v51 = vmul.f32 0.01, %v3310_v23 }
 0x5e4   : > { %v10375_v46 = vadd.f32 %v3436_v8, %v3404_v7  ;;  %6933 = vmatmul.mubr.bf16.gmra.mrb[24].mxu0 %v564_v36 }
 0x5e5   : > { %v3358_v17 = vsel %vm3326_vm15, %v3310_v23, %v3342_v51  ;;  %6936 = vmatprep.mubr.bf16.mxu0 %v565_v49 }
 0x5e6   : > { %3483 = vmax.xlane.f32.xlu0 %v10373_v12  ;;  %3481 = vmax.xlane.f32.xlu1 %v10375_v46  ;;  %v3406_v34 = vmul.f32 %v6757_v6, %v3358_v17 }
 0x5e8   : > { %v10379_v21 = vadd.f32 %v3438_v2, %v3406_v34 }
 0x5ea   : > { %3485 = vmax.xlane.f32.xlu1 %v10379_v21 }
 0x5ec   : > { %6937 = vmatmul.mubr.bf16.gmra.mrb[28].mxu0 %v566_v50 }
 0x624   : > { %v3458_v26 = vpop.xlane.xlu1 %3457 }
 0x649   : > { %v3456_v15 = vpop.xlane.xlu0 %3455 }
 0x64d   : > { %v3460_v5 = vpop.xlane.xlu0 %3459 }
 0x651   : > { %v3462_v58 = vpop.xlane.xlu0 %3461 }
 0x655   : > { %v3464_v42 = vpop.xlane.xlu0 %3463  ;;  %v3466_v56 = vpop.xlane.xlu1 %3465 }
 0x656   : > { %v3488_v29 = vmax.f32 %v3458_v26, %v3466_v56  ;;  %v3487_v61 = vmax.f32 %v3456_v15, %v3464_v42 }
 0x659   : > { %v3468_v28 = vpop.xlane.xlu0 %3467  ;;  %v3470_v30 = vpop.xlane.xlu1 %3469 }
 0x65a   : > { %v3489_v14 = vmax.f32 %v3460_v5, %v3468_v28  ;;  %v3490_v40 = vmax.f32 %v3462_v58, %v3470_v30 }
 0x65d   : > { %v3474_v37 = vpop.xlane.xlu1 %3473 }
 0x65e   : > { %v3492_v19 = vmax.f32 %v3488_v29, %v3474_v37 }
 0x667   : > { %v3472_v39 = vpop.xlane.xlu0 %3471 }
 0x668   : > { %v3491_v38 = vmax.f32 %v3487_v61, %v3472_v39 }
 0x66b   : > { %v3476_v63 = vpop.xlane.xlu0 %3475 }
 0x66c   : > { %v3493_v22 = vmax.f32 %v3489_v14, %v3476_v63 }
 0x66f   : > { %v3480_v27 = vpop.xlane.xlu0 %3479  ;;  %v3478_v18 = vpop.xlane.xlu1 %3477 }
 0x670   : > { %v3494_v6 = vmax.f32 %v3490_v40, %v3478_v18  ;;  %v3495_v35 = vmax.f32 %v3491_v38, %v3480_v27 }
 0x673   : > { %v3482_v10 = vpop.xlane.xlu1 %3481  ;;  %v3484_v32 = vpop.xlane.xlu0 %3483 }
 0x674   : > { %v3496_v4 = vmax.f32 %v3492_v19, %v3482_v10  ;;  %v3497_v47 = vmax.f32 %v3493_v22, %v3484_v32  ;;  %v7532_v32 = vld [vmem:[%s8067_s22] ss:$0 sm:$0xff] }
 0x676   : > { %v3499_v60 = vmax.f32 %v3495_v35, %v3496_v4 }
 0x677   : > { %v3486_v3 = vpop.xlane.xlu1 %3485 }
 0x678   : > { %v3498_v54 = vmax.f32 %v3494_v6, %v3486_v3 }
 0x67a   : > { %v3500_v11 = vmax.f32 %v3497_v47, %v3498_v54 }
 0x67c   : > { %v3501_v48 = vmax.f32 %v3499_v60, %v3500_v11 }
 0x67e   : > { %v3502_v52 = vrot.slane %v3501_v48, 4 }
 0x680   : > { %v3503_v8 = vmax.f32 %v3501_v48, %v3502_v52 }
 0x682   : > { %v3504_v33 = vrot.slane %v3503_v8, 2 }
 0x684   : > { %v3505_v23 = vmax.f32 %v3503_v8, %v3504_v33  ;;  %v13237_v33 = vmov 0  }
 0x686   : > { %v3506_v25 = vrot.slane %v3505_v23, 1 }
 0x688   : > { %v3507_v7 = vmax.f32 %v3505_v23, %v3506_v25 }
 0x68a   : > { %v3509_v51 = vsub.f32 %v10140_v13, %v3507_v7  ;;  %v3508_v2 = vsub.f32 %v10263_v43, %v3507_v7  ;;  %v3511_v17 = vsub.f32 %v10283_v44, %v3507_v7  ;;  %v3510_v34 = vsub.f32 %v10272_v55, %v3507_v7 }
 0x68b   : > { %v3513_v36 = vsub.f32 %v10295_v1, %v3507_v7  ;;  %v3512_v50 = vsub.f32 %v10293_v24, %v3507_v7  ;;  %v3515_v13 = vsub.f32 %v10314_v53, %v3507_v7  ;;  %v3514_v44 = vsub.f32 %v10312_v62, %v3507_v7 }
 0x68c   : > { %v3526_v31 = vmul.f32 1.442695, %v3509_v51  ;;  %v3524_v0 = vmul.f32 1.442695, %v3508_v2  ;;  %v3530_v16 = vmul.f32 1.442695, %v3511_v17  ;;  %v3517_v5 = vsub.f32 %v10331_v41, %v3507_v7 }
 0x68d   : > { %v3528_v49 = vmul.f32 1.442695, %v3510_v34  ;;  %v3534_v15 = vmul.f32 1.442695, %v3513_v36  ;;  %v3532_v43 = vmul.f32 1.442695, %v3512_v50  ;;  %v3516_v1 = vsub.f32 %v10353_v59, %v3507_v7 }
 0x68e   : > { %7497 = vpow2.f32 %v3526_v31  ;;  %v3538_v55 = vmul.f32 1.442695, %v3515_v13  ;;  %v3536_v58 = vmul.f32 1.442695, %v3514_v44  ;;  %v3542_v24 = vmul.f32 1.442695, %v3517_v5 }
 0x68f   : > { %7499 = vpow2.f32 %v3524_v0  ;;  %v3519_v62 = vsub.f32 %v10368_v45, %v3507_v7  ;;  %v3540_v53 = vmul.f32 1.442695, %v3516_v1  ;;  %v3518_v41 = vsub.f32 %v10359_v9, %v3507_v7 }
 0x690   : > { %7501 = vpow2.f32 %v3530_v16  ;;  %v3521_v30 = vsub.f32 %v10375_v46, %v3507_v7  ;;  %v3520_v45 = vsub.f32 %v10365_v20, %v3507_v7  ;;  %v3523_v27 = vsub.f32 %v10379_v21, %v3507_v7 }
 0x691   : > { %7503 = vpow2.f32 %v3528_v49  ;;  %v3546_v59 = vmul.f32 1.442695, %v3519_v62  ;;  %v3544_v39 = vmul.f32 1.442695, %v3518_v41  ;;  %v3522_v46 = vsub.f32 %v10373_v12, %v3507_v7 }
 0x692   : > { %7505 = vpow2.f32 %v3534_v15  ;;  %v3550_v9 = vmul.f32 1.442695, %v3521_v30  ;;  %v3548_v18 = vmul.f32 1.442695, %v3520_v45  ;;  %v3554_v20 = vmul.f32 1.442695, %v3523_v27 }
 0x693   : > { %7507 = vpow2.f32 %v3532_v43  ;;  %v3552_v61 = vmul.f32 1.442695, %v3522_v46 }
 0x694   : > { %7509 = vpow2.f32 %v3538_v55 }
 0x695   : > { %7511 = vpow2.f32 %v3536_v58 }
 0x696   : > { %7513 = vpow2.f32 %v3542_v24 }
 0x697   : > { %7515 = vpow2.f32 %v3540_v53 }
 0x698   : > { %v10392_v26 = vpop.eup %7497  ;;  %7517 = vpow2.f32 %v3546_v59 }
 0x699   : > { %v10394_v42 = vpop.eup %7499  ;;  %3558 = vadd.xlane.f32.xlu1 %v10392_v26  ;;  %7519 = vpow2.f32 %v3544_v39 }
 0x69a   : > { %3556 = vadd.xlane.f32.xlu0 %v10394_v42  ;;  %v10400_v56 = vpop.eup %7501  ;;  %7521 = vpow2.f32 %v3550_v9 }
 0x69b   : > { %v10402_v28 = vpop.eup %7503  ;;  %7523 = vpow2.f32 %v3548_v18 }
 0x69c   : > { %v10408_v37 = vpop.eup %7505  ;;  %7525 = vpow2.f32 %v3554_v20 }
 0x69d   : > { %3562 = vadd.xlane.f32.xlu1 %v10400_v56  ;;  %v10410_v63 = vpop.eup %7507  ;;  %7527 = vpow2.f32 %v3552_v61 }
 0x69e   : > { %3560 = vadd.xlane.f32.xlu0 %v10402_v28  ;;  %v10416_v29 = vpop.eup %7509 }
 0x69f   : > { %v10418_v10 = vpop.eup %7511 }
 0x6a0   : > { %v10422_v14 = vpop.eup %7513 }
 0x6a1   : > { %3566 = vadd.xlane.f32.xlu1 %v10408_v37  ;;  %v10424_v21 = vpop.eup %7515 }
 0x6a2   : > { %3564 = vadd.xlane.f32.xlu0 %v10410_v63  ;;  %v10428_v12 = vpop.eup %7517 }
 0x6a3   : > { %v10430_v19 = vpop.eup %7519 }
 0x6a4   : > { %v10435_v35 = vpop.eup %7521 }
 0x6a5   : > { %3570 = vadd.xlane.f32.xlu1 %v10416_v29  ;;  %v10437_v54 = vpop.eup %7523 }
 0x6a6   : > { %3568 = vadd.xlane.f32.xlu0 %v10418_v10  ;;  %v10445_v52 = vpop.eup %7525 }
 0x6a7   : > { %v6926_v40 = vpop.f32.mrb[16].mxu0  ;;  %v10447_v8 = vpop.eup %7527 }
 0x6a8   : > { %v730_v38 = vadd.f32 %v7532_v32, %v6926_v40  ;;  %v721_v22 = vpop.f32.mrb[17].mxu0 }
 0x6a9   : > { %3574 = vadd.xlane.f32.xlu1 %v10422_v14  ;;  %v6927_v6 = vpop.f32.mrb[18].mxu0  ;;  %v722_v4 = vadd.f32 %v7532_v32, %v721_v22 }
 0x6aa   : > { %3572 = vadd.xlane.f32.xlu0 %v10424_v21  ;;  %v733_v3 = vadd.f32 %v7532_v32, %v6927_v6  ;;  %v724_v47 = vpop.f32.mrb[19].mxu0 }
 0x6ab   : > { %v725_v11 = vadd.f32 %v7532_v32, %v724_v47 }
 0x6ac   : > { %v10440_v60 = vpack.c.bf16 %v733_v3, %v730_v38 }
 0x6ad   : > { %3578 = vadd.xlane.f32.xlu1 %v10428_v12  ;;  %v10443_v48 = vpack.c.bf16 %v725_v11, %v722_v4 }
 0x6ae   : > { %3576 = vadd.xlane.f32.xlu0 %v10430_v19 }
 0x6af   : > { %1021 = vmatmul.mubr.bf16.gmra.mrb[32].mxu1 %v10443_v48  ;;  %v6930_v23 = vpop.f32.mrb[20].mxu0 }
 0x6b0   : > { %1030 = vmatprep.mubr.bf16.mxu1 %v13237_v33  ;;  %v746_v25 = vadd.f32 %v7532_v32, %v6930_v23  ;;  %v737_v7 = vpop.f32.mrb[21].mxu0 }
 0x6b1   : > { %3582 = vadd.xlane.f32.xlu1 %v10435_v35  ;;  %v738_v51 = vadd.f32 %v7532_v32, %v737_v7  ;;  %v6931_v2 = vpop.f32.mrb[22].mxu0 }
 0x6b2   : > { %3580 = vadd.xlane.f32.xlu0 %v10437_v54  ;;  %v749_v17 = vadd.f32 %v7532_v32, %v6931_v2  ;;  %v740_v34 = vpop.f32.mrb[23].mxu0 }
 0x6b3   : > { %v741_v31 = vadd.f32 %v7532_v32, %v740_v34 }
 0x6b4   : > { %v10455_v0 = vpack.c.bf16 %v749_v17, %v746_v25 }
 0x6b5   : > { %3586 = vadd.xlane.f32.xlu1 %v10445_v52  ;;  %v10457_v16 = vpack.c.bf16 %v741_v31, %v738_v51 }
 0x6b6   : > { %3584 = vadd.xlane.f32.xlu0 %v10447_v8 }
 0x6b7   : > { %1031 = vmatmul.mubr.bf16.gmra.mrb[36].mxu1 %v10440_v60  ;;  %v6934_v36 = vpop.f32.mrb[24].mxu0 }
 0x6b8   : > { %1040 = vmatprep.mubr.bf16.mxu1 %v13237_v33  ;;  %v762_v49 = vadd.f32 %v7532_v32, %v6934_v36  ;;  %v753_v50 = vpop.f32.mrb[25].mxu0 }
 0x6b9   : > { %v754_v15 = vadd.f32 %v7532_v32, %v753_v50  ;;  %v6935_v13 = vpop.f32.mrb[26].mxu0 }
 0x6ba   : > { %v765_v43 = vadd.f32 %v7532_v32, %v6935_v13  ;;  %v756_v44 = vpop.f32.mrb[27].mxu0 }
 0x6bb   : > { %v757_v55 = vadd.f32 %v7532_v32, %v756_v44 }
 0x6bc   : > { %v10463_v5 = vpack.c.bf16 %v765_v43, %v762_v49 }
 0x6bd   : > { %v10465_v58 = vpack.c.bf16 %v757_v55, %v754_v15 }
 0x6bf   : > { %1041 = vmatmul.mubr.bf16.gmra.mrb[40].mxu1 %v10457_v16  ;;  %v6938_v1 = vpop.f32.mrb[28].mxu0 }
 0x6c0   : > { %1050 = vmatprep.mubr.bf16.mxu1 %v13237_v33  ;;  %v778_v24 = vadd.f32 %v7532_v32, %v6938_v1  ;;  %v769_v62 = vpop.f32.mrb[29].mxu0 }
 0x6c1   : > { %v770_v53 = vadd.f32 %v7532_v32, %v769_v62  ;;  %v6939_v41 = vpop.f32.mrb[30].mxu0 }
 0x6c2   : > { %v781_v59 = vadd.f32 %v7532_v32, %v6939_v41  ;;  %v772_v30 = vpop.f32.mrb[31].mxu0 }
 0x6c3   : > { %v773_v39 = vadd.f32 %v7532_v32, %v772_v30 }
 0x6c4   : > { %v10469_v45 = vpack.c.bf16 %v781_v59, %v778_v24 }
 0x6c5   : > { %v10471_v9 = vpack.c.bf16 %v773_v39, %v770_v53 }
 0x6c7   : > { %1051 = vmatmul.mubr.bf16.gmra.mrb[44].mxu1 %v10455_v0 }
 0x6c8   : > { %1060 = vmatprep.mubr.bf16.mxu1 %v13237_v33 }
 0x6cf   : > { %1061 = vmatmul.mubr.bf16.gmra.mrb[48].mxu1 %v10465_v58 }
 0x6d0   : > { %1070 = vmatprep.mubr.bf16.mxu1 %v13237_v33 }
 0x6d7   : > { %1071 = vmatmul.mubr.bf16.gmra.mrb[52].mxu1 %v10463_v5 }
 0x6d8   : > { %1080 = vmatprep.mubr.bf16.mxu1 %v13237_v33 }
 0x6df   : > { %1081 = vmatmul.mubr.bf16.gmra.mrb[56].mxu1 %v10471_v9 }
 0x6e0   : > { %1090 = vmatprep.mubr.bf16.mxu1 %v13237_v33 }
 0x6e7   : > { %1091 = vmatmul.mubr.bf16.gmra.mrb[60].mxu1 %v10469_v45 }
 0x726   : > { %v3559_v27 = vpop.xlane.xlu1 %3558 }
 0x727   : > { %v3557_v18 = vpop.xlane.xlu0 %3556 }
 0x728   : > { %v3588_v46 = vadd.f32 %v3559_v27, %v3557_v18 }
 0x72a   : > { %v3563_v20 = vpop.xlane.xlu1 %3562 }
 0x72b   : > { %v3561_v61 = vpop.xlane.xlu0 %3560 }
 0x72c   : > { %v3589_v40 = vadd.f32 %v3588_v46, %v3561_v61 }
 0x72e   : > { %v3567_v32 = vpop.xlane.xlu1 %3566  ;;  %v3590_v38 = vadd.f32 %v3589_v40, %v3563_v20 }
 0x72f   : > { %v3565_v22 = vpop.xlane.xlu0 %3564 }
 0x730   : > { %v3591_v6 = vadd.f32 %v3590_v38, %v3565_v22  ;;  %v13240_v22 = vld [vmem:[#allocation159_spill] sm:$0xff] }
 0x732   : > { %v3571_v4 = vpop.xlane.xlu1 %3570  ;;  %v3592_v3 = vadd.f32 %v3591_v6, %v3567_v32  ;;  %v13238_v32 = vld [vmem:[#allocation21_spill] sm:$0xff] }
 0x733   : > { %v3569_v47 = vpop.xlane.xlu0 %3568 }
 0x734   : > { %v3593_v11 = vadd.f32 %v3592_v3, %v3569_v47 }
 0x736   : > { %v3575_v23 = vpop.xlane.xlu1 %3574  ;;  %v3594_v25 = vadd.f32 %v3593_v11, %v3571_v4 }
 0x737   : > { %v3573_v7 = vpop.xlane.xlu0 %3572 }
 0x738   : > { %v3595_v33 = vadd.f32 %v3594_v25, %v3573_v7 }
 0x73a   : > { %v3579_v51 = vpop.xlane.xlu1 %3578  ;;  %v3596_v2 = vadd.f32 %v3595_v33, %v3575_v23 }
 0x73b   : > { %v3577_v17 = vpop.xlane.xlu0 %3576 }
 0x73c   : > { %v3597_v34 = vadd.f32 %v3596_v2, %v3577_v17 }
 0x73e   : > { %v3598_v31 = vadd.f32 %v3597_v34, %v3579_v51  ;;  %v3583_v36 = vpop.xlane.xlu1 %3582 }
 0x73f   : > { %v3581_v49 = vpop.xlane.xlu0 %3580 }
 0x740   : > { %v3599_v50 = vadd.f32 %v3598_v31, %v3581_v49 }
 0x742   : > { %v3600_v15 = vadd.f32 %v3599_v50, %v3583_v36  ;;  %v3587_v44 = vpop.xlane.xlu1 %3586 }
 0x743   : > { %v3585_v13 = vpop.xlane.xlu0 %3584 }
 0x744   : > { %v3601_v43 = vadd.f32 %v3600_v15, %v3585_v13 }
 0x746   : > { %v3602_v55 = vadd.f32 %v3601_v43, %v3587_v44 }
 0x748   : > { %v3603_v1 = vrot.slane %v3602_v55, 4 }
 0x74a   : > { %v3604_v24 = vadd.f32 %v3603_v1, %v3602_v55 }
 0x74c   : > { %v3605_v62 = vrot.slane %v3604_v24, 2 }
 0x74e   : > { %v3606_v53 = vadd.f32 %v3605_v62, %v3604_v24 }
 0x750   : > { %v3607_v41 = vrot.slane %v3606_v53, 1 }
 0x752   : > { %v3608_v59 = vadd.f32 %v3607_v41, %v3606_v53 }
 0x754   : > { %7529 = vrcp.f32 %v3608_v59 }
 0x75e   : > { %v7530_v30 = vpop.eup %7529 }
 0x75f   : > { %v3611_v39 = vmul.f32 %v7530_v30, %v10394_v42  ;;  %v3612_v27 = vmul.f32 %v7530_v30, %v10392_v26  ;;  %v3613_v18 = vmul.f32 %v7530_v30, %v10402_v28  ;;  %v3614_v46 = vmul.f32 %v7530_v30, %v10400_v56 }
 0x760   : > { %v3615_v20 = vmul.f32 %v7530_v30, %v10410_v63  ;;  %v3616_v61 = vmul.f32 %v7530_v30, %v10408_v37  ;;  %v3617_v40 = vmul.f32 %v7530_v30, %v10418_v10  ;;  %v3618_v42 = vmul.f32 %v7530_v30, %v10416_v29 }
 0x761   : > { %6972 = vmatprep.mubr.f32.mxu0 %v3611_v39  ;;  %v3619_v26 = vmul.f32 %v7530_v30, %v10424_v21  ;;  %v3620_v28 = vmul.f32 %v7530_v30, %v10422_v14  ;;  %v3621_v56 = vmul.f32 %v7530_v30, %v10430_v19  ;;  %v3622_v63 = vmul.f32 %v7530_v30, %v10428_v12 }
 0x762   : > { %6973 = vmatmul.mubr.f32.vlgmr.msra.gmra.mrb[32].mxu0 %v3612_v27  ;;  %v3623_v37 = vmul.f32 %v7530_v30, %v10437_v54  ;;  %v3624_v10 = vmul.f32 %v7530_v30, %v10435_v35  ;;  %v3625_v29 = vmul.f32 %v7530_v30, %v10447_v8  ;;  %v3626_v21 = vmul.f32 %v7530_v30, %v10445_v52 }
 0x763   : > { %6975 = vmatprep.mubr.f32.mxu0 %v3613_v18 }
 0x766   : > { %6976 = vmatmul.mubr.f32.gmra.mrb[34].mxu0 %v3614_v46 }
 0x767   : > { %6978 = vmatprep.mubr.f32.mxu0 %v3615_v20 }
 0x76a   : > { %6979 = vmatmul.mubr.f32.gmra.mrb[36].mxu0 %v3616_v61 }
 0x76b   : > { %6981 = vmatprep.mubr.f32.mxu0 %v3617_v40 }
 0x76e   : > { %6982 = vmatmul.mubr.f32.gmra.mrb[38].mxu0 %v3618_v42 }
 0x76f   : > { %6984 = vmatprep.mubr.f32.mxu0 %v3619_v26 }
 0x772   : > { %6985 = vmatmul.mubr.f32.gmra.mrb[40].mxu0 %v3620_v28 }
 0x773   : > { %6987 = vmatprep.mubr.f32.mxu0 %v3621_v56 }
 0x776   : > { %6988 = vmatmul.mubr.f32.gmra.mrb[42].mxu0 %v3622_v63 }
 0x777   : > { %6990 = vmatprep.mubr.f32.mxu0 %v3623_v37 }
 0x77a   : > { %6991 = vmatmul.mubr.f32.gmra.mrb[44].mxu0 %v3624_v10 }
 0x77b   : > { %6993 = vmatprep.mubr.f32.mxu0 %v3625_v29 }
 0x77e   : > { %6994 = vmatmul.mubr.f32.gmra.mrb[46].mxu0 %v3626_v21 }
 0x782   : > { %v1022_v14 = vpop.f32.mrb[32].mxu1 }
 0x783   : > { %v10495_v19 = vadd.f32 %v1022_v14, %v13238_v32  ;;  %v1024_v38 = vpop.f32.mrb[33].mxu1 }
 0x784   : > { %v10498_v12 = vadd.f32 %v1024_v38, %v13240_v22  ;;  %v1026_v54 = vpop.f32.mrb[34].mxu1 }
 0x785   : > { %13239 = vst [vmem:[#allocation86_spill] sm:$0xff] %v10495_v19  ;;  %v10501_v6 = vadd.f32 %v1026_v54, %v13238_v32  ;;  %v1028_v35 = vpop.f32.mrb[35].mxu1 }
 0x786   : > { %v10504_v8 = vadd.f32 %v1028_v35, %v13240_v22 }
 0x78a   : > { %v1032_v4 = vpop.f32.mrb[36].mxu1 }
 0x78b   : > { %v10507_v52 = vadd.f32 %v1032_v4, %v13238_v32  ;;  %v1034_v3 = vpop.f32.mrb[37].mxu1 }
 0x78c   : > { %v10510_v47 = vadd.f32 %v1034_v3, %v13240_v22  ;;  %v1036_v11 = vpop.f32.mrb[38].mxu1 }
 0x78d   : > { %v10513_v23 = vadd.f32 %v1036_v11, %v13238_v32  ;;  %v1038_v25 = vpop.f32.mrb[39].mxu1 }
 0x78e   : > { %v10516_v7 = vadd.f32 %v1038_v25, %v13240_v22 }
 0x78f   : > { %13241 = vst [vmem:[#allocation28_spill] sm:$0xff] %v10513_v23 }
 0x792   : > { %v1042_v33 = vpop.f32.mrb[40].mxu1 }
 0x793   : > { %v10519_v51 = vadd.f32 %v1042_v33, %v13238_v32  ;;  %v1044_v2 = vpop.f32.mrb[41].mxu1 }
 0x794   : > { %v10522_v17 = vadd.f32 %v1044_v2, %v13240_v22  ;;  %v1046_v34 = vpop.f32.mrb[42].mxu1 }
 0x795   : > { %v10525_v31 = vadd.f32 %v1046_v34, %v13238_v32  ;;  %v1048_v36 = vpop.f32.mrb[43].mxu1 }
 0x796   : > { %v10528_v49 = vadd.f32 %v1048_v36, %v13240_v22 }
 0x797   : > { %13242 = vst [vmem:[#allocation166_spill] sm:$0xff] %v10525_v31 }
 0x79a   : > { %v1052_v50 = vpop.f32.mrb[44].mxu1 }
 0x79b   : > { %v10531_v15 = vadd.f32 %v1052_v50, %v13238_v32  ;;  %v1054_v13 = vpop.f32.mrb[45].mxu1 }
 0x79c   : > { %v10534_v43 = vadd.f32 %v1054_v13, %v13240_v22  ;;  %v1056_v44 = vpop.f32.mrb[46].mxu1 }
 0x79d   : > { %v10537_v55 = vadd.f32 %v1056_v44, %v13238_v32  ;;  %v1058_v1 = vpop.f32.mrb[47].mxu1 }
 0x79e   : > { %v10540_v24 = vadd.f32 %v1058_v1, %v13240_v22 }
 0x79f   : > { %13243 = vst [vmem:[#allocation107_spill] sm:$0xff] %v10537_v55 }
 0x7a2   : > { %v1062_v62 = vpop.f32.mrb[48].mxu1 }
 0x7a3   : > { %v10543_v53 = vadd.f32 %v1062_v62, %v13238_v32  ;;  %v1064_v41 = vpop.f32.mrb[49].mxu1 }
 0x7a4   : > { %v10546_v59 = vadd.f32 %v1064_v41, %v13240_v22  ;;  %v1066_v30 = vpop.f32.mrb[50].mxu1 }
 0x7a5   : > { %v10549_v39 = vadd.f32 %v1066_v30, %v13238_v32  ;;  %v1068_v27 = vpop.f32.mrb[51].mxu1 }
 0x7a6   : > { %v10552_v18 = vadd.f32 %v1068_v27, %v13240_v22 }
 0x7a7   : > { %13244 = vst [vmem:[#allocation153_spill] sm:$0xff] %v10549_v39 }
 0x7aa   : > { %v1072_v46 = vpop.f32.mrb[52].mxu1 }
 0x7ab   : > { %v10555_v20 = vadd.f32 %v1072_v46, %v13238_v32  ;;  %v1074_v61 = vpop.f32.mrb[53].mxu1 }
 0x7ac   : > { %v10558_v40 = vadd.f32 %v1074_v61, %v13240_v22  ;;  %v1076_v42 = vpop.f32.mrb[54].mxu1 }
 0x7ad   : > { %v10561_v26 = vadd.f32 %v1076_v42, %v13238_v32  ;;  %v1078_v28 = vpop.f32.mrb[55].mxu1 }
 0x7ae   : > { %v10564_v56 = vadd.f32 %v1078_v28, %v13240_v22 }
 0x7af   : > { %13245 = vst [vmem:[#allocation103_spill] sm:$0xff] %v10561_v26 }
 0x7b2   : > { %v1082_v63 = vpop.f32.mrb[56].mxu1 }
 0x7b3   : > { %v10567_v37 = vadd.f32 %v1082_v63, %v13238_v32  ;;  %v1084_v10 = vpop.f32.mrb[57].mxu1 }
 0x7b4   : > { %v10570_v29 = vadd.f32 %v1084_v10, %v13240_v22  ;;  %v1086_v21 = vpop.f32.mrb[58].mxu1 }
 0x7b5   : > { %v10573_v14 = vadd.f32 %v1086_v21, %v13238_v32  ;;  %v1088_v38 = vpop.f32.mrb[59].mxu1 }
 0x7b6   : > { %v10576_v54 = vadd.f32 %v1088_v38, %v13240_v22 }
 0x7b7   : > { %13246 = vst [vmem:[#allocation23_spill] sm:$0xff] %v10573_v14 }
 0x7ba   : > { %v1092_v35 = vpop.f32.mrb[60].mxu1 }
 0x7bb   : > { %v10579_v4 = vadd.f32 %v1092_v35, %v13238_v32  ;;  %v1094_v3 = vpop.f32.mrb[61].mxu1 }
 0x7bc   : > { %v10582_v11 = vadd.f32 %v1094_v3, %v13240_v22  ;;  %v1096_v25 = vpop.f32.mrb[62].mxu1 }
 0x7bd   : > { %v10585_v33 = vadd.f32 %v1096_v25, %v13238_v32  ;;  %v1098_v2 = vpop.f32.mrb[63].mxu1 }
 0x7be   : > { %v10588_v34 = vadd.f32 %v1098_v2, %v13240_v22 }
 0x7bf   : > { %13247 = vst [vmem:[#allocation154_spill] sm:$0xff] %v10585_v33 }
 0x835   : > { %v6974_v36 = vpop.f32.mrb[32].mxu0 }
 0x836   : > { %v3693_v50 = vpop.f32.mrb[33].mxu0  ;;  %3777 = vst [vmem:[#allocation14 + $0x8] sm:$0xff] (!%p6702_p8), %v6974_v36 }
 0x837   : > { %3776 = vst [vmem:[#allocation14] sm:$0xff] (!%p6702_p8), %v3693_v50 }
 0x839   : > { %v6977_v13 = vpop.f32.mrb[34].mxu0 }
 0x83a   : > { %v3703_v44 = vpop.f32.mrb[35].mxu0  ;;  %3779 = vst [vmem:[#allocation14 + $0x18] sm:$0xff] (!%p6702_p8), %v6977_v13 }
 0x83b   : > { %3778 = vst [vmem:[#allocation14 + $0x10] sm:$0xff] (!%p6702_p8), %v3703_v44 }
 0x83d   : > { %v6980_v1 = vpop.f32.mrb[36].mxu0 }
 0x83e   : > { %v3713_v62 = vpop.f32.mrb[37].mxu0  ;;  %3781 = vst [vmem:[#allocation14 + $0x28] sm:$0xff] (!%p6702_p8), %v6980_v1 }
 0x83f   : > { %3780 = vst [vmem:[#allocation14 + $0x20] sm:$0xff] (!%p6702_p8), %v3713_v62 }
 0x841   : > { %v6983_v41 = vpop.f32.mrb[38].mxu0 }
 0x842   : > { %v3723_v30 = vpop.f32.mrb[39].mxu0  ;;  %3783 = vst [vmem:[#allocation14 + $0x38] sm:$0xff] (!%p6702_p8), %v6983_v41 }
 0x843   : > { %3782 = vst [vmem:[#allocation14 + $0x30] sm:$0xff] (!%p6702_p8), %v3723_v30 }
 0x845   : > { %v6986_v27 = vpop.f32.mrb[40].mxu0 }
 0x846   : > { %v3733_v46 = vpop.f32.mrb[41].mxu0  ;;  %3785 = vst [vmem:[#allocation14 + $0x48] sm:$0xff] (!%p6702_p8), %v6986_v27 }
 0x847   : > { %3784 = vst [vmem:[#allocation14 + $0x40] sm:$0xff] (!%p6702_p8), %v3733_v46 }
 0x849   : > { %v6989_v61 = vpop.f32.mrb[42].mxu0 }
 0x84a   : > { %v3743_v42 = vpop.f32.mrb[43].mxu0  ;;  %3787 = vst [vmem:[#allocation14 + $0x58] sm:$0xff] (!%p6702_p8), %v6989_v61 }
 0x84b   : > { %3786 = vst [vmem:[#allocation14 + $0x50] sm:$0xff] (!%p6702_p8), %v3743_v42 }
 0x84c   : > { %3775 = sbr.rel (%p6702_p8) target bundleno = 2132 (0x854), region = 80 }
 0x84d   : > { %v6992_v28 = vpop.f32.mrb[44].mxu0 }
 0x84e   : > { %v3753_v63 = vpop.f32.mrb[45].mxu0  ;;  %3789 = vst [vmem:[#allocation14 + $0x68] sm:$0xff] (!%p6702_p8), %v6992_v28 }
 0x84f   : > { %3788 = vst [vmem:[#allocation14 + $0x60] sm:$0xff] (!%p6702_p8), %v3753_v63 }
 0x851   : > { %v6995_v32 = vpop.f32.mrb[46].mxu0 }
 0x852   : > { %v3763_v10 = vpop.f32.mrb[47].mxu0  ;;  %3791 = vst [vmem:[#allocation14 + $0x78] sm:$0xff] (!%p6702_p8), %v6995_v32 }
 0x853   : > { %3790 = vst [vmem:[#allocation14 + $0x70] sm:$0xff] %v3763_v10 }
 0x854 PF: > { %p6703_p4 = scmp.ge.s32.totalorder %s7799_s29, 1 }
 0x855   : > { %v3796_v22 = vpack.c.bf16 (!%p6703_p4), %v6974_v36, %v3693_v50  ;;  %v3797_v21 = vpack.c.bf16 (!%p6703_p4), %v6977_v13, %v3703_v44  ;;  %v3798_v38 = vpack.c.bf16 (!%p6703_p4), %v6980_v1, %v3713_v62  ;;  %v3799_v35 = vpack.c.bf16 (!%p6703_p4), %v6983_v41, %v3723_v30 }
 0x856   : > { %3795 = sbr.rel (%p6703_p4) target bundleno = 2141 (0x85d), region = 84  ;;  %v3800_v3 = vpack.c.bf16 (!%p6703_p4), %v6986_v27, %v3733_v46  ;;  %v3801_v25 = vpack.c.bf16 (!%p6703_p4), %v6989_v61, %v3743_v42  ;;  %v3802_v2 = vpack.c.bf16 (!%p6703_p4), %v6992_v28, %v3753_v63  ;;  %v3803_v57 = vpack.c.bf16 (!%p6703_p4), %v6995_v32, %v3763_v10 }
 0x857   : > { %3804 = vst [vmem:[#allocation2] sm:$0xff] (!%p6703_p4), %v3796_v22  ;;  %3805 = vst [vmem:[#allocation2 + $0x8] sm:$0xff] (!%p6703_p4), %v3797_v21 }
 0x858   : > { %3806 = vst [vmem:[#allocation2 + $0x10] sm:$0xff] (!%p6703_p4), %v3798_v38  ;;  %3807 = vst [vmem:[#allocation2 + $0x18] sm:$0xff] (!%p6703_p4), %v3799_v35 }
 0x859   : > { %3808 = vst [vmem:[#allocation2 + $0x20] sm:$0xff] (!%p6703_p4), %v3800_v3  ;;  %3809 = vst [vmem:[#allocation2 + $0x28] sm:$0xff] (!%p6703_p4), %v3801_v25 }
 0x85a   : > { %3810 = vst [vmem:[#allocation2 + $0x30] sm:$0xff] (!%p6703_p4), %v3802_v2  ;;  %3811 = vst [vmem:[#allocation2 + $0x38] sm:$0xff] (!%p6703_p4), %v3803_v57 }
 0x85d PF: > { %3812 = vxpose.xlu0.b32.start [1/16] (narrow) %v10498_v12, 16  ;;  %v13248_v33 = vmov 0   ;;  %7085 = vmatprep.subr.bf16.mxu0 %v10443_v48  ;;  %v13249_v57 = vld [vmem:[#allocation154_spill] sm:$0xff]  ;;  %s3960_s22 = sld [smem:[#allocation13]]  ;;  %v13257_v13 = vmov 4   ;;  %s6704_s13 = sld [smem:[#allocation13 + $0x1]] }
 0x85e   : > { %7533 = vset.pattern.permute.xlu1 %v13248_v33  ;;  %7087 = vmatpush3.bf16.msra.mxu0 %v10443_v48  ;;  %v13251_v48 = vmov 2   ;;  %s6705_s16 = sld [smem:[#allocation13 + $0x2]]  ;;  %s6706_s18 = sld [smem:[#allocation13 + $0x3]] }
 0x85f   : > { %3846 = vperm.xlu1 %7533, %v10495_v19   ;;  %7089 = vmatprep.subr.bf16.mxu0 %v10440_v60  ;;  %s6707_s7 = sld [smem:[#allocation13 + $0x4]]  ;;  %s6708_s28 = sld [smem:[#allocation13 + $0x5]] }
 0x860   : > { %s6709_s12 = sld [smem:[#allocation13 + $0x6]]  ;;  %s6710_s20 = sld [smem:[#allocation13 + $0x7]] }
 0x861   : > { %3813 = vxpose.xlu0.b32.cont [2/16] (narrow) %v10504_v8, 16  ;;  %s11539_s17 = sld [smem:[#allocation13 + $0x8]]  ;;  %s11580_s19 = sld [smem:[#allocation13 + $0x9]] }
 0x862   : > { %7091 = vmatpush3.bf16.msra.mxu0 %v10440_v60  ;;  %v13250_v60 = vmov 1   ;;  %s11602_s21 = sld [smem:[#allocation13 + $0xa]]  ;;  %s11638_s25 = sld [smem:[#allocation13 + $0xb]] }
 0x863   : > { %3851 = vperm.xlu1 %7533, %v10501_v6   ;;  %7093 = vmatprep.subr.bf16.mxu0 %v10457_v16  ;;  %s11689_s10 = sld [smem:[#allocation13 + $0xc]]  ;;  %s11794_s11 = sld [smem:[#allocation13 + $0xd]] }
 0x864   : > { %s11934_s14 = sld [smem:[#allocation13 + $0xe]]  ;;  %s6718_s24 = sld [smem:[#allocation13 + $0xf]] }
 0x865   : > { %3814 = vxpose.xlu0.b32.cont [3/16] (narrow) %v10510_v47, 16 }
 0x866   : > { %7095 = vmatpush3.bf16.msra.mxu0 %v10457_v16 }
 0x867   : > { %3856 = vperm.xlu1 %7533, %v10507_v52   ;;  %7097 = vmatprep.subr.bf16.mxu0 %v10455_v0 }
 0x869   : > { %3815 = vxpose.xlu0.b32.cont [4/16] (narrow) %v10516_v7, 16 }
 0x86a   : > { %7099 = vmatpush3.bf16.msra.mxu0 %v10455_v0 }
 0x86b   : > { %3861 = vperm.xlu1 %7533, %v10513_v23   ;;  %7101 = vmatprep.subr.bf16.mxu0 %v10465_v58 }
 0x86d   : > { %3816 = vxpose.xlu0.b32.cont [5/16] (narrow) %v10522_v17, 16  ;;  %v13254_v17 = vld [vmem:[#allocation20_spill] sm:$0xff] }
 0x86e   : > { %7103 = vmatpush3.bf16.msra.mxu0 %v10465_v58 }
 0x86f   : > { %3866 = vperm.xlu1 %7533, %v10519_v51   ;;  %7105 = vmatprep.subr.bf16.mxu0 %v10463_v5 }
 0x871   : > { %3817 = vxpose.xlu0.b32.cont [6/16] (narrow) %v10528_v49, 16 }
 0x872   : > { %7107 = vmatpush3.bf16.msra.mxu0 %v10463_v5 }
 0x873   : > { %3871 = vperm.xlu1 %7533, %v10525_v31   ;;  %7109 = vmatprep.subr.bf16.mxu0 %v10471_v9 }
 0x875   : > { %3818 = vxpose.xlu0.b32.cont [7/16] (narrow) %v10534_v43, 16 }
 0x876   : > { %7111 = vmatpush3.bf16.msra.mxu0 %v10471_v9  ;;  %v13253_v9 = vmov 3  }
 0x877   : > { %3876 = vperm.xlu1 %7533, %v10531_v15   ;;  %7113 = vmatprep.subr.bf16.mxu0 %v10469_v45 }
 0x879   : > { %3819 = vxpose.xlu0.b32.cont [8/16] (narrow) %v10540_v24, 16 }
 0x87a   : > { %7115 = vmatpush3.bf16.msra.mxu0 %v10469_v45 }
 0x87b   : > { %3881 = vperm.xlu1 %7533, %v10537_v55  }
 0x87d   : > { %3820 = vxpose.xlu0.b32.cont [9/16] (narrow) %v10546_v59, 16 }
 0x87f   : > { %3886 = vperm.xlu1 %7533, %v10543_v53  }
 0x881   : > { %3821 = vxpose.xlu0.b32.cont [10/16] (narrow) %v10552_v18, 16  ;;  %v10713_v18 = vstv %s3960_s22 }
 0x882   : > { %13256 = vst [vmem:[#allocation105_spill] sm:$0xff] %v10713_v18 }
 0x883   : > { %3891 = vperm.xlu1 %7533, %v10549_v39  }
 0x885   : > { %3822 = vxpose.xlu0.b32.cont [11/16] (narrow) %v10558_v40, 16 }
 0x887   : > { %3896 = vperm.xlu1 %7533, %v10555_v20  }
 0x889   : > { %3823 = vxpose.xlu0.b32.cont [12/16] (narrow) %v10564_v56, 16 }
 0x88b   : > { %3901 = vperm.xlu1 %7533, %v10561_v26  }
 0x88d   : > { %3824 = vxpose.xlu0.b32.cont [13/16] (narrow) %v10570_v29, 16 }
 0x88f   : > { %3906 = vperm.xlu1 %7533, %v10567_v37  }
 0x891   : > { %3825 = vxpose.xlu0.b32.cont [14/16] (narrow) %v10576_v54, 16 }
 0x893   : > { %3911 = vperm.xlu1 %7533, %v10573_v14  }
 0x895   : > { %3826 = vxpose.xlu0.b32.cont [15/16] (narrow) %v10582_v11, 16 }
 0x897   : > { %3916 = vperm.xlu1 %7533, %v10579_v4  }
 0x899   : > { %3827 = vxpose.xlu0.b32.end [16/16] (narrow) %v10588_v34, 16 }
 0x89b   : > { %3921 = vperm.xlu1 %7533, %v13249_v57  }
 0x89f   : > { %7535 = vset.pattern.permute.xlu1 %v13250_v60 }
 0x8a0   : > { %3999 = vperm.xlu1 %7535, %v10501_v6  }
 0x8a4   : > { %4003 = vperm.xlu1 %7535, %v10507_v52  }
 0x8a8   : > { %4007 = vperm.xlu1 %7535, %v10513_v23  }
 0x8ac   : > { %4011 = vperm.xlu1 %7535, %v10519_v51  }
 0x8b0   : > { %4015 = vperm.xlu1 %7535, %v10525_v31  }
 0x8b4   : > { %4019 = vperm.xlu1 %7535, %v10531_v15  }
 0x8b8   : > { %4023 = vperm.xlu1 %7535, %v10537_v55  }
 0x8bc   : > { %4027 = vperm.xlu1 %7535, %v10543_v53  }
 0x8c0   : > { %4031 = vperm.xlu1 %7535, %v10549_v39  }
 0x8c2   : > { %7534 = vset.pattern.permute.xlu0 %v13250_v60 }
 0x8c3   : > { %3995 = vperm.xlu0 %7534, %v10495_v19  }
 0x8c4   : > { %4035 = vperm.xlu1 %7535, %v10555_v20  }
 0x8c7   : > { %4043 = vperm.xlu0 %7534, %v10567_v37  }
 0x8c8   : > { %4039 = vperm.xlu1 %7535, %v10561_v26  }
 0x8cb   : > { %4051 = vperm.xlu0 %7534, %v10579_v4  }
 0x8cc   : > { %4047 = vperm.xlu1 %7535, %v10573_v14  }
 0x8cf   : > { %7536 = vset.pattern.permute.xlu0 %v13251_v48 }
 0x8d0   : > { %4055 = vperm.xlu1 %7535, %v13249_v57   ;;  %4129 = vperm.xlu0 %7536, %v10495_v19  }
 0x8d4   : > { %7537 = vset.pattern.permute.xlu1 %v13251_v48  ;;  %4141 = vperm.xlu0 %7536, %v10513_v23   ;;  %v13260_v48 = vmov 5  }
 0x8d5   : > { %4133 = vperm.xlu1 %7537, %v10501_v6  }
 0x8d8   : > { %4149 = vperm.xlu0 %7536, %v10525_v31  }
 0x8d9   : > { %4137 = vperm.xlu1 %7537, %v10507_v52  }
 0x8dc   : > { %4157 = vperm.xlu0 %7536, %v10537_v55  }
 0x8dd   : > { %4145 = vperm.xlu1 %7537, %v10519_v51   ;;  %v10700_v47 = vpop.trf.xlu0 }
 0x8de   : > { %v10672_v0 = vpop.permute.xlu1 %3846  ;;  %v10708_v49 = vrot.slane %v10700_v47, %v13254_v17 }
 0x8e0   : > { %4165 = vperm.xlu0 %7536, %v10549_v39   ;;  %13255 = vst [vmem:[#allocation133_spill] sm:$0xff] %v10708_v49 }
 0x8e1   : > { %4153 = vperm.xlu1 %7537, %v10531_v15  }
 0x8e2   : > { %v10676_v16 = vpop.permute.xlu1 %3851 }
 0x8e4   : > { %4173 = vperm.xlu0 %7536, %v10561_v26  }
 0x8e5   : > { %4161 = vperm.xlu1 %7537, %v10543_v53  }
 0x8e6   : > { %v10680_v5 = vpop.permute.xlu1 %3856 }
 0x8e7   : > { %13252 = vst [vmem:[#allocation155_spill] sm:$0xff] %v10680_v5 }
 0x8e8   : > { %4181 = vperm.xlu0 %7536, %v10573_v14  }
 0x8e9   : > { %4169 = vperm.xlu1 %7537, %v10555_v20  }
 0x8ea   : > { %v10684_v58 = vpop.permute.xlu1 %3861 }
 0x8ec   : > { %4189 = vperm.xlu0 %7536, %v13249_v57  }
 0x8ed   : > { %4177 = vperm.xlu1 %7537, %v10567_v37  }
 0x8ee   : > { %v10688_v45 = vpop.permute.xlu1 %3866 }
 0x8f0   : > { %7539 = vset.pattern.permute.xlu0 %v13253_v9 }
 0x8f1   : > { %4185 = vperm.xlu1 %7537, %v10579_v4   ;;  %4267 = vperm.xlu0 %7539, %v10501_v6  }
 0x8f2   : > { %v10693_v12 = vpop.permute.xlu1 %3871 }
 0x8f5   : > { %7538 = vset.pattern.permute.xlu1 %v13253_v9  ;;  %4279 = vperm.xlu0 %7539, %v10519_v51  }
 0x8f6   : > { %4263 = vperm.xlu1 %7538, %v10495_v19   ;;  %v10698_v8 = vpop.permute.xlu1 %3876 }
 0x8f9   : > { %4287 = vperm.xlu0 %7539, %v10531_v15  }
 0x8fa   : > { %4271 = vperm.xlu1 %7538, %v10507_v52   ;;  %v10704_v7 = vpop.permute.xlu1 %3881 }
 0x8fd   : > { %4295 = vperm.xlu0 %7539, %v10543_v53  }
 0x8fe   : > { %4275 = vperm.xlu1 %7538, %v10513_v23   ;;  %v3887_v43 = vpop.permute.xlu1 %3886 }
 0x8ff   : > { %v3936_v24 = vadd.f32 %v10708_v49, %v3887_v43 }
 0x901   : > { %v3952_v59 = vmax.f32 %v3936_v24, 0.0  ;;  %4303 = vperm.xlu0 %7539, %v10555_v20  }
 0x902   : > { %4283 = vperm.xlu1 %7538, %v10525_v31   ;;  %v10717_v40 = vpop.permute.xlu1 %3891 }
 0x903   : > { %v10720_v56 = vmul.f32 %v10713_v18, %v3952_v59  ;;  %v13264_v59 = vld [vmem:[#allocation156_spill] sm:$0xff] }
 0x905   : > { %4311 = vperm.xlu0 %7539, %v10567_v37  }
 0x906   : > { %4291 = vperm.xlu1 %7538, %v10537_v55   ;;  %v3897_v29 = vpop.permute.xlu1 %3896 }
 0x907   : > { %v3938_v54 = vadd.f32 %v10708_v49, %v3897_v29  ;;  %v10791_v29 = vrot.slane %v10700_v47, %v13264_v59 }
 0x909   : > { %v3954_v11 = vmax.f32 %v3938_v54, 0.0  ;;  %4319 = vperm.xlu0 %7539, %v10579_v4   ;;  %13265 = vst [vmem:[#allocation91_spill] sm:$0xff] %v10791_v29 }
 0x90a   : > { %4299 = vperm.xlu1 %7538, %v10549_v39   ;;  %v3902_v33 = vpop.permute.xlu1 %3901 }
 0x90b   : > { %v10728_v34 = vmul.f32 %v10713_v18, %v3954_v11  ;;  %v3939_v36 = vadd.f32 %v10708_v49, %v3902_v33  ;;  %v10797_v33 = vpop.trf.xlu0 }
 0x90c   : > { %13266 = vst [vmem:[#allocation157_spill] sm:$0xff] %v10797_v33 }
 0x90d   : > { %v3955_v50 = vmax.f32 %v3939_v36, 0.0  ;;  %7540 = vset.pattern.permute.xlu0 %v13257_v13 }
 0x90e   : > { %4307 = vperm.xlu1 %7538, %v10561_v26   ;;  %v3907_v44 = vpop.permute.xlu1 %3906  ;;  %4397 = vperm.xlu0 %7540, %v10495_v19  }
 0x90f   : > { %v10734_v1 = vmul.f32 %v10713_v18, %v3955_v50  ;;  %v3940_v62 = vadd.f32 %v10708_v49, %v3907_v44  ;;  %v10799_v50 = vstv %s6704_s13 }
 0x910   : > { %13267 = vst [vmem:[#allocation26_spill] sm:$0xff] %v10799_v50 }
 0x911   : > { %v3956_v41 = vmax.f32 %v3940_v62, 0.0 }
 0x912   : > { %4315 = vperm.xlu1 %7538, %v10573_v14   ;;  %v3912_v30 = vpop.permute.xlu1 %3911  ;;  %4409 = vperm.xlu0 %7540, %v10513_v23  }
 0x913   : > { %v10740_v27 = vmul.f32 %v10713_v18, %v3956_v41  ;;  %v3941_v46 = vadd.f32 %v10708_v49, %v3912_v30 }
 0x915   : > { %v3957_v61 = vmax.f32 %v3941_v46, 0.0 }
 0x916   : > { %4323 = vperm.xlu1 %7538, %v13249_v57   ;;  %v3917_v42 = vpop.permute.xlu1 %3916  ;;  %4417 = vperm.xlu0 %7540, %v10525_v31  }
 0x917   : > { %v10746_v28 = vmul.f32 %v10713_v18, %v3957_v61  ;;  %v3942_v63 = vadd.f32 %v10708_v49, %v3917_v42 }
 0x919   : > { %v3958_v32 = vmax.f32 %v3942_v63, 0.0 }
 0x91a   : > { %7541 = vset.pattern.permute.xlu1 %v13257_v13  ;;  %v3922_v10 = vpop.permute.xlu1 %3921  ;;  %4425 = vperm.xlu0 %7540, %v10537_v55  }
 0x91b   : > { %v10752_v22 = vmul.f32 %v10713_v18, %v3958_v32  ;;  %v3943_v21 = vadd.f32 %v10708_v49, %v3922_v10  ;;  %4401 = vperm.xlu1 %7541, %v10501_v6  }
 0x91d   : > { %v3959_v38 = vmax.f32 %v3943_v21, 0.0 }
 0x91e   : > { %4433 = vperm.xlu0 %7540, %v10549_v39  }
 0x91f   : > { %v10758_v35 = vmul.f32 %v10713_v18, %v3959_v38  ;;  %4405 = vperm.xlu1 %7541, %v10507_v52   ;;  %v10762_v3 = vpop.permute.xlu1 %3999 }
 0x922   : > { %4441 = vperm.xlu0 %7540, %v10561_v26  }
 0x923   : > { %4413 = vperm.xlu1 %7541, %v10519_v51   ;;  %v10766_v25 = vpop.permute.xlu1 %4003 }
 0x924   : > { %13258 = vst [vmem:[#allocation219_spill] sm:$0xff] %v10766_v25  ;;  %v10879_v25 = vstv %s6705_s16 }
 0x925   : > { %13282 = vst [vmem:[#allocation119_spill] sm:$0xff] %v10879_v25 }
 0x926   : > { %4449 = vperm.xlu0 %7540, %v10573_v14  }
 0x927   : > { %4421 = vperm.xlu1 %7541, %v10531_v15   ;;  %v10770_v2 = vpop.permute.xlu1 %4007 }
 0x92a   : > { %4457 = vperm.xlu0 %7540, %v13249_v57  }
 0x92b   : > { %4429 = vperm.xlu1 %7541, %v10543_v53   ;;  %v10774_v60 = vpop.permute.xlu1 %4011 }
 0x92c   : > { %13259 = vst [vmem:[#allocation110_spill] sm:$0xff] %v10774_v60 }
 0x92e   : > { %7543 = vset.pattern.permute.xlu0 %v13260_v48 }
 0x92f   : > { %4437 = vperm.xlu1 %7541, %v10555_v20   ;;  %v10778_v9 = vpop.permute.xlu1 %4015  ;;  %4535 = vperm.xlu0 %7543, %v10501_v6  }
 0x930   : > { %13261 = vst [vmem:[#allocation32_spill] sm:$0xff] %v10778_v9 }
 0x933   : > { %4445 = vperm.xlu1 %7541, %v10567_v37   ;;  %v10782_v43 = vpop.permute.xlu1 %4019  ;;  %4547 = vperm.xlu0 %7543, %v10519_v51  }
 0x934   : > { %13262 = vst [vmem:[#allocation88_spill] sm:$0xff] %v10782_v43 }
 0x937   : > { %4453 = vperm.xlu1 %7541, %v10579_v4   ;;  %v10786_v24 = vpop.permute.xlu1 %4023  ;;  %4555 = vperm.xlu0 %7543, %v10531_v15  }
 0x938   : > { %13263 = vst [vmem:[#allocation206_spill] sm:$0xff] %v10786_v24 }
 0x93b   : > { %7542 = vset.pattern.permute.xlu1 %v13260_v48  ;;  %v4028_v54 = vpop.permute.xlu1 %4027  ;;  %4563 = vperm.xlu0 %7543, %v10543_v53  }
 0x93c   : > { %v4070_v11 = vadd.f32 %v10791_v29, %v4028_v54  ;;  %4531 = vperm.xlu1 %7542, %v10495_v19  }
 0x93e   : > { %v4086_v36 = vmax.f32 %v4070_v11, 0.0 }
 0x93f   : > { %v10801_v13 = vpop.permute.xlu1 %4031  ;;  %4571 = vperm.xlu0 %7543, %v10555_v20  }
 0x940   : > { %13268 = vst [vmem:[#allocation136_spill] sm:$0xff] %v10801_v13  ;;  %v4104_v44 = vmul.f32 %v10799_v50, %v4086_v36  ;;  %4539 = vperm.xlu1 %7542, %v10507_v52  }
 0x942   : > { %v10807_v62 = vadd.f32 %v4104_v44, %v10720_v56  ;;  %v10809_v41 = vpop.permute.xlu0 %3995 }
 0x943   : > { %13269 = vst [vmem:[#allocation112_spill] sm:$0xff] %v10809_v41  ;;  %v4036_v30 = vpop.permute.xlu1 %4035  ;;  %4579 = vperm.xlu0 %7543, %v10567_v37  }
 0x944   : > { %v4072_v46 = vadd.f32 %v10791_v29, %v4036_v30  ;;  %4543 = vperm.xlu1 %7542, %v10513_v23  }
 0x946   : > { %v4088_v61 = vmax.f32 %v4072_v46, 0.0  ;;  %v4044_v42 = vpop.permute.xlu0 %4043 }
 0x947   : > { %v4040_v63 = vpop.permute.xlu1 %4039  ;;  %v4074_v10 = vadd.f32 %v10791_v29, %v4044_v42  ;;  %4587 = vperm.xlu0 %7543, %v10579_v4  }
 0x948   : > { %v4106_v32 = vmul.f32 %v10799_v50, %v4088_v61  ;;  %v4073_v21 = vadd.f32 %v10791_v29, %v4040_v63  ;;  %4551 = vperm.xlu1 %7542, %v10525_v31   ;;  %v13270_v61 = vmov 6  }
 0x949   : > { %v4090_v38 = vmax.f32 %v4074_v10, 0.0 }
 0x94a   : > { %v10820_v56 = vadd.f32 %v4106_v32, %v10728_v34  ;;  %v4089_v48 = vmax.f32 %v4073_v21, 0.0  ;;  %v4052_v54 = vpop.permute.xlu0 %4051 }
 0x94b   : > { %v4048_v11 = vpop.permute.xlu1 %4047  ;;  %v4108_v36 = vmul.f32 %v10799_v50, %v4090_v38  ;;  %v4076_v30 = vadd.f32 %v10791_v29, %v4052_v54  ;;  %7544 = vset.pattern.permute.xlu0 %v13270_v61 }
 0x94c   : > { %v4107_v44 = vmul.f32 %v10799_v50, %v4089_v48  ;;  %v4075_v46 = vadd.f32 %v10791_v29, %v4048_v11  ;;  %4559 = vperm.xlu1 %7542, %v10537_v55   ;;  %4665 = vperm.xlu0 %7544, %v10495_v19  }
 0x94d   : > { %v10830_v34 = vadd.f32 %v4108_v36, %v10740_v27  ;;  %v4092_v63 = vmax.f32 %v4076_v30, 0.0 }
 0x94e   : > { %v4123_v42 = vadd.f32 %v4107_v44, %v10734_v1  ;;  %v4091_v32 = vmax.f32 %v4075_v46, 0.0 }
 0x94f   : > { %v4056_v10 = vpop.permute.xlu1 %4055  ;;  %v4110_v21 = vmul.f32 %v10799_v50, %v4092_v63  ;;  %v10836_v54 = vpop.permute.xlu0 %4129 }
 0x950   : > { %v4109_v38 = vmul.f32 %v10799_v50, %v4091_v32  ;;  %v4077_v48 = vadd.f32 %v10791_v29, %v4056_v10  ;;  %13271 = vst [vmem:[#allocation37_spill] sm:$0xff] %v10836_v54  ;;  %4567 = vperm.xlu1 %7542, %v10549_v39   ;;  %4677 = vperm.xlu0 %7544, %v10513_v23  }
 0x951   : > { %v10841_v27 = vadd.f32 %v4110_v21, %v10752_v22  ;;  %v13280_v21 = vld [vmem:[#allocation197_spill] sm:$0xff] }
 0x952   : > { %v4125_v1 = vadd.f32 %v4109_v38, %v10746_v28  ;;  %v4093_v11 = vmax.f32 %v4077_v48, 0.0  ;;  %v10873_v38 = vrot.slane %v10700_v47, %v13280_v21 }
 0x953   : > { %v10845_v44 = vpop.permute.xlu0 %4141 }
 0x954   : > { %v4111_v36 = vmul.f32 %v10799_v50, %v4093_v11  ;;  %13272 = vst [vmem:[#allocation93_spill] sm:$0xff] %v10845_v44  ;;  %v10847_v30 = vpop.permute.xlu1 %4133  ;;  %4575 = vperm.xlu1 %7542, %v10561_v26   ;;  %4685 = vperm.xlu0 %7544, %v10525_v31   ;;  %13281 = vst [vmem:[#allocation116_spill] sm:$0xff] %v10873_v38  ;;  %v13283_v50 = vmov 7  }
 0x955   : > { %13273 = vst [vmem:[#allocation171_spill] sm:$0xff] %v10847_v30 }
 0x956   : > { %v4127_v46 = vadd.f32 %v4111_v36, %v10758_v35 }
 0x957   : > { %v10852_v63 = vpop.permute.xlu0 %4149 }
 0x958   : > { %13274 = vst [vmem:[#allocation138_spill] sm:$0xff] %v10852_v63  ;;  %v10854_v32 = vpop.permute.xlu1 %4137  ;;  %4583 = vperm.xlu1 %7542, %v10573_v14   ;;  %4693 = vperm.xlu0 %7544, %v10537_v55  }
 0x959   : > { %13275 = vst [vmem:[#allocation160_spill] sm:$0xff] %v10854_v32 }
 0x95b   : > { %v10858_v28 = vpop.permute.xlu0 %4157 }
 0x95c   : > { %13276 = vst [vmem:[#allocation109_spill] sm:$0xff] %v10858_v28  ;;  %v10860_v22 = vpop.permute.xlu1 %4145  ;;  %4591 = vperm.xlu1 %7542, %v13249_v57   ;;  %4701 = vperm.xlu0 %7544, %v10549_v39  }
 0x95d   : > { %13277 = vst [vmem:[#allocation114_spill] sm:$0xff] %v10860_v22 }
 0x95f   : > { %v10864_v10 = vpop.permute.xlu0 %4165 }
 0x960   : > { %13278 = vst [vmem:[#allocation173_spill] sm:$0xff] %v10864_v10  ;;  %v10866_v35 = vpop.permute.xlu1 %4153  ;;  %7545 = vset.pattern.permute.xlu1 %v13270_v61  ;;  %4709 = vperm.xlu0 %7544, %v10561_v26  }
 0x961   : > { %13279 = vst [vmem:[#allocation140_spill] sm:$0xff] %v10866_v35  ;;  %4669 = vperm.xlu1 %7545, %v10501_v6  }
 0x963   : > { %v4174_v48 = vpop.permute.xlu0 %4173 }
 0x964   : > { %v4162_v11 = vpop.permute.xlu1 %4161  ;;  %v4207_v36 = vadd.f32 %v10873_v38, %v4174_v48  ;;  %4717 = vperm.xlu0 %7544, %v10573_v14  }
 0x965   : > { %v4204_v32 = vadd.f32 %v10873_v38, %v4162_v11  ;;  %4673 = vperm.xlu1 %7545, %v10507_v52  }
 0x966   : > { %v4223_v5 = vmax.f32 %v4207_v36, 0.0 }
 0x967   : > { %v4220_v61 = vmax.f32 %v4204_v32, 0.0  ;;  %v4182_v35 = vpop.permute.xlu0 %4181 }
 0x968   : > { %v4170_v10 = vpop.permute.xlu1 %4169  ;;  %v4241_v22 = vmul.f32 %v10879_v25, %v4223_v5  ;;  %v4209_v63 = vadd.f32 %v10873_v38, %v4182_v35  ;;  %4725 = vperm.xlu0 %7544, %v13249_v57  }
 0x969   : > { %v4238_v28 = vmul.f32 %v10879_v25, %v4220_v61  ;;  %v4206_v48 = vadd.f32 %v10873_v38, %v4170_v10  ;;  %4681 = vperm.xlu1 %7545, %v10519_v51  }
 0x96a   : > { %v10887_v11 = vadd.f32 %v4241_v22, %v4123_v42  ;;  %v4225_v36 = vmax.f32 %v4209_v63, 0.0 }
 0x96b   : > { %v4254_v32 = vadd.f32 %v4238_v28, %v10807_v62  ;;  %v4222_v30 = vmax.f32 %v4206_v48, 0.0  ;;  %v4190_v44 = vpop.permute.xlu0 %4189 }
 0x96c   : > { %v4178_v54 = vpop.permute.xlu1 %4177  ;;  %v4243_v5 = vmul.f32 %v10879_v25, %v4225_v36  ;;  %v4211_v35 = vadd.f32 %v10873_v38, %v4190_v44  ;;  %7547 = vset.pattern.permute.xlu0 %v13283_v50 }
 0x96d   : > { %v4240_v61 = vmul.f32 %v10879_v25, %v4222_v30  ;;  %v4208_v10 = vadd.f32 %v10873_v38, %v4178_v54  ;;  %4689 = vperm.xlu1 %7545, %v10531_v15   ;;  %4803 = vperm.xlu0 %7547, %v10501_v6  }
 0x96e   : > { %v10896_v42 = vadd.f32 %v4243_v5, %v4125_v1  ;;  %v4227_v63 = vmax.f32 %v4211_v35, 0.0 }
 0x96f   : > { %v4256_v62 = vadd.f32 %v4240_v61, %v10820_v56  ;;  %v4224_v28 = vmax.f32 %v4208_v10, 0.0 }
 0x970   : > { %v4186_v22 = vpop.permute.xlu1 %4185  ;;  %v4245_v48 = vmul.f32 %v10879_v25, %v4227_v63  ;;  %v10903_v54 = vpop.permute.xlu0 %4267 }
 0x971   : > { %v4242_v30 = vmul.f32 %v10879_v25, %v4224_v28  ;;  %v4210_v44 = vadd.f32 %v10873_v38, %v4186_v22  ;;  %13284 = vst [vmem:[#allocation161_spill] sm:$0xff] %v10903_v54  ;;  %4697 = vperm.xlu1 %7545, %v10543_v53   ;;  %4815 = vperm.xlu0 %7547, %v10519_v51  }
 0x972   : > { %v10906_v36 = vadd.f32 %v4245_v48, %v4127_v46 }
 0x973   : > { %v4258_v1 = vadd.f32 %v4242_v30, %v10830_v34  ;;  %v4226_v56 = vmax.f32 %v4210_v44, 0.0  ;;  %v13289_v34 = vld [vmem:[#allocation198_spill] sm:$0xff]  ;;  %v10933_v44 = vstv %s6706_s18 }
 0x974   : > { %v10911_v61 = vpop.permute.xlu0 %4279  ;;  %v10926_v28 = vrot.slane %v10700_v47, %v13289_v34  ;;  %13292 = vst [vmem:[#allocation177_spill] sm:$0xff] %v10933_v44 }
 0x975   : > { %v4244_v5 = vmul.f32 %v10879_v25, %v4226_v56  ;;  %13285 = vst [vmem:[#allocation162_spill] sm:$0xff] %v10911_v61  ;;  %v10913_v35 = vpop.permute.xlu1 %4263  ;;  %4705 = vperm.xlu1 %7545, %v10555_v20   ;;  %4823 = vperm.xlu0 %7547, %v10531_v15  }
 0x976   : > { %13286 = vst [vmem:[#allocation163_spill] sm:$0xff] %v10913_v35  ;;  %13290 = vst [vmem:[#allocation165_spill] sm:$0xff] %v10926_v28 }
 0x977   : > { %v4260_v10 = vadd.f32 %v4244_v5, %v10841_v27 }
 0x978   : > { %v10918_v46 = vpop.permute.xlu0 %4287 }
 0x979   : > { %13287 = vst [vmem:[#allocation210_spill] sm:$0xff] %v10918_v46  ;;  %v10920_v63 = vpop.permute.xlu1 %4271  ;;  %4713 = vperm.xlu1 %7545, %v10567_v37   ;;  %4831 = vperm.xlu0 %7547, %v10543_v53  }
 0x97a   : > { %13288 = vst [vmem:[#allocation164_spill] sm:$0xff] %v10920_v63 }
 0x97c   : > { %v4296_v22 = vpop.permute.xlu0 %4295 }
 0x97d   : > { %v10928_v48 = vpop.permute.xlu1 %4275  ;;  %v4338_v27 = vadd.f32 %v10926_v28, %v4296_v22  ;;  %4721 = vperm.xlu1 %7545, %v10579_v4   ;;  %4839 = vperm.xlu0 %7547, %v10555_v20  }
 0x97e   : > { %13291 = vst [vmem:[#allocation31_spill] sm:$0xff] %v10928_v48 }
 0x97f   : > { %v4354_v30 = vmax.f32 %v4338_v27, 0.0 }
 0x980   : > { %v4304_v56 = vpop.permute.xlu0 %4303 }
 0x981   : > { %v10935_v5 = vpop.permute.xlu1 %4283  ;;  %v4372_v63 = vmul.f32 %v10933_v44, %v4354_v30  ;;  %v4340_v46 = vadd.f32 %v10926_v28, %v4304_v56  ;;  %7546 = vset.pattern.permute.xlu1 %v13283_v50  ;;  %4847 = vperm.xlu0 %7547, %v10567_v37  }
 0x982   : > { %13293 = vst [vmem:[#allocation74_spill] sm:$0xff] %v10935_v5  ;;  %4799 = vperm.xlu1 %7546, %v10495_v19  }
 0x983   : > { %v10942_v22 = vadd.f32 %v4372_v63, %v4254_v32  ;;  %v4356_v48 = vmax.f32 %v4340_v46, 0.0  ;;  %v13296_v63 = vmov 8  }
 0x984   : > { %v4312_v35 = vpop.permute.xlu0 %4311 }
 0x985   : > { %v10944_v27 = vpop.permute.xlu1 %4291  ;;  %v4374_v61 = vmul.f32 %v10933_v44, %v4356_v48  ;;  %v4342_v5 = vadd.f32 %v10926_v28, %v4312_v35  ;;  %4855 = vperm.xlu0 %7547, %v10579_v4  }
 0x986   : > { %13294 = vst [vmem:[#allocation121_spill] sm:$0xff] %v10944_v27  ;;  %4807 = vperm.xlu1 %7546, %v10507_v52  }
 0x987   : > { %v10950_v30 = vadd.f32 %v4374_v61, %v4256_v62  ;;  %v4358_v50 = vmax.f32 %v4342_v5, 0.0 }
 0x988   : > { %v4320_v56 = vpop.permute.xlu0 %4319 }
 0x989   : > { %v10952_v25 = vpop.permute.xlu1 %4299  ;;  %v4376_v32 = vmul.f32 %v10933_v44, %v4358_v50  ;;  %v4344_v46 = vadd.f32 %v10926_v28, %v4320_v56  ;;  %7548 = vset.pattern.permute.xlu0 %v13296_v63 }
 0x98a   : > { %13295 = vst [vmem:[#allocation123_spill] sm:$0xff] %v10952_v25  ;;  %4811 = vperm.xlu1 %7546, %v10513_v23   ;;  %4933 = vperm.xlu0 %7548, %v10495_v19  }
 0x98b   : > { %v10958_v48 = vadd.f32 %v4376_v32, %v4258_v1  ;;  %v4360_v35 = vmax.f32 %v4344_v46, 0.0 }
 0x98d   : > { %v4308_v27 = vpop.permute.xlu1 %4307  ;;  %v4378_v62 = vmul.f32 %v10933_v44, %v4360_v35  ;;  %v10963_v5 = vpop.permute.xlu0 %4397 }
 0x98e   : > { %v4341_v61 = vadd.f32 %v10926_v28, %v4308_v27  ;;  %13297 = vst [vmem:[#allocation126_spill] sm:$0xff] %v10963_v5  ;;  %4819 = vperm.xlu1 %7546, %v10525_v31   ;;  %4945 = vperm.xlu0 %7548, %v10513_v23  }
 0x98f   : > { %v10966_v50 = vadd.f32 %v4378_v62, %v4260_v10 }
 0x990   : > { %v4357_v56 = vmax.f32 %v4341_v61, 0.0 }
 0x991   : > { %v4316_v25 = vpop.permute.xlu1 %4315  ;;  %v10971_v46 = vpop.permute.xlu0 %4409 }
 0x992   : > { %v4375_v1 = vmul.f32 %v10933_v44, %v4357_v56  ;;  %v4343_v32 = vadd.f32 %v10926_v28, %v4316_v25  ;;  %13298 = vst [vmem:[#allocation167_spill] sm:$0xff] %v10971_v46  ;;  %4827 = vperm.xlu1 %7546, %v10537_v55   ;;  %4953 = vperm.xlu0 %7548, %v10525_v31  }
 0x994   : > { %v4391_v27 = vadd.f32 %v4375_v1, %v10887_v11  ;;  %v4359_v35 = vmax.f32 %v4343_v32, 0.0 }
 0x995   : > { %v4324_v5 = vpop.permute.xlu1 %4323  ;;  %v10978_v61 = vpop.permute.xlu0 %4417 }
 0x996   : > { %v4377_v10 = vmul.f32 %v10933_v44, %v4359_v35  ;;  %v4345_v62 = vadd.f32 %v10926_v28, %v4324_v5  ;;  %13299 = vst [vmem:[#allocation199_spill] sm:$0xff] %v10978_v61  ;;  %4835 = vperm.xlu1 %7546, %v10549_v39   ;;  %4961 = vperm.xlu0 %7548, %v10537_v55  }
 0x998   : > { %v4393_v25 = vadd.f32 %v4377_v10, %v10896_v42  ;;  %v4361_v56 = vmax.f32 %v4345_v62, 0.0  ;;  %v13304_v42 = vld [vmem:[#allocation200_spill] sm:$0xff] }
 0x999   : > { %v10984_v11 = vpop.permute.xlu0 %4425  ;;  %v10999_v10 = vrot.slane %v10700_v47, %v13304_v42 }
 0x99a   : > { %v4379_v46 = vmul.f32 %v10933_v44, %v4361_v56  ;;  %13300 = vst [vmem:[#allocation220_spill] sm:$0xff] %v10984_v11  ;;  %v10986_v1 = vpop.permute.xlu1 %4401  ;;  %4843 = vperm.xlu1 %7546, %v10561_v26   ;;  %4969 = vperm.xlu0 %7548, %v10549_v39  }
 0x99b   : > { %13301 = vst [vmem:[#allocation90_spill] sm:$0xff] %v10986_v1  ;;  %13305 = vst [vmem:[#allocation168_spill] sm:$0xff] %v10999_v10  ;;  %v11006_v1 = vstv %s6707_s7 }
 0x99c   : > { %v4395_v32 = vadd.f32 %v4379_v46, %v10906_v36  ;;  %13307 = vst [vmem:[#allocation22_spill] sm:$0xff] %v11006_v1 }
 0x99d   : > { %v10991_v5 = vpop.permute.xlu0 %4433 }
 0x99e   : > { %13302 = vst [vmem:[#allocation128_spill] sm:$0xff] %v10991_v5  ;;  %v10993_v35 = vpop.permute.xlu1 %4405  ;;  %4851 = vperm.xlu1 %7546, %v10573_v14   ;;  %4977 = vperm.xlu0 %7548, %v10561_v26  }
 0x99f   : > { %13303 = vst [vmem:[#allocation130_spill] sm:$0xff] %v10993_v35 }
 0x9a1   : > { %v4442_v62 = vpop.permute.xlu0 %4441 }
 0x9a2   : > { %v11001_v56 = vpop.permute.xlu1 %4413  ;;  %v4475_v36 = vadd.f32 %v10999_v10, %v4442_v62  ;;  %4859 = vperm.xlu1 %7546, %v13249_v57   ;;  %4981 = vperm.xlu0 %7548, %v10567_v37  }
 0x9a3   : > { %13306 = vst [vmem:[#allocation203_spill] sm:$0xff] %v11001_v56 }
 0x9a4   : > { %v4491_v46 = vmax.f32 %v4475_v36, 0.0 }
 0x9a5   : > { %v4450_v35 = vpop.permute.xlu0 %4449 }
 0x9a6   : > { %v11008_v5 = vpop.permute.xlu1 %4421  ;;  %v4509_v11 = vmul.f32 %v11006_v1, %v4491_v46  ;;  %v4477_v61 = vadd.f32 %v10999_v10, %v4450_v35  ;;  %7549 = vset.pattern.permute.xlu1 %v13296_v63  ;;  %4993 = vperm.xlu0 %7548, %v13249_v57   ;;  %v13309_v46 = vmov 9  }
 0x9a7   : > { %13308 = vst [vmem:[#allocation170_spill] sm:$0xff] %v11008_v5  ;;  %4937 = vperm.xlu1 %7549, %v10501_v6  }
 0x9a8   : > { %v11015_v62 = vadd.f32 %v4509_v11, %v4391_v27  ;;  %v4493_v56 = vmax.f32 %v4477_v61, 0.0 }
 0x9a9   : > { %v4458_v44 = vpop.permute.xlu0 %4457 }
 0x9aa   : > { %v4430_v36 = vpop.permute.xlu1 %4429  ;;  %v4511_v28 = vmul.f32 %v11006_v1, %v4493_v56  ;;  %v4479_v54 = vadd.f32 %v10999_v10, %v4458_v44  ;;  %7552 = vset.pattern.permute.xlu0 %v13309_v46 }
 0x9ab   : > { %v4472_v5 = vadd.f32 %v10999_v10, %v4430_v36  ;;  %4941 = vperm.xlu1 %7549, %v10507_v52   ;;  %5071 = vperm.xlu0 %7552, %v10501_v6  }
 0x9ac   : > { %v11022_v35 = vadd.f32 %v4511_v28, %v4393_v25  ;;  %v4495_v38 = vmax.f32 %v4479_v54, 0.0 }
 0x9ad   : > { %v4488_v41 = vmax.f32 %v4472_v5, 0.0 }
 0x9ae   : > { %v4438_v27 = vpop.permute.xlu1 %4437  ;;  %v4513_v61 = vmul.f32 %v11006_v1, %v4495_v38  ;;  %v11028_v44 = vpop.permute.xlu0 %4535 }
 0x9af   : > { %v4506_v11 = vmul.f32 %v11006_v1, %v4488_v41  ;;  %v4474_v56 = vadd.f32 %v10999_v10, %v4438_v27  ;;  %13310 = vst [vmem:[#allocation182_spill] sm:$0xff] %v11028_v44  ;;  %4949 = vperm.xlu1 %7549, %v10519_v51   ;;  %5083 = vperm.xlu0 %7552, %v10519_v51  }
 0x9b0   : > { %v11031_v36 = vadd.f32 %v4513_v61, %v4395_v32 }
 0x9b1   : > { %v4522_v28 = vadd.f32 %v4506_v11, %v10942_v22  ;;  %v4490_v25 = vmax.f32 %v4474_v56, 0.0 }
 0x9b2   : > { %v4446_v54 = vpop.permute.xlu1 %4445  ;;  %v11037_v13 = vpop.permute.xlu0 %4547 }
 0x9b3   : > { %v4508_v5 = vmul.f32 %v11006_v1, %v4490_v25  ;;  %v4476_v38 = vadd.f32 %v10999_v10, %v4446_v54  ;;  %13311 = vst [vmem:[#allocation35_spill] sm:$0xff] %v11037_v13  ;;  %4957 = vperm.xlu1 %7549, %v10531_v15   ;;  %5091 = vperm.xlu0 %7552, %v10531_v15   ;;  %v13313_v54 = vld [vmem:[#allocation202_spill] sm:$0xff] }
 0x9b5   : > { %v4524_v41 = vadd.f32 %v4508_v5, %v10950_v30  ;;  %v4492_v27 = vmax.f32 %v4476_v38, 0.0  ;;  %v11051_v30 = vrot.slane %v10700_v47, %v13313_v54 }
 0x9b6   : > { %v4454_v32 = vpop.permute.xlu1 %4453  ;;  %v11044_v11 = vpop.permute.xlu0 %4555 }
 0x9b7   : > { %v4510_v22 = vmul.f32 %v11006_v1, %v4492_v27  ;;  %v4478_v61 = vadd.f32 %v10999_v10, %v4454_v32  ;;  %13312 = vst [vmem:[#allocation25_spill] sm:$0xff] %v11044_v11  ;;  %4965 = vperm.xlu1 %7549, %v10543_v53   ;;  %5103 = vperm.xlu0 %7552, %v10549_v39   ;;  %13314 = vst [vmem:[#allocation172_spill] sm:$0xff] %v11051_v30 }
 0x9b9   : > { %v4526_v56 = vadd.f32 %v4510_v22, %v10958_v48  ;;  %v4494_v25 = vmax.f32 %v4478_v61, 0.0  ;;  %v11060_v22 = vstv %s6708_s28 }
 0x9ba   : > { %v4564_v38 = vpop.permute.xlu0 %4563  ;;  %13316 = vst [vmem:[#allocation207_spill] sm:$0xff] %v11060_v22 }
 0x9bb   : > { %v4512_v5 = vmul.f32 %v11006_v1, %v4494_v25  ;;  %v11054_v44 = vpop.permute.xlu1 %4531  ;;  %v4606_v27 = vadd.f32 %v11051_v30, %v4564_v38  ;;  %4973 = vperm.xlu1 %7549, %v10555_v20   ;;  %5119 = vperm.xlu0 %7552, %v10573_v14  }
 0x9bc   : > { %13315 = vst [vmem:[#allocation184_spill] sm:$0xff] %v11054_v44  ;;  %v13318_v44 = vmov 10  }
 0x9bd   : > { %v4528_v32 = vadd.f32 %v4512_v5, %v10966_v50  ;;  %v4622_v48 = vmax.f32 %v4606_v27, 0.0 }
 0x9be   : > { %v4572_v61 = vpop.permute.xlu0 %4571 }
 0x9bf   : > { %v11062_v11 = vpop.permute.xlu1 %4539  ;;  %v4640_v13 = vmul.f32 %v11060_v22, %v4622_v48  ;;  %v4608_v25 = vadd.f32 %v11051_v30, %v4572_v61  ;;  %7550 = vset.pattern.permute.xlu1 %v13309_v46  ;;  %7556 = vset.pattern.permute.xlu0 %v13318_v44 }
 0x9c0   : > { %13317 = vst [vmem:[#allocation24_spill] sm:$0xff] %v11062_v11  ;;  %5067 = vperm.xlu1 %7550, %v10495_v19   ;;  %5201 = vperm.xlu0 %7556, %v10495_v19  }
 0x9c1   : > { %v11069_v38 = vadd.f32 %v4640_v13, %v4522_v28  ;;  %v4624_v50 = vmax.f32 %v4608_v25, 0.0 }
 0x9c2   : > { %v4580_v5 = vpop.permute.xlu0 %4579 }
 0x9c3   : > { %v11072_v27 = vpop.permute.xlu1 %4543  ;;  %v4642_v11 = vmul.f32 %v11060_v22, %v4624_v50  ;;  %v4610_v48 = vadd.f32 %v11051_v30, %v4580_v5 }
 0x9c4   : > { %13319 = vst [vmem:[#allocation211_spill] sm:$0xff] %v11072_v27  ;;  %5075 = vperm.xlu1 %7550, %v10507_v52   ;;  %5213 = vperm.xlu0 %7556, %v10513_v23  }
 0x9c5   : > { %v11077_v61 = vadd.f32 %v4642_v11, %v4524_v41  ;;  %v4626_v1 = vmax.f32 %v4610_v48, 0.0 }
 0x9c6   : > { %v4588_v10 = vpop.permute.xlu0 %4587 }
 0x9c7   : > { %v4644_v13 = vmul.f32 %v11060_v22, %v4626_v1  ;;  %v4612_v28 = vadd.f32 %v11051_v30, %v4588_v10  ;;  %v11082_v25 = vpop.permute.xlu1 %4551 }
 0x9c8   : > { %13320 = vst [vmem:[#allocation174_spill] sm:$0xff] %v11082_v25  ;;  %5079 = vperm.xlu1 %7550, %v10513_v23   ;;  %5221 = vperm.xlu0 %7556, %v10525_v31  }
 0x9c9   : > { %v11085_v27 = vadd.f32 %v4644_v13, %v4526_v56  ;;  %v4628_v50 = vmax.f32 %v4612_v28, 0.0 }
 0x9cb   : > { %v4646_v41 = vmul.f32 %v11060_v22, %v4628_v50  ;;  %v11089_v11 = vpop.permute.xlu1 %4559  ;;  %v11091_v5 = vpop.permute.xlu0 %4665 }
 0x9cc   : > { %13321 = vst [vmem:[#allocation176_spill] sm:$0xff] %v11089_v11  ;;  %13322 = vst [vmem:[#allocation213_spill] sm:$0xff] %v11091_v5  ;;  %5087 = vperm.xlu1 %7550, %v10525_v31   ;;  %5229 = vperm.xlu0 %7556, %v10537_v55  }
 0x9cd   : > { %v11094_v1 = vadd.f32 %v4646_v41, %v4528_v32 }
 0x9cf   : > { %v11097_v10 = vpop.permute.xlu1 %4567  ;;  %v11099_v48 = vpop.permute.xlu0 %4677 }
 0x9d0   : > { %13323 = vst [vmem:[#allocation186_spill] sm:$0xff] %v11097_v10  ;;  %13324 = vst [vmem:[#allocation212_spill] sm:$0xff] %v11099_v48  ;;  %5095 = vperm.xlu1 %7550, %v10537_v55   ;;  %5233 = vperm.xlu0 %7556, %v10543_v53  }
 0x9d3   : > { %v4576_v56 = vpop.permute.xlu1 %4575  ;;  %v11103_v13 = vpop.permute.xlu0 %4685 }
 0x9d4   : > { %13325 = vst [vmem:[#allocation27_spill] sm:$0xff] %v11103_v13  ;;  %v4609_v28 = vadd.f32 %v11051_v30, %v4576_v56  ;;  %7551 = vset.pattern.permute.xlu1 %v13296_v63  ;;  %5245 = vperm.xlu0 %7556, %v10561_v26  }
 0x9d5   : > { %4985 = vperm.xlu1 %7551, %v10573_v14  }
 0x9d6   : > { %v4625_v32 = vmax.f32 %v4609_v28, 0.0 }
 0x9d7   : > { %v4584_v50 = vpop.permute.xlu1 %4583  ;;  %v11111_v10 = vpop.permute.xlu0 %4693 }
 0x9d8   : > { %v4643_v41 = vmul.f32 %v11060_v22, %v4625_v32  ;;  %v4611_v48 = vadd.f32 %v11051_v30, %v4584_v50  ;;  %13326 = vst [vmem:[#allocation43_spill] sm:$0xff] %v11111_v10  ;;  %5249 = vperm.xlu0 %7556, %v10567_v37   ;;  %v13328_v10 = vld [vmem:[#allocation204_spill] sm:$0xff] }
 0x9d9   : > { %4989 = vperm.xlu1 %7551, %v10579_v4  }
 0x9da   : > { %v4659_v56 = vadd.f32 %v4643_v41, %v11015_v62  ;;  %v4627_v13 = vmax.f32 %v4611_v48, 0.0  ;;  %v11126_v62 = vrot.slane %v10700_v47, %v13328_v10 }
 0x9db   : > { %v4592_v63 = vpop.permute.xlu1 %4591  ;;  %v11118_v11 = vpop.permute.xlu0 %4701 }
 0x9dc   : > { %v4645_v5 = vmul.f32 %v11060_v22, %v4627_v13  ;;  %v4613_v28 = vadd.f32 %v11051_v30, %v4592_v63  ;;  %13327 = vst [vmem:[#allocation45_spill] sm:$0xff] %v11118_v11  ;;  %5261 = vperm.xlu0 %7556, %v13249_v57   ;;  %13329 = vst [vmem:[#allocation52_spill] sm:$0xff] %v11126_v62  ;;  %v13331_v11 = vmov 11  }
 0x9dd   : > { %7553 = vset.pattern.permute.xlu1 %v13309_v46 }
 0x9de   : > { %v4661_v32 = vadd.f32 %v4645_v5, %v11022_v35  ;;  %v4629_v50 = vmax.f32 %v4613_v28, 0.0  ;;  %5099 = vperm.xlu1 %7553, %v10543_v53   ;;  %v11136_v5 = vstv %s6709_s12 }
 0x9df   : > { %v4710_v13 = vpop.permute.xlu0 %4709  ;;  %13332 = vst [vmem:[#allocation188_spill] sm:$0xff] %v11136_v5 }
 0x9e0   : > { %v4647_v48 = vmul.f32 %v11060_v22, %v4629_v50  ;;  %v11129_v41 = vpop.permute.xlu1 %4669  ;;  %v4743_v63 = vadd.f32 %v11126_v62, %v4710_v13  ;;  %7560 = vset.pattern.permute.xlu0 %v13331_v11 }
 0x9e1   : > { %13330 = vst [vmem:[#allocation47_spill] sm:$0xff] %v11129_v41  ;;  %5339 = vperm.xlu0 %7560, %v10501_v6  }
 0x9e2   : > { %v4663_v25 = vadd.f32 %v4647_v48, %v11031_v36  ;;  %5107 = vperm.xlu1 %7553, %v10555_v20   ;;  %v4759_v35 = vmax.f32 %v4743_v63, 0.0 }
 0x9e3   : > { %v4718_v28 = vpop.permute.xlu0 %4717 }
 0x9e4   : > { %v11138_v30 = vpop.permute.xlu1 %4673  ;;  %v4777_v50 = vmul.f32 %v11136_v5, %v4759_v35  ;;  %v4745_v41 = vadd.f32 %v11126_v62, %v4718_v28 }
 0x9e5   : > { %13333 = vst [vmem:[#allocation42_spill] sm:$0xff] %v11138_v30  ;;  %5351 = vperm.xlu0 %7560, %v10519_v51  }
 0x9e6   : > { %5111 = vperm.xlu1 %7553, %v10561_v26   ;;  %v11144_v13 = vadd.f32 %v4777_v50, %v4659_v56  ;;  %v4761_v36 = vmax.f32 %v4745_v41, 0.0 }
 0x9e7   : > { %v4726_v48 = vpop.permute.xlu0 %4725 }
 0x9e8   : > { %v11146_v22 = vpop.permute.xlu1 %4681  ;;  %v4779_v63 = vmul.f32 %v11136_v5, %v4761_v36  ;;  %v4747_v24 = vadd.f32 %v11126_v62, %v4726_v48 }
 0x9e9   : > { %13334 = vst [vmem:[#allocation49_spill] sm:$0xff] %v11146_v22  ;;  %5359 = vperm.xlu0 %7560, %v10531_v15  }
 0x9ea   : > { %7554 = vset.pattern.permute.xlu1 %v13318_v44  ;;  %v11152_v35 = vadd.f32 %v4779_v63, %v4661_v32  ;;  %v4763_v28 = vmax.f32 %v4747_v24, 0.0 }
 0x9eb   : > { %5205 = vperm.xlu1 %7554, %v10501_v6  }
 0x9ec   : > { %v11155_v30 = vpop.permute.xlu1 %4689  ;;  %v4781_v56 = vmul.f32 %v11136_v5, %v4763_v28  ;;  %v11158_v41 = vpop.permute.xlu0 %4803 }
 0x9ed   : > { %13335 = vst [vmem:[#allocation124_spill] sm:$0xff] %v11155_v30  ;;  %13336 = vst [vmem:[#allocation178_spill] sm:$0xff] %v11158_v41  ;;  %5371 = vperm.xlu0 %7560, %v10549_v39  }
 0x9ee   : > { %v11161_v50 = vadd.f32 %v4781_v56, %v4663_v25  ;;  %v13339_v56 = vmov 12  }
 0x9ef   : > { %5209 = vperm.xlu1 %7554, %v10507_v52  }
 0x9f0   : > { %v4698_v36 = vpop.permute.xlu1 %4697  ;;  %v11165_v32 = vpop.permute.xlu0 %4815 }
 0x9f1   : > { %v4740_v48 = vadd.f32 %v11126_v62, %v4698_v36  ;;  %13337 = vst [vmem:[#allocation44_spill] sm:$0xff] %v11165_v32  ;;  %5387 = vperm.xlu0 %7560, %v10573_v14  }
 0x9f3   : > { %v4756_v24 = vmax.f32 %v4740_v48, 0.0  ;;  %5217 = vperm.xlu1 %7554, %v10519_v51   ;;  %v13340_v48 = vld [vmem:[#allocation205_spill] sm:$0xff] }
 0x9f4   : > { %v4706_v63 = vpop.permute.xlu1 %4705  ;;  %v11171_v25 = vpop.permute.xlu0 %4823  ;;  %v11179_v32 = vrot.slane %v10700_v47, %v13340_v48 }
 0x9f5   : > { %v4774_v28 = vmul.f32 %v11136_v5, %v4756_v24  ;;  %v4742_v41 = vadd.f32 %v11126_v62, %v4706_v63  ;;  %13338 = vst [vmem:[#allocation180_spill] sm:$0xff] %v11171_v25  ;;  %7564 = vset.pattern.permute.xlu0 %v13339_v56 }
 0x9f6   : > { %5469 = vperm.xlu0 %7564, %v10495_v19   ;;  %13341 = vst [vmem:[#allocation135_spill] sm:$0xff] %v11179_v32 }
 0x9f7   : > { %v4790_v30 = vadd.f32 %v4774_v28, %v11069_v38  ;;  %v4758_v36 = vmax.f32 %v4742_v41, 0.0  ;;  %5225 = vperm.xlu1 %7554, %v10531_v15   ;;  %v11188_v28 = vstv %s6710_s20 }
 0x9f8   : > { %v4714_v22 = vpop.permute.xlu1 %4713  ;;  %v4832_v43 = vpop.permute.xlu0 %4831  ;;  %13342 = vst [vmem:[#allocation217_spill] sm:$0xff] %v11188_v28 }
 0x9f9   : > { %v4776_v24 = vmul.f32 %v11136_v5, %v4758_v36  ;;  %v4744_v63 = vadd.f32 %v11126_v62, %v4714_v22  ;;  %v4874_v25 = vadd.f32 %v11179_v32, %v4832_v43 }
 0x9fa   : > { %5481 = vperm.xlu0 %7564, %v10513_v23  }
 0x9fb   : > { %v4792_v10 = vadd.f32 %v4776_v24, %v11077_v61  ;;  %v4760_v38 = vmax.f32 %v4744_v63, 0.0  ;;  %7555 = vset.pattern.permute.xlu1 %v13309_v46  ;;  %v4890_v41 = vmax.f32 %v4874_v25, 0.0 }
 0x9fc   : > { %5115 = vperm.xlu1 %7555, %v10567_v37   ;;  %v4722_v47 = vpop.permute.xlu1 %4721  ;;  %v4840_v48 = vpop.permute.xlu0 %4839 }
 0x9fd   : > { %v4778_v36 = vmul.f32 %v11136_v5, %v4760_v38  ;;  %v4746_v22 = vadd.f32 %v11126_v62, %v4722_v47  ;;  %v4908_v43 = vmul.f32 %v11188_v28, %v4890_v41  ;;  %v4876_v61 = vadd.f32 %v11179_v32, %v4840_v48 }
 0x9fe   : > { %5489 = vperm.xlu0 %7564, %v10525_v31  }
 0x9ff   : > { %v4794_v24 = vadd.f32 %v4778_v36, %v11085_v27  ;;  %v4762_v63 = vmax.f32 %v4746_v22, 0.0  ;;  %v11196_v46 = vadd.f32 %v4908_v43, %v4790_v30  ;;  %v4892_v25 = vmax.f32 %v4876_v61, 0.0 }
 0xa00   : > { %5123 = vperm.xlu1 %7555, %v10579_v4   ;;  %v4848_v38 = vpop.permute.xlu0 %4847 }
 0xa01   : > { %13343 = vst [vmem:[#allocation51_spill] sm:$0xff] %v11196_v46  ;;  %v4780_v9 = vmul.f32 %v11136_v5, %v4762_v63  ;;  %v11200_v60 = vpop.permute.xlu1 %4799  ;;  %v4910_v47 = vmul.f32 %v11188_v28, %v4892_v25  ;;  %v4878_v41 = vadd.f32 %v11179_v32, %v4848_v38 }
 0xa02   : > { %5497 = vperm.xlu0 %7564, %v10537_v55  }
 0xa03   : > { %v4796_v48 = vadd.f32 %v4780_v9, %v11094_v1  ;;  %v11206_v27 = vadd.f32 %v4910_v47, %v4792_v10  ;;  %v4894_v30 = vmax.f32 %v4878_v41, 0.0 }
 0xa04   : > { %5127 = vperm.xlu1 %7555, %v13249_v57   ;;  %v4856_v36 = vpop.permute.xlu0 %4855 }
 0xa05   : > { %13344 = vst [vmem:[#allocation214_spill] sm:$0xff] %v11206_v27  ;;  %v11209_v22 = vpop.permute.xlu1 %4807  ;;  %v4912_v43 = vmul.f32 %v11188_v28, %v4894_v30  ;;  %v4880_v61 = vadd.f32 %v11179_v32, %v4856_v36 }
 0xa06   : > { %13345 = vst [vmem:[#allocation63_spill] sm:$0xff] %v11209_v22  ;;  %5501 = vperm.xlu0 %7564, %v10543_v53  }
 0xa07   : > { %v11214_v63 = vadd.f32 %v4912_v43, %v4794_v24  ;;  %v4896_v25 = vmax.f32 %v4880_v61, 0.0  ;;  %v13355_v43 = vmov 13  }
 0xa08   : > { %7557 = vset.pattern.permute.xlu1 %v13318_v44 }
 0xa09   : > { %13346 = vst [vmem:[#allocation46_spill] sm:$0xff] %v11214_v63  ;;  %5237 = vperm.xlu1 %7557, %v10549_v39   ;;  %v11218_v9 = vpop.permute.xlu1 %4811  ;;  %v4914_v1 = vmul.f32 %v11188_v28, %v4896_v25  ;;  %v11221_v10 = vpop.permute.xlu0 %4933 }
 0xa0a   : > { %13347 = vst [vmem:[#allocation209_spill] sm:$0xff] %v11221_v10  ;;  %5513 = vperm.xlu0 %7564, %v10561_v26  }
 0xa0b   : > { %v11224_v38 = vadd.f32 %v4914_v1, %v4796_v48 }
 0xa0d   : > { %13348 = vst [vmem:[#allocation89_spill] sm:$0xff] %v11224_v38  ;;  %5241 = vperm.xlu1 %7557, %v10555_v20   ;;  %v11227_v47 = vpop.permute.xlu1 %4819  ;;  %v11229_v24 = vpop.permute.xlu0 %4945 }
 0xa0e   : > { %13349 = vst [vmem:[#allocation191_spill] sm:$0xff] %v11227_v47  ;;  %13350 = vst [vmem:[#allocation192_spill] sm:$0xff] %v11229_v24  ;;  %5517 = vperm.xlu0 %7564, %v10567_v37  }
 0xa11   : > { %7558 = vset.pattern.permute.xlu1 %v13331_v11  ;;  %v11233_v41 = vpop.permute.xlu1 %4827  ;;  %v11235_v30 = vpop.permute.xlu0 %4953 }
 0xa12   : > { %13351 = vst [vmem:[#allocation193_spill] sm:$0xff] %v11233_v41  ;;  %13352 = vst [vmem:[#allocation54_spill] sm:$0xff] %v11235_v30  ;;  %5335 = vperm.xlu1 %7558, %v10495_v19   ;;  %5529 = vperm.xlu0 %7564, %v13249_v57  }
 0xa15   : > { %v11239_v48 = vpop.permute.xlu1 %4835  ;;  %v11241_v36 = vpop.permute.xlu0 %4961 }
 0xa16   : > { %13353 = vst [vmem:[#allocation55_spill] sm:$0xff] %v11239_v48  ;;  %13354 = vst [vmem:[#allocation96_spill] sm:$0xff] %v11241_v36  ;;  %5343 = vperm.xlu1 %7558, %v10507_v52   ;;  %7568 = vset.pattern.permute.xlu0 %v13355_v43 }
 0xa17   : > { %5607 = vperm.xlu0 %7568, %v10501_v6  }
 0xa19   : > { %v4844_v61 = vpop.permute.xlu1 %4843  ;;  %v11247_v1 = vpop.permute.xlu0 %4969 }
 0xa1a   : > { %v4877_v25 = vadd.f32 %v11179_v32, %v4844_v61  ;;  %13356 = vst [vmem:[#allocation48_spill] sm:$0xff] %v11247_v1  ;;  %5347 = vperm.xlu1 %7558, %v10513_v23  }
 0xa1b   : > { %5619 = vperm.xlu0 %7568, %v10519_v51  }
 0xa1c   : > { %v4893_v22 = vmax.f32 %v4877_v25, 0.0 }
 0xa1d   : > { %v4852_v38 = vpop.permute.xlu1 %4851  ;;  %v11253_v36 = vpop.permute.xlu0 %4977 }
 0xa1e   : > { %v4911_v27 = vmul.f32 %v11188_v28, %v4893_v22  ;;  %v4879_v63 = vadd.f32 %v11179_v32, %v4852_v38  ;;  %13357 = vst [vmem:[#allocation194_spill] sm:$0xff] %v11253_v36  ;;  %5355 = vperm.xlu1 %7558, %v10525_v31   ;;  %v13413_v36 = vld [vmem:[#allocation138_spill] sm:$0xff] }
 0xa1f   : > { %5627 = vperm.xlu0 %7568, %v10531_v15  }
 0xa20   : > { %v11257_v48 = vadd.f32 %v4911_v27, %v11144_v13  ;;  %v4895_v61 = vmax.f32 %v4879_v63, 0.0 }
 0xa21   : > { %v4860_v1 = vpop.permute.xlu1 %4859  ;;  %v11262_v41 = vpop.permute.xlu0 %4981 }
 0xa22   : > { %13358 = vst [vmem:[#allocation195_spill] sm:$0xff] %v11257_v48  ;;  %v4913_v25 = vmul.f32 %v11188_v28, %v4895_v61  ;;  %v4881_v30 = vadd.f32 %v11179_v32, %v4860_v1  ;;  %13359 = vst [vmem:[#allocation56_spill] sm:$0xff] %v11262_v41  ;;  %5363 = vperm.xlu1 %7558, %v10537_v55   ;;  %v13366_v61 = vmov 14  }
 0xa23   : > { %5639 = vperm.xlu0 %7568, %v10549_v39  }
 0xa24   : > { %v11266_v22 = vadd.f32 %v4913_v25, %v11152_v35  ;;  %v4897_v38 = vmax.f32 %v4881_v30, 0.0 }
 0xa25   : > { %v11270_v27 = vpop.permute.xlu0 %4993 }
 0xa26   : > { %13360 = vst [vmem:[#allocation158_spill] sm:$0xff] %v11266_v22  ;;  %v4915_v13 = vmul.f32 %v11188_v28, %v4897_v38  ;;  %13361 = vst [vmem:[#allocation60_spill] sm:$0xff] %v11270_v27  ;;  %7559 = vset.pattern.permute.xlu1 %v13318_v44  ;;  %v11273_v63 = vpop.permute.xlu1 %4937  ;;  %v13422_v22 = vld [vmem:[#allocation119_spill] sm:$0xff] }
 0xa27   : > { %13362 = vst [vmem:[#allocation62_spill] sm:$0xff] %v11273_v63  ;;  %5253 = vperm.xlu1 %7559, %v10573_v14   ;;  %5655 = vperm.xlu0 %7568, %v10573_v14  }
 0xa28   : > { %v11277_v1 = vadd.f32 %v4915_v13, %v11161_v50 }
 0xa2a   : > { %13363 = vst [vmem:[#allocation144_spill] sm:$0xff] %v11277_v1  ;;  %v11280_v35 = vpop.permute.xlu1 %4941  ;;  %v11282_v30 = vpop.permute.xlu0 %5071 }
 0xa2b   : > { %13364 = vst [vmem:[#allocation50_spill] sm:$0xff] %v11280_v35  ;;  %13365 = vst [vmem:[#allocation58_spill] sm:$0xff] %v11282_v30  ;;  %5257 = vperm.xlu1 %7559, %v10579_v4   ;;  %7572 = vset.pattern.permute.xlu0 %v13366_v61 }
 0xa2c   : > { %5737 = vperm.xlu0 %7572, %v10495_v19  }
 0xa2e   : > { %v11287_v44 = vpop.permute.xlu1 %4949  ;;  %v11289_v25 = vpop.permute.xlu0 %5083 }
 0xa2f   : > { %13367 = vst [vmem:[#allocation65_spill] sm:$0xff] %v11287_v44  ;;  %13368 = vst [vmem:[#allocation66_spill] sm:$0xff] %v11289_v25  ;;  %7561 = vset.pattern.permute.xlu1 %v13331_v11  ;;  %v13381_v25 = vmov 15   ;;  %v3931_v44 = vadd.f32 %v10708_v49, %v10684_v58  ;;  %v11397_v58 = vrot.slane %v10797_v33, %v13264_v59  ;;  %v11415_v59 = vrot.slane %v10797_v33, %v13304_v42 }
 0xa30   : > { %5367 = vperm.xlu1 %7561, %v10543_v53   ;;  %5749 = vperm.xlu0 %7572, %v10513_v23  }
 0xa31   : > { %13394 = vst [vmem:[#allocation73_spill] sm:$0xff] %v11415_v59  ;;  %v13398_v59 = vld [vmem:[#allocation32_spill] sm:$0xff] }
 0xa32   : > { %v11294_v50 = vpop.permute.xlu1 %4957  ;;  %v11296_v38 = vpop.permute.xlu0 %5091 }
 0xa33   : > { %13369 = vst [vmem:[#allocation201_spill] sm:$0xff] %v11294_v50  ;;  %13370 = vst [vmem:[#allocation38_spill] sm:$0xff] %v11296_v38 }
 0xa34   : > { %5375 = vperm.xlu1 %7561, %v10555_v20   ;;  %5757 = vperm.xlu0 %7572, %v10525_v31  }
 0xa36   : > { %v11300_v13 = vpop.permute.xlu1 %4965  ;;  %v11302_v35 = vpop.permute.xlu0 %5103 }
 0xa37   : > { %13371 = vst [vmem:[#allocation53_spill] sm:$0xff] %v11302_v35 }
 0xa38   : > { %5379 = vperm.xlu1 %7561, %v10561_v26   ;;  %5765 = vperm.xlu0 %7572, %v10537_v55  }
 0xa3a   : > { %v11306_v30 = vpop.permute.xlu1 %4973  ;;  %v11308_v63 = vpop.permute.xlu0 %5119 }
 0xa3b   : > { %13372 = vst [vmem:[#allocation68_spill] sm:$0xff] %v11306_v30 }
 0xa3c   : > { %7562 = vset.pattern.permute.xlu1 %v13339_v56  ;;  %5769 = vperm.xlu0 %7572, %v10543_v53  }
 0xa3d   : > { %5473 = vperm.xlu1 %7562, %v10501_v6  }
 0xa3f   : > { %v11313_v1 = vpop.permute.xlu1 %5067  ;;  %v11315_v27 = vpop.permute.xlu0 %5201 }
 0xa40   : > { %13373 = vst [vmem:[#allocation70_spill] sm:$0xff] %v11313_v1  ;;  %13374 = vst [vmem:[#allocation108_spill] sm:$0xff] %v11315_v27  ;;  %5781 = vperm.xlu0 %7572, %v10561_v26  }
 0xa41   : > { %5477 = vperm.xlu1 %7562, %v10507_v52  }
 0xa43   : > { %v11319_v35 = vpop.permute.xlu1 %5075  ;;  %v11321_v38 = vpop.permute.xlu0 %5213 }
 0xa44   : > { %13375 = vst [vmem:[#allocation111_spill] sm:$0xff] %v11319_v35  ;;  %13376 = vst [vmem:[#allocation72_spill] sm:$0xff] %v11321_v38  ;;  %5785 = vperm.xlu0 %7572, %v10567_v37  }
 0xa45   : > { %5485 = vperm.xlu1 %7562, %v10519_v51  }
 0xa47   : > { %v11325_v30 = vpop.permute.xlu1 %5079  ;;  %v11327_v41 = vpop.permute.xlu0 %5221 }
 0xa48   : > { %13377 = vst [vmem:[#allocation75_spill] sm:$0xff] %v11325_v30  ;;  %13378 = vst [vmem:[#allocation113_spill] sm:$0xff] %v11327_v41  ;;  %5797 = vperm.xlu0 %7572, %v13249_v57  }
 0xa49   : > { %5493 = vperm.xlu1 %7562, %v10531_v15  }
 0xa4b   : > { %v11331_v27 = vpop.permute.xlu1 %5087  ;;  %v11333_v1 = vpop.permute.xlu0 %5229 }
 0xa4c   : > { %13379 = vst [vmem:[#allocation77_spill] sm:$0xff] %v11331_v27  ;;  %13380 = vst [vmem:[#allocation69_spill] sm:$0xff] %v11333_v1  ;;  %7576 = vset.pattern.permute.xlu0 %v13381_v25 }
 0xa4d   : > { %7563 = vset.pattern.permute.xlu1 %v13331_v11  ;;  %5875 = vperm.xlu0 %7576, %v10501_v6  }
 0xa4e   : > { %5383 = vperm.xlu1 %7563, %v10567_v37  }
 0xa4f   : > { %v11339_v35 = vpop.permute.xlu1 %5095  ;;  %v11341_v30 = vpop.permute.xlu0 %5233 }
 0xa50   : > { %13382 = vst [vmem:[#allocation79_spill] sm:$0xff] %v11339_v35  ;;  %13383 = vst [vmem:[#allocation81_spill] sm:$0xff] %v11341_v30 }
 0xa51   : > { %5887 = vperm.xlu0 %7576, %v10519_v51  }
 0xa52   : > { %5391 = vperm.xlu1 %7563, %v10579_v4  }
 0xa53   : > { %v11349_v1 = vpop.permute.xlu0 %5245 }
 0xa54   : > { %v11345_v41 = vpop.permute.xlu1 %4985  ;;  %13384 = vst [vmem:[#allocation142_spill] sm:$0xff] %v11349_v1  ;;  %v11387_v1 = vrot.slane %v10797_v33, %v13254_v17  ;;  %v3935_v17 = vadd.f32 %v10708_v49, %v10704_v7 }
 0xa55   : > { %5895 = vperm.xlu0 %7576, %v10531_v15  }
 0xa56   : > { %5395 = vperm.xlu1 %7563, %v13249_v57   ;;  %v13414_v57 = vld [vmem:[#allocation109_spill] sm:$0xff] }
 0xa57   : > { %v11358_v27 = vpop.permute.xlu0 %5249 }
 0xa58   : > { %v11351_v11 = vpop.permute.xlu1 %4989  ;;  %13386 = vst [vmem:[#allocation115_spill] sm:$0xff] %v11358_v27  ;;  %v3928_v27 = vadd.f32 %v10708_v49, %v10672_v0  ;;  %v3933_v0 = vadd.f32 %v10708_v49, %v10693_v12  ;;  %v11405_v12 = vrot.slane %v10797_v33, %v13280_v21 }
 0xa59   : > { %13385 = vst [vmem:[#allocation145_spill] sm:$0xff] %v11351_v11  ;;  %5907 = vperm.xlu0 %7576, %v10549_v39  }
 0xa5a   : > { %7565 = vset.pattern.permute.xlu1 %v13339_v56  ;;  %13393 = vst [vmem:[#allocation98_spill] sm:$0xff] %v11405_v12  ;;  %v3949_v42 = vmax.f32 %v3933_v0, 0.0  ;;  %v13421_v12 = vld [vmem:[#allocation165_spill] sm:$0xff] }
 0xa5b   : > { %5505 = vperm.xlu1 %7565, %v10549_v39   ;;  %v11366_v11 = vpop.permute.xlu0 %5261  ;;  %v13402_v39 = vld [vmem:[#allocation88_spill] sm:$0xff] }
 0xa5c   : > { %13388 = vst [vmem:[#allocation95_spill] sm:$0xff] %v11366_v11  ;;  %v3944_v11 = vmax.f32 %v3928_v27, 0.0  ;;  %v4068_v0 = vadd.f32 %v10791_v29, %v13402_v39  ;;  %v13406_v39 = vld [vmem:[#allocation26_spill] sm:$0xff] }
 0xa5d   : > { %v11356_v35 = vpop.permute.xlu1 %5099  ;;  %5919 = vperm.xlu0 %7576, %v10567_v37  }
 0xa5e   : > { %v11425_v21 = vmul.f32 %v10713_v18, %v3944_v11 }
 0xa5f   : > { %5509 = vperm.xlu1 %7565, %v10555_v20  }
 0xa60   : > { %v11374_v50 = vpop.permute.xlu0 %5339 }
 0xa61   : > { %v11362_v38 = vpop.permute.xlu1 %5107  ;;  %5927 = vperm.xlu0 %7576, %v10579_v4   ;;  %13390 = vst [vmem:[#allocation148_spill] sm:$0xff] %v11374_v50  ;;  %v3934_v50 = vadd.f32 %v10708_v49, %v10698_v8  ;;  %v3937_v8 = vadd.f32 %v10708_v49, %v10717_v40 }
 0xa62   : > { %13387 = vst [vmem:[#allocation147_spill] sm:$0xff] %v11362_v38  ;;  %v3929_v38 = vadd.f32 %v10708_v49, %v10676_v16  ;;  %v4063_v16 = vadd.f32 %v10791_v29, %v10762_v3  ;;  %v11411_v3 = vrot.slane %v10797_v33, %v13289_v34  ;;  %v4065_v34 = vadd.f32 %v10791_v29, %v10770_v2 }
 0xa63   : > { %7566 = vset.pattern.permute.xlu1 %v13355_v43  ;;  %v3953_v2 = vmax.f32 %v3937_v8, 0.0  ;;  %v3967_v8 = vmul.f32 %v10713_v18, %v3949_v42 }
 0xa64   : > { %5603 = vperm.xlu1 %7566, %v10495_v19   ;;  %v3932_v19 = vadd.f32 %v10708_v49, %v10688_v45  ;;  %v3945_v45 = vmax.f32 %v3929_v38, 0.0  ;;  %v11421_v7 = vpop.permute.xlu0 %5351  ;;  %v13397_v38 = vld [vmem:[#allocation110_spill] sm:$0xff]  ;;  %v3950_v49 = vmax.f32 %v3934_v50, 0.0 }
 0xa65   : > { %v11369_v25 = vpop.permute.xlu1 %5111  ;;  %13396 = vst [vmem:[#allocation149_spill] sm:$0xff] %v11421_v7  ;;  %v3951_v7 = vmax.f32 %v3935_v17, 0.0  ;;  %v13403_v50 = vld [vmem:[#allocation206_spill] sm:$0xff] }
 0xa66   : > { %13389 = vst [vmem:[#allocation71_spill] sm:$0xff] %v11369_v25  ;;  %v3948_v40 = vmax.f32 %v3932_v19, 0.0  ;;  %v13400_v19 = vld [vmem:[#allocation204_spill] sm:$0xff] }
 0xa67   : > { %v11439_v46 = vrot.slane %v10797_v33, %v13400_v19 }
 0xa68   : > { %5611 = vperm.xlu1 %7566, %v10507_v52  }
 0xa69   : > { %13401 = vst [vmem:[#allocation76_spill] sm:$0xff] %v11439_v46 }
 0xa6a   : > { %v11376_v48 = vpop.permute.xlu1 %5205 }
 0xa6b   : > { %13391 = vst [vmem:[#allocation83_spill] sm:$0xff] %v11376_v48  ;;  %v3947_v48 = vmax.f32 %v3931_v44, 0.0  ;;  %v11419_v44 = vrot.slane %v10797_v33, %v13313_v54  ;;  %v4067_v54 = vadd.f32 %v10791_v29, %v13398_v59  ;;  %v3968_v33 = vmul.f32 %v10713_v18, %v3950_v49 }
 0xa6c   : > { %5615 = vperm.xlu1 %7566, %v10513_v23   ;;  %v4079_v23 = vmax.f32 %v4063_v16, 0.0  ;;  %v4069_v16 = vadd.f32 %v10791_v29, %v13403_v50  ;;  %v11454_v50 = vpop.permute.xlu0 %5359  ;;  %v3971_v49 = vmul.f32 %v10713_v18, %v3953_v2 }
 0xa6d   : > { %13395 = vst [vmem:[#allocation118_spill] sm:$0xff] %v11419_v44  ;;  %v3965_v11 = vmul.f32 %v10713_v18, %v3947_v48  ;;  %v4081_v48 = vmax.f32 %v4065_v34, 0.0  ;;  %v4083_v25 = vmax.f32 %v4067_v54, 0.0  ;;  %13407 = vst [vmem:[#allocation120_spill] sm:$0xff] %v11454_v50 }
 0xa6e   : > { %v11399_v27 = vpop.permute.xlu1 %5209  ;;  %v4097_v46 = vmul.f32 %v13406_v39, %v4079_v23  ;;  %v4085_v23 = vmax.f32 %v4069_v16, 0.0 }
 0xa6f   : > { %13392 = vst [vmem:[#allocation117_spill] sm:$0xff] %v11399_v27  ;;  %v4066_v27 = vadd.f32 %v10791_v29, %v13397_v38  ;;  %v13404_v38 = vld [vmem:[#allocation136_spill] sm:$0xff]  ;;  %v4099_v50 = vmul.f32 %v13406_v39, %v4081_v48 }
 0xa70   : > { %5623 = vperm.xlu1 %7566, %v10525_v31   ;;  %v3963_v31 = vmul.f32 %v10713_v18, %v3945_v45  ;;  %v4071_v59 = vadd.f32 %v10791_v29, %v13404_v38  ;;  %v3966_v45 = vmul.f32 %v10713_v18, %v3948_v40  ;;  %v3969_v38 = vmul.f32 %v10713_v18, %v3951_v7  ;;  %v13410_v40 = vld [vmem:[#allocation116_spill] sm:$0xff]  ;;  %v13416_v18 = vld [vmem:[#allocation173_spill] sm:$0xff] }
 0xa71   : > { %v4082_v17 = vmax.f32 %v4066_v27, 0.0  ;;  %v13411_v27 = vld [vmem:[#allocation93_spill] sm:$0xff]  ;;  %v4203_v2 = vadd.f32 %v13410_v40, %v13414_v57 }
 0xa72   : > { %v11433_v44 = vpop.permute.xlu1 %5217  ;;  %v4199_v30 = vadd.f32 %v13410_v40, %v13411_v27  ;;  %v4087_v54 = vmax.f32 %v4071_v59, 0.0  ;;  %v4113_v27 = vadd.f32 %v4097_v46, %v3963_v31  ;;  %v4103_v31 = vmul.f32 %v13406_v39, %v4085_v23 }
 0xa73   : > { %13399 = vst [vmem:[#allocation85_spill] sm:$0xff] %v11433_v44  ;;  %v13405_v44 = vld [vmem:[#allocation112_spill] sm:$0xff]  ;;  %v4100_v7 = vmul.f32 %v13406_v39, %v4082_v17  ;;  %v4205_v17 = vadd.f32 %v13410_v40, %v13416_v18 }
 0xa74   : > { %5631 = vperm.xlu1 %7566, %v10537_v55   ;;  %v4062_v19 = vadd.f32 %v10791_v29, %v13405_v44  ;;  %v13409_v55 = vld [vmem:[#allocation37_spill] sm:$0xff]  ;;  %v13412_v44 = vld [vmem:[#allocation171_spill] sm:$0xff]  ;;  %v4084_v29 = vmax.f32 %v4068_v0, 0.0  ;;  %v13415_v0 = vld [vmem:[#allocation114_spill] sm:$0xff]  ;;  %v4215_v59 = vmax.f32 %v4199_v30, 0.0  ;;  %v4105_v46 = vmul.f32 %v13406_v39, %v4087_v54 }
 0xa75   : > { %v4196_v34 = vadd.f32 %v13410_v40, %v13409_v55  ;;  %v4197_v42 = vadd.f32 %v13410_v40, %v13412_v44  ;;  %v4201_v55 = vadd.f32 %v13410_v40, %v13413_v36  ;;  %v4101_v44 = vmul.f32 %v13406_v39, %v4083_v25  ;;  %v13418_v25 = vld [vmem:[#allocation140_spill] sm:$0xff] }
 0xa76   : > { %v11456_v24 = vpop.permute.xlu1 %5225  ;;  %v4200_v16 = vadd.f32 %v13410_v40, %v13415_v0  ;;  %v4102_v36 = vmul.f32 %v13406_v39, %v4084_v29  ;;  %v4202_v57 = vadd.f32 %v13410_v40, %v13418_v25  ;;  %v4115_v0 = vadd.f32 %v4099_v50, %v3965_v11  ;;  %v13420_v29 = vld [vmem:[#allocation161_spill] sm:$0xff] }
 0xa77   : > { %13408 = vst [vmem:[#allocation100_spill] sm:$0xff] %v11456_v24  ;;  %v4078_v24 = vmax.f32 %v4062_v19, 0.0  ;;  %v4213_v48 = vmax.f32 %v4197_v42, 0.0  ;;  %v4217_v42 = vmax.f32 %v4201_v55, 0.0  ;;  %v4117_v18 = vadd.f32 %v4101_v44, %v3967_v8  ;;  %v13424_v44 = vld [vmem:[#allocation162_spill] sm:$0xff] }
 0xa78   : > { %7567 = vset.pattern.permute.xlu1 %v13339_v56  ;;  %v4212_v56 = vmax.f32 %v4196_v34, 0.0  ;;  %v4116_v34 = vadd.f32 %v4100_v7, %v3966_v45  ;;  %v4216_v47 = vmax.f32 %v4200_v16, 0.0  ;;  %v4331_v23 = vadd.f32 %v13421_v12, %v13420_v29  ;;  %v13425_v16 = vld [vmem:[#allocation163_spill] sm:$0xff] }
 0xa79   : > { %5521 = vperm.xlu1 %7567, %v10573_v14   ;;  %v11486_v14 = vpop.permute.xlu0 %5371  ;;  %v4096_v30 = vmul.f32 %v13406_v39, %v4078_v24  ;;  %v4233_v10 = vmul.f32 %v13422_v22, %v4215_v59  ;;  %v4231_v25 = vmul.f32 %v13422_v22, %v4213_v48  ;;  %v4221_v40 = vmax.f32 %v4205_v17, 0.0  ;;  %v13433_v39 = vld [vmem:[#allocation168_spill] sm:$0xff] }
 0xa7a   : > { %13419 = vst [vmem:[#allocation179_spill] sm:$0xff] %v11486_v14  ;;  %v4230_v54 = vmul.f32 %v13422_v22, %v4212_v56  ;;  %v4118_v45 = vadd.f32 %v4102_v36, %v3968_v33  ;;  %v4119_v24 = vadd.f32 %v4103_v31, %v3969_v38  ;;  %v4121_v50 = vadd.f32 %v4105_v46, %v3971_v49  ;;  %v13426_v38 = vld [vmem:[#allocation210_spill] sm:$0xff]  ;;  %v13444_v14 = vld [vmem:[#allocation172_spill] sm:$0xff] }
 0xa7b   : > { %v11479_v19 = vpop.permute.xlu1 %5115  ;;  %v4218_v7 = vmax.f32 %v4202_v57, 0.0  ;;  %v4112_v8 = vadd.f32 %v4096_v30, %v11425_v21  ;;  %v4235_v55 = vmul.f32 %v13422_v22, %v4217_v42  ;;  %v4330_v56 = vadd.f32 %v13421_v12, %v13425_v16  ;;  %v13428_v42 = vld [vmem:[#allocation74_spill] sm:$0xff] }
 0xa7c   : > { %13417 = vst [vmem:[#allocation87_spill] sm:$0xff] %v11479_v19  ;;  %v4219_v19 = vmax.f32 %v4203_v2, 0.0  ;;  %v4334_v2 = vadd.f32 %v13421_v12, %v13424_v44  ;;  %v4234_v48 = vmul.f32 %v13422_v22, %v4216_v47  ;;  %v4347_v33 = vmax.f32 %v4331_v23, 0.0  ;;  %v13429_v23 = vld [vmem:[#allocation121_spill] sm:$0xff] }
 0xa7d   : > { %5525 = vperm.xlu1 %7567, %v10579_v4   ;;  %v4336_v49 = vadd.f32 %v13421_v12, %v13426_v38  ;;  %v11508_v17 = vpop.permute.xlu0 %5387  ;;  %v4246_v21 = vadd.f32 %v4230_v54, %v4112_v8  ;;  %v4249_v36 = vadd.f32 %v4233_v10, %v4115_v0  ;;  %v4247_v31 = vadd.f32 %v4231_v25, %v4113_v27  ;;  %v13430_v10 = vld [vmem:[#allocation123_spill] sm:$0xff]  ;;  %v13431_v25 = vld [vmem:[#allocation177_spill] sm:$0xff] }
 0xa7e   : > { %v4237_v59 = vmul.f32 %v13422_v22, %v4219_v19  ;;  %v4239_v46 = vmul.f32 %v13422_v22, %v4221_v40  ;;  %v4236_v30 = vmul.f32 %v13422_v22, %v4218_v7  ;;  %v13427_v19 = vld [vmem:[#allocation31_spill] sm:$0xff]  ;;  %v4335_v29 = vadd.f32 %v13421_v12, %v13428_v42  ;;  %v13432_v22 = vld [vmem:[#allocation126_spill] sm:$0xff] }
 0xa7f   : > { %v11495_v11 = vpop.permute.xlu1 %5123  ;;  %v4333_v47 = vadd.f32 %v13421_v12, %v13427_v19  ;;  %v4337_v44 = vadd.f32 %v13421_v12, %v13429_v23  ;;  %v4251_v16 = vadd.f32 %v4235_v55, %v4117_v18  ;;  %v4350_v38 = vmax.f32 %v4334_v2, 0.0  ;;  %v13435_v18 = vld [vmem:[#allocation199_spill] sm:$0xff] }
 0xa80   : > { %13423 = vst [vmem:[#allocation181_spill] sm:$0xff] %v11495_v11  ;;  %v4346_v54 = vmax.f32 %v4330_v56, 0.0  ;;  %v4339_v27 = vadd.f32 %v13421_v12, %v13430_v10  ;;  %v4253_v40 = vadd.f32 %v4237_v59, %v4119_v24  ;;  %v4250_v0 = vadd.f32 %v4234_v48, %v4116_v34  ;;  %v13434_v11 = vld [vmem:[#allocation167_spill] sm:$0xff] }
 0xa81   : > { %7569 = vset.pattern.permute.xlu1 %v13355_v43  ;;  %v4365_v8 = vmul.f32 %v13431_v25, %v4347_v33  ;;  %v4352_v7 = vmax.f32 %v4336_v49, 0.0  ;;  %v4255_v19 = vadd.f32 %v4239_v46, %v4121_v50  ;;  %v4464_v42 = vadd.f32 %v13433_v39, %v13432_v22  ;;  %v11531_v34 = vpop.permute.xlu0 %5469  ;;  %v13437_v22 = vld [vmem:[#allocation220_spill] sm:$0xff] }
 0xa82   : > { %5635 = vperm.xlu1 %7569, %v10543_v53   ;;  %v4467_v23 = vadd.f32 %v13433_v39, %v13434_v11  ;;  %v4469_v55 = vadd.f32 %v13433_v39, %v13435_v18  ;;  %v4252_v2 = vadd.f32 %v4236_v30, %v4118_v45  ;;  %v4349_v56 = vmax.f32 %v4333_v47, 0.0  ;;  %13436 = vst [vmem:[#allocation218_spill] sm:$0xff] %v11531_v34  ;;  %v13439_v46 = vld [vmem:[#allocation128_spill] sm:$0xff]  ;;  %v13440_v47 = vld [vmem:[#allocation203_spill] sm:$0xff] }
 0xa83   : > { %v11512_v57 = vpop.permute.xlu1 %5127  ;;  %v4351_v10 = vmax.f32 %v4335_v29, 0.0  ;;  %v4353_v24 = vmax.f32 %v4337_v44, 0.0  ;;  %v4368_v48 = vmul.f32 %v13431_v25, %v4350_v38  ;;  %v4364_v50 = vmul.f32 %v13431_v25, %v4346_v54 }
 0xa84   : > { %v4355_v33 = vmax.f32 %v4339_v27, 0.0  ;;  %v4471_v49 = vadd.f32 %v13433_v39, %v13437_v22  ;;  %v11541_v11 = vadd.f32 %v4365_v8, %v4247_v31  ;;  %v4370_v45 = vmul.f32 %v13431_v25, %v4352_v7  ;;  %v13441_v27 = vld [vmem:[#allocation170_spill] sm:$0xff] }
 0xa85   : > { %v4473_v30 = vadd.f32 %v13433_v39, %v13439_v46  ;;  %v4468_v29 = vadd.f32 %v13433_v39, %v13440_v47  ;;  %v4480_v44 = vmax.f32 %v4464_v42, 0.0  ;;  %v4483_v38 = vmax.f32 %v4467_v23, 0.0  ;;  %v13442_v7 = vld [vmem:[#allocation90_spill] sm:$0xff] }
 0xa86   : > { %5643 = vperm.xlu1 %7569, %v10555_v20   ;;  %13438 = vst [vmem:[#allocation150_spill] sm:$0xff] %v11541_v11  ;;  %v4485_v54 = vmax.f32 %v4469_v55, 0.0  ;;  %v4470_v18 = vadd.f32 %v13433_v39, %v13441_v27  ;;  %v4367_v22 = vmul.f32 %v13431_v25, %v4349_v56  ;;  %v4369_v31 = vmul.f32 %v13431_v25, %v4351_v10  ;;  %v13443_v27 = vld [vmem:[#allocation35_spill] sm:$0xff]  ;;  %v11561_v10 = vpop.permute.xlu0 %5481 }
 0xa87   : > { %v4371_v8 = vmul.f32 %v13431_v25, %v4353_v24  ;;  %v4465_v46 = vadd.f32 %v13433_v39, %v13442_v7  ;;  %v4384_v47 = vadd.f32 %v4368_v48, %v4250_v0  ;;  %v4380_v11 = vadd.f32 %v4364_v50, %v4246_v21  ;;  %v13445_v24 = vld [vmem:[#allocation22_spill] sm:$0xff] }
 0xa88   : > { %v11533_v59 = vpop.permute.xlu1 %5237  ;;  %v4373_v42 = vmul.f32 %v13431_v25, %v4355_v33  ;;  %v4487_v23 = vmax.f32 %v4471_v49, 0.0  ;;  %v4386_v55 = vadd.f32 %v4370_v45, %v4252_v2  ;;  %v4489_v34 = vmax.f32 %v4473_v30, 0.0  ;;  %v13446_v30 = vld [vmem:[#allocation25_spill] sm:$0xff] }
 0xa89   : > { %v4602_v56 = vadd.f32 %v13444_v14, %v13443_v27  ;;  %v4498_v7 = vmul.f32 %v13445_v24, %v4480_v44  ;;  %v4501_v39 = vmul.f32 %v13445_v24, %v4483_v38  ;;  %v4503_v21 = vmul.f32 %v13445_v24, %v4485_v54 }
 0xa8a   : > { %5647 = vperm.xlu1 %7569, %v10561_v26   ;;  %v4484_v26 = vmax.f32 %v4468_v29, 0.0  ;;  %v4486_v0 = vmax.f32 %v4470_v18, 0.0  ;;  %v4383_v2 = vadd.f32 %v4367_v22, %v4249_v36  ;;  %v4385_v48 = vadd.f32 %v4369_v31, %v4251_v16 }
 0xa8b   : > { %v4387_v50 = vadd.f32 %v4371_v8, %v4253_v40  ;;  %v4481_v33 = vmax.f32 %v4465_v46, 0.0  ;;  %v4389_v49 = vadd.f32 %v4373_v42, %v4255_v19  ;;  %v4505_v45 = vmul.f32 %v13445_v24, %v4487_v23  ;;  %v13449_v8 = vld [vmem:[#allocation211_spill] sm:$0xff]  ;;  %v13451_v42 = vld [vmem:[#allocation176_spill] sm:$0xff] }
 0xa8c   : > { %v11556_v12 = vpop.permute.xlu1 %5241  ;;  %v4604_v29 = vadd.f32 %v13444_v14, %v13446_v30  ;;  %v11572_v27 = vstv %s11539_s17  ;;  %v4507_v38 = vmul.f32 %v13445_v24, %v4489_v34  ;;  %v4502_v54 = vmul.f32 %v13445_v24, %v4484_v26  ;;  %v13450_v26 = vld [vmem:[#allocation174_spill] sm:$0xff] }
 0xa8d   : > { %v4618_v18 = vmax.f32 %v4602_v56, 0.0  ;;  %v4514_v16 = vadd.f32 %v4498_v7, %v4380_v11  ;;  %v4517_v40 = vadd.f32 %v4501_v39, %v4383_v2  ;;  %v4519_v19 = vadd.f32 %v4503_v21, %v4385_v48  ;;  %v11593_v56 = vpop.permute.xlu0 %5489  ;;  %v13453_v7 = vld [vmem:[#allocation213_spill] sm:$0xff] }
 0xa8e   : > { %7570 = vset.pattern.permute.xlu1 %v13366_v61  ;;  %v4504_v22 = vmul.f32 %v13445_v24, %v4486_v0  ;;  %v11585_v31 = vmul.f32 %v13445_v24, %v4481_v33  ;;  %v4601_v34 = vadd.f32 %v13444_v14, %v13449_v8  ;;  %v4603_v46 = vadd.f32 %v13444_v14, %v13450_v26  ;;  %v13454_v0 = vld [vmem:[#allocation186_spill] sm:$0xff] }
 0xa8f   : > { %5741 = vperm.xlu1 %7570, %v10501_v6   ;;  %v13447_v6 = vld [vmem:[#allocation184_spill] sm:$0xff]  ;;  %v4605_v23 = vadd.f32 %v13444_v14, %v13451_v42  ;;  %13452 = vst [vmem:[#allocation132_spill] sm:$0xff] %v11593_v56  ;;  %v4521_v39 = vadd.f32 %v4505_v45, %v4387_v50  ;;  %v4620_v11 = vmax.f32 %v4604_v29, 0.0  ;;  %v4732_v21 = vadd.f32 %v11126_v62, %v13453_v7  ;;  %v13457_v24 = vld [vmem:[#allocation182_spill] sm:$0xff]  ;;  %v13460_v7 = vld [vmem:[#allocation27_spill] sm:$0xff] }
 0xa90   : > { %v4598_v36 = vadd.f32 %v13444_v14, %v13447_v6  ;;  %13448 = vst [vmem:[#allocation78_spill] sm:$0xff] %v11585_v31  ;;  %v4607_v2 = vadd.f32 %v13444_v14, %v13454_v0  ;;  %v4523_v33 = vadd.f32 %v4507_v38, %v4389_v49  ;;  %v4518_v30 = vadd.f32 %v4502_v54, %v4384_v47  ;;  %v13456_v6 = vld [vmem:[#allocation207_spill] sm:$0xff]  ;;  %v13459_v45 = vld [vmem:[#allocation212_spill] sm:$0xff] }
 0xa91   : > { %v11574_v44 = vpop.permute.xlu1 %5335  ;;  %v4636_v8 = vmul.f32 %v13456_v6, %v4618_v18  ;;  %v4520_v42 = vadd.f32 %v4504_v22, %v4386_v55  ;;  %v11606_v50 = vadd.f32 %v13444_v14, %v13457_v24  ;;  %v4735_v29 = vadd.f32 %v11126_v62, %v13459_v45  ;;  %v13461_v54 = vld [vmem:[#allocation43_spill] sm:$0xff]  ;;  %v13462_v22 = vld [vmem:[#allocation45_spill] sm:$0xff]  ;;  %v13501_v56 = vld [vmem:[#allocation28_spill] sm:$0xff] }
 0xa92   : > { %v4614_v26 = vmax.f32 %v4598_v36, 0.0  ;;  %v4737_v0 = vadd.f32 %v11126_v62, %v13460_v7  ;;  %v4617_v47 = vmax.f32 %v4601_v34, 0.0  ;;  %v4619_v49 = vmax.f32 %v4603_v46, 0.0  ;;  %v13463_v14 = vld [vmem:[#allocation49_spill] sm:$0xff]  ;;  %v11626_v46 = vpop.permute.xlu0 %5497 }
 0xa93   : > { %5745 = vperm.xlu1 %7570, %v10507_v52   ;;  %13458 = vst [vmem:[#allocation102_spill] sm:$0xff] %v11606_v50  ;;  %v4621_v38 = vmax.f32 %v4605_v23, 0.0  ;;  %v4739_v18 = vadd.f32 %v11126_v62, %v13461_v54  ;;  %v4638_v55 = vmul.f32 %v13456_v6, %v4620_v11  ;;  %v4748_v36 = vmax.f32 %v4732_v21, 0.0  ;;  %13464 = vst [vmem:[#allocation134_spill] sm:$0xff] %v11626_v46  ;;  %v13465_v11 = vld [vmem:[#allocation124_spill] sm:$0xff] }
 0xa94   : > { %v4623_v24 = vmax.f32 %v4607_v2, 0.0  ;;  %v4652_v45 = vadd.f32 %v4636_v8, %v4518_v30  ;;  %v4632_v7 = vmul.f32 %v13456_v6, %v4614_v26  ;;  %v11624_v34 = vstv %s11580_s19 }
 0xa95   : > { %v11599_v48 = vpop.permute.xlu1 %5343  ;;  %v4751_v23 = vmax.f32 %v4735_v29, 0.0  ;;  %v4753_v54 = vmax.f32 %v4737_v0, 0.0  ;;  %v4738_v21 = vadd.f32 %v11126_v62, %v13465_v11  ;;  %v5013_v2 = vadd.f32 %v11387_v1, %v11345_v41 }
 0xa96   : > { %13455 = vst [vmem:[#allocation183_spill] sm:$0xff] %v11599_v48  ;;  %v4741_v48 = vadd.f32 %v11126_v62, %v13462_v22  ;;  %v4635_v30 = vmul.f32 %v13456_v6, %v4617_v47  ;;  %v4637_v8 = vmul.f32 %v13456_v6, %v4619_v49  ;;  %v4755_v26 = vmax.f32 %v4739_v18, 0.0 }
 0xa97   : > { %5753 = vperm.xlu1 %7570, %v10519_v51   ;;  %v4736_v51 = vadd.f32 %v11126_v62, %v13463_v14  ;;  %v4639_v14 = vmul.f32 %v13456_v6, %v4621_v38  ;;  %v4654_v22 = vadd.f32 %v4638_v55, %v4520_v42  ;;  %v4766_v29 = vmul.f32 %v11136_v5, %v4748_v36 }
 0xa98   : > { %v4641_v0 = vmul.f32 %v13456_v6, %v4623_v24  ;;  %v4757_v50 = vmax.f32 %v4741_v48, 0.0  ;;  %v4648_v41 = vadd.f32 %v4632_v7, %v4514_v16  ;;  %v11645_v31 = vstv %s11602_s21  ;;  %v11651_v16 = vpop.permute.xlu0 %5501 }
 0xa99   : > { %v11618_v25 = vpop.permute.xlu1 %5347  ;;  %v4752_v62 = vmax.f32 %v4736_v51, 0.0  ;;  %v4769_v49 = vmul.f32 %v11136_v5, %v4751_v23  ;;  %v4771_v42 = vmul.f32 %v11136_v5, %v4753_v54  ;;  %v4754_v38 = vmax.f32 %v4738_v21, 0.0 }
 0xa9a   : > { %v5029_v18 = vmax.f32 %v5013_v2, 0.0  ;;  %v4651_v48 = vadd.f32 %v4635_v30, %v4517_v40  ;;  %v4653_v55 = vadd.f32 %v4637_v8, %v4519_v19  ;;  %v4655_v36 = vadd.f32 %v4639_v14, %v4521_v39  ;;  %v13467_v19 = vld [vmem:[#allocation180_spill] sm:$0xff] }
 0xa9b   : > { %5761 = vperm.xlu1 %7570, %v10531_v15   ;;  %v13466_v15 = vld [vmem:[#allocation44_spill] sm:$0xff]  ;;  %v4773_v24 = vmul.f32 %v11136_v5, %v4755_v26  ;;  %v11654_v7 = vadd.f32 %v4766_v29, %v4648_v41  ;;  %v4657_v51 = vadd.f32 %v4641_v0, %v4523_v33  ;;  %v4775_v23 = vmul.f32 %v11136_v5, %v4757_v50 }
 0xa9c   : > { %v4870_v47 = vadd.f32 %v11179_v32, %v13466_v15  ;;  %v5147_v54 = vadd.f32 %v11397_v58, %v11308_v63  ;;  %v4872_v39 = vadd.f32 %v11179_v32, %v13467_v19  ;;  %v11666_v2 = vadd.f32 %v4769_v49, %v4651_v48 }
 0xa9d   : > { %v11640_v11 = vpop.permute.xlu1 %5355  ;;  %v11668_v33 = vadd.f32 %v4771_v42, %v4653_v55  ;;  %v4772_v50 = vmul.f32 %v11136_v5, %v4754_v38  ;;  %v5047_v63 = vmul.f32 %v11572_v27, %v5029_v18  ;;  %v11672_v30 = vadd.f32 %v4773_v24, %v4655_v36  ;;  %v13468_v42 = vld [vmem:[#allocation209_spill] sm:$0xff]  ;;  %v13469_v18 = vld [vmem:[#allocation158_spill] sm:$0xff] }
 0xa9e   : > { %v4886_v40 = vmax.f32 %v4870_v47, 0.0  ;;  %v4869_v8 = vadd.f32 %v11179_v32, %v11218_v9  ;;  %v5142_v14 = vadd.f32 %v11397_v58, %v11356_v35  ;;  %v5163_v26 = vmax.f32 %v5147_v54, 0.0  ;;  %v11691_v9 = vpop.permute.xlu0 %5513  ;;  %v13470_v55 = vld [vmem:[#allocation98_spill] sm:$0xff] }
 0xa9f   : > { %7571 = vset.pattern.permute.xlu1 %v13355_v43  ;;  %v4770_v43 = vmul.f32 %v11136_v5, %v4752_v62  ;;  %v4866_v62 = vadd.f32 %v11179_v32, %v11200_v60  ;;  %v11684_v29 = vstv %s11638_s25  ;;  %v5415_v0 = vadd.f32 %v11411_v3, %v11508_v17  ;;  %v13472_v54 = vld [vmem:[#allocation154_spill] sm:$0xff] }
 0xaa0   : > { %5651 = vperm.xlu1 %7571, %v10567_v37   ;;  %v5008_v37 = vadd.f32 %v11387_v1, %v11300_v13  ;;  %v11681_v13 = vadd.f32 %v4775_v23, %v4657_v51  ;;  %v4904_v15 = vmul.f32 %v11188_v28, %v4886_v40  ;;  %v4888_v60 = vmax.f32 %v4872_v39, 0.0 }
 0xaa1   : > { %v11659_v21 = vpop.permute.xlu1 %5363  ;;  %v4786_v41 = vadd.f32 %v4770_v43, %v4652_v45  ;;  %v4788_v49 = vadd.f32 %v4772_v50, %v4654_v22  ;;  %v5000_v38 = vadd.f32 %v11387_v1, %v13468_v42  ;;  %v5063_v48 = vadd.f32 %v5047_v63, %v13469_v18  ;;  %v13471_v45 = vld [vmem:[#allocation191_spill] sm:$0xff]  ;;  %v13473_v43 = vld [vmem:[#allocation194_spill] sm:$0xff]  ;;  %v13476_v42 = vld [vmem:[#allocation192_spill] sm:$0xff] }
 0xaa2   : > { %v5024_v47 = vmax.f32 %v5008_v37, 0.0  ;;  %v4882_v24 = vmax.f32 %v4866_v62, 0.0  ;;  %v4885_v17 = vmax.f32 %v4869_v8, 0.0  ;;  %v4871_v51 = vadd.f32 %v11179_v32, %v13471_v45  ;;  %v13474_v62 = vld [vmem:[#allocation81_spill] sm:$0xff] }
 0xaa3   : > { %v5158_v23 = vmax.f32 %v5142_v14, 0.0  ;;  %v5011_v40 = vadd.f32 %v11387_v1, %v13473_v43  ;;  %v5181_v22 = vmul.f32 %v11624_v34, %v5163_v26  ;;  %v5431_v19 = vmax.f32 %v5415_v0, 0.0 }
 0xaa4   : > { %5659 = vperm.xlu1 %7571, %v10579_v4   ;;  %v11703_v37 = vadd.f32 %v4904_v15, %v4786_v41  ;;  %v4906_v50 = vmul.f32 %v11188_v28, %v4888_v60  ;;  %v5042_v63 = vmul.f32 %v11572_v27, %v5024_v47  ;;  %v5276_v8 = vadd.f32 %v13470_v55, %v13474_v62  ;;  %v13477_v60 = vld [vmem:[#allocation71_spill] sm:$0xff] }
 0xaa5   : > { %v5016_v14 = vmax.f32 %v5000_v38, 0.0  ;;  %v5003_v18 = vadd.f32 %v11387_v1, %v13476_v42  ;;  %v5197_v45 = vadd.f32 %v5181_v22, %v5063_v48  ;;  %v4900_v0 = vmul.f32 %v11188_v28, %v4882_v24  ;;  %v13478_v22 = vld [vmem:[#allocation153_spill] sm:$0xff] }
 0xaa6   : > { %v5254_v35 = vpop.permute.xlu1 %5253  ;;  %v4887_v41 = vmax.f32 %v4871_v51, 0.0  ;;  %v5176_v15 = vmul.f32 %v11624_v34, %v5158_v23  ;;  %v5145_v47 = vadd.f32 %v11397_v58, %v13477_v60  ;;  %v4903_v38 = vmul.f32 %v11188_v28, %v4885_v17  ;;  %v13480_v23 = vld [vmem:[#allocation73_spill] sm:$0xff] }
 0xaa7   : > { %v5281_v36 = vadd.f32 %v13470_v55, %v5254_v35  ;;  %v5027_v43 = vmax.f32 %v5011_v40, 0.0  ;;  %v5449_v62 = vmul.f32 %v11684_v29, %v5431_v19  ;;  %v5292_v51 = vmax.f32 %v5276_v8, 0.0 }
 0xaa8   : > { %5663 = vperm.xlu1 %7571, %v13472_v54   ;;  %v11726_v42 = vstv %s11689_s10  ;;  %v5544_v60 = vadd.f32 %v13480_v23, %v11651_v16  ;;  %v11730_v5 = vadd.f32 %v4906_v50, %v4788_v49  ;;  %v5034_v6 = vmul.f32 %v11572_v27, %v5016_v14  ;;  %v13483_v14 = vld [vmem:[#allocation142_spill] sm:$0xff] }
 0xaa9   : > { %v5297_v39 = vmax.f32 %v5281_v36, 0.0  ;;  %v11718_v36 = vpop.permute.xlu0 %5517  ;;  %v4905_v19 = vmul.f32 %v11188_v28, %v4887_v41  ;;  %v4916_v8 = vadd.f32 %v4900_v0, %v11654_v7  ;;  %v5045_v49 = vmul.f32 %v11572_v27, %v5027_v43 }
 0xaaa   : > { %v11709_v35 = vpop.permute.xlu1 %5257  ;;  %v5310_v50 = vmul.f32 %v11645_v31, %v5292_v51  ;;  %v5560_v41 = vmax.f32 %v5544_v60, 0.0 }
 0xaab   : > { %13475 = vst [vmem:[#allocation185_spill] sm:$0xff] %v11709_v35  ;;  %v5315_v26 = vmul.f32 %v11645_v31, %v5297_v39  ;;  %v13479_v39 = vld [vmem:[#allocation51_spill] sm:$0xff]  ;;  %v5019_v35 = vmax.f32 %v5003_v18, 0.0  ;;  %v5279_v18 = vadd.f32 %v13470_v55, %v13483_v14  ;;  %v13488_v14 = vld [vmem:[#allocation201_spill] sm:$0xff] }
 0xaac   : > { %7573 = vset.pattern.permute.xlu1 %v13366_v61  ;;  %v5058_v24 = vadd.f32 %v5042_v63, %v13479_v39  ;;  %v13482_v39 = vld [vmem:[#allocation193_spill] sm:$0xff]  ;;  %v5578_v46 = vmul.f32 %v11726_v42, %v5560_v41 }
 0xaad   : > { %v5331_v48 = vadd.f32 %v5315_v26, %v5197_v45  ;;  %5773 = vperm.xlu1 %7573, %v13478_v22   ;;  %v5161_v26 = vmax.f32 %v5145_v47, 0.0  ;;  %v4919_v22 = vadd.f32 %v4903_v38, %v11666_v2  ;;  %v4873_v16 = vadd.f32 %v11179_v32, %v13482_v39  ;;  %v13484_v2 = vld [vmem:[#allocation54_spill] sm:$0xff]  ;;  %v13485_v38 = vld [vmem:[#allocation65_spill] sm:$0xff] }
 0xaae   : > { %v5192_v45 = vadd.f32 %v5176_v15, %v5058_v24  ;;  %v11746_v15 = vpop.permute.xlu0 %5529  ;;  %v5037_v7 = vmul.f32 %v11572_v27, %v5019_v35  ;;  %v5005_v0 = vadd.f32 %v11387_v1, %v13484_v2  ;;  %v5004_v43 = vadd.f32 %v11387_v1, %v13485_v38  ;;  %v13487_v35 = vld [vmem:[#allocation195_spill] sm:$0xff] }
 0xaaf   : > { %v5368_v17 = vpop.permute.xlu1 %5367  ;;  %v11733_v40 = vadd.f32 %v5449_v62, %v5331_v48  ;;  %v11748_v62 = vadd.f32 %v5034_v6, %v4916_v8  ;;  %v4921_v24 = vadd.f32 %v4905_v19, %v11668_v33  ;;  %v5179_v51 = vmul.f32 %v11624_v34, %v5161_v26  ;;  %v13486_v6 = vld [vmem:[#allocation55_spill] sm:$0xff] }
 0xab0   : > { %v5410_v63 = vadd.f32 %v11411_v3, %v5368_v17  ;;  %v5326_v60 = vadd.f32 %v5310_v50, %v5192_v45  ;;  %v4875_v8 = vadd.f32 %v11179_v32, %v13486_v6  ;;  %v5061_v39 = vadd.f32 %v5045_v49, %v13487_v35  ;;  %v13490_v45 = vld [vmem:[#allocation86_spill] sm:$0xff]  ;;  %v13492_v35 = vld [vmem:[#allocation48_spill] sm:$0xff] }
 0xab1   : > { %13481 = vst [vmem:[#allocation151_spill] sm:$0xff] %v11733_v40  ;;  %5777 = vperm.xlu1 %7573, %v10555_v20   ;;  %v5006_v2 = vadd.f32 %v11387_v1, %v13488_v14  ;;  %v13489_v40 = vmov 15   ;;  %v5295_v38 = vmax.f32 %v5279_v18, 0.0  ;;  %v5547_v33 = vadd.f32 %v13480_v23, %v11691_v9 }
 0xab2   : > { %v5426_v47 = vmax.f32 %v5410_v63, 0.0  ;;  %v4889_v63 = vmax.f32 %v4873_v16, 0.0  ;;  %v11770_v26 = vadd.f32 %v5037_v7, %v4919_v22  ;;  %v5021_v16 = vmax.f32 %v5005_v0, 0.0  ;;  %v11776_v32 = vpop.permute.xlu0 %5607  ;;  %v13496_v7 = vld [vmem:[#allocation38_spill] sm:$0xff] }
 0xab3   : > { %v11755_v48 = vpop.permute.xlu1 %5375  ;;  %v5020_v50 = vmax.f32 %v5004_v43, 0.0  ;;  %v5009_v14 = vadd.f32 %v11387_v1, %v13492_v35  ;;  %v5195_v18 = vadd.f32 %v5179_v51, %v5061_v39  ;;  %13493 = vst [vmem:[#allocation137_spill] sm:$0xff] %v11776_v32  ;;  %v5140_v0 = vadd.f32 %v11397_v58, %v13496_v7  ;;  %v13497_v43 = vld [vmem:[#allocation85_spill] sm:$0xff] }
 0xab4   : > { %v5444_v17 = vmul.f32 %v11684_v29, %v5426_v47  ;;  %v13491_v47 = vld [vmem:[#allocation66_spill] sm:$0xff]  ;;  %v5313_v35 = vmul.f32 %v11645_v31, %v5295_v38  ;;  %v5563_v51 = vmax.f32 %v5547_v33, 0.0  ;;  %v5039_v7 = vmul.f32 %v11572_v27, %v5021_v16 }
 0xab5   : > { %7574 = vset.pattern.permute.xlu1 %v13489_v40  ;;  %v5138_v49 = vadd.f32 %v11397_v58, %v13491_v47  ;;  %v5022_v47 = vmax.f32 %v5006_v2, 0.0  ;;  %v5025_v32 = vmax.f32 %v5009_v14, 0.0 }
 0xab6   : > { %v5460_v19 = vadd.f32 %v5444_v17, %v5326_v60  ;;  %5871 = vperm.xlu1 %7574, %v13490_v45   ;;  %v4891_v60 = vmax.f32 %v4875_v8, 0.0  ;;  %v13495_v17 = vld [vmem:[#allocation56_spill] sm:$0xff]  ;;  %v5272_v45 = vadd.f32 %v13470_v55, %v13497_v43  ;;  %v5329_v2 = vadd.f32 %v5313_v35, %v5195_v18  ;;  %v5620_v14 = vpop.permute.xlu0 %5619 }
 0xab7   : > { %v5380_v6 = vpop.permute.xlu1 %5379  ;;  %v5012_v22 = vadd.f32 %v11387_v1, %v13495_v17  ;;  %v5154_v17 = vmax.f32 %v5138_v49, 0.0  ;;  %v13500_v43 = vld [vmem:[#allocation100_spill] sm:$0xff]  ;;  %v5156_v49 = vmax.f32 %v5140_v0, 0.0  ;;  %v5581_v16 = vmul.f32 %v11726_v42, %v5563_v51 }
 0xab8   : > { %v5413_v41 = vadd.f32 %v11411_v3, %v5380_v6  ;;  %v11779_v9 = vadd.f32 %v5578_v46, %v5460_v19  ;;  %v4907_v46 = vmul.f32 %v11188_v28, %v4889_v63  ;;  %v13498_v19 = vld [vmem:[#allocation96_spill] sm:$0xff]  ;;  %v5038_v6 = vmul.f32 %v11572_v27, %v5020_v50 }
 0xab9   : > { %v5007_v8 = vadd.f32 %v11387_v1, %v13498_v19  ;;  %v5288_v63 = vmax.f32 %v5272_v45, 0.0  ;;  %v5274_v19 = vadd.f32 %v13470_v55, %v13500_v43  ;;  %v5040_v50 = vmul.f32 %v11572_v27, %v5022_v47 }
 0xaba   : > { %13494 = vst [vmem:[#allocation187_spill] sm:$0xff] %v11779_v9  ;;  %v5429_v39 = vmax.f32 %v5413_v41, 0.0  ;;  %5879 = vperm.xlu1 %7574, %v10507_v52   ;;  %v4909_v52 = vmul.f32 %v11188_v28, %v4891_v60  ;;  %v5028_v41 = vmax.f32 %v5012_v22, 0.0  ;;  %v5054_v35 = vadd.f32 %v5038_v6, %v11703_v37  ;;  %v13502_v60 = vld [vmem:[#allocation149_spill] sm:$0xff] }
 0xabb   : > { %v5023_v18 = vmax.f32 %v5007_v8, 0.0  ;;  %v5406_v22 = vadd.f32 %v11411_v3, %v13502_v60  ;;  %v11810_v45 = vadd.f32 %v4907_v46, %v11672_v30  ;;  %v11812_v43 = vadd.f32 %v5039_v7, %v4921_v24  ;;  %v13505_v24 = vld [vmem:[#allocation120_spill] sm:$0xff]  ;;  %v5628_v60 = vpop.permute.xlu0 %5627 }
 0xabc   : > { %v5447_v38 = vmul.f32 %v11684_v29, %v5429_v39  ;;  %v11797_v33 = vpop.permute.xlu1 %5473  ;;  %v5172_v39 = vmul.f32 %v11624_v34, %v5154_v17  ;;  %v5043_v0 = vmul.f32 %v11572_v27, %v5025_v32  ;;  %v5046_v37 = vmul.f32 %v11572_v27, %v5028_v41  ;;  %v13506_v32 = vld [vmem:[#allocation87_spill] sm:$0xff] }
 0xabd   : > { %13499 = vst [vmem:[#allocation122_spill] sm:$0xff] %v11797_v33  ;;  %v5306_v8 = vmul.f32 %v11645_v31, %v5288_v63  ;;  %v5290_v6 = vmax.f32 %v5274_v19, 0.0  ;;  %v5056_v17 = vadd.f32 %v5040_v50, %v11730_v5  ;;  %v5174_v30 = vmul.f32 %v11624_v34, %v5156_v49  ;;  %v13509_v5 = vld [vmem:[#allocation60_spill] sm:$0xff]  ;;  %v13510_v50 = vld [vmem:[#allocation53_spill] sm:$0xff] }
 0xabe   : > { %v5463_v9 = vadd.f32 %v5447_v38, %v5329_v2  ;;  %5883 = vperm.xlu1 %7574, %v13501_v56   ;;  %v4925_v56 = vadd.f32 %v4909_v52, %v11681_v13  ;;  %v5408_v46 = vadd.f32 %v11411_v3, %v13505_v24  ;;  %v5146_v7 = vadd.f32 %v11397_v58, %v13506_v32  ;;  %v13508_v52 = vld [vmem:[#allocation118_spill] sm:$0xff] }
 0xabf   : > { %v11830_v13 = vmul.f32 %v11572_v27, %v5023_v18  ;;  %v5188_v2 = vadd.f32 %v5172_v39, %v5054_v35  ;;  %v5422_v38 = vmax.f32 %v5406_v22, 0.0  ;;  %v5674_v41 = vadd.f32 %v13508_v52, %v5620_v14  ;;  %v13511_v32 = vld [vmem:[#allocation46_spill] sm:$0xff]  ;;  %v13512_v22 = vld [vmem:[#allocation68_spill] sm:$0xff] }
 0xac0   : > { %v11815_v47 = vpop.permute.xlu1 %5477  ;;  %v11817_v51 = vadd.f32 %v5581_v16, %v5463_v9  ;;  %v13507_v9 = vld [vmem:[#allocation166_spill] sm:$0xff]  ;;  %v11833_v63 = vadd.f32 %v5043_v0, %v4925_v56  ;;  %v5015_v19 = vadd.f32 %v11387_v1, %v13509_v5  ;;  %v5143_v49 = vadd.f32 %v11397_v58, %v13510_v50 }
 0xac1   : > { %13503 = vst [vmem:[#allocation104_spill] sm:$0xff] %v11815_v47  ;;  %v11840_v16 = vstv %s11794_s11  ;;  %v5322_v18 = vadd.f32 %v5306_v8, %v5188_v2  ;;  %v5308_v35 = vmul.f32 %v11645_v31, %v5290_v6  ;;  %v5190_v14 = vadd.f32 %v5174_v30, %v5056_v17  ;;  %v13513_v47 = vld [vmem:[#allocation107_spill] sm:$0xff]  ;;  %v13514_v2 = vld [vmem:[#allocation70_spill] sm:$0xff] }
 0xac2   : > { %13504 = vst [vmem:[#allocation139_spill] sm:$0xff] %v11817_v51  ;;  %5891 = vperm.xlu1 %7574, %v13507_v9   ;;  %v5062_v9 = vadd.f32 %v5046_v37, %v13511_v32  ;;  %v5010_v0 = vadd.f32 %v11387_v1, %v13512_v22  ;;  %v5424_v56 = vmax.f32 %v5408_v46, 0.0  ;;  %v5162_v5 = vmax.f32 %v5146_v7, 0.0 }
 0xac3   : > { %v5440_v50 = vmul.f32 %v11684_v29, %v5422_v38  ;;  %v5690_v51 = vmax.f32 %v5674_v41, 0.0  ;;  %v5676_v33 = vadd.f32 %v13508_v52, %v5628_v60  ;;  %v5031_v37 = vmax.f32 %v5015_v19, 0.0 }
 0xac4   : > { %v5486_v24 = vpop.permute.xlu1 %5485  ;;  %v5159_v8 = vmax.f32 %v5143_v49, 0.0  ;;  %v5134_v6 = vadd.f32 %v11397_v58, %v13514_v2  ;;  %v5324_v32 = vadd.f32 %v5308_v35, %v5190_v14  ;;  %v5026_v38 = vmax.f32 %v5010_v0, 0.0  ;;  %v13517_v0 = vld [vmem:[#allocation108_spill] sm:$0xff] }
 0xac5   : > { %v5540_v39 = vadd.f32 %v13480_v23, %v5486_v24  ;;  %v13515_v24 = vld [vmem:[#allocation115_spill] sm:$0xff]  ;;  %v5456_v46 = vadd.f32 %v5440_v50, %v5322_v18  ;;  %v5442_v41 = vmul.f32 %v11684_v29, %v5424_v56  ;;  %v5180_v60 = vmul.f32 %v11624_v34, %v5162_v5 }
 0xac6   : > { %5899 = vperm.xlu1 %7574, %v13513_v47   ;;  %v5280_v17 = vadd.f32 %v13470_v55, %v13515_v24  ;;  %v5149_v19 = vadd.f32 %v11397_v58, %v11512_v57  ;;  %v5708_v49 = vmul.f32 %v11840_v16, %v5690_v51  ;;  %v13516_v18 = vld [vmem:[#allocation23_spill] sm:$0xff]  ;;  %v5150_v14 = vmax.f32 %v5134_v6, 0.0 }
 0xac7   : > { %v5556_v28 = vmax.f32 %v5540_v39, 0.0  ;;  %v5692_v39 = vmax.f32 %v5676_v33, 0.0  ;;  %v5268_v56 = vadd.f32 %v13470_v55, %v13517_v0  ;;  %v5548_v5 = vadd.f32 %v13480_v23, %v11718_v36 }
 0xac8   : > { %v5494_v30 = vpop.permute.xlu1 %5493  ;;  %v5296_v50 = vmax.f32 %v5280_v17, 0.0  ;;  %v5458_v57 = vadd.f32 %v5442_v41, %v5324_v32  ;;  %v5177_v33 = vmul.f32 %v11624_v34, %v5159_v8  ;;  %v5196_v24 = vadd.f32 %v5180_v60, %v5062_v9  ;;  %v13518_v41 = vld [vmem:[#allocation95_spill] sm:$0xff] }
 0xac9   : > { %v5574_v7 = vmul.f32 %v11726_v42, %v5556_v28  ;;  %v5542_v47 = vadd.f32 %v13480_v23, %v5494_v30  ;;  %v5049_v28 = vmul.f32 %v11572_v27, %v5031_v37  ;;  %v5165_v30 = vmax.f32 %v5149_v19, 0.0  ;;  %v13519_v19 = vld [vmem:[#allocation72_spill] sm:$0xff] }
 0xaca   : > { %7575 = vset.pattern.permute.xlu1 %v13366_v61  ;;  %v5044_v6 = vmul.f32 %v11572_v27, %v5026_v38  ;;  %v5277_v17 = vadd.f32 %v13470_v55, %v11533_v59  ;;  %v5710_v36 = vmul.f32 %v11840_v16, %v5692_v39  ;;  %v5283_v9 = vadd.f32 %v13470_v55, %v13518_v41 }
 0xacb   : > { %v5590_v22 = vadd.f32 %v5574_v7, %v5456_v46  ;;  %v5558_v35 = vmax.f32 %v5542_v47, 0.0  ;;  %5789 = vperm.xlu1 %7575, %v13516_v18   ;;  %v5640_v46 = vpop.permute.xlu0 %5639  ;;  %v5284_v7 = vmax.f32 %v5268_v56, 0.0  ;;  %v5314_v47 = vmul.f32 %v11645_v31, %v5296_v50  ;;  %v13521_v50 = vld [vmem:[#allocation144_spill] sm:$0xff] }
 0xacc   : > { %v5168_v60 = vmul.f32 %v11624_v34, %v5150_v14  ;;  %v11884_v38 = vadd.f32 %v13470_v55, %v13519_v19  ;;  %v5193_v14 = vadd.f32 %v5177_v33, %v11833_v63  ;;  %v5278_v33 = vadd.f32 %v13470_v55, %v11556_v12 }
 0xacd   : > { %v5576_v61 = vmul.f32 %v11726_v42, %v5558_v35  ;;  %v5384_v2 = vpop.permute.xlu1 %5383  ;;  %v11869_v51 = vadd.f32 %v5708_v49, %v5590_v22  ;;  %v5564_v49 = vmax.f32 %v5548_v5, 0.0  ;;  %v13520_v22 = vld [vmem:[#allocation147_spill] sm:$0xff]  ;;  %v5183_v35 = vmul.f32 %v11624_v34, %v5165_v30 }
 0xace   : > { %v5414_v37 = vadd.f32 %v11411_v3, %v5384_v2  ;;  %v5330_v0 = vadd.f32 %v5314_v47, %v5196_v24  ;;  %v5302_v5 = vmul.f32 %v11645_v31, %v5284_v7  ;;  %v13523_v30 = vld [vmem:[#allocation179_spill] sm:$0xff]  ;;  %v5402_v19 = vadd.f32 %v11411_v3, %v11574_v44 }
 0xacf   : > { %v5592_v32 = vadd.f32 %v5576_v61, %v5458_v57  ;;  %5793 = vperm.xlu1 %7575, %v10579_v4   ;;  %v5144_v4 = vadd.f32 %v11397_v58, %v13520_v22  ;;  %v5065_v57 = vadd.f32 %v5049_v28, %v13521_v50  ;;  %v13522_v61 = vld [vmem:[#allocation214_spill] sm:$0xff]  ;;  %v11901_v41 = vpop.permute.xlu0 %5655  ;;  %v5184_v28 = vadd.f32 %v5168_v60, %v11748_v62  ;;  %v13525_v50 = vld [vmem:[#allocation113_spill] sm:$0xff] }
 0xad0   : > { %v5430_v8 = vmax.f32 %v5414_v37, 0.0  ;;  %v5060_v2 = vadd.f32 %v5044_v6, %v13522_v61  ;;  %v5293_v37 = vmax.f32 %v5277_v17, 0.0  ;;  %v5411_v63 = vadd.f32 %v11411_v3, %v13523_v30 }
 0xad1   : > { %v11886_v59 = vpop.permute.xlu1 %5391  ;;  %v11888_v39 = vadd.f32 %v5710_v36, %v5592_v32  ;;  %v5299_v36 = vmax.f32 %v5283_v9, 0.0  ;;  %v5551_v32 = vadd.f32 %v13480_v23, %v11746_v15  ;;  %v5287_v17 = vmax.f32 %v11884_v38, 0.0  ;;  %v13524_v9 = vld [vmem:[#allocation75_spill] sm:$0xff] }
 0xad2   : > { %v5448_v56 = vmul.f32 %v11684_v29, %v5430_v8  ;;  %v5160_v7 = vmax.f32 %v5144_v4, 0.0  ;;  %v5199_v15 = vadd.f32 %v5183_v35, %v5065_v57  ;;  %v5311_v62 = vmul.f32 %v11645_v31, %v5293_v37 }
 0xad3   : > { %7577 = vset.pattern.permute.xlu1 %v13489_v40  ;;  %v5582_v40 = vmul.f32 %v11726_v42, %v5564_v49  ;;  %v5412_v8 = vadd.f32 %v11411_v3, %v11755_v48  ;;  %v5317_v12 = vmul.f32 %v11645_v31, %v5299_v36  ;;  %v5567_v49 = vmax.f32 %v5551_v32, 0.0  ;;  %v5738_v61 = vpop.permute.xlu0 %5737 }
 0xad4   : > { %v5464_v24 = vadd.f32 %v5448_v56, %v5330_v0  ;;  %5903 = vperm.xlu1 %7577, %v10543_v53   ;;  %v5137_v53 = vadd.f32 %v11397_v58, %v13524_v9  ;;  %v5318_v4 = vadd.f32 %v5302_v5, %v5184_v28  ;;  %v5427_v35 = vmax.f32 %v5411_v63, 0.0  ;;  %v13526_v5 = vld [vmem:[#allocation77_spill] sm:$0xff] }
 0xad5   : > { %v5396_v6 = vpop.permute.xlu1 %5395  ;;  %v5294_v0 = vmax.f32 %v5278_v33, 0.0  ;;  %v5679_v56 = vadd.f32 %v13508_v52, %v5640_v46  ;;  %v11926_v57 = vadd.f32 %v13470_v55, %v13525_v50  ;;  %v5178_v48 = vmul.f32 %v11624_v34, %v5160_v7 }
 0xad6   : > { %v5417_v47 = vadd.f32 %v11411_v3, %v5396_v6  ;;  %v11917_v60 = vadd.f32 %v5582_v40, %v5464_v24  ;;  %v5333_v37 = vadd.f32 %v5317_v12, %v5199_v15  ;;  %v5153_v32 = vmax.f32 %v5137_v53, 0.0  ;;  %v13527_v40 = vld [vmem:[#allocation103_spill] sm:$0xff] }
 0xad7   : > { %v5327_v24 = vadd.f32 %v5311_v62, %v5193_v14  ;;  %v5428_v30 = vmax.f32 %v5412_v8, 0.0  ;;  %v5139_v28 = vadd.f32 %v11397_v58, %v13526_v5  ;;  %v5418_v46 = vmax.f32 %v5402_v19, 0.0  ;;  %v13529_v62 = vld [vmem:[#allocation218_spill] sm:$0xff] }
 0xad8   : > { %v5433_v22 = vmax.f32 %v5417_v47, 0.0  ;;  %5911 = vperm.xlu1 %7577, %v10555_v20   ;;  %v5585_v63 = vmul.f32 %v11726_v42, %v5567_v49  ;;  %v5445_v6 = vmul.f32 %v11684_v29, %v5427_v35  ;;  %v5312_v7 = vmul.f32 %v11645_v31, %v5294_v0  ;;  %v13528_v47 = vld [vmem:[#allocation79_spill] sm:$0xff] }
 0xad9   : > { %v5695_v15 = vmax.f32 %v5679_v56, 0.0  ;;  %v5141_v9 = vadd.f32 %v11397_v58, %v13528_v47  ;;  %v5194_v53 = vadd.f32 %v5178_v48, %v5060_v2  ;;  %v5536_v8 = vadd.f32 %v13480_v23, %v13529_v62  ;;  %v5750_v48 = vpop.permute.xlu0 %5749 }
 0xada   : > { %v5451_v36 = vmul.f32 %v11684_v29, %v5433_v22  ;;  %v5506_v44 = vpop.permute.xlu1 %5505  ;;  %v5446_v49 = vmul.f32 %v11684_v29, %v5428_v30  ;;  %v5461_v22 = vadd.f32 %v5445_v6, %v5327_v24  ;;  %v5171_v0 = vmul.f32 %v11624_v34, %v5153_v32 }
 0xadb   : > { %v5545_v20 = vadd.f32 %v13480_v23, %v5506_v44  ;;  %v5155_v56 = vmax.f32 %v5139_v28, 0.0  ;;  %v5405_v2 = vadd.f32 %v11411_v3, %v11618_v25  ;;  %v5713_v44 = vmul.f32 %v11840_v16, %v5695_v15  ;;  %v13531_v28 = vld [vmem:[#allocation76_spill] sm:$0xff] }
 0xadc   : > { %v5467_v33 = vadd.f32 %v5451_v36, %v5333_v37  ;;  %5915 = vperm.xlu1 %7577, %v13527_v40   ;;  %v5436_v37 = vmul.f32 %v11684_v29, %v5418_v46  ;;  %v5328_v36 = vadd.f32 %v5312_v7, %v5194_v53  ;;  %v5552_v32 = vmax.f32 %v5536_v8, 0.0 }
 0xadd   : > { %v5561_v14 = vmax.f32 %v5545_v20, 0.0  ;;  %v13530_v20 = vld [vmem:[#allocation69_spill] sm:$0xff]  ;;  %v5407_v46 = vadd.f32 %v11411_v3, %v11640_v11  ;;  %v5421_v15 = vmax.f32 %v5405_v2, 0.0  ;;  %v5187_v11 = vadd.f32 %v5171_v0, %v11770_v26 }
 0xade   : > { %v5510_v12 = vpop.permute.xlu1 %5509  ;;  %v11943_v19 = vadd.f32 %v5585_v63, %v5467_v33  ;;  %v5275_v5 = vadd.f32 %v13470_v55, %v13530_v20  ;;  %v5157_v63 = vmax.f32 %v5141_v9, 0.0  ;;  %v5804_v33 = vadd.f32 %v13531_v28, %v5738_v61 }
 0xadf   : > { %v5579_v50 = vmul.f32 %v11726_v42, %v5561_v14  ;;  %v5546_v35 = vadd.f32 %v13480_v23, %v5510_v12  ;;  %v5462_v25 = vadd.f32 %v5446_v49, %v5328_v36  ;;  %v5452_v7 = vadd.f32 %v5436_v37, %v5318_v4  ;;  %v5758_v12 = vpop.permute.xlu0 %5757 }
 0xae0   : > { %5923 = vperm.xlu1 %7577, %v13516_v18   ;;  %v11963_v14 = vstv %s11934_s14  ;;  %v5305_v61 = vmul.f32 %v11645_v31, %v5287_v17  ;;  %v5173_v9 = vmul.f32 %v11624_v34, %v5155_v56  ;;  %v5570_v62 = vmul.f32 %v11726_v42, %v5552_v32 }
 0xae1   : > { %v5595_v24 = vadd.f32 %v5579_v50, %v5461_v22  ;;  %v5562_v30 = vmax.f32 %v5546_v35, 0.0  ;;  %v5539_v4 = vadd.f32 %v13480_v23, %v11561_v10  ;;  %v5820_v8 = vmax.f32 %v5804_v33, 0.0 }
 0xae2   : > { %v5291_v22 = vmax.f32 %v5275_v5, 0.0  ;;  %v5175_v38 = vmul.f32 %v11624_v34, %v5157_v63  ;;  %v5423_v17 = vmax.f32 %v5407_v46, 0.0  ;;  %v5439_v26 = vmul.f32 %v11684_v29, %v5421_v15 }
 0xae3   : > { %v5580_v40 = vmul.f32 %v11726_v42, %v5562_v30  ;;  %v5604_v18 = vpop.permute.xlu1 %5603  ;;  %v11960_v6 = vadd.f32 %v5713_v44, %v5595_v24  ;;  %v5409_v35 = vadd.f32 %v11411_v3, %v11659_v21  ;;  %v5586_v0 = vadd.f32 %v5570_v62, %v5452_v7  ;;  %v5766_v33 = vpop.permute.xlu0 %5765 }
 0xae4   : > { %v5670_v47 = vadd.f32 %v13508_v52, %v5604_v18  ;;  %5931 = vperm.xlu1 %7577, %v13472_v54   ;;  %v5289_v54 = vmax.f32 %v11926_v57, 0.0  ;;  %v5057_v10 = vadd.f32 %v11830_v13, %v11810_v45  ;;  %v5189_v37 = vadd.f32 %v5173_v9, %v11812_v43  ;;  %v13532_v57 = vld [vmem:[#allocation132_spill] sm:$0xff] }
 0xae5   : > { %v11972_v53 = vadd.f32 %v5580_v40, %v5462_v25  ;;  %v5541_v2 = vadd.f32 %v13480_v23, %v13532_v57  ;;  %v5807_v36 = vadd.f32 %v13531_v28, %v5750_v48  ;;  %v5555_v44 = vmax.f32 %v5539_v4, 0.0  ;;  %v13533_v40 = vld [vmem:[#allocation134_spill] sm:$0xff]  ;;  %v13538_v57 = vld [vmem:[#allocation181_spill] sm:$0xff] }
 0xae6   : > { %v5686_v49 = vmax.f32 %v5670_v47, 0.0  ;;  %v5321_v24 = vadd.f32 %v5305_v61, %v5187_v11  ;;  %v5838_v30 = vmul.f32 %v11963_v14, %v5820_v8  ;;  %v5307_v21 = vmul.f32 %v11645_v31, %v5289_v54  ;;  %v13534_v47 = vld [vmem:[#allocation150_spill] sm:$0xff]  ;;  %v13537_v54 = vld [vmem:[#allocation145_spill] sm:$0xff] }
 0xae7   : > { %v11979_v50 = vpop.permute.xlu1 %5611  ;;  %v5309_v5 = vmul.f32 %v11645_v31, %v5291_v22  ;;  %v5191_v63 = vadd.f32 %v5175_v38, %v5057_v10  ;;  %v5441_v32 = vmul.f32 %v11684_v29, %v5423_v17  ;;  %v5425_v43 = vmax.f32 %v5409_v35, 0.0  ;;  %v13535_v61 = vld [vmem:[#allocation78_spill] sm:$0xff] }
 0xae8   : > { %v5704_v56 = vmul.f32 %v11840_v16, %v5686_v49  ;;  %v5455_v13 = vadd.f32 %v5439_v26, %v5321_v24  ;;  %v5557_v48 = vmax.f32 %v5541_v2, 0.0  ;;  %v5543_v18 = vadd.f32 %v13480_v23, %v13533_v40  ;;  %v13536_v8 = vld [vmem:[#allocation102_spill] sm:$0xff] }
 0xae9   : > { %v5323_v7 = vadd.f32 %v5307_v21, %v5189_v37  ;;  %v5823_v15 = vmax.f32 %v5807_v36, 0.0  ;;  %v12002_v11 = vadd.f32 %v13535_v61, %v13534_v47  ;;  %v5573_v9 = vmul.f32 %v11726_v42, %v5555_v44  ;;  %v13543_v47 = vld [vmem:[#allocation135_spill] sm:$0xff] }
 0xaea   : > { %v5720_v20 = vadd.f32 %v5704_v56, %v5586_v0  ;;  %v5809_v62 = vadd.f32 %v13531_v28, %v5758_v12  ;;  %v4615_v49 = vmax.f32 %v13536_v8, 0.0  ;;  %v5014_v22 = vadd.f32 %v11387_v1, %v13537_v54 }
 0xaeb   : > { %v5616_v45 = vpop.permute.xlu1 %5615  ;;  %v5457_v38 = vadd.f32 %v5441_v32, %v5323_v7  ;;  %v5325_v17 = vadd.f32 %v5309_v5, %v5191_v63  ;;  %v5443_v35 = vmul.f32 %v11684_v29, %v5425_v43  ;;  %v5589_v0 = vadd.f32 %v5573_v9, %v5455_v13  ;;  %v13539_v5 = vld [vmem:[#allocation47_spill] sm:$0xff]  ;;  %v13540_v63 = vld [vmem:[#allocation52_spill] sm:$0xff]  ;;  %v13541_v13 = vld [vmem:[#allocation185_spill] sm:$0xff] }
 0xaec   : > { %v5673_v46 = vadd.f32 %v13508_v52, %v5616_v45  ;;  %v11996_v25 = vadd.f32 %v5838_v30, %v5720_v20  ;;  %v5575_v37 = vmul.f32 %v11726_v42, %v5557_v48  ;;  %v5148_v12 = vadd.f32 %v11397_v58, %v13538_v57  ;;  %v5770_v30 = vpop.permute.xlu0 %5769 }
 0xaed   : > { %v5559_v2 = vmax.f32 %v5543_v18, 0.0  ;;  %v5841_v36 = vmul.f32 %v11963_v14, %v5823_v15  ;;  %v5825_v44 = vmax.f32 %v5809_v62, 0.0  ;;  %v5811_v24 = vadd.f32 %v13531_v28, %v5766_v33  ;;  %v13542_v33 = vld [vmem:[#allocation178_spill] sm:$0xff] }
 0xaee   : > { %v5689_v4 = vmax.f32 %v5673_v46, 0.0  ;;  %v4733_v32 = vadd.f32 %v13540_v63, %v13539_v5  ;;  %v5030_v45 = vmax.f32 %v5014_v22, 0.0  ;;  %v5282_v43 = vadd.f32 %v13470_v55, %v13541_v13 }
 0xaef   : > { %v5624_v26 = vpop.permute.xlu1 %5623  ;;  %v5591_v46 = vadd.f32 %v5575_v37, %v5457_v38  ;;  %v5459_v40 = vadd.f32 %v5443_v35, %v5325_v17  ;;  %v4867_v61 = vadd.f32 %v13543_v47, %v13542_v33  ;;  %v5164_v9 = vmax.f32 %v5148_v12, 0.0 }
 0xaf0   : > { %v5707_v56 = vmul.f32 %v11840_v16, %v5689_v4  ;;  %v5675_v10 = vadd.f32 %v13508_v52, %v5624_v26  ;;  %v5577_v62 = vmul.f32 %v11726_v42, %v5559_v2  ;;  %v5416_v4 = vadd.f32 %v11411_v3, %v11886_v59  ;;  %v5782_v37 = vpop.permute.xlu0 %5781 }
 0xaf1   : > { %v5843_v8 = vmul.f32 %v11963_v14, %v5825_v44  ;;  %v5827_v54 = vmax.f32 %v5811_v24, 0.0  ;;  %v4749_v17 = vmax.f32 %v4733_v32, 0.0  ;;  %v5048_v26 = vmul.f32 %v11572_v27, %v5030_v45 }
 0xaf2   : > { %v5723_v20 = vadd.f32 %v5707_v56, %v5589_v0  ;;  %v5691_v21 = vmax.f32 %v5675_v10, 0.0  ;;  %v5683_v35 = vadd.f32 %v13508_v52, %v11901_v41  ;;  %v5298_v0 = vmax.f32 %v5282_v43, 0.0  ;;  %v13544_v56 = vld [vmem:[#allocation62_spill] sm:$0xff]  ;;  %v13547_v43 = vld [vmem:[#allocation89_spill] sm:$0xff] }
 0xaf3   : > { %v5632_v48 = vpop.permute.xlu1 %5631  ;;  %v5001_v10 = vadd.f32 %v11387_v1, %v13544_v56  ;;  %v5593_v57 = vadd.f32 %v5577_v62, %v5459_v40  ;;  %v5182_v24 = vmul.f32 %v11624_v34, %v5164_v9  ;;  %v4883_v5 = vmax.f32 %v4867_v61, 0.0  ;;  %v13546_v41 = vld [vmem:[#allocation58_spill] sm:$0xff]  ;;  %v13549_v9 = vld [vmem:[#allocation83_spill] sm:$0xff] }
 0xaf4   : > { %v5709_v18 = vmul.f32 %v11840_v16, %v5691_v21  ;;  %v5677_v7 = vadd.f32 %v13508_v52, %v5632_v48  ;;  %v12023_v15 = vadd.f32 %v5841_v36, %v5723_v20  ;;  %v13545_v36 = vld [vmem:[#allocation207_spill] sm:$0xff]  ;;  %v5432_v20 = vmax.f32 %v5416_v4, 0.0 }
 0xaf5   : > { %v4633_v44 = vmul.f32 %v13545_v36, %v4615_v49  ;;  %v5135_v32 = vadd.f32 %v11397_v58, %v13546_v41  ;;  %v5845_v45 = vmul.f32 %v11963_v14, %v5827_v54  ;;  %v5699_v48 = vmax.f32 %v5683_v35, 0.0  ;;  %v13550_v35 = vld [vmem:[#allocation217_spill] sm:$0xff] }
 0xaf6   : > { %v5725_v22 = vadd.f32 %v5709_v18, %v5591_v46  ;;  %v5693_v38 = vmax.f32 %v5677_v7, 0.0  ;;  %v5064_v46 = vadd.f32 %v5048_v26, %v13547_v43  ;;  %v5316_v40 = vmul.f32 %v11645_v31, %v5298_v0  ;;  %v13548_v7 = vld [vmem:[#allocation188_spill] sm:$0xff] }
 0xaf7   : > { %v4767_v49 = vmul.f32 %v13548_v7, %v4749_v17  ;;  %v5017_v33 = vmax.f32 %v5001_v10, 0.0  ;;  %v5269_v62 = vadd.f32 %v13470_v55, %v13549_v9  ;;  %v4649_v26 = vadd.f32 %v4633_v44, %v12002_v11  ;;  %v12057_v17 = vpop.permute.xlu0 %5785 }
 0xaf8   : > { %v5711_v12 = vmul.f32 %v11840_v16, %v5693_v38  ;;  %v5522_v59 = vpop.permute.xlu1 %5521  ;;  %v12037_v2 = vadd.f32 %v5843_v8, %v5725_v22  ;;  %v5198_v8 = vadd.f32 %v5182_v24, %v5064_v46  ;;  %v5450_v22 = vmul.f32 %v11684_v29, %v5432_v20 }
 0xaf9   : > { %v5549_v21 = vadd.f32 %v13480_v23, %v5522_v59  ;;  %v4901_v0 = vmul.f32 %v13550_v35, %v4883_v5  ;;  %v5151_v56 = vmax.f32 %v5135_v32, 0.0  ;;  %v5717_v10 = vmul.f32 %v11840_v16, %v5699_v48  ;;  %v13553_v48 = vld [vmem:[#allocation148_spill] sm:$0xff] }
 0xafa   : > { %v5727_v13 = vadd.f32 %v5711_v12, %v5593_v57  ;;  %v5332_v57 = vadd.f32 %v5316_v40, %v5198_v8  ;;  %v13551_v12 = vld [vmem:[#allocation151_spill] sm:$0xff]  ;;  %v4783_v24 = vadd.f32 %v4767_v49, %v4649_v26  ;;  %v5035_v20 = vmul.f32 %v11572_v27, %v5017_v33 }
 0xafb   : > { %v5565_v18 = vmax.f32 %v5549_v21, 0.0  ;;  %v5812_v41 = vadd.f32 %v13531_v28, %v5770_v30  ;;  %v5169_v46 = vmul.f32 %v11624_v34, %v5151_v56  ;;  %v5403_v40 = vadd.f32 %v11411_v3, %v13553_v48  ;;  %v12074_v9 = vpop.permute.xlu0 %5797 }
 0xafc   : > { %v5526_v4 = vpop.permute.xlu1 %5525  ;;  %v12050_v61 = vadd.f32 %v5845_v45, %v5727_v13  ;;  %v5285_v45 = vmax.f32 %v5269_v62, 0.0  ;;  %v5466_v13 = vadd.f32 %v5450_v22, %v5332_v57  ;;  %v4917_v32 = vadd.f32 %v4901_v0, %v4783_v24 }
 0xafd   : > { %v5583_v54 = vmul.f32 %v11726_v42, %v5565_v18  ;;  %v5550_v38 = vadd.f32 %v13480_v23, %v5526_v4  ;;  %v13554_v18 = vld [vmem:[#allocation122_spill] sm:$0xff]  ;;  %v5828_v30 = vmax.f32 %v5812_v41, 0.0  ;;  %v5419_v0 = vmax.f32 %v5403_v40, 0.0  ;;  %v13557_v41 = vld [vmem:[#allocation137_spill] sm:$0xff] }
 0xafe   : > { %v5537_v49 = vadd.f32 %v13480_v23, %v13554_v18  ;;  %v5051_v4 = vadd.f32 %v5035_v20, %v4917_v32  ;;  %v5303_v8 = vmul.f32 %v11645_v31, %v5285_v45  ;;  %v5815_v57 = vadd.f32 %v13531_v28, %v5782_v37 }
 0xaff   : > { %v5599_v59 = vadd.f32 %v5583_v54, %v13551_v12  ;;  %v5566_v21 = vmax.f32 %v5550_v38, 0.0  ;;  %v13556_v12 = vld [vmem:[#allocation187_spill] sm:$0xff]  ;;  %v5671_v20 = vadd.f32 %v13508_v52, %v13557_v41  ;;  %v5437_v37 = vmul.f32 %v11684_v29, %v5419_v0 }
 0xb00   : > { %v5185_v26 = vadd.f32 %v5169_v46, %v5051_v4  ;;  %v5553_v56 = vmax.f32 %v5537_v49, 0.0  ;;  %v13560_v46 = vld [vmem:[#allocation157_spill] sm:$0xff]  ;;  %v5831_v18 = vmax.f32 %v5815_v57, 0.0  ;;  %v13562_v0 = vld [vmem:[#allocation139_spill] sm:$0xff] }
 0xb01   : > { %v5584_v11 = vmul.f32 %v11726_v42, %v5566_v21  ;;  %v5636_v44 = vpop.permute.xlu1 %5635  ;;  %v12064_v5 = vadd.f32 %v5717_v10, %v5599_v59  ;;  %v5846_v10 = vmul.f32 %v11963_v14, %v5828_v30 }
 0xb02   : > { %v5678_v43 = vadd.f32 %v13508_v52, %v5636_v44  ;;  %v5319_v24 = vadd.f32 %v5303_v8, %v5185_v26  ;;  %v5571_v40 = vmul.f32 %v11726_v42, %v5553_v56 }
 0xb03   : > { %13552 = vst [vmem:[#allocation80_spill] sm:$0xff] %v12064_v5  ;;  %v12072_v33 = vadd.f32 %v5584_v11, %v5466_v13  ;;  %v5876_v13 = vpop.permute.xlu0 %5875 }
 0xb04   : > { %v5694_v62 = vmax.f32 %v5678_v43, 0.0  ;;  %v13559_v43 = vld [vmem:[#allocation205_spill] sm:$0xff]  ;;  %v5453_v4 = vadd.f32 %v5437_v37, %v5319_v24 }
 0xb05   : > { %13555 = vst [vmem:[#allocation215_spill] sm:$0xff] %v12072_v33  ;;  %v5644_v22 = vpop.permute.xlu1 %5643  ;;  %v12090_v48 = vrot.slane %v13560_v46, %v13559_v43 }
 0xb06   : > { %v5712_v54 = vmul.f32 %v11840_v16, %v5694_v62  ;;  %v5680_v38 = vadd.f32 %v13508_v52, %v5644_v22  ;;  %v5687_v62 = vmax.f32 %v5671_v20, 0.0 }
 0xb07   : > { %v5939_v8 = vadd.f32 %v12090_v48, %v5876_v13 }
 0xb08   : > { %v5728_v59 = vadd.f32 %v5712_v54, %v13556_v12  ;;  %v5696_v21 = vmax.f32 %v5680_v38, 0.0  ;;  %v5587_v38 = vadd.f32 %v5571_v40, %v5453_v4  ;;  %v5705_v56 = vmul.f32 %v11840_v16, %v5687_v62  ;;  %v13566_v40 = vld [vmem:[#allocation155_spill] sm:$0xff]  ;;  %v13568_v4 = vld [vmem:[#allocation160_spill] sm:$0xff] }
 0xb09   : > { %v5648_v45 = vpop.permute.xlu1 %5647  ;;  %v5955_v57 = vmax.f32 %v5939_v8, 0.0  ;;  %v13569_v8 = vld [vmem:[#allocation116_spill] sm:$0xff] }
 0xb0a   : > { %v5714_v11 = vmul.f32 %v11840_v16, %v5696_v21  ;;  %v5681_v44 = vadd.f32 %v13508_v52, %v5648_v45  ;;  %v12086_v32 = vadd.f32 %v5846_v10, %v5728_v59  ;;  %v5849_v10 = vmul.f32 %v11963_v14, %v5831_v18  ;;  %v12103_v59 = vld [vmem:[#allocation8 + $0x40] sm:$0xff]   ;;  %v13567_v18 = vld [vmem:[#allocation133_spill] sm:$0xff] }
 0xb0b   : > { %v12105_v21 = vstv %s6718_s24  ;;  %v5721_v20 = vadd.f32 %v5705_v56, %v5587_v38  ;;  %v6761_v13 = vunpack.c.h.bf16 %v12103_v59  ;;  %v13572_v56 = vld [vmem:[#allocation131_spill] sm:$0xff] }
 0xb0c   : > { %13558 = vst [vmem:[#allocation152_spill] sm:$0xff] %v12086_v32  ;;  %v12095_v49 = vadd.f32 %v5714_v11, %v11972_v53  ;;  %v5697_v30 = vmax.f32 %v5681_v44, 0.0  ;;  %v13564_v11 = vld [vmem:[#allocation219_spill] sm:$0xff]  ;;  %v5973_v46 = vmul.f32 %v12105_v21, %v5955_v57 }
 0xb0d   : > { %v13565_v44 = vld [vmem:[#allocation91_spill] sm:$0xff] }
 0xb0e   : > { %13561 = vst [vmem:[#allocation141_spill] sm:$0xff] %v12095_v49  ;;  %v5715_v22 = vmul.f32 %v11840_v16, %v5697_v30  ;;  %v5742_v54 = vpop.permute.xlu1 %5741  ;;  %v4064_v43 = vadd.f32 %v13565_v44, %v13564_v11  ;;  %v3930_v30 = vadd.f32 %v13567_v18, %v13566_v40 }
 0xb0f   : > { %v5805_v26 = vadd.f32 %v13531_v28, %v5742_v54 }
 0xb10   : > { %v5731_v12 = vadd.f32 %v5715_v22, %v13562_v0  ;;  %v4198_v22 = vadd.f32 %v13569_v8, %v13568_v4  ;;  %v4080_v38 = vmax.f32 %v4064_v43, 0.0  ;;  %v13571_v0 = vld [vmem:[#allocation165_spill] sm:$0xff]  ;;  %v3946_v5 = vmax.f32 %v3930_v30, 0.0  ;;  %v13577_v43 = vld [vmem:[#allocation172_spill] sm:$0xff] }
 0xb11   : > { %v5821_v53 = vmax.f32 %v5805_v26, 0.0  ;;  %v6118_v26 = vsub.f32 1.0, %v6761_v13 }
 0xb12   : > { %v12107_v24 = vpop.permute.xlu1 %5745  ;;  %v12109_v41 = vadd.f32 %v5849_v10, %v5731_v12  ;;  %v13570_v10 = vld [vmem:[#allocation164_spill] sm:$0xff]  ;;  %v4214_v57 = vmax.f32 %v4198_v22, 0.0  ;;  %v13579_v22 = vld [vmem:[#allocation119_spill] sm:$0xff] }
 0xb13   : > { %v5839_v45 = vmul.f32 %v11963_v14, %v5821_v53  ;;  %v4332_v12 = vadd.f32 %v13571_v0, %v13570_v10  ;;  %v6134_v18 = vmul.f32 -1e+30, %v6118_v26  ;;  %v13578_v10 = vld [vmem:[#allocation105_spill] sm:$0xff] }
 0xb14   : > { %13563 = vst [vmem:[#allocation196_spill] sm:$0xff] %v12109_v41  ;;  %v13575_v41 = vld [vmem:[#allocation26_spill] sm:$0xff]  ;;  %v3964_v0 = vmul.f32 %v13578_v10, %v3946_v5  ;;  %v4232_v32 = vmul.f32 %v13579_v22, %v4214_v57 }
 0xb15   : > { %v5855_v37 = vadd.f32 %v5839_v45, %v5721_v20  ;;  %v13573_v20 = vld [vmem:[#allocation130_spill] sm:$0xff]  ;;  %v13574_v45 = vld [vmem:[#allocation168_spill] sm:$0xff]  ;;  %v4098_v4 = vmul.f32 %v13575_v41, %v4080_v38 }
 0xb16   : > { %v5754_v62 = vpop.permute.xlu1 %5753  ;;  %v4466_v44 = vadd.f32 %v13574_v45, %v13573_v20  ;;  %v13580_v20 = vld [vmem:[#allocation42_spill] sm:$0xff] }
 0xb17   : > { %v5989_v54 = vadd.f32 %v5973_v46, %v5855_v37  ;;  %v4348_v46 = vmax.f32 %v4332_v12, 0.0  ;;  %v13576_v37 = vld [vmem:[#allocation24_spill] sm:$0xff]  ;;  %v4734_v45 = vadd.f32 %v13540_v63, %v13580_v20  ;;  %v4114_v12 = vadd.f32 %v4098_v4, %v3964_v0  ;;  %v13583_v57 = vld [vmem:[#allocation22_spill] sm:$0xff] }
 0xb18   : > { %v4600_v8 = vadd.f32 %v13577_v43, %v13576_v37  ;;  %v4482_v33 = vmax.f32 %v4466_v44, 0.0  ;;  %v13581_v37 = vld [vmem:[#allocation177_spill] sm:$0xff]  ;;  %v13582_v43 = vld [vmem:[#allocation63_spill] sm:$0xff]  ;;  %v13584_v10 = vld [vmem:[#allocation50_spill] sm:$0xff] }
 0xb19   : > { %v6005_v53 = vadd.f32 %v5989_v54, %v13572_v56  ;;  %v5816_v54 = vadd.f32 %v13531_v28, %v12057_v17  ;;  %v4868_v17 = vadd.f32 %v13543_v47, %v13582_v43  ;;  %v4750_v63 = vmax.f32 %v4734_v45, 0.0  ;;  %v13585_v47 = vld [vmem:[#allocation111_spill] sm:$0xff] }
 0xb1a   : > { %v12123_v11 = vpop.permute.xlu1 %5761  ;;  %v4500_v44 = vmul.f32 %v13583_v57, %v4482_v33  ;;  %v5002_v22 = vadd.f32 %v11387_v1, %v13584_v10  ;;  %v5819_v33 = vadd.f32 %v13531_v28, %v12074_v9  ;;  %v13587_v43 = vld [vmem:[#allocation183_spill] sm:$0xff] }
 0xb1b   : > { %vm6021_vm0 = vcmp.gt.f32.partialorder %v6005_v53, 0.0  ;;  %v6037_v40 = vmul.f32 0.01, %v6005_v53  ;;  %v4768_v1 = vmul.f32 %v13548_v7, %v4750_v63  ;;  %v5404_v9 = vadd.f32 %v11411_v3, %v13587_v43  ;;  %v12168_v63 = vld [vmem:[#allocation8 + $0x50] sm:$0xff]  }
 0xb1c   : > { %v5018_v45 = vmax.f32 %v5002_v22, 0.0  ;;  %v12171_v22 = vld [vmem:[#allocation8 + $0x58] sm:$0xff]  }
 0xb1d   : > { %v6053_v49 = vsel %vm6021_vm0, %v6005_v53, %v6037_v40  ;;  %v4366_v53 = vmul.f32 %v13581_v37, %v4348_v46  ;;  %v4616_v40 = vmax.f32 %v4600_v8, 0.0  ;;  %v5420_v3 = vmax.f32 %v5404_v9, 0.0 }
 0xb1e   : > { %v6102_v30 = vmul.f32 %v6761_v13, %v6053_v49  ;;  %v5832_v49 = vmax.f32 %v5816_v54, 0.0  ;;  %v4248_v13 = vadd.f32 %v4232_v32, %v4114_v12  ;;  %v5136_v54 = vadd.f32 %v11397_v58, %v13585_v47 }
 0xb1f   : > { %v5652_v26 = vpop.permute.xlu1 %5651  ;;  %v4634_v8 = vmul.f32 %v13545_v36, %v4616_v40  ;;  %v5036_v7 = vmul.f32 %v11572_v27, %v5018_v45  ;;  %v6768_v47 = vunpack.c.l.bf16 %v12168_v63 }
 0xb20   : > { %v5682_v41 = vadd.f32 %v13508_v52, %v5652_v26  ;;  %v12137_v38 = vadd.f32 %v6134_v18, %v6102_v30  ;;  %v4382_v46 = vadd.f32 %v4366_v53, %v4248_v13  ;;  %v4884_v30 = vmax.f32 %v4868_v17, 0.0 }
 0xb21   : > { %v5850_v0 = vmul.f32 %v11963_v14, %v5832_v49  ;;  %v5152_v40 = vmax.f32 %v5136_v54, 0.0 }
 0xb22   : > { %v5698_v5 = vmax.f32 %v5682_v41, 0.0  ;;  %6167 = vmax.xlane.f32.xlu1 %v12137_v38  ;;  %v4516_v20 = vadd.f32 %v4500_v44, %v4382_v46  ;;  %v13586_v41 = vld [vmem:[#allocation117_spill] sm:$0xff]  ;;  %v4902_v53 = vmul.f32 %v13550_v35, %v4884_v30 }
 0xb23   : > { %v12146_v18 = vpop.permute.xlu1 %5659  ;;  %v5270_v12 = vadd.f32 %v13470_v55, %v13586_v41  ;;  %v5888_v55 = vpop.permute.xlu0 %5887  ;;  %v5170_v35 = vmul.f32 %v11624_v34, %v5152_v40  ;;  %v6121_v41 = vsub.f32 1.0, %v6768_v47 }
 0xb24   : > { %v5716_v4 = vmul.f32 %v11840_v16, %v5698_v5  ;;  %v4650_v58 = vadd.f32 %v4634_v8, %v4516_v20  ;;  %v5808_v5 = vadd.f32 %v13531_v28, %v5754_v62 }
 0xb25   : > { %v5286_v13 = vmax.f32 %v5270_v12, 0.0 }
 0xb26   : > { %v5732_v32 = vadd.f32 %v5716_v4, %v11917_v60  ;;  %v5835_v60 = vmax.f32 %v5819_v33, 0.0  ;;  %v4784_v49 = vadd.f32 %v4768_v1, %v4650_v58  ;;  %v13588_v4 = vld [vmem:[#allocation104_spill] sm:$0xff]  ;;  %v5824_v30 = vmax.f32 %v5808_v5, 0.0 }
 0xb27   : > { %v5664_v26 = vpop.permute.xlu1 %5663  ;;  %v5538_v46 = vadd.f32 %v13480_v23, %v13588_v4  ;;  %v5304_v54 = vmul.f32 %v11645_v31, %v5286_v13  ;;  %v6772_v33 = vunpack.c.l.bf16 %v12171_v22  ;;  %v5942_v23 = vadd.f32 %v12090_v48, %v5888_v55 }
 0xb28   : > { %v12159_v36 = vadd.f32 %v5850_v0, %v5732_v32  ;;  %v5685_v37 = vadd.f32 %v13508_v52, %v5664_v26  ;;  %v4918_v10 = vadd.f32 %v4902_v53, %v4784_v49  ;;  %v5853_v27 = vmul.f32 %v11963_v14, %v5835_v60  ;;  %v5896_v26 = vpop.permute.xlu0 %5895  ;;  %v12196_v53 = vld [vmem:[#allocation8 + $0x48] sm:$0xff]  }
 0xb29   : > { %v5672_v0 = vadd.f32 %v13508_v52, %v11979_v50  ;;  %v5438_v1 = vmul.f32 %v11684_v29, %v5420_v3  ;;  %v5554_v45 = vmax.f32 %v5538_v46, 0.0  ;;  %v5806_v31 = vadd.f32 %v13531_v28, %v12107_v24 }
 0xb2a   : > { %v5701_v17 = vmax.f32 %v5685_v37, 0.0  ;;  %v5052_v8 = vadd.f32 %v5036_v7, %v4918_v10  ;;  %v5842_v50 = vmul.f32 %v11963_v14, %v5824_v30  ;;  %v6760_v58 = vunpack.c.l.bf16 %v12103_v59 }
 0xb2b   : > { %v5688_v37 = vmax.f32 %v5672_v0, 0.0  ;;  %v5958_v29 = vmax.f32 %v5942_v23, 0.0  ;;  %v5572_v60 = vmul.f32 %v11726_v42, %v5554_v45  ;;  %v5944_v7 = vadd.f32 %v12090_v48, %v5896_v26 }
 0xb2c   : > { %v5719_v57 = vmul.f32 %v11840_v16, %v5701_v17  ;;  %v5774_v44 = vpop.permute.xlu1 %5773  ;;  %v5186_v20 = vadd.f32 %v5170_v35, %v5052_v8  ;;  %v5822_v17 = vmax.f32 %v5806_v31, 0.0  ;;  %v5858_v5 = vadd.f32 %v5842_v50, %v11869_v51 }
 0xb2d   : > { %v5813_v43 = vadd.f32 %v13531_v28, %v5774_v44  ;;  %v6764_v13 = vunpack.c.l.bf16 %v12196_v53  ;;  %v12206_v55 = vmul.f32 -1e+30, %v6121_v41  ;;  %v5706_v10 = vmul.f32 %v11840_v16, %v5688_v37 }
 0xb2e   : > { %v5735_v62 = vadd.f32 %v5719_v57, %v11943_v19  ;;  %v5810_v19 = vadd.f32 %v13531_v28, %v12123_v11  ;;  %v5320_v12 = vadd.f32 %v5304_v54, %v5186_v20  ;;  %v6123_v11 = vsub.f32 1.0, %v6772_v33  ;;  %v5908_v57 = vpop.permute.xlu0 %5907 }
 0xb2f   : > { %v6117_v44 = vsub.f32 1.0, %v6760_v58  ;;  %v5976_v42 = vmul.f32 %v12105_v21, %v5958_v29  ;;  %v5829_v46 = vmax.f32 %v5813_v43, 0.0  ;;  %v6765_v51 = vunpack.c.h.bf16 %v12196_v53 }
 0xb30   : > { %v12181_v34 = vpop.permute.xlu1 %5777  ;;  %v12184_v32 = vadd.f32 %v5853_v27, %v5735_v62  ;;  %v5826_v40 = vmax.f32 %v5810_v19, 0.0  ;;  %v5454_v24 = vadd.f32 %v5438_v1, %v5320_v12  ;;  %v12211_v3 = vmul.f32 -1e+30, %v6123_v11  ;;  %v12216_v62 = vld [vmem:[#allocation8 + $0x60] sm:$0xff]  }
 0xb31   : > { %v5840_v30 = vmul.f32 %v11963_v14, %v5822_v17  ;;  %v5960_v23 = vmax.f32 %v5944_v7, 0.0  ;;  %v5947_v19 = vadd.f32 %v12090_v48, %v5908_v57  ;;  %v5992_v20 = vadd.f32 %v5976_v42, %v5858_v5 }
 0xb32   : > { %v5844_v4 = vmul.f32 %v11963_v14, %v5826_v40  ;;  %v5588_v8 = vadd.f32 %v5572_v60, %v5454_v24  ;;  %v6119_v1 = vsub.f32 1.0, %v6764_v13  ;;  %v6777_v50 = vunpack.c.h.bf16 %v12216_v62 }
 0xb33   : > { %v5847_v12 = vmul.f32 %v11963_v14, %v5829_v46  ;;  %v6133_v11 = vmul.f32 -1e+30, %v6117_v44  ;;  %v6120_v29 = vsub.f32 1.0, %v6765_v51  ;;  %v5963_v60 = vmax.f32 %v5947_v19, 0.0 }
 0xb34   : > { %v5722_v45 = vadd.f32 %v5706_v10, %v5588_v8  ;;  %v5860_v41 = vadd.f32 %v5844_v4, %v11888_v39  ;;  %v6008_v17 = vadd.f32 %v5992_v20, %v13572_v56  ;;  %v6135_v39 = vmul.f32 -1e+30, %v6119_v1 }
 0xb35   : > { %v5872_v9 = vpop.permute.xlu1 %5871  ;;  %v5863_v10 = vadd.f32 %v5847_v12, %v11960_v6  ;;  %v6136_v44 = vmul.f32 -1e+30, %v6120_v29  ;;  %v6769_v42 = vunpack.c.h.bf16 %v12168_v63 }
 0xb36   : > { %v5938_v49 = vadd.f32 %v12090_v48, %v5872_v9  ;;  %v5856_v40 = vadd.f32 %v5840_v30, %v5722_v45  ;;  %v5981_v30 = vmul.f32 %v12105_v21, %v5963_v60  ;;  %vm6024_vm2 = vcmp.gt.f32.partialorder %v6008_v17, 0.0 }
 0xb38   : > { %v5954_v35 = vmax.f32 %v5938_v49, 0.0  ;;  %v5997_v1 = vadd.f32 %v5981_v30, %v5863_v10 }
 0xb39   : > { %v5880_v27 = vpop.permute.xlu1 %5879 }
 0xb3a   : > { %v5972_v54 = vmul.f32 %v12105_v21, %v5954_v35  ;;  %v5940_v0 = vadd.f32 %v12090_v48, %v5880_v27 }
 0xb3c   : > { %v5988_v26 = vadd.f32 %v5972_v54, %v11996_v25  ;;  %v5956_v31 = vmax.f32 %v5940_v0, 0.0  ;;  %v5978_v25 = vmul.f32 %v12105_v21, %v5960_v23  ;;  %v6773_v0 = vunpack.c.h.bf16 %v12171_v22 }
 0xb3d   : > { %v5884_v37 = vpop.permute.xlu1 %5883 }
 0xb3e   : > { %v6004_v43 = vadd.f32 %v5988_v26, %v13572_v56  ;;  %v5974_v9 = vmul.f32 %v12105_v21, %v5956_v31  ;;  %v5941_v24 = vadd.f32 %v12090_v48, %v5884_v37  ;;  %v5994_v57 = vadd.f32 %v5978_v25, %v5860_v41  ;;  %v5920_v41 = vpop.permute.xlu0 %5919 }
 0xb3f   : > { %v6040_v31 = vmul.f32 0.01, %v6008_v17  ;;  %v5950_v25 = vadd.f32 %v12090_v48, %v5920_v41 }
 0xb40   : > { %v6036_v49 = vmul.f32 0.01, %v6004_v43  ;;  %v5990_v7 = vadd.f32 %v5974_v9, %v5856_v40  ;;  %v5957_v5 = vmax.f32 %v5941_v24, 0.0  ;;  %vm6020_vm1 = vcmp.gt.f32.partialorder %v6004_v43, 0.0 }
 0xb41   : > { %v5892_v35 = vpop.permute.xlu1 %5891  ;;  %v6010_v20 = vadd.f32 %v5994_v57, %v13572_v56  ;;  %v6124_v40 = vsub.f32 1.0, %v6773_v0 }
 0xb42   : > { %v6006_v4 = vadd.f32 %v5990_v7, %v13572_v56  ;;  %v5975_v46 = vmul.f32 %v12105_v21, %v5957_v5  ;;  %v5943_v27 = vadd.f32 %v12090_v48, %v5892_v35  ;;  %v6052_v8 = vsel %vm6020_vm1, %v6004_v43, %v6036_v49 }
 0xb43   : > { %v6101_v54 = vmul.f32 %v6760_v58, %v6052_v8  ;;  %vm6026_vm5 = vcmp.gt.f32.partialorder %v6010_v20, 0.0 }
 0xb44   : > { %v6038_v6 = vmul.f32 0.01, %v6006_v4  ;;  %v5991_v23 = vadd.f32 %v5975_v46, %v12023_v15  ;;  %v5959_v19 = vmax.f32 %v5943_v27, 0.0  ;;  %vm6022_vm3 = vcmp.gt.f32.partialorder %v6006_v4, 0.0 }
 0xb45   : > { %v5900_v45 = vpop.permute.xlu1 %5899  ;;  %v12246_v26 = vadd.f32 %v6133_v11, %v6101_v54  ;;  %v5684_v15 = vadd.f32 %v13508_v52, %v12146_v18  ;;  %v6122_v11 = vsub.f32 1.0, %v6769_v42  ;;  %v6056_v52 = vsel %vm6024_vm2, %v6008_v17, %v6040_v31  ;;  %v5928_v17 = vpop.permute.xlu0 %5927 }
 0xb46   : > { %v6007_v12 = vadd.f32 %v5991_v23, %v13572_v56  ;;  %v5977_v59 = vmul.f32 %v12105_v21, %v5959_v19  ;;  %v5945_v58 = vadd.f32 %v12090_v48, %v5900_v45  ;;  %v6054_v37 = vsel %vm6022_vm3, %v6006_v4, %v6038_v6 }
 0xb47   : > { %6165 = vmax.xlane.f32.xlu0 %v12246_v26  ;;  %v6103_v29 = vmul.f32 %v6764_v13, %v6054_v37  ;;  %v6042_v18 = vmul.f32 0.01, %v6010_v20  ;;  %v6013_v13 = vadd.f32 %v5997_v1, %v13572_v56  ;;  %v6138_v10 = vmul.f32 -1e+30, %v6122_v11 }
 0xb48   : > { %v6039_v43 = vmul.f32 0.01, %v6007_v12  ;;  %v5993_v9 = vadd.f32 %v5977_v59, %v12037_v2  ;;  %v5961_v24 = vmax.f32 %v5945_v58, 0.0  ;;  %vm6023_vm4 = vcmp.gt.f32.partialorder %v6007_v12, 0.0 }
 0xb49   : > { %v12262_v60 = vadd.f32 %v6135_v39, %v6103_v29  ;;  %v6126_v39 = vsub.f32 1.0, %v6777_v50  ;;  %v5700_v35 = vmax.f32 %v5684_v15, 0.0  ;;  %v5966_v27 = vmax.f32 %v5950_v25, 0.0 }
 0xb4a   : > { %v6009_v49 = vadd.f32 %v5993_v9, %v13572_v56  ;;  %v5979_v7 = vmul.f32 %v12105_v21, %v5961_v24  ;;  %v5790_v5 = vpop.permute.xlu1 %5789  ;;  %v6055_v57 = vsel %vm6023_vm4, %v6007_v12, %v6039_v43  ;;  %v6105_v30 = vmul.f32 %v6768_v47, %v6056_v52  ;;  %v13589_v9 = vld [vmem:[#allocation215_spill] sm:$0xff] }
 0xb4b   : > { %6169 = vmax.xlane.f32.xlu0 %v12262_v60  ;;  %v6104_v2 = vmul.f32 %v6765_v51, %v6055_v57  ;;  %v6140_v54 = vmul.f32 -1e+30, %v6124_v40  ;;  %v6058_v23 = vsel %vm6026_vm5, %v6010_v20, %v6042_v18  ;;  %v6045_v19 = vmul.f32 0.01, %v6013_v13  ;;  %v12313_v18 = vld [vmem:[#allocation8 + $0x68] sm:$0xff]  }
 0xb4c   : > { %v6041_v4 = vmul.f32 0.01, %v6009_v49  ;;  %v5995_v46 = vadd.f32 %v5979_v7, %v12050_v61  ;;  %vm6025_vm6 = vcmp.gt.f32.partialorder %v6009_v49, 0.0  ;;  %v5952_v1 = vadd.f32 %v12090_v48, %v5928_v17 }
 0xb4d   : > { %v12274_v8 = vadd.f32 %v6136_v44, %v6104_v2  ;;  %vm6029_vm7 = vcmp.gt.f32.partialorder %v6013_v13, 0.0  ;;  %v12284_v44 = vld [vmem:[#allocation8 + $0x70] sm:$0xff]   ;;  %v5718_v47 = vmul.f32 %v11840_v16, %v5700_v35  ;;  %v5814_v31 = vadd.f32 %v13531_v28, %v12181_v34 }
 0xb4e   : > { %v6011_v53 = vadd.f32 %v5995_v46, %v13572_v56  ;;  %v5794_v51 = vpop.permute.xlu1 %5793  ;;  %v6057_v6 = vsel %vm6025_vm6, %v6009_v49, %v6041_v4  ;;  %v12292_v59 = vadd.f32 %v12206_v55, %v6105_v30  ;;  %v6107_v63 = vmul.f32 %v6772_v33, %v6058_v23  ;;  %v12329_v4 = vld [vmem:[#allocation8 + $0x78] sm:$0xff]  }
 0xb4f   : > { %v5818_v45 = vadd.f32 %v13531_v28, %v5794_v51  ;;  %6171 = vmax.xlane.f32.xlu0 %v12274_v8  ;;  %v6106_v61 = vmul.f32 %v6769_v42, %v6057_v6  ;;  %v6061_v58 = vsel %vm6029_vm7, %v6013_v13, %v6045_v19  ;;  %v6784_v37 = vunpack.c.l.bf16 %v12284_v44  ;;  %v13591_v51 = vld [vmem:[#allocation141_spill] sm:$0xff] }
 0xb50   : > { %v6043_v41 = vmul.f32 0.01, %v6011_v53  ;;  %vm6027_vm8 = vcmp.gt.f32.partialorder %v6011_v53, 0.0  ;;  %v6142_v29 = vmul.f32 -1e+30, %v6126_v39  ;;  %v6776_v55 = vunpack.c.l.bf16 %v12216_v62  ;;  %v13590_v39 = vld [vmem:[#allocation152_spill] sm:$0xff] }
 0xb51   : > { %v5834_v20 = vmax.f32 %v5818_v45, 0.0  ;;  %v12289_v12 = vadd.f32 %v6138_v10, %v6106_v61  ;;  %v5984_v11 = vmul.f32 %v12105_v21, %v5966_v27  ;;  %v5968_v33 = vmax.f32 %v5952_v1, 0.0 }
 0xb52   : > { %v6059_v42 = vsel %vm6027_vm8, %v6011_v53, %v6043_v41  ;;  %v5830_v40 = vmax.f32 %v5814_v31, 0.0  ;;  %v5734_v24 = vadd.f32 %v5718_v47, %v13589_v9  ;;  %v12309_v52 = vadd.f32 %v12211_v3, %v6107_v63 }
 0xb53   : > { %v5852_v16 = vmul.f32 %v11963_v14, %v5834_v20  ;;  %v5904_v15 = vpop.permute.xlu1 %5903  ;;  %6175 = vmax.xlane.f32.xlu1 %v12289_v12  ;;  %6173 = vmax.xlane.f32.xlu0 %v12292_v59  ;;  %v6108_v34 = vmul.f32 %v6773_v0, %v6059_v42  ;;  %v6110_v22 = vmul.f32 %v6777_v50, %v6061_v58  ;;  %v6129_v3 = vsub.f32 1.0, %v6784_v37 }
 0xb54   : > { %v5946_v43 = vadd.f32 %v12090_v48, %v5904_v15  ;;  %v6000_v13 = vadd.f32 %v5984_v11, %v12159_v36  ;;  %v5817_v49 = vadd.f32 %v13531_v28, %v5790_v5  ;;  %v5848_v2 = vmul.f32 %v11963_v14, %v5830_v40 }
 0xb55   : > { %v12306_v25 = vadd.f32 %v6140_v54, %v6108_v34  ;;  %v5868_v7 = vadd.f32 %v5852_v16, %v5734_v24  ;;  %v5986_v10 = vmul.f32 %v12105_v21, %v5968_v33  ;;  %v12325_v36 = vadd.f32 %v6142_v29, %v6110_v22 }
 0xb56   : > { %v5962_v0 = vmax.f32 %v5946_v43, 0.0  ;;  %v6125_v28 = vsub.f32 1.0, %v6776_v55  ;;  %v6780_v5 = vunpack.c.l.bf16 %v12313_v18  ;;  %v6016_v46 = vadd.f32 %v6000_v13, %v13572_v56  ;;  %v13593_v13 = vld [vmem:[#allocation80_spill] sm:$0xff] }
 0xb57   : > { %v5912_v57 = vpop.permute.xlu1 %5911  ;;  %6179 = vmax.xlane.f32.xlu1 %v12306_v25  ;;  %6177 = vmax.xlane.f32.xlu0 %v12309_v52  ;;  %v5833_v27 = vmax.f32 %v5817_v49, 0.0  ;;  %v6002_v30 = vadd.f32 %v5986_v10, %v5868_v7  ;;  %v12333_v53 = vmul.f32 -1e+30, %v6129_v3  ;;  %v5864_v6 = vadd.f32 %v5848_v2, %v13591_v51 }
 0xb58   : > { %v5980_v62 = vmul.f32 %v12105_v21, %v5962_v0  ;;  %v5948_v50 = vadd.f32 %v12090_v48, %v5912_v57  ;;  %v6141_v45 = vmul.f32 -1e+30, %v6125_v28  ;;  %v6127_v61 = vsub.f32 1.0, %v6780_v5  ;;  %v13592_v0 = vld [vmem:[#allocation196_spill] sm:$0xff] }
 0xb59   : > { %v6781_v47 = vunpack.c.h.bf16 %v12313_v18  ;;  %v6788_v31 = vunpack.c.l.bf16 %v12329_v4  ;;  %v5851_v42 = vmul.f32 %v11963_v14, %v5833_v27  ;;  %v6018_v58 = vadd.f32 %v6002_v30, %v13572_v56 }
 0xb5a   : > { %v5996_v17 = vadd.f32 %v5980_v62, %v13590_v39  ;;  %v5964_v35 = vmax.f32 %v5948_v50, 0.0  ;;  %vm6032_vm10 = vcmp.gt.f32.partialorder %v6016_v46, 0.0  ;;  %v6048_v15 = vmul.f32 0.01, %v6016_v46 }
 0xb5b   : > { %v5916_v54 = vpop.permute.xlu1 %5915  ;;  %6183 = vmax.xlane.f32.xlu1 %v12325_v36  ;;  %v6143_v43 = vmul.f32 -1e+30, %v6127_v61  ;;  %v6128_v9 = vsub.f32 1.0, %v6781_v47  ;;  %v6785_v24 = vunpack.c.h.bf16 %v12284_v44  ;;  %v5867_v49 = vadd.f32 %v5851_v42, %v13593_v13 }
 0xb5c   : > { %v6012_v23 = vadd.f32 %v5996_v17, %v13572_v56  ;;  %v5982_v19 = vmul.f32 %v12105_v21, %v5964_v35  ;;  %v5949_v1 = vadd.f32 %v12090_v48, %v5916_v54  ;;  %v6064_v3 = vsel %vm6032_vm10, %v6016_v46, %v6048_v15 }
 0xb5d   : > { %v6050_v2 = vmul.f32 0.01, %v6018_v58  ;;  %v6130_v39 = vsub.f32 1.0, %v6785_v24  ;;  %vm6034_vm12 = vcmp.gt.f32.partialorder %v6018_v58, 0.0  ;;  %v6131_v17 = vsub.f32 1.0, %v6788_v31 }
 0xb5e   : > { %v6044_v41 = vmul.f32 0.01, %v6012_v23  ;;  %v5998_v20 = vadd.f32 %v5982_v19, %v5864_v6  ;;  %v5965_v63 = vmax.f32 %v5949_v1, 0.0  ;;  %vm6028_vm9 = vcmp.gt.f32.partialorder %v6012_v23, 0.0 }
 0xb5f   : > { %v5924_v16 = vpop.permute.xlu1 %5923  ;;  %v6144_v46 = vmul.f32 -1e+30, %v6128_v9  ;;  %v6113_v51 = vmul.f32 %v6784_v37, %v6064_v3  ;;  %v6789_v6 = vunpack.c.h.bf16 %v12329_v4  ;;  %v6066_v19 = vsel %vm6034_vm12, %v6018_v58, %v6050_v2 }
 0xb60   : > { %v6014_v34 = vadd.f32 %v5998_v20, %v13572_v56  ;;  %v5983_v29 = vmul.f32 %v12105_v21, %v5965_v63  ;;  %v5951_v11 = vadd.f32 %v12090_v48, %v5924_v16  ;;  %v6060_v33 = vsel %vm6028_vm9, %v6012_v23, %v6044_v41 }
 0xb61   : > { %v6109_v40 = vmul.f32 %v6776_v55, %v6060_v33  ;;  %v6146_v20 = vmul.f32 -1e+30, %v6130_v39  ;;  %v12368_v44 = vadd.f32 %v12333_v53, %v6113_v51  ;;  %v6115_v37 = vmul.f32 %v6788_v31, %v6066_v19 }
 0xb62   : > { %v6046_v22 = vmul.f32 0.01, %v6014_v34  ;;  %v5999_v14 = vadd.f32 %v5983_v29, %v13592_v0  ;;  %v5967_v18 = vmax.f32 %v5951_v11, 0.0  ;;  %vm6030_vm11 = vcmp.gt.f32.partialorder %v6014_v34, 0.0 }
 0xb63   : > { %v5932_v7 = vpop.permute.xlu1 %5931  ;;  %v12349_v57 = vadd.f32 %v6141_v45, %v6109_v40  ;;  %v6147_v45 = vmul.f32 -1e+30, %v6131_v17  ;;  %v6132_v4 = vsub.f32 1.0, %v6789_v6 }
 0xb64   : > { %v6015_v62 = vadd.f32 %v5999_v14, %v13572_v56  ;;  %v5985_v55 = vmul.f32 %v12105_v21, %v5967_v18  ;;  %v5953_v50 = vadd.f32 %v12090_v48, %v5932_v7  ;;  %v6062_v10 = vsel %vm6030_vm11, %v6014_v34, %v6046_v22 }
 0xb65   : > { %6181 = vmax.xlane.f32.xlu0 %v12349_v57  ;;  %v6111_v28 = vmul.f32 %v6780_v5, %v6062_v10  ;;  %v12375_v16 = vadd.f32 %v6147_v45, %v6115_v37  ;;  %v6148_v15 = vmul.f32 -1e+30, %v6132_v4 }
 0xb66   : > { %v6047_v35 = vmul.f32 0.01, %v6015_v62  ;;  %v6001_v27 = vadd.f32 %v5985_v55, %v5867_v49  ;;  %v5969_v30 = vmax.f32 %v5953_v50, 0.0  ;;  %vm6031_vm13 = vcmp.gt.f32.partialorder %v6015_v62, 0.0 }
 0xb67   : > { %v12356_v54 = vadd.f32 %v6143_v43, %v6111_v28 }
 0xb68   : > { %v6017_v48 = vadd.f32 %v6001_v27, %v13572_v56  ;;  %v5987_v23 = vmul.f32 %v12105_v21, %v5969_v30  ;;  %v6063_v5 = vsel %vm6031_vm13, %v6015_v62, %v6047_v35 }
 0xb69   : > { %6185 = vmax.xlane.f32.xlu0 %v12356_v54  ;;  %v6112_v1 = vmul.f32 %v6781_v47, %v6063_v5 }
 0xb6a   : > { %v6049_v61 = vmul.f32 0.01, %v6017_v48  ;;  %v6003_v41 = vadd.f32 %v5987_v23, %v12184_v32  ;;  %vm6033_vm14 = vcmp.gt.f32.partialorder %v6017_v48, 0.0 }
 0xb6b   : > { %v12365_v63 = vadd.f32 %v6144_v46, %v6112_v1 }
 0xb6c   : > { %v6019_v21 = vadd.f32 %v6003_v41, %v13572_v56  ;;  %v6065_v42 = vsel %vm6033_vm14, %v6017_v48, %v6049_v61 }
 0xb6d   : > { %6187 = vmax.xlane.f32.xlu1 %v12365_v63  ;;  %6189 = vmax.xlane.f32.xlu0 %v12368_v44  ;;  %v6114_v47 = vmul.f32 %v6785_v24, %v6065_v42 }
 0xb6e   : > { %v6051_v58 = vmul.f32 0.01, %v6019_v21  ;;  %vm6035_vm15 = vcmp.gt.f32.partialorder %v6019_v21, 0.0 }
 0xb6f   : > { %v12373_v32 = vadd.f32 %v6146_v20, %v6114_v47 }
 0xb70   : > { %v6067_v34 = vsel %vm6035_vm15, %v6019_v21, %v6051_v58 }
 0xb71   : > { %6191 = vmax.xlane.f32.xlu1 %v12373_v32  ;;  %6193 = vmax.xlane.f32.xlu0 %v12375_v16  ;;  %v6116_v53 = vmul.f32 %v6789_v6, %v6067_v34 }
 0xb73   : > { %v12379_v56 = vadd.f32 %v6148_v15, %v6116_v53 }
 0xb75   : > { %6195 = vmax.xlane.f32.xlu1 %v12379_v56 }
 0xbaf   : > { %v6168_v33 = vpop.xlane.xlu1 %6167 }
 0xbd4   : > { %v6166_v31 = vpop.xlane.xlu0 %6165 }
 0xbd8   : > { %v6170_v29 = vpop.xlane.xlu0 %6169 }
 0xbdc   : > { %v6172_v11 = vpop.xlane.xlu0 %6171 }
 0xbe0   : > { %v6174_v40 = vpop.xlane.xlu0 %6173  ;;  %v6176_v43 = vpop.xlane.xlu1 %6175 }
 0xbe1   : > { %v6198_v49 = vmax.f32 %v6168_v33, %v6176_v43  ;;  %v6197_v3 = vmax.f32 %v6166_v31, %v6174_v40 }
 0xbe4   : > { %v6178_v9 = vpop.xlane.xlu0 %6177  ;;  %v6180_v24 = vpop.xlane.xlu1 %6179 }
 0xbe5   : > { %v6200_v2 = vmax.f32 %v6172_v11, %v6180_v24  ;;  %v6199_v62 = vmax.f32 %v6170_v29, %v6178_v9 }
 0xbe8   : > { %v6184_v0 = vpop.xlane.xlu1 %6183 }
 0xbe9   : > { %v6202_v55 = vmax.f32 %v6198_v49, %v6184_v0 }
 0xbf2   : > { %v6182_v22 = vpop.xlane.xlu0 %6181 }
 0xbf3   : > { %v6201_v10 = vmax.f32 %v6197_v3, %v6182_v22 }
 0xbf6   : > { %v6186_v14 = vpop.xlane.xlu0 %6185 }
 0xbf7   : > { %v6203_v28 = vmax.f32 %v6199_v62, %v6186_v14 }
 0xbfa   : > { %v6188_v18 = vpop.xlane.xlu1 %6187  ;;  %v6190_v13 = vpop.xlane.xlu0 %6189 }
 0xbfb   : > { %v6204_v39 = vmax.f32 %v6200_v2, %v6188_v18  ;;  %v6205_v27 = vmax.f32 %v6201_v10, %v6190_v13 }
 0xbfe   : > { %v6192_v7 = vpop.xlane.xlu1 %6191  ;;  %v6194_v50 = vpop.xlane.xlu0 %6193 }
 0xbff   : > { %v6206_v17 = vmax.f32 %v6202_v55, %v6192_v7  ;;  %v6207_v30 = vmax.f32 %v6203_v28, %v6194_v50 }
 0xc01   : > { %v6209_v51 = vmax.f32 %v6205_v27, %v6206_v17 }
 0xc02   : > { %v6196_v35 = vpop.xlane.xlu1 %6195 }
 0xc03   : > { %v6208_v46 = vmax.f32 %v6204_v39, %v6196_v35 }
 0xc05   : > { %v6210_v6 = vmax.f32 %v6207_v30, %v6208_v46 }
 0xc07   : > { %v6211_v48 = vmax.f32 %v6209_v51, %v6210_v6 }
 0xc09   : > { %v6212_v23 = vrot.slane %v6211_v48, 4 }
 0xc0b   : > { %v6213_v5 = vmax.f32 %v6211_v48, %v6212_v23 }
 0xc0d   : > { %v6214_v19 = vrot.slane %v6213_v5, 2 }
 0xc0f   : > { %v6215_v1 = vmax.f32 %v6213_v5, %v6214_v19 }
 0xc11   : > { %v6216_v45 = vrot.slane %v6215_v1, 1 }
 0xc13   : > { %v6217_v61 = vmax.f32 %v6215_v1, %v6216_v45 }
 0xc15   : > { %v6219_v41 = vsub.f32 %v12137_v38, %v6217_v61  ;;  %v6218_v20 = vsub.f32 %v12246_v26, %v6217_v61  ;;  %v6221_v37 = vsub.f32 %v12274_v8, %v6217_v61  ;;  %v6220_v4 = vsub.f32 %v12262_v60, %v6217_v61 }
 0xc16   : > { %v6223_v58 = vsub.f32 %v12289_v12, %v6217_v61  ;;  %v6222_v34 = vsub.f32 %v12292_v59, %v6217_v61  ;;  %v6225_v38 = vsub.f32 %v12306_v25, %v6217_v61  ;;  %v6224_v8 = vsub.f32 %v12309_v52, %v6217_v61 }
 0xc17   : > { %v6236_v21 = vmul.f32 1.442695, %v6219_v41  ;;  %v6234_v42 = vmul.f32 1.442695, %v6218_v20  ;;  %v6240_v47 = vmul.f32 1.442695, %v6221_v37  ;;  %v6227_v31 = vsub.f32 %v12325_v36, %v6217_v61 }
 0xc18   : > { %v6238_v15 = vmul.f32 1.442695, %v6220_v4  ;;  %v6244_v53 = vmul.f32 1.442695, %v6223_v58  ;;  %v6242_v26 = vmul.f32 1.442695, %v6222_v34  ;;  %v6226_v12 = vsub.f32 %v12349_v57, %v6217_v61 }
 0xc19   : > { %7578 = vpow2.f32 %v6236_v21  ;;  %v6248_v60 = vmul.f32 1.442695, %v6225_v38  ;;  %v6246_v29 = vmul.f32 1.442695, %v6224_v8  ;;  %v6252_v59 = vmul.f32 1.442695, %v6227_v31 }
 0xc1a   : > { %7580 = vpow2.f32 %v6234_v42  ;;  %v6229_v25 = vsub.f32 %v12365_v63, %v6217_v61  ;;  %v6250_v52 = vmul.f32 1.442695, %v6226_v12  ;;  %v6228_v36 = vsub.f32 %v12356_v54, %v6217_v61 }
 0xc1b   : > { %7582 = vpow2.f32 %v6240_v47  ;;  %v6231_v9 = vsub.f32 %v12373_v32, %v6217_v61  ;;  %v6230_v63 = vsub.f32 %v12368_v44, %v6217_v61  ;;  %v6233_v14 = vsub.f32 %v12379_v56, %v6217_v61 }
 0xc1c   : > { %7584 = vpow2.f32 %v6238_v15  ;;  %v6256_v57 = vmul.f32 1.442695, %v6229_v25  ;;  %v6254_v24 = vmul.f32 1.442695, %v6228_v36  ;;  %v6232_v32 = vsub.f32 %v12375_v16, %v6217_v61 }
 0xc1d   : > { %7586 = vpow2.f32 %v6244_v53  ;;  %v6260_v54 = vmul.f32 1.442695, %v6231_v9  ;;  %v6258_v18 = vmul.f32 1.442695, %v6230_v63  ;;  %v6264_v44 = vmul.f32 1.442695, %v6233_v14 }
 0xc1e   : > { %7588 = vpow2.f32 %v6242_v26  ;;  %v6262_v7 = vmul.f32 1.442695, %v6232_v32 }
 0xc1f   : > { %7590 = vpow2.f32 %v6248_v60 }
 0xc20   : > { %7592 = vpow2.f32 %v6246_v29 }
 0xc21   : > { %7594 = vpow2.f32 %v6252_v59 }
 0xc22   : > { %7596 = vpow2.f32 %v6250_v52 }
 0xc23   : > { %v12392_v11 = vpop.eup %7578  ;;  %7598 = vpow2.f32 %v6256_v57 }
 0xc24   : > { %v12394_v33 = vpop.eup %7580  ;;  %6268 = vadd.xlane.f32.xlu1 %v12392_v11  ;;  %7600 = vpow2.f32 %v6254_v24 }
 0xc25   : > { %6266 = vadd.xlane.f32.xlu0 %v12394_v33  ;;  %v12400_v40 = vpop.eup %7582  ;;  %7602 = vpow2.f32 %v6260_v54 }
 0xc26   : > { %v12402_v43 = vpop.eup %7584  ;;  %7604 = vpow2.f32 %v6258_v18 }
 0xc27   : > { %v12408_v22 = vpop.eup %7586  ;;  %7606 = vpow2.f32 %v6264_v44 }
 0xc28   : > { %6272 = vadd.xlane.f32.xlu1 %v12400_v40  ;;  %v12410_v0 = vpop.eup %7588  ;;  %7608 = vpow2.f32 %v6262_v7 }
 0xc29   : > { %6270 = vadd.xlane.f32.xlu0 %v12402_v43  ;;  %v12416_v13 = vpop.eup %7590 }
 0xc2a   : > { %v12418_v49 = vpop.eup %7592 }
 0xc2b   : > { %v12422_v3 = vpop.eup %7594 }
 0xc2c   : > { %6276 = vadd.xlane.f32.xlu1 %v12408_v22  ;;  %v12424_v2 = vpop.eup %7596 }
 0xc2d   : > { %6274 = vadd.xlane.f32.xlu0 %v12410_v0  ;;  %v12428_v16 = vpop.eup %7598 }
 0xc2e   : > { %v12430_v56 = vpop.eup %7600 }
 0xc2f   : > { %v12434_v62 = vpop.eup %7602 }
 0xc30   : > { %6280 = vadd.xlane.f32.xlu1 %v12416_v13  ;;  %v12436_v55 = vpop.eup %7604 }
 0xc31   : > { %6278 = vadd.xlane.f32.xlu0 %v12418_v49  ;;  %v12440_v50 = vpop.eup %7606 }
 0xc32   : > { %v12442_v10 = vpop.eup %7608 }
 0xc34   : > { %6284 = vadd.xlane.f32.xlu1 %v12422_v3 }
 0xc35   : > { %6282 = vadd.xlane.f32.xlu0 %v12424_v2 }
 0xc38   : > { %6288 = vadd.xlane.f32.xlu1 %v12428_v16 }
 0xc39   : > { %6286 = vadd.xlane.f32.xlu0 %v12430_v56 }
 0xc3c   : > { %6292 = vadd.xlane.f32.xlu1 %v12434_v62 }
 0xc3d   : > { %6290 = vadd.xlane.f32.xlu0 %v12436_v55 }
 0xc40   : > { %6296 = vadd.xlane.f32.xlu1 %v12440_v50 }
 0xc41   : > { %6294 = vadd.xlane.f32.xlu0 %v12442_v10 }
 0xcb1   : > { %v6269_v28 = vpop.xlane.xlu1 %6268 }
 0xcb2   : > { %v6267_v39 = vpop.xlane.xlu0 %6266 }
 0xcb3   : > { %v6298_v17 = vadd.f32 %v6269_v28, %v6267_v39 }
 0xcb5   : > { %v6273_v35 = vpop.xlane.xlu1 %6272 }
 0xcb6   : > { %v6271_v27 = vpop.xlane.xlu0 %6270 }
 0xcb7   : > { %v6299_v30 = vadd.f32 %v6298_v17, %v6271_v27 }
 0xcb9   : > { %v6277_v46 = vpop.xlane.xlu1 %6276  ;;  %v6300_v51 = vadd.f32 %v6299_v30, %v6273_v35 }
 0xcba   : > { %v6275_v6 = vpop.xlane.xlu0 %6274 }
 0xcbb   : > { %v6301_v48 = vadd.f32 %v6300_v51, %v6275_v6 }
 0xcbd   : > { %v6281_v23 = vpop.xlane.xlu1 %6280  ;;  %v6302_v5 = vadd.f32 %v6301_v48, %v6277_v46 }
 0xcbe   : > { %v6279_v19 = vpop.xlane.xlu0 %6278 }
 0xcbf   : > { %v6303_v1 = vadd.f32 %v6302_v5, %v6279_v19 }
 0xcc1   : > { %v6285_v45 = vpop.xlane.xlu1 %6284  ;;  %v6304_v61 = vadd.f32 %v6303_v1, %v6281_v23 }
 0xcc2   : > { %v6283_v41 = vpop.xlane.xlu0 %6282 }
 0xcc3   : > { %v6305_v20 = vadd.f32 %v6304_v61, %v6283_v41 }
 0xcc5   : > { %v6289_v37 = vpop.xlane.xlu1 %6288  ;;  %v6306_v4 = vadd.f32 %v6305_v20, %v6285_v45 }
 0xcc6   : > { %v6287_v21 = vpop.xlane.xlu0 %6286 }
 0xcc7   : > { %v6307_v42 = vadd.f32 %v6306_v4, %v6287_v21 }
 0xcc9   : > { %v6308_v47 = vadd.f32 %v6307_v42, %v6289_v37  ;;  %v6293_v58 = vpop.xlane.xlu1 %6292 }
 0xcca   : > { %v6291_v15 = vpop.xlane.xlu0 %6290 }
 0xccb   : > { %v6309_v34 = vadd.f32 %v6308_v47, %v6291_v15 }
 0xccd   : > { %v6310_v53 = vadd.f32 %v6309_v34, %v6293_v58  ;;  %v6297_v8 = vpop.xlane.xlu1 %6296 }
 0xcce   : > { %v6295_v38 = vpop.xlane.xlu0 %6294 }
 0xccf   : > { %v6311_v26 = vadd.f32 %v6310_v53, %v6295_v38 }
 0xcd1   : > { %v6312_v60 = vadd.f32 %v6311_v26, %v6297_v8 }
 0xcd3   : > { %v6313_v31 = vrot.slane %v6312_v60, 4 }
 0xcd5   : > { %v6314_v29 = vadd.f32 %v6313_v31, %v6312_v60 }
 0xcd7   : > { %v6315_v12 = vrot.slane %v6314_v29, 2 }
 0xcd9   : > { %v6316_v59 = vadd.f32 %v6315_v12, %v6314_v29 }
 0xcdb   : > { %v6317_v25 = vrot.slane %v6316_v59, 1 }
 0xcdd   : > { %v6318_v52 = vadd.f32 %v6317_v25, %v6316_v59 }
 0xcdf   : > { %7610 = vrcp.f32 %v6318_v52 }
 0xce9   : > { %v7611_v36 = vpop.eup %7610 }
 0xcea   : > { %v6321_v57 = vmul.f32 %v7611_v36, %v12394_v33  ;;  %v6322_v9 = vmul.f32 %v7611_v36, %v12392_v11  ;;  %v6323_v24 = vmul.f32 %v7611_v36, %v12402_v43  ;;  %v6324_v63 = vmul.f32 %v7611_v36, %v12400_v40 }
 0xceb   : > { %v6325_v54 = vmul.f32 %v7611_v36, %v12410_v0  ;;  %v6326_v14 = vmul.f32 %v7611_v36, %v12408_v22  ;;  %v6327_v18 = vmul.f32 %v7611_v36, %v12418_v49  ;;  %v6328_v33 = vmul.f32 %v7611_v36, %v12416_v13 }
 0xcec   : > { %7028 = vmatprep.mubr.f32.mxu0 %v6321_v57  ;;  %v6329_v11 = vmul.f32 %v7611_v36, %v12424_v2  ;;  %v6330_v43 = vmul.f32 %v7611_v36, %v12422_v3  ;;  %v6331_v40 = vmul.f32 %v7611_v36, %v12430_v56  ;;  %v6332_v0 = vmul.f32 %v7611_v36, %v12428_v16 }
 0xced   : > { %7029 = vmatmul.mubr.f32.vlgmr.msra.gmra.mrb[48].mxu0 %v6322_v9  ;;  %v6333_v22 = vmul.f32 %v7611_v36, %v12436_v55  ;;  %v6334_v32 = vmul.f32 %v7611_v36, %v12434_v62  ;;  %v6335_v13 = vmul.f32 %v7611_v36, %v12442_v10  ;;  %v6336_v49 = vmul.f32 %v7611_v36, %v12440_v50 }
 0xcee   : > { %7031 = vmatprep.mubr.f32.mxu0 %v6323_v24 }
 0xcf1   : > { %7032 = vmatmul.mubr.f32.gmra.mrb[50].mxu0 %v6324_v63 }
 0xcf2   : > { %7034 = vmatprep.mubr.f32.mxu0 %v6325_v54 }
 0xcf5   : > { %7035 = vmatmul.mubr.f32.gmra.mrb[52].mxu0 %v6326_v14 }
 0xcf6   : > { %7037 = vmatprep.mubr.f32.mxu0 %v6327_v18 }
 0xcf9   : > { %7038 = vmatmul.mubr.f32.gmra.mrb[54].mxu0 %v6328_v33 }
 0xcfa   : > { %7040 = vmatprep.mubr.f32.mxu0 %v6329_v11 }
 0xcfd   : > { %7041 = vmatmul.mubr.f32.gmra.mrb[56].mxu0 %v6330_v43 }
 0xcfe   : > { %7043 = vmatprep.mubr.f32.mxu0 %v6331_v40 }
 0xd01   : > { %7044 = vmatmul.mubr.f32.gmra.mrb[58].mxu0 %v6332_v0 }
 0xd02   : > { %7046 = vmatprep.mubr.f32.mxu0 %v6333_v22 }
 0xd05   : > { %7047 = vmatmul.mubr.f32.gmra.mrb[60].mxu0 %v6334_v32 }
 0xd06   : > { %7049 = vmatprep.mubr.f32.mxu0 %v6335_v13 }
 0xd09   : > { %7050 = vmatmul.mubr.f32.gmra.mrb[62].mxu0 %v6336_v49 }
 0xdc0   : > { %v7030_v44 = vpop.f32.mrb[48].mxu0 }
 0xdc1   : > { %v6403_v7 = vpop.f32.mrb[49].mxu0  ;;  %6486 = vst [vmem:[#allocation14 + $0x88] sm:$0xff] (!%p6702_p8), %v7030_v44 }
 0xdc2   : > { %6485 = vst [vmem:[#allocation14 + $0x80] sm:$0xff] (!%p6702_p8), %v6403_v7 }
 0xdc4   : > { %v7033_v3 = vpop.f32.mrb[50].mxu0 }
 0xdc5   : > { %v6413_v2 = vpop.f32.mrb[51].mxu0  ;;  %6488 = vst [vmem:[#allocation14 + $0x98] sm:$0xff] (!%p6702_p8), %v7033_v3 }
 0xdc6   : > { %6487 = vst [vmem:[#allocation14 + $0x90] sm:$0xff] (!%p6702_p8), %v6413_v2 }
 0xdc8   : > { %v7036_v56 = vpop.f32.mrb[52].mxu0 }
 0xdc9   : > { %v6423_v28 = vpop.f32.mrb[53].mxu0  ;;  %6490 = vst [vmem:[#allocation14 + $0xa8] sm:$0xff] (!%p6702_p8), %v7036_v56 }
 0xdca   : > { %6489 = vst [vmem:[#allocation14 + $0xa0] sm:$0xff] (!%p6702_p8), %v6423_v28 }
 0xdcc   : > { %v7039_v16 = vpop.f32.mrb[54].mxu0 }
 0xdcd   : > { %v6433_v39 = vpop.f32.mrb[55].mxu0  ;;  %6492 = vst [vmem:[#allocation14 + $0xb8] sm:$0xff] (!%p6702_p8), %v7039_v16 }
 0xdce   : > { %6491 = vst [vmem:[#allocation14 + $0xb0] sm:$0xff] (!%p6702_p8), %v6433_v39 }
 0xdd0   : > { %v7042_v55 = vpop.f32.mrb[56].mxu0 }
 0xdd1   : > { %v6443_v17 = vpop.f32.mrb[57].mxu0  ;;  %6494 = vst [vmem:[#allocation14 + $0xc8] sm:$0xff] (!%p6702_p8), %v7042_v55 }
 0xdd2   : > { %6493 = vst [vmem:[#allocation14 + $0xc0] sm:$0xff] (!%p6702_p8), %v6443_v17 }
 0xdd4   : > { %v7045_v35 = vpop.f32.mrb[58].mxu0 }
 0xdd5   : > { %v6453_v27 = vpop.f32.mrb[59].mxu0  ;;  %6496 = vst [vmem:[#allocation14 + $0xd8] sm:$0xff] (!%p6702_p8), %v7045_v35 }
 0xdd6   : > { %6495 = vst [vmem:[#allocation14 + $0xd0] sm:$0xff] (!%p6702_p8), %v6453_v27 }
 0xdd7   : > { %6484 = sbr.rel (%p6702_p8) target bundleno = 3551 (0xddf), region = 88 }
 0xdd8   : > { %v7048_v62 = vpop.f32.mrb[60].mxu0 }
 0xdd9   : > { %v6463_v30 = vpop.f32.mrb[61].mxu0  ;;  %6498 = vst [vmem:[#allocation14 + $0xe8] sm:$0xff] (!%p6702_p8), %v7048_v62 }
 0xdda   : > { %6497 = vst [vmem:[#allocation14 + $0xe0] sm:$0xff] (!%p6702_p8), %v6463_v30 }
 0xddc   : > { %v7051_v10 = vpop.f32.mrb[62].mxu0 }
 0xddd   : > { %v6473_v46 = vpop.f32.mrb[63].mxu0  ;;  %6500 = vst [vmem:[#allocation14 + $0xf8] sm:$0xff] (!%p6702_p8), %v7051_v10 }
 0xdde   : > { %6499 = vst [vmem:[#allocation14 + $0xf0] sm:$0xff] %v6473_v46 }
 0xddf PF: > { %6503 = sbr.rel (%p6703_p4) target bundleno = 3558 (0xde6), region = 92  ;;  %v6504_v50 = vpack.c.bf16 (!%p6703_p4), %v7030_v44, %v6403_v7  ;;  %v6505_v51 = vpack.c.bf16 (!%p6703_p4), %v7033_v3, %v6413_v2  ;;  %v6506_v6 = vpack.c.bf16 (!%p6703_p4), %v7036_v56, %v6423_v28  ;;  %v6507_v48 = vpack.c.bf16 (!%p6703_p4), %v7039_v16, %v6433_v39 }
 0xde0   : > { %v6508_v23 = vpack.c.bf16 (!%p6703_p4), %v7042_v55, %v6443_v17  ;;  %v6509_v5 = vpack.c.bf16 (!%p6703_p4), %v7045_v35, %v6453_v27  ;;  %v6510_v19 = vpack.c.bf16 (!%p6703_p4), %v7048_v62, %v6463_v30  ;;  %v6511_v1 = vpack.c.bf16 (!%p6703_p4), %v7051_v10, %v6473_v46 }
 0xde1   : > { %6512 = vst [vmem:[#allocation2 + $0x40] sm:$0xff] (!%p6703_p4), %v6504_v50  ;;  %6513 = vst [vmem:[#allocation2 + $0x48] sm:$0xff] (!%p6703_p4), %v6505_v51 }
 0xde2   : > { %6514 = vst [vmem:[#allocation2 + $0x50] sm:$0xff] (!%p6703_p4), %v6506_v6  ;;  %6515 = vst [vmem:[#allocation2 + $0x58] sm:$0xff] (!%p6703_p4), %v6507_v48 }
 0xde3   : > { %6516 = vst [vmem:[#allocation2 + $0x60] sm:$0xff] (!%p6703_p4), %v6508_v23  ;;  %6517 = vst [vmem:[#allocation2 + $0x68] sm:$0xff] (!%p6703_p4), %v6509_v5 }
 0xde4   : > { %6518 = vst [vmem:[#allocation2 + $0x70] sm:$0xff] (!%p6703_p4), %v6510_v19  ;;  %6519 = vst [vmem:[#allocation2 + $0x78] sm:$0xff] (!%p6703_p4), %v6511_v1 }
 0xde6 PF: > { %s13594_s29 = sadd.s32 4294967295, %s7807_s9   ;;  %s7834_s26 = smov [#allocation14]  }
 0xde7   : > { %p12468_p7 = scmp.eq.s32.totalorder %s13594_s29, 1  ;;  %s6529_s27 = sshll.u32 %s7834_s26, 4  ;;  %s6530_s27 = int_to_ptr.vmem [resolvable:$true] %s6529_s27 }
 0xde8   : > { %s7739_s22 = scalar_lea.vmem %s6530_s27, 4096  ;;  %p7746_p10 = scmp.lt.s32.totalorder %s6530_s27, %s6530_s27 }
 0xde9   : > { %p7740_p9 = scmp.ne.s32.totalorder %s6530_s27, %s7739_s22  ;;  %p7747_p11 = scmp.lt.s32.totalorder %s7739_s22, %s7739_s22 }
 0xdeb   : > { %p7741_p3 = pnand %p7740_p9, %p12468_p7  ;;  %p7748_p12 = por %p7747_p11, %p7746_p10 }
 0xded   : > { %p7742_p2 = pneg %p7741_p3 }
 0xdef   : > { %p7749_p13 = pnand %p7748_p12, %p7742_p2 }
 0xdf1   : > { %7752 = shalt.err (!%p7749_p13)
}
 0xdf2   : > { %s7753_s18 = scalar_lea.hbm %s12511_s8, 4096 }
 0xdf3   : > { %p7754_p6 = scmp.ne.s32.totalorder %s12511_s8, %s7753_s18  ;;  %p7759_p5 = scmp.lt.u32.totalorder %s7753_s18, %s12511_s8 }
 0xdf5   : > { %p7755_p0 = pnand %p7754_p6, %p12468_p7 }
 0xdf7   : > { %p7756_p1 = pneg %p7755_p0 }
 0xdf9   : > { %p7761_p8 = pnand %p7759_p5, %p7756_p1 }
 0xdfb   : > { %7764 = shalt.err (!%p7761_p8)
}
 0xdfc   : > { %s7835_s17 = smov 128   ;;  %s7836_s19 = smov 8  }
 0xdfd   : > { %7137 = dma.vmem_to_hbm [thread:$0]  (%p12468_p7), %s6530_s27, 4096, %s12511_s8, [#allocation6], %s7835_s17, %s7835_s17, %s7836_s19  }
 0xdfe   : > { %7794 = dma.done.wait (%p12468_p7), [#allocation6], 4096  }
 0xdff   : > { %7796 = vsyncadd (%p12468_p7), [#allocation6], 4294963200 }
 0xe00 PF: > { %s24_s9 = sadd.s32 1, %s7807_s9   ;;  %s13596_s29 = smov %s7803_s30 }
 0xe01   : > { %p21_p4 = scmp.ge.s32.totalorder %s24_s9, 4   ;;  %s13597_s30 = smov %s13599_s15 }
 0xe03   :  { %23 = sbr.rel (!%p21_p4) target bundleno = 8 (0x8), region = 124 }
 0xe0a   :  { %6545 = vsyncpa [#allocation5], 1 }
 0xe0b   :  { %6547 = vsyncpa [#allocation5 + $0x1], 1 }
 0xe0c   :  { %6548 = vsyncpa [#allocation9], 1 }
 0xe0d   :  { %6549 = vsyncpa [#allocation12], 1 }
 0xe0e   :  { %6550 = vsyncpa [#allocation6], 1 }
 0xe0f   :  { %6552 = vsyncpa [#allocation6 + $0x1], 1 }
 0xe10   :  { %6553 = vsyncpa [#allocation7], 1 }
 0xe11   :  { %6555 = vsyncpa [#allocation7 + $0x1], 1 }

</bundles_post_ra>
